<compile_context>
chip_gen: v7x
topology: tpu7x:2x2x1
jax: 0.10.0
libtpu: 0.0.40
codegen_flags: <defaults>
</compile_context>

<pallas_src>
import functools

import jax
import jax.numpy as jnp
from jax.experimental import pallas as pl
from jax.experimental.pallas import tpu as pltpu

LANES = 128       # channel padding target (TPU lane width)
ROW_ALIGN = 16    # width padding target (bf16 sublane-packed tile height)


def _conv3x3_rows(get_patch, w_ref):
    """3x3 conv over row-flattened patches.

    get_patch(kh) -> (M, Cp) bf16: input rows kh..kh+H-1 flattened over (H, Wp),
    channels on lanes.  w_ref[kw] is (3*Cp, Cp) with K ordered kh-major x channel.
    Returns an f32 (M, Cp) accumulator on the padded-width grid; columns outside
    [1, W] hold don't-care values (masked or cropped by the caller).
    """
    # Fold the 3 kh taps into the contraction dim: one lane-aligned concat, K = 3*Cp.
    x_cat = jnp.concatenate([get_patch(0), get_patch(1), get_patch(2)], axis=1)
    z0, z1, z2 = (jnp.dot(x_cat, w_ref[kw, :, :], preferred_element_type=jnp.float32)
                  for kw in range(3))
    # Width-tap combine: acc[r] = z0[r-1] + z1[r] + z2[r+1].  The single wrap/filler
    # rows only ever land in padded (discarded) columns of the padded-width grid.
    # (pltpu.roll(z, +/-1, axis=0) is the XLU-native alternative to these concats.)
    z0_down = jnp.concatenate([z0[:1], z0[:-1]], axis=0)
    z2_up = jnp.concatenate([z2[1:], z2[-1:]], axis=0)
    return z0_down + z1 + z2_up


def basic_block_kernel(xp_ref, w1_ref, w2_ref, s1_ref, b1_ref, s2_ref, b2_ref,
                       out_ref, mid_ref, *, valid_width):
    """One batch image per grid step.

    xp_ref : (1, H+2, Wp, Cp) bf16  zero-padded input (spatial + channel padding)
    w*_ref : (3, 3*Cp, Cp)    bf16  conv taps, [kw, kh*Cp + cin, cout]
    s*/b*  : (1, Cp)          f32   folded BN scale / bias
    out_ref: (1, H, Wp, Cp)   f32   padded-width, lane-dense output
    mid_ref: (H+2, Wp, Cp)    bf16  VMEM scratch: zero-padded conv1 output
    """
    _, Hp, Wp, Cp = xp_ref.shape
    H = Hp - 2
    M = H * Wp
    W = valid_width

    # ---- conv1 (3x3 / stride 1 / pad 1) + folded BN1 + ReLU ----
    acc1 = _conv3x3_rows(
        lambda kh: xp_ref[0, kh:kh + H, :, :].reshape(M, Cp), w1_ref)
    y1 = jnp.maximum(acc1 * s1_ref[...] + b1_ref[...], 0.0)

    # Zero the width-pad columns so conv2 sees proper zero padding, then write the
    # H-padded intermediate exactly once (2 tiny border-row stores + 1 interior store).
    col = jax.lax.broadcasted_iota(jnp.int32, (H, Wp, Cp), 1)
    y1 = jnp.where((col >= 1) & (col <= W), y1.reshape(H, Wp, Cp), 0.0)
    mid_ref[0, :, :] = jnp.zeros((Wp, Cp), mid_ref.dtype)
    mid_ref[Hp - 1, :, :] = jnp.zeros((Wp, Cp), mid_ref.dtype)
    mid_ref[1:Hp - 1, :, :] = y1.astype(mid_ref.dtype)

    # ---- conv2 + folded BN2 + residual add + ReLU ----
    acc2 = _conv3x3_rows(
        lambda kh: mid_ref[kh:kh + H, :, :].reshape(M, Cp), w2_ref)
    y2 = acc2 * s2_ref[...] + b2_ref[...]
    res = xp_ref[0, 1:Hp - 1, :, :].reshape(M, Cp).astype(jnp.float32)
    out = jnp.maximum(y2 + res, 0.0)
    out_ref[0, :, :, :] = out.reshape(H, Wp, Cp).astype(out_ref.dtype)


def fold_bn(gamma, beta, running_mean, running_var, eps=1e-5):
    scale = gamma * jax.lax.rsqrt(running_var + eps)
    bias = beta - running_mean * scale
    return (scale.reshape(1, -1).astype(jnp.float32),
            bias.reshape(1, -1).astype(jnp.float32))


@jax.jit
def basic_block_forward(x_nchw, w1_oihw, w2_oihw, s1, b1, s2, b2):
    """x_nchw: (N, C, H, W) f32; conv weights (Cout, Cin, 3, 3); s*/b*: (1, C) folded BN."""
    N, C, H, W = x_nchw.shape
    Cout = w1_oihw.shape[0]
    assert w1_oihw.shape == (Cout, C, 3, 3) and w2_oihw.shape == (Cout, Cout, 3, 3)
    assert Cout == C, "BasicBlock with stride=1 / no downsample needs inplanes == planes"

    Cp = ((C + LANES - 1) // LANES) * LANES
    Hp = H + 2
    Wp = ((W + 2 + ROW_ALIGN - 1) // ROW_ALIGN) * ROW_ALIGN
    M = H * Wp

    # NCHW -> NHWC, bf16, zero-pad: 1 row top/bottom, 1 col left, (Wp-W-1) right,
    # channels up to the lane width.  XLA fuses transpose+pad into one HBM pass.
    # TODO(synk): at large sizes do this padding in-kernel to save the extra HBM copy.
    x = jnp.transpose(x_nchw, (0, 2, 3, 1)).astype(jnp.bfloat16)
    xp = jnp.pad(x, ((0, 0), (1, 1), (1, Wp - W - 1), (0, Cp - C)))

    def prep_w(w):
        # (Cout, Cin, 3, 3) -> (kw, kh*Cp + cin, cout) bf16 with kh folded into K.
        w = jnp.transpose(w, (3, 2, 1, 0))                      # (kw, kh, Cin, Cout)
        w = jnp.pad(w, ((0, 0), (0, 0), (0, Cp - C), (0, Cp - Cout)))
        return w.reshape(3, 3 * Cp, Cp).astype(jnp.bfloat16)

    w1 = prep_w(w1_oihw)
    w2 = prep_w(w2_oihw)

    def prep_sb(v):
        return jnp.pad(v.astype(jnp.float32), ((0, 0), (0, Cp - C)))

    s1p, b1p, s2p, b2p = prep_sb(s1), prep_sb(b1), prep_sb(s2), prep_sb(b2)

    flops = 2 * 2 * 3 * N * M * (3 * Cp) * Cp          # 2 convs x 3 dots x 2*M*K*N
    bytes_accessed = (xp.size * 2 + (w1.size + w2.size) * 2
                      + (s1p.size + b1p.size + s2p.size + b2p.size) * 4
                      + N * H * Wp * Cp * 4)

    # Grid over batch: one image per step, pipelined; "parallel" lets v7x's two
    # TensorCores split the batch.  Weights / BN vectors keep a constant block index
    # so they stay VMEM-resident.
    # TODO(synk): for large H*W additionally tile over H with a 2-row halo so the
    # per-step footprint stays inside v7x's 64 MiB VMEM.
    out_full = pl.pallas_call(
        functools.partial(basic_block_kernel, valid_width=W),
        out_shape=jax.ShapeDtypeStruct((N, H, Wp, Cp), jnp.float32),
        grid_spec=pltpu.PrefetchScalarGridSpec(
            num_scalar_prefetch=0,
            grid=(N,),
            in_specs=[
                pl.BlockSpec((1, Hp, Wp, Cp), lambda n: (n, 0, 0, 0)),
                pl.BlockSpec((3, 3 * Cp, Cp), lambda n: (0, 0, 0)),
                pl.BlockSpec((3, 3 * Cp, Cp), lambda n: (0, 0, 0)),
                pl.BlockSpec((1, Cp), lambda n: (0, 0)),
                pl.BlockSpec((1, Cp), lambda n: (0, 0)),
                pl.BlockSpec((1, Cp), lambda n: (0, 0)),
                pl.BlockSpec((1, Cp), lambda n: (0, 0)),
            ],
            out_specs=pl.BlockSpec((1, H, Wp, Cp), lambda n: (n, 0, 0, 0)),
            scratch_shapes=[pltpu.VMEM((Hp, Wp, Cp), jnp.bfloat16)],
        ),
        compiler_params=pltpu.CompilerParams(
            dimension_semantics=("parallel",),
            vmem_limit_bytes=32 * 1024 * 1024,
        ),
        cost_estimate=pl.CostEstimate(
            flops=flops, transcendentals=0, bytes_accessed=bytes_accessed),
    )(xp, w1, w2, s1p, b1p, s2p, b2p)

    # Crop the spatial/channel padding and go back to NCHW.
    out = out_full[:, :, 1:W + 1, :C]
    return jnp.transpose(out, (0, 3, 1, 2))


def reference_forward(x_nchw, w1_oihw, w2_oihw, s1, b1, s2, b2):
    """Pure-JAX reference (lax.conv) for the correctness check."""
    dn = jax.lax.conv_dimension_numbers(x_nchw.shape, w1_oihw.shape,
                                        ('NCHW', 'OIHW', 'NCHW'))

    def conv(x, w):
        return jax.lax.conv_general_dilated(x, w, (1, 1), ((1, 1), (1, 1)),
                                            dimension_numbers=dn)

    def affine(x, s, b):
        return x * s.reshape(1, -1, 1, 1) + b.reshape(1, -1, 1, 1)

    out = jnp.maximum(affine(conv(x_nchw, w1_oihw), s1, b1), 0.0)
    out = affine(conv(out, w2_oihw), s2, b2)
    return jnp.maximum(out + x_nchw, 0.0)


if __name__ == "__main__":
    # Small shapes: inplanes == planes (stride=1, downsample=None)
    N, C, H, W = 2, 4, 16, 16
    planes = C

    key = jax.random.PRNGKey(0)
    k1, k2, k3, k4, k5, k6, k7, k8 = jax.random.split(key, 8)

    x = jax.random.normal(k1, (N, C, H, W), dtype=jnp.float32)

    # conv weights (Cout, Cin, 3, 3), He-style scaling
    w1 = jax.random.normal(k2, (planes, C, 3, 3), jnp.float32) * (2.0 / (9 * C)) ** 0.5
    w2 = jax.random.normal(k3, (planes, planes, 3, 3), jnp.float32) * (2.0 / (9 * planes)) ** 0.5

    # BN params (deterministic, non-trivial), eval-mode running stats
    gamma1 = 1.0 + 0.1 * jax.random.normal(k4, (planes,), jnp.float32)
    beta1 = 0.1 * jax.random.normal(k5, (planes,), jnp.float32)
    mean1 = 0.05 * jax.random.normal(k6, (planes,), jnp.float32)
    var1 = 0.9 + 0.2 * jax.random.uniform(k6, (planes,), jnp.float32)

    gamma2 = 1.0 + 0.1 * jax.random.normal(k7, (planes,), jnp.float32)
    beta2 = 0.1 * jax.random.normal(k8, (planes,), jnp.float32)
    mean2 = 0.05 * jax.random.normal(k8, (planes,), jnp.float32)
    var2 = 0.9 + 0.2 * jax.random.uniform(k7, (planes,), jnp.float32)

    s1, b1 = fold_bn(gamma1, beta1, mean1, var1)
    s2, b2 = fold_bn(gamma2, beta2, mean2, var2)

    out = basic_block_forward(x, w1, w2, s1, b1, s2, b2)
    out = jax.block_until_ready(out)

    # Reference on the same bf16-rounded operands the kernel consumes (MXU path is
    # bf16 x bf16 -> f32; only the bf16 intermediate differs slightly).
    bf = lambda a: a.astype(jnp.bfloat16).astype(jnp.float32)
    ref = reference_forward(bf(x), bf(w1), bf(w2),
                            s1.reshape(-1), b1.reshape(-1),
                            s2.reshape(-1), b2.reshape(-1))
    ref = jax.block_until_ready(ref)

    assert out.shape == (N, C, H, W)
    max_err = float(jnp.max(jnp.abs(out - ref)))
    assert jnp.allclose(out, ref, atol=3e-2, rtol=3e-2), max_err

    print("KERNEL_OK")
</pallas_src>

<mosaic_0001>
module attributes {stable_mosaic.version = 11 : i64} {
  func.func @basic_block_kernel(%arg0: i32, %arg1: memref<1x18x32x128xbf16, #tpu.memory_space<vmem>>, %arg2: memref<3x384x128xbf16, #tpu.memory_space<vmem>>, %arg3: memref<3x384x128xbf16, #tpu.memory_space<vmem>>, %arg4: memref<1x128xf32, #tpu.memory_space<vmem>>, %arg5: memref<1x128xf32, #tpu.memory_space<vmem>>, %arg6: memref<1x128xf32, #tpu.memory_space<vmem>>, %arg7: memref<1x128xf32, #tpu.memory_space<vmem>>, %arg8: memref<1x16x32x128xf32, #tpu.memory_space<vmem>>, %arg9: memref<18x32x128xbf16, #tpu.memory_space<vmem>>) attributes {dimension_semantics = [#tpu.dimension_semantics<parallel>], iteration_bounds = array<i64: 2>, scalar_prefetch = 0 : i64, scratch_operands = 1 : i64, tpu.core_type = #tpu.core_type<tc>, window_params = [{transform_indices = @transform_0, window_bounds = array<i64: 1, 18, 32, 128>}, {pipeline_mode = #tpu.pipeline_mode<synchronous>, transform_indices = @transform_1, window_bounds = array<i64: 3, 384, 128>}, {pipeline_mode = #tpu.pipeline_mode<synchronous>, transform_indices = @transform_2, window_bounds = array<i64: 3, 384, 128>}, {pipeline_mode = #tpu.pipeline_mode<synchronous>, transform_indices = @transform_3, window_bounds = array<i64: 1, 128>}, {pipeline_mode = #tpu.pipeline_mode<synchronous>, transform_indices = @transform_4, window_bounds = array<i64: 1, 128>}, {pipeline_mode = #tpu.pipeline_mode<synchronous>, transform_indices = @transform_5, window_bounds = array<i64: 1, 128>}, {pipeline_mode = #tpu.pipeline_mode<synchronous>, transform_indices = @transform_6, window_bounds = array<i64: 1, 128>}, {transform_indices = @transform_7, window_bounds = array<i64: 1, 16, 32, 128>}]} {
    %c0 = arith.constant 0 : index
    %c0_0 = arith.constant 0 : index
    %c0_1 = arith.constant 0 : index
    %c0_2 = arith.constant 0 : index
    %0 = vector.load %arg1[%c0, %c0_0, %c0_1, %c0_2] : memref<1x18x32x128xbf16, #tpu.memory_space<vmem>>, vector<1x16x32x128xbf16>
    %1 = vector.shape_cast %0 : vector<1x16x32x128xbf16> to vector<16x32x128xbf16>
    %2 = vector.shape_cast %1 : vector<16x32x128xbf16> to vector<512x128xbf16>
    %c0_3 = arith.constant 0 : index
    %c1 = arith.constant 1 : index
    %c0_4 = arith.constant 0 : index
    %c0_5 = arith.constant 0 : index
    %3 = vector.load %arg1[%c0_3, %c1, %c0_4, %c0_5] : memref<1x18x32x128xbf16, #tpu.memory_space<vmem>>, vector<1x16x32x128xbf16>
    %4 = vector.shape_cast %3 : vector<1x16x32x128xbf16> to vector<16x32x128xbf16>
    %5 = vector.shape_cast %4 : vector<16x32x128xbf16> to vector<512x128xbf16>
    %c0_6 = arith.constant 0 : index
    %c2 = arith.constant 2 : index
    %c0_7 = arith.constant 0 : index
    %c0_8 = arith.constant 0 : index
    %6 = vector.load %arg1[%c0_6, %c2, %c0_7, %c0_8] : memref<1x18x32x128xbf16, #tpu.memory_space<vmem>>, vector<1x16x32x128xbf16>
    %7 = vector.shape_cast %6 : vector<1x16x32x128xbf16> to vector<16x32x128xbf16>
    %8 = vector.shape_cast %7 : vector<16x32x128xbf16> to vector<512x128xbf16>
    %9 = tpu.concatenate %2, %5, %8 in 1 : vector<512x128xbf16>, vector<512x128xbf16>, vector<512x128xbf16> -> vector<512x384xbf16>
    %c0_9 = arith.constant 0 : index
    %c0_10 = arith.constant 0 : index
    %c0_11 = arith.constant 0 : index
    %10 = vector.load %arg2[%c0_9, %c0_10, %c0_11] : memref<3x384x128xbf16, #tpu.memory_space<vmem>>, vector<1x384x128xbf16>
    %11 = vector.shape_cast %10 : vector<1x384x128xbf16> to vector<384x128xbf16>
    %cst = arith.constant dense<0.000000e+00> : vector<512x128xf32>
    %12 = tpu.matmul %9, %11, %cst {dimension_numbers = #tpu.dot_dimension_numbers<[1], [0], [0], [1], [0, 0, 1, 1], [], []>} : vector<512x384xbf16>, vector<384x128xbf16>, vector<512x128xf32> -> vector<512x128xf32>
    %c1_12 = arith.constant 1 : index
    %c0_13 = arith.constant 0 : index
    %c0_14 = arith.constant 0 : index
    %13 = vector.load %arg2[%c1_12, %c0_13, %c0_14] : memref<3x384x128xbf16, #tpu.memory_space<vmem>>, vector<1x384x128xbf16>
    %14 = vector.shape_cast %13 : vector<1x384x128xbf16> to vector<384x128xbf16>
    %cst_15 = arith.constant dense<0.000000e+00> : vector<512x128xf32>
    %15 = tpu.matmul %9, %14, %cst_15 {dimension_numbers = #tpu.dot_dimension_numbers<[1], [0], [0], [1], [0, 0, 1, 1], [], []>} : vector<512x384xbf16>, vector<384x128xbf16>, vector<512x128xf32> -> vector<512x128xf32>
    %c2_16 = arith.constant 2 : index
    %c0_17 = arith.constant 0 : index
    %c0_18 = arith.constant 0 : index
    %16 = vector.load %arg2[%c2_16, %c0_17, %c0_18] : memref<3x384x128xbf16, #tpu.memory_space<vmem>>, vector<1x384x128xbf16>
    %17 = vector.shape_cast %16 : vector<1x384x128xbf16> to vector<384x128xbf16>
    %cst_19 = arith.constant dense<0.000000e+00> : vector<512x128xf32>
    %18 = tpu.matmul %9, %17, %cst_19 {dimension_numbers = #tpu.dot_dimension_numbers<[1], [0], [0], [1], [0, 0, 1, 1], [], []>} : vector<512x384xbf16>, vector<384x128xbf16>, vector<512x128xf32> -> vector<512x128xf32>
    %19 = vector.extract_strided_slice %12 {offsets = [0, 0], sizes = [1, 128], strides = [1, 1]} : vector<512x128xf32> to vector<1x128xf32>
    %20 = vector.extract_strided_slice %12 {offsets = [0, 0], sizes = [511, 128], strides = [1, 1]} : vector<512x128xf32> to vector<511x128xf32>
    %21 = tpu.concatenate %19, %20 in 0 : vector<1x128xf32>, vector<511x128xf32> -> vector<512x128xf32>
    %22 = vector.extract_strided_slice %18 {offsets = [1, 0], sizes = [511, 128], strides = [1, 1]} : vector<512x128xf32> to vector<511x128xf32>
    %23 = vector.extract_strided_slice %18 {offsets = [511, 0], sizes = [1, 128], strides = [1, 1]} : vector<512x128xf32> to vector<1x128xf32>
    %24 = tpu.concatenate %22, %23 in 0 : vector<511x128xf32>, vector<1x128xf32> -> vector<512x128xf32>
    %25 = arith.addf %21, %15 : vector<512x128xf32>
    %26 = arith.addf %25, %24 : vector<512x128xf32>
    %c0_20 = arith.constant 0 : index
    %c0_21 = arith.constant 0 : index
    %27 = vector.load %arg4[%c0_20, %c0_21] : memref<1x128xf32, #tpu.memory_space<vmem>>, vector<1x128xf32>
    %28 = vector.broadcast %27 : vector<1x128xf32> to vector<512x128xf32>
    %29 = arith.mulf %26, %28 : vector<512x128xf32>
    %c0_22 = arith.constant 0 : index
    %c0_23 = arith.constant 0 : index
    %30 = vector.load %arg5[%c0_22, %c0_23] : memref<1x128xf32, #tpu.memory_space<vmem>>, vector<1x128xf32>
    %31 = vector.broadcast %30 : vector<1x128xf32> to vector<512x128xf32>
    %32 = arith.addf %29, %31 : vector<512x128xf32>
    %cst_24 = arith.constant 0.000000e+00 : f32
    %33 = vector.broadcast %cst_24 : f32 to vector<512x128xf32>
    %34 = arith.maximumf %32, %33 : vector<512x128xf32>
    %35 = tpu.iota {dimensions = array<i32: 1>} : vector<16x32x128xi32>
    %c1_i32 = arith.constant 1 : i32
    %36 = vector.broadcast %c1_i32 : i32 to vector<16x32x128xi32>
    %37 = arith.cmpi sge, %35, %36 : vector<16x32x128xi32>
    %c16_i32 = arith.constant 16 : i32
    %38 = vector.broadcast %c16_i32 : i32 to vector<16x32x128xi32>
    %39 = arith.cmpi sle, %35, %38 : vector<16x32x128xi32>
    %40 = arith.andi %37, %39 : vector<16x32x128xi1>
    %41 = vector.shape_cast %34 : vector<512x128xf32> to vector<16x32x128xf32>
    %cst_25 = arith.constant 0.000000e+00 : f32
    %42 = vector.broadcast %cst_25 : f32 to vector<16x32x128xf32>
    %43 = arith.select %40, %41, %42 : vector<16x32x128xi1>, vector<16x32x128xf32>
    %cst_26 = arith.constant 0.000000e+00 : bf16
    %44 = vector.broadcast %cst_26 : bf16 to vector<32x128xbf16>
    %c0_27 = arith.constant 0 : index
    %c0_28 = arith.constant 0 : index
    %c0_29 = arith.constant 0 : index
    %45 = vector.load %arg9[%c0_27, %c0_28, %c0_29] : memref<18x32x128xbf16, #tpu.memory_space<vmem>>, vector<1x32x128xbf16>
    %46 = vector.shape_cast %45 : vector<1x32x128xbf16> to vector<32x128xbf16>
    %47 = vector.shape_cast %44 : vector<32x128xbf16> to vector<1x32x128xbf16>
    tpu.vector_store %arg9[%c0_27, %c0_28, %c0_29], %47 {strides = array<i32>} : memref<18x32x128xbf16, #tpu.memory_space<vmem>>, vector<1x32x128xbf16>,
    %cst_30 = arith.constant 0.000000e+00 : bf16
    %48 = vector.broadcast %cst_30 : bf16 to vector<32x128xbf16>
    %c17 = arith.constant 17 : index
    %c0_31 = arith.constant 0 : index
    %c0_32 = arith.constant 0 : index
    %49 = vector.load %arg9[%c17, %c0_31, %c0_32] : memref<18x32x128xbf16, #tpu.memory_space<vmem>>, vector<1x32x128xbf16>
    %50 = vector.shape_cast %49 : vector<1x32x128xbf16> to vector<32x128xbf16>
    %51 = vector.shape_cast %48 : vector<32x128xbf16> to vector<1x32x128xbf16>
    tpu.vector_store %arg9[%c17, %c0_31, %c0_32], %51 {strides = array<i32>} : memref<18x32x128xbf16, #tpu.memory_space<vmem>>, vector<1x32x128xbf16>,
    %52 = arith.truncf %43 : vector<16x32x128xf32> to vector<16x32x128xbf16>
    %c1_33 = arith.constant 1 : index
    %c0_34 = arith.constant 0 : index
    %c0_35 = arith.constant 0 : index
    %53 = vector.load %arg9[%c1_33, %c0_34, %c0_35] : memref<18x32x128xbf16, #tpu.memory_space<vmem>>, vector<16x32x128xbf16>
    tpu.vector_store %arg9[%c1_33, %c0_34, %c0_35], %52 {strides = array<i32>} : memref<18x32x128xbf16, #tpu.memory_space<vmem>>, vector<16x32x128xbf16>,
    %c0_36 = arith.constant 0 : index
    %c0_37 = arith.constant 0 : index
    %c0_38 = arith.constant 0 : index
    %54 = vector.load %arg9[%c0_36, %c0_37, %c0_38] : memref<18x32x128xbf16, #tpu.memory_space<vmem>>, vector<16x32x128xbf16>
    %55 = vector.shape_cast %54 : vector<16x32x128xbf16> to vector<512x128xbf16>
    %c1_39 = arith.constant 1 : index
    %c0_40 = arith.constant 0 : index
    %c0_41 = arith.constant 0 : index
    %56 = vector.load %arg9[%c1_39, %c0_40, %c0_41] : memref<18x32x128xbf16, #tpu.memory_space<vmem>>, vector<16x32x128xbf16>
    %57 = vector.shape_cast %56 : vector<16x32x128xbf16> to vector<512x128xbf16>
    %c2_42 = arith.constant 2 : index
    %c0_43 = arith.constant 0 : index
    %c0_44 = arith.constant 0 : index
    %58 = vector.load %arg9[%c2_42, %c0_43, %c0_44] : memref<18x32x128xbf16, #tpu.memory_space<vmem>>, vector<16x32x128xbf16>
    %59 = vector.shape_cast %58 : vector<16x32x128xbf16> to vector<512x128xbf16>
    %60 = tpu.concatenate %55, %57, %59 in 1 : vector<512x128xbf16>, vector<512x128xbf16>, vector<512x128xbf16> -> vector<512x384xbf16>
    %c0_45 = arith.constant 0 : index
    %c0_46 = arith.constant 0 : index
    %c0_47 = arith.constant 0 : index
    %61 = vector.load %arg3[%c0_45, %c0_46, %c0_47] : memref<3x384x128xbf16, #tpu.memory_space<vmem>>, vector<1x384x128xbf16>
    %62 = vector.shape_cast %61 : vector<1x384x128xbf16> to vector<384x128xbf16>
    %cst_48 = arith.constant dense<0.000000e+00> : vector<512x128xf32>
    %63 = tpu.matmul %60, %62, %cst_48 {dimension_numbers = #tpu.dot_dimension_numbers<[1], [0], [0], [1], [0, 0, 1, 1], [], []>} : vector<512x384xbf16>, vector<384x128xbf16>, vector<512x128xf32> -> vector<512x128xf32>
    %c1_49 = arith.constant 1 : index
    %c0_50 = arith.constant 0 : index
    %c0_51 = arith.constant 0 : index
    %64 = vector.load %arg3[%c1_49, %c0_50, %c0_51] : memref<3x384x128xbf16, #tpu.memory_space<vmem>>, vector<1x384x128xbf16>
    %65 = vector.shape_cast %64 : vector<1x384x128xbf16> to vector<384x128xbf16>
    %cst_52 = arith.constant dense<0.000000e+00> : vector<512x128xf32>
    %66 = tpu.matmul %60, %65, %cst_52 {dimension_numbers = #tpu.dot_dimension_numbers<[1], [0], [0], [1], [0, 0, 1, 1], [], []>} : vector<512x384xbf16>, vector<384x128xbf16>, vector<512x128xf32> -> vector<512x128xf32>
    %c2_53 = arith.constant 2 : index
    %c0_54 = arith.constant 0 : index
    %c0_55 = arith.constant 0 : index
    %67 = vector.load %arg3[%c2_53, %c0_54, %c0_55] : memref<3x384x128xbf16, #tpu.memory_space<vmem>>, vector<1x384x128xbf16>
    %68 = vector.shape_cast %67 : vector<1x384x128xbf16> to vector<384x128xbf16>
    %cst_56 = arith.constant dense<0.000000e+00> : vector<512x128xf32>
    %69 = tpu.matmul %60, %68, %cst_56 {dimension_numbers = #tpu.dot_dimension_numbers<[1], [0], [0], [1], [0, 0, 1, 1], [], []>} : vector<512x384xbf16>, vector<384x128xbf16>, vector<512x128xf32> -> vector<512x128xf32>
    %70 = vector.extract_strided_slice %63 {offsets = [0, 0], sizes = [1, 128], strides = [1, 1]} : vector<512x128xf32> to vector<1x128xf32>
    %71 = vector.extract_strided_slice %63 {offsets = [0, 0], sizes = [511, 128], strides = [1, 1]} : vector<512x128xf32> to vector<511x128xf32>
    %72 = tpu.concatenate %70, %71 in 0 : vector<1x128xf32>, vector<511x128xf32> -> vector<512x128xf32>
    %73 = vector.extract_strided_slice %69 {offsets = [1, 0], sizes = [511, 128], strides = [1, 1]} : vector<512x128xf32> to vector<511x128xf32>
    %74 = vector.extract_strided_slice %69 {offsets = [511, 0], sizes = [1, 128], strides = [1, 1]} : vector<512x128xf32> to vector<1x128xf32>
    %75 = tpu.concatenate %73, %74 in 0 : vector<511x128xf32>, vector<1x128xf32> -> vector<512x128xf32>
    %76 = arith.addf %72, %66 : vector<512x128xf32>
    %77 = arith.addf %76, %75 : vector<512x128xf32>
    %c0_57 = arith.constant 0 : index
    %c0_58 = arith.constant 0 : index
    %78 = vector.load %arg6[%c0_57, %c0_58] : memref<1x128xf32, #tpu.memory_space<vmem>>, vector<1x128xf32>
    %79 = vector.broadcast %78 : vector<1x128xf32> to vector<512x128xf32>
    %80 = arith.mulf %77, %79 : vector<512x128xf32>
    %c0_59 = arith.constant 0 : index
    %c0_60 = arith.constant 0 : index
    %81 = vector.load %arg7[%c0_59, %c0_60] : memref<1x128xf32, #tpu.memory_space<vmem>>, vector<1x128xf32>
    %82 = vector.broadcast %81 : vector<1x128xf32> to vector<512x128xf32>
    %83 = arith.addf %80, %82 : vector<512x128xf32>
    %c0_61 = arith.constant 0 : index
    %c1_62 = arith.constant 1 : index
    %c0_63 = arith.constant 0 : index
    %c0_64 = arith.constant 0 : index
    %84 = vector.load %arg1[%c0_61, %c1_62, %c0_63, %c0_64] : memref<1x18x32x128xbf16, #tpu.memory_space<vmem>>, vector<1x16x32x128xbf16>
    %85 = vector.shape_cast %84 : vector<1x16x32x128xbf16> to vector<16x32x128xbf16>
    %86 = vector.shape_cast %85 : vector<16x32x128xbf16> to vector<512x128xbf16>
    %87 = arith.extf %86 : vector<512x128xbf16> to vector<512x128xf32>
    %88 = arith.addf %83, %87 : vector<512x128xf32>
    %cst_65 = arith.constant 0.000000e+00 : f32
    %89 = vector.broadcast %cst_65 : f32 to vector<512x128xf32>
    %90 = arith.maximumf %88, %89 : vector<512x128xf32>
    %91 = vector.shape_cast %90 : vector<512x128xf32> to vector<16x32x128xf32>
    %c0_66 = arith.constant 0 : index
    %c0_67 = arith.constant 0 : index
    %c0_68 = arith.constant 0 : index
    %c0_69 = arith.constant 0 : index
    %92 = vector.load %arg8[%c0_66, %c0_67, %c0_68, %c0_69] : memref<1x16x32x128xf32, #tpu.memory_space<vmem>>, vector<1x16x32x128xf32>
    %93 = vector.shape_cast %92 : vector<1x16x32x128xf32> to vector<16x32x128xf32>
    %94 = vector.shape_cast %91 : vector<16x32x128xf32> to vector<1x16x32x128xf32>
    tpu.vector_store %arg8[%c0_66, %c0_67, %c0_68, %c0_69], %94 {strides = array<i32>} : memref<1x16x32x128xf32, #tpu.memory_space<vmem>>, vector<1x16x32x128xf32>,
    return
  }
  func.func @transform_0(%arg0: i32) -> (i32, i32, i32, i32) {
    %c0_i32 = arith.constant 0 : i32
    %c0_i32_0 = arith.constant 0 : i32
    %c0_i32_1 = arith.constant 0 : i32
    %c0_i32_2 = arith.constant 0 : i32
    return %arg0, %c0_i32, %c0_i32_0, %c0_i32_1 : i32, i32, i32, i32
  }
  func.func @transform_1(%arg0: i32) -> (i32, i32, i32) {
    %c0_i32 = arith.constant 0 : i32
    %c0_i32_0 = arith.constant 0 : i32
    %c0_i32_1 = arith.constant 0 : i32
    %c0_i32_2 = arith.constant 0 : i32
    return %c0_i32, %c0_i32_0, %c0_i32_1 : i32, i32, i32
  }
  func.func @transform_2(%arg0: i32) -> (i32, i32, i32) {
    %c0_i32 = arith.constant 0 : i32
    %c0_i32_0 = arith.constant 0 : i32
    %c0_i32_1 = arith.constant 0 : i32
    %c0_i32_2 = arith.constant 0 : i32
    return %c0_i32, %c0_i32_0, %c0_i32_1 : i32, i32, i32
  }
  func.func @transform_3(%arg0: i32) -> (i32, i32) {
    %c0_i32 = arith.constant 0 : i32
    %c0_i32_0 = arith.constant 0 : i32
    %c0_i32_1 = arith.constant 0 : i32
    return %c0_i32, %c0_i32_0 : i32, i32
  }
  func.func @transform_4(%arg0: i32) -> (i32, i32) {
    %c0_i32 = arith.constant 0 : i32
    %c0_i32_0 = arith.constant 0 : i32
    %c0_i32_1 = arith.constant 0 : i32
    return %c0_i32, %c0_i32_0 : i32, i32
  }
  func.func @transform_5(%arg0: i32) -> (i32, i32) {
    %c0_i32 = arith.constant 0 : i32
    %c0_i32_0 = arith.constant 0 : i32
    %c0_i32_1 = arith.constant 0 : i32
    return %c0_i32, %c0_i32_0 : i32, i32
  }
  func.func @transform_6(%arg0: i32) -> (i32, i32) {
    %c0_i32 = arith.constant 0 : i32
    %c0_i32_0 = arith.constant 0 : i32
    %c0_i32_1 = arith.constant 0 : i32
    return %c0_i32, %c0_i32_0 : i32, i32
  }
  func.func @transform_7(%arg0: i32) -> (i32, i32, i32, i32) {
    %c0_i32 = arith.constant 0 : i32
    %c0_i32_0 = arith.constant 0 : i32
    %c0_i32_1 = arith.constant 0 : i32
    %c0_i32_2 = arith.constant 0 : i32
    return %arg0, %c0_i32, %c0_i32_0, %c0_i32_1 : i32, i32, i32, i32
  }
}

</mosaic_0001>

<bundles_post_ra>
// kernel: basic_block_forward.1
= control target key start
LH: loop header
LB: loop body
LE: loop exit
PB: predicated region body
PF: predicated region fallthrough
CT: control target
= control target key end

     0   :  { %s10677_s24 = smov 0   ;;  %s14980_s0 = inlined_call_operand.vmem [shape: bf16[2,18,32,128], index: 0, kind: input, shape index: {}]   ;;  %s14981_s1 = inlined_call_operand.vmem [shape: bf16[3,384,128], index: 1, kind: input, shape index: {}]   ;;  %s14982_s2 = inlined_call_operand.vmem [shape: bf16[3,384,128], index: 2, kind: input, shape index: {}]   ;;  %s14983_s3 = inlined_call_operand.vmem [shape: f32[1,128], index: 3, kind: input, shape index: {}]   ;;  %s14984_s4 = inlined_call_operand.vmem [shape: f32[1,128], index: 4, kind: input, shape index: {}]   ;;  %s14985_s5 = inlined_call_operand.vmem [shape: f32[1,128], index: 5, kind: input, shape index: {}]   ;;  %s14986_s6 = inlined_call_operand.vmem [shape: f32[1,128], index: 6, kind: input, shape index: {}]   ;;  %s14987_s7 = inlined_call_operand.vmem [shape: f32[2,16,32,128], index: 7, kind: output, shape index: {}]  }
   0x1 LB: > { %s7927_s25 = sadd.s32 4294967295, %s10632_s24   ;;  %p7931_p0 = scmp.ge.s32.totalorder %s10632_s24, 1  ;;  %s10632_s24 = sphi %s10677_s24, %s17_s24  }
   0x2   : > { %p237_p1 = scmp.lt.s32.totalorder %s10632_s24, 3 }
   0x4   : > { %p238_p2 = pnand %p7931_p0, %p237_p1 }
   0x6   : > { %241 = sbr.rel (%p238_p2) target bundleno = 1555 (0x613), region = 48 }
   0xd   : > { %v10286_v0 = vld [vmem:[%s14981_s1] sm:$0xff]   ;;  %v14989_v1 = vmov 0   ;;  %p269_p3 = scmp.lt.s32.totalorder %s7927_s25, 1  ;;  %v10288_v3 = vld [vmem:[%s14981_s1 + $0x8] sm:$0xff]   ;;  %v10291_v5 = vld [vmem:[%s14981_s1 + $0x90] sm:$0xff]   ;;  %vm3426_vm0 = vcmask 1040384  }
   0xe   : > { %1242 = vmatprep.subr.bf16.mxu0 %v14989_v1  ;;  %v10287_v2 = vld [vmem:[%s14981_s1 + $0x80] sm:$0xff]   ;;  %v10289_v4 = vld [vmem:[%s14981_s1 + $0x88] sm:$0xff]   ;;  %v10290_v6 = vld [vmem:[%s14981_s1 + $0x10] sm:$0xff]   ;;  %vm3683_vm1 = vcmask 1046528   ;;  %vm10635_vm4 = vmmov 1  }
   0xf   : > { %1243 = vmatpush1.bf16.msra.mxu0 %v10286_v0  ;;  %9794 = vmatprep.subr.bf16.mxu1 %v10287_v2  ;;  %s15483_s25 = smov (!%p269_p3, %s7927_s25), 1  ;;  %v10293_v7 = vld [vmem:[%s14981_s1 + $0x98] sm:$0xff]   ;;  %v10295_v9 = vld [vmem:[%s14981_s1 + $0xa0] sm:$0xff]   ;;  %v10297_v12 = vld [vmem:[%s14981_s1 + $0xa8] sm:$0xff]  }
  0x10   : > { %1244 = vmatprep.subr.bf16.mxu0 %v14989_v1  ;;  %9795 = vmatpush3.bf16.msra.mxu1 %v10287_v2  ;;  %s10274_s17 = smul.u32 288, %s15483_s25  ;;  %v10292_v8 = vld [vmem:[%s14981_s1 + $0x18] sm:$0xff]   ;;  %v10294_v10 = vld [vmem:[%s14981_s1 + $0x20] sm:$0xff]   ;;  %v10296_v13 = vld [vmem:[%s14981_s1 + $0x28] sm:$0xff]   ;;  %s8565_s29 = sshll.u32 %s15483_s25, 9 }
  0x11   : > { %9796 = vmatprep.subr.bf16.mxu1 %v10289_v4  ;;  %v10299_v14 = vld [vmem:[%s14981_s1 + $0xb0] sm:$0xff]   ;;  %v10301_v16 = vld [vmem:[%s14981_s1 + $0xb8] sm:$0xff]   ;;  %v10303_v18 = vld [vmem:[%s14981_s1 + $0x40] sm:$0xff]   ;;  %s14396_s8 = scalar_lea.vmem %s14987_s7, %s8565_s29 }
  0x12   : > { %s10722_s26 = scalar_lea.vmem %s14980_s0, %s10274_s17  ;;  %v10298_v15 = vld [vmem:[%s14981_s1 + $0x30] sm:$0xff]   ;;  %v10300_v17 = vld [vmem:[%s14981_s1 + $0x38] sm:$0xff]   ;;  %v10317_v21 = vld [vmem:[%s14981_s1 + $0xc0] sm:$0xff]  }
  0x13   : > { %1245 = vmatpush1.bf16.msra.mxu0 %v10288_v3  ;;  %v10302_v11 = vld [vmem:[%s10722_s26 + $0x20] sm:$0xff]   ;;  %v10304_v19 = vld [vmem:[%s10722_s26 + $0x28] sm:$0xff]   ;;  %v10306_v20 = vld [vmem:[%s10722_s26 + $0x30] sm:$0xff]  }
  0x14   : > { %1246 = vmatprep.subr.bf16.mxu0 %v14989_v1  ;;  %9797 = vmatpush3.bf16.msra.mxu1 %v10289_v4  ;;  %v10761_v22 = vld [vmem:[%s10722_s26 + $0x10] sm:$0xff]   ;;  %v10305_v23 = vld [vmem:[%s14981_s1 + $0x48] sm:$0xff]   ;;  %v10308_v26 = vld [vmem:[%s10722_s26 + $0x38] sm:$0xff]  }
  0x15   : > { %9798 = vmatprep.subr.bf16.mxu1 %v10291_v5  ;;  %9810 = vmatprep.mubr.bf16.mxu1 %v10302_v11  ;;  %v10307_v24 = vld [vmem:[%s14981_s1 + $0x50] sm:$0xff]   ;;  %v10324_v25 = vld [vmem:[%s14981_s1 + $0xc8] sm:$0xff]   ;;  %v10310_v27 = vld [vmem:[%s10722_s26 + $0x40] sm:$0xff]  }
  0x16   : > { %1274 = vmatprep.mubr.bf16.mxu0 %v10761_v22  ;;  %v10309_v28 = vld [vmem:[%s14981_s1 + $0x58] sm:$0xff]   ;;  %v10329_v29 = vld [vmem:[%s14981_s1 + $0xd0] sm:$0xff]   ;;  %v10311_v30 = vld [vmem:[%s14981_s1 + $0x60] sm:$0xff]  }
  0x17   : > { %1247 = vmatpush1.bf16.msra.mxu0 %v10290_v6  ;;  %v10312_v31 = vld [vmem:[%s10722_s26 + $0x48] sm:$0xff]   ;;  %v10314_v32 = vld [vmem:[%s10722_s26 + $0x50] sm:$0xff]   ;;  %v10334_v33 = vld [vmem:[%s14981_s1 + $0xd8] sm:$0xff]  }
  0x18   : > { %1248 = vmatprep.subr.bf16.mxu0 %v14989_v1  ;;  %9799 = vmatpush3.bf16.msra.mxu1 %v10291_v5  ;;  %v10313_v34 = vld [vmem:[%s14981_s1 + $0x68] sm:$0xff]   ;;  %v10339_v35 = vld [vmem:[%s14981_s1 + $0xe0] sm:$0xff]   ;;  %v10315_v36 = vld [vmem:[%s14981_s1 + $0x70] sm:$0xff]  }
  0x19   : > { %9800 = vmatprep.subr.bf16.mxu1 %v10293_v7  ;;  %v10316_v37 = vld [vmem:[%s10722_s26 + $0x58] sm:$0xff]   ;;  %v10321_v38 = vld [vmem:[%s10722_s26 + $0x60] sm:$0xff]   ;;  %v10345_v41 = vld [vmem:[%s14981_s1 + $0xe8] sm:$0xff]  }
  0x1a   : > { %v10318_v39 = vld [vmem:[%s14981_s1 + $0x78] sm:$0xff]   ;;  %v10322_v40 = vld [vmem:[%s14981_s1 + $0x140] sm:$0xff]   ;;  %v10323_v43 = vld [vmem:[%s10722_s26 + $0x68] sm:$0xff]  }
  0x1b   : > { %1249 = vmatpush1.bf16.msra.mxu0 %v10292_v8  ;;  %v10822_v42 = vld [vmem:[%s10722_s26] sm:$0xff]   ;;  %v10826_v44 = vld [vmem:[%s10722_s26 + $0x18] sm:$0xff]   ;;  %v10327_v45 = vld [vmem:[%s10722_s26 + $0x70] sm:$0xff]  }
  0x1c   : > { %1250 = vmatprep.subr.bf16.mxu0 %v14989_v1  ;;  %9801 = vmatpush3.bf16.msra.mxu1 %v10293_v7  ;;  %v10343_v46 = vld [vmem:[%s14981_s1 + $0x148] sm:$0xff]   ;;  %v10350_v47 = vld [vmem:[%s14981_s1 + $0xf0] sm:$0xff]   ;;  %v10355_v49 = vld [vmem:[%s14981_s1 + $0xf8] sm:$0xff]  }
  0x1d   : > { %9802 = vmatprep.subr.bf16.mxu1 %v10295_v9  ;;  %v10839_v48 = vld [vmem:[%s10722_s26 + $0x8] sm:$0xff]   ;;  %v10846_v50 = vld [vmem:[%s10722_s26 + $0x20] sm:$0xff]   ;;  %v10328_v51 = vld [vmem:[%s10722_s26 + $0x78] sm:$0xff]  }
  0x1e   : > { %v10332_v52 = vld [vmem:[%s10722_s26 + $0x80] sm:$0xff]   ;;  %v10857_v54 = vld [vmem:[%s10722_s26 + $0x10] sm:$0xff]   ;;  %v10333_v55 = vld [vmem:[%s10722_s26 + $0x88] sm:$0xff]  }
  0x1f   : > { %1251 = vmatpush1.bf16.msra.mxu0 %v10294_v10  ;;  %v10360_v53 = vld [vmem:[%s14981_s1 + $0x100] sm:$0xff]   ;;  %v10861_v56 = vld [vmem:[%s10722_s26 + $0x28] sm:$0xff]   ;;  %v10364_v57 = vld [vmem:[%s14981_s1 + $0x150] sm:$0xff]  }
  0x20   : > { %1252 = vmatprep.subr.bf16.mxu0 %v14989_v1  ;;  %9803 = vmatpush3.bf16.msra.mxu1 %v10295_v9  ;;  %v10337_v58 = vld [vmem:[%s10722_s26 + $0x90] sm:$0xff]   ;;  %v10366_v59 = vld [vmem:[%s14981_s1 + $0x108] sm:$0xff]   ;;  %v10874_v60 = vld [vmem:[%s10722_s26 + $0x18] sm:$0xff]  }
  0x21   : > { %9804 = vmatprep.subr.bf16.mxu1 %v10297_v12  ;;  %v10338_v61 = vld [vmem:[%s10722_s26 + $0x98] sm:$0xff]   ;;  %v10371_v62 = vld [vmem:[%s14981_s1 + $0x110] sm:$0xff]   ;;  %v10342_v0 = vld [vmem:[%s10722_s26 + $0xa0] sm:$0xff]  }
  0x22   : > { %v10882_v63 = vld [vmem:[%s10722_s26 + $0x30] sm:$0xff]   ;;  %v10372_v2 = vld [vmem:[%s14981_s1 + $0x118] sm:$0xff]   ;;  %v10892_v3 = vld [vmem:[%s10722_s26 + $0x20] sm:$0xff]  }
  0x23   : > { %1253 = vmatpush1.bf16.msra.mxu0 %v10296_v13  ;;  %v10377_v4 = vld [vmem:[%s14981_s1 + $0x120] sm:$0xff]   ;;  %v10344_v5 = vld [vmem:[%s10722_s26 + $0xa8] sm:$0xff]   ;;  %v10900_v6 = vld [vmem:[%s10722_s26 + $0x38] sm:$0xff]  }
  0x24   : > { %1254 = vmatprep.subr.bf16.mxu0 %v14989_v1  ;;  %9805 = vmatpush3.bf16.msra.mxu1 %v10297_v12  ;;  %v10348_v7 = vld [vmem:[%s10722_s26 + $0xb0] sm:$0xff]   ;;  %v10378_v8 = vld [vmem:[%s14981_s1 + $0x128] sm:$0xff]   ;;  %v10349_v11 = vld [vmem:[%s10722_s26 + $0xb8] sm:$0xff]  }
  0x25   : > { %9806 = vmatprep.subr.bf16.mxu1 %v10299_v14  ;;  %v10910_v9 = vld [vmem:[%s10722_s26 + $0x28] sm:$0xff]   ;;  %v10383_v10 = vld [vmem:[%s14981_s1 + $0x130] sm:$0xff]   ;;  %v10387_v12 = vld [vmem:[%s14981_s1 + $0x158] sm:$0xff]  }
  0x26   : > { %v10921_v13 = vld [vmem:[%s10722_s26 + $0x40] sm:$0xff]  }
  0x27   : > { %1255 = vmatpush1.bf16.msra.mxu0 %v10298_v15  ;;  %v10384_v15 = vld [vmem:[%s14981_s1 + $0x138] sm:$0xff]  }
  0x28   : > { %1256 = vmatprep.subr.bf16.mxu0 %v14989_v1  ;;  %9807 = vmatpush3.bf16.msra.mxu1 %v10299_v14  ;;  %v10353_v14 = vld [vmem:[%s10722_s26 + $0xc0] sm:$0xff]  }
  0x29   : > { %9808 = vmatprep.subr.bf16.mxu1 %v10301_v16 }
  0x2b   : > { %1257 = vmatpush1.bf16.msra.mxu0 %v10300_v17  ;;  %v10354_v17 = vld [vmem:[%s10722_s26 + $0xc8] sm:$0xff]  }
  0x2c   : > { %1258 = vmatprep.subr.bf16.mxu0 %v14989_v1  ;;  %9809 = vmatpush3.bf16.msra.mxu1 %v10301_v16  ;;  %v10931_v16 = vld [vmem:[%s10722_s26 + $0x30] sm:$0xff]  }
  0x2d   : > { %2013 = vmatprep.subr.bf16.mxu1 %v14989_v1 }
  0x2f   : > { %1259 = vmatpush1.bf16.msra.mxu0 %v10303_v18  ;;  %9811 = vmatmul.mubr.bf16.vlgmr.msra.gmra.mrb[0].mxu1 %v10304_v19  ;;  %v10936_v18 = vld [vmem:[%s10722_s26 + $0x48] sm:$0xff]   ;;  %v10397_v19 = vld [vmem:[%s14981_s1 + $0x160] sm:$0xff]  }
  0x30   : > { %1260 = vmatprep.subr.bf16.mxu0 %v14989_v1  ;;  %9814 = vmatprep.mubr.bf16.mxu1 %v10306_v20  ;;  %v10358_v20 = vld [vmem:[%s10722_s26 + $0xd0] sm:$0xff]  }
  0x31   : > { %2014 = vmatpush1.bf16.msra.mxu1 %v10317_v21  ;;  %v10945_v21 = vld [vmem:[%s10722_s26 + $0x38] sm:$0xff]  }
  0x32   : > { %2015 = vmatprep.subr.bf16.mxu1 %v14989_v1 }
  0x33   : > { %1261 = vmatpush1.bf16.msra.mxu0 %v10305_v23  ;;  %v10948_v23 = vld [vmem:[%s10722_s26 + $0x50] sm:$0xff]  }
  0x34   : > { %1262 = vmatprep.subr.bf16.mxu0 %v14989_v1 }
  0x35   : > { %2016 = vmatpush1.bf16.msra.mxu1 %v10324_v25  ;;  %v10363_v25 = vld [vmem:[%s10722_s26 + $0xe0] sm:$0xff]  }
  0x36   : > { %2017 = vmatprep.subr.bf16.mxu1 %v14989_v1 }
  0x37   : > { %1263 = vmatpush1.bf16.msra.mxu0 %v10307_v24  ;;  %9815 = vmatmul.mubr.bf16.gmra.mrb[4].mxu1 %v10308_v26  ;;  %v10359_v24 = vld [vmem:[%s10722_s26 + $0xd8] sm:$0xff]   ;;  %v10408_v26 = vld [vmem:[%s14981_s1 + $0x168] sm:$0xff]  }
  0x38   : > { %1264 = vmatprep.subr.bf16.mxu0 %v14989_v1  ;;  %9818 = vmatprep.mubr.bf16.mxu1 %v10310_v27  ;;  %v10958_v27 = vld [vmem:[%s10722_s26 + $0x40] sm:$0xff]  }
  0x39   : > { %2018 = vmatpush1.bf16.msra.mxu1 %v10329_v29  ;;  %v10365_v29 = vld [vmem:[%s10722_s26 + $0xe8] sm:$0xff]  }
  0x3a   : > { %2019 = vmatprep.subr.bf16.mxu1 %v14989_v1 }
  0x3b   : > { %1265 = vmatpush1.bf16.msra.mxu0 %v10309_v28  ;;  %v10961_v28 = vld [vmem:[%s10722_s26 + $0x58] sm:$0xff]  }
  0x3c   : > { %1266 = vmatprep.subr.bf16.mxu0 %v14989_v1 }
  0x3d   : > { %2020 = vmatpush1.bf16.msra.mxu1 %v10334_v33  ;;  %v10419_v33 = vld [vmem:[%s14981_s1 + $0x170] sm:$0xff]  }
  0x3e   : > { %2021 = vmatprep.subr.bf16.mxu1 %v14989_v1 }
  0x3f   : > { %1267 = vmatpush1.bf16.msra.mxu0 %v10311_v30  ;;  %9819 = vmatmul.mubr.bf16.gmra.mrb[8].mxu1 %v10312_v31  ;;  %v10369_v30 = vld [vmem:[%s10722_s26 + $0xf0] sm:$0xff]   ;;  %v10968_v31 = vld [vmem:[%s10722_s26 + $0x48] sm:$0xff]  }
  0x40   : > { %1268 = vmatprep.subr.bf16.mxu0 %v14989_v1  ;;  %9822 = vmatprep.mubr.bf16.mxu1 %v10314_v32  ;;  %v10370_v32 = vld [vmem:[%s10722_s26 + $0xf8] sm:$0xff]  }
  0x41   : > { %2022 = vmatpush1.bf16.msra.mxu1 %v10339_v35  ;;  %v10375_v35 = vld [vmem:[%s10722_s26 + $0x100] sm:$0xff]  }
  0x42   : > { %2023 = vmatprep.subr.bf16.mxu1 %v14989_v1 }
  0x43   : > { %1269 = vmatpush1.bf16.msra.mxu0 %v10313_v34  ;;  %v10975_v34 = vld [vmem:[%s10722_s26 + $0x60] sm:$0xff]  }
  0x44   : > { %1270 = vmatprep.subr.bf16.mxu0 %v14989_v1 }
  0x45   : > { %2024 = vmatpush1.bf16.msra.mxu1 %v10345_v41  ;;  %v10994_v41 = vld [vmem:[%s10722_s26 + $0x70] sm:$0xff]  }
  0x46   : > { %2025 = vmatprep.subr.bf16.mxu1 %v14989_v1 }
  0x47   : > { %1271 = vmatpush1.bf16.msra.mxu0 %v10315_v36  ;;  %9823 = vmatmul.mubr.bf16.gmra.mrb[12].mxu1 %v10316_v37  ;;  %v10981_v36 = vld [vmem:[%s10722_s26 + $0x50] sm:$0xff]   ;;  %v10984_v37 = vld [vmem:[%s10722_s26 + $0x68] sm:$0xff]  }
  0x48   : > { %1272 = vmatprep.subr.bf16.mxu0 %v14989_v1  ;;  %9826 = vmatprep.mubr.bf16.mxu1 %v10321_v38  ;;  %v10376_v38 = vld [vmem:[%s10722_s26 + $0x108] sm:$0xff]  }
  0x49   : > { %2026 = vmatpush1.bf16.msra.mxu1 %v10350_v47  ;;  %v10394_v47 = vld [vmem:[%s14981_s1 + $0x180] sm:$0xff]  }
  0x4a   : > { %2027 = vmatprep.subr.bf16.mxu1 %v14989_v1 }
  0x4b   : > { %1273 = vmatpush1.bf16.msra.mxu0 %v10318_v39  ;;  %v10381_v39 = vld [vmem:[%s10722_s26 + $0x110] sm:$0xff]  }
  0x4c   : > { %9874 = vmatprep.subr.bf16.mxu0 %v10322_v40 }
  0x4d   : > { %2028 = vmatpush1.bf16.msra.mxu1 %v10355_v49  ;;  %v10430_v49 = vld [vmem:[%s14981_s1 + $0x178] sm:$0xff]  }
  0x4e   : > { %1275 = vmatmul.mubr.bf16.vlgmr.msra.gmra.mrb[0].mxu0 %v10822_v42  ;;  %2029 = vmatprep.subr.bf16.mxu1 %v14989_v1 }
  0x4f   : > { %9875 = vmatpush3.bf16.msra.mxu0 %v10322_v40  ;;  %1282 = vmatprep.mubr.bf16.mxu0 %v10826_v44  ;;  %v10991_v40 = vld [vmem:[%s10722_s26 + $0x58] sm:$0xff]  }
  0x50   : > { %9827 = vmatmul.mubr.bf16.gmra.mrb[16].mxu1 %v10323_v43  ;;  %9876 = vmatprep.subr.bf16.mxu0 %v10343_v46  ;;  %v10382_v43 = vld [vmem:[%s10722_s26 + $0x118] sm:$0xff]  }
  0x51   : > { %9830 = vmatprep.mubr.bf16.mxu1 %v10327_v45  ;;  %2030 = vmatpush1.bf16.msra.mxu1 %v10360_v53  ;;  %v11000_v45 = vld [vmem:[%s10722_s26 + $0x60] sm:$0xff]   ;;  %v10405_v53 = vld [vmem:[%s14981_s1 + $0x190] sm:$0xff]  }
  0x52   : > { %2031 = vmatprep.subr.bf16.mxu1 %v14989_v1 }
  0x53   : > { %9877 = vmatpush3.bf16.msra.mxu0 %v10343_v46  ;;  %v11004_v46 = vld [vmem:[%s10722_s26 + $0x78] sm:$0xff]  }
  0x54   : > { %9878 = vmatprep.subr.bf16.mxu0 %v10364_v57 }
  0x55   : > { %2032 = vmatpush1.bf16.msra.mxu1 %v10366_v59  ;;  %v10427_v59 = vld [vmem:[%s14981_s1 + $0x1b0] sm:$0xff]  }
  0x56   : > { %1283 = vmatmul.mubr.bf16.gmra.mrb[4].mxu0 %v10839_v48  ;;  %2033 = vmatprep.subr.bf16.mxu1 %v14989_v1 }
  0x57   : > { %1290 = vmatprep.mubr.bf16.mxu0 %v10846_v50  ;;  %9879 = vmatpush3.bf16.msra.mxu0 %v10364_v57  ;;  %v10416_v57 = vld [vmem:[%s14981_s1 + $0x1a0] sm:$0xff]  }
  0x58   : > { %9831 = vmatmul.mubr.bf16.gmra.mrb[20].mxu1 %v10328_v51  ;;  %9880 = vmatprep.subr.bf16.mxu0 %v10387_v12  ;;  %v10400_v51 = vld [vmem:[%s14981_s1 + $0x188] sm:$0xff]  }
  0x59   : > { %9834 = vmatprep.mubr.bf16.mxu1 %v10332_v52  ;;  %2034 = vmatpush1.bf16.msra.mxu1 %v10371_v62  ;;  %v11023_v52 = vld [vmem:[%s10722_s26 + $0x80] sm:$0xff]  }
  0x5a   : > { %2035 = vmatprep.subr.bf16.mxu1 %v14989_v1  ;;  %v10438_v62 = vld [vmem:[%s14981_s1 + $0x1c0] sm:$0xff]  }
  0x5b   : > { %9881 = vmatpush3.bf16.msra.mxu0 %v10387_v12  ;;  %v10444_v12 = vld [vmem:[%s14981_s1 + $0x1d8] sm:$0xff]  }
  0x5c   : > { %9882 = vmatprep.subr.bf16.mxu0 %v10397_v19 }
  0x5d   : > { %2036 = vmatpush1.bf16.msra.mxu1 %v10372_v2  ;;  %v11105_v2 = vld [vmem:[%s10722_s26 + $0x90] sm:$0xff]  }
  0x5e   : > { %1291 = vmatmul.mubr.bf16.gmra.mrb[8].mxu0 %v10857_v54  ;;  %2037 = vmatprep.subr.bf16.mxu1 %v14989_v1 }
  0x5f   : > { %1298 = vmatprep.mubr.bf16.mxu0 %v10861_v56  ;;  %9883 = vmatpush3.bf16.msra.mxu0 %v10397_v19 }
  0x60   : > { %9835 = vmatmul.mubr.bf16.gmra.mrb[24].mxu1 %v10333_v55  ;;  %9884 = vmatprep.subr.bf16.mxu0 %v10408_v26  ;;  %v11041_v55 = vld [vmem:[%s10722_s26 + $0x88] sm:$0xff]  }
  0x61   : > { %9838 = vmatprep.mubr.bf16.mxu1 %v10337_v58  ;;  %2038 = vmatpush1.bf16.msra.mxu1 %v10377_v4  ;;  %v11059_v58 = vld [vmem:[%s10722_s26 + $0x90] sm:$0xff]   ;;  %v11112_v4 = vld [vmem:[%s10722_s26 + $0xa8] sm:$0xff]  }
  0x62   : > { %2039 = vmatprep.subr.bf16.mxu1 %v14989_v1 }
  0x63   : > { %9885 = vmatpush3.bf16.msra.mxu0 %v10408_v26 }
  0x64   : > { %9886 = vmatprep.subr.bf16.mxu0 %v10419_v33 }
  0x65   : > { %2040 = vmatpush1.bf16.msra.mxu1 %v10378_v8  ;;  %v11133_v8 = vld [vmem:[%s10722_s26 + $0xa0] sm:$0xff]  }
  0x66   : > { %1299 = vmatmul.mubr.bf16.gmra.mrb[12].mxu0 %v10874_v60  ;;  %2041 = vmatprep.subr.bf16.mxu1 %v14989_v1 }
  0x67   : > { %1306 = vmatprep.mubr.bf16.mxu0 %v10882_v63  ;;  %9887 = vmatpush3.bf16.msra.mxu0 %v10419_v33 }
  0x68   : > { %9839 = vmatmul.mubr.bf16.gmra.mrb[28].mxu1 %v10338_v61  ;;  %9888 = vmatprep.subr.bf16.mxu0 %v10430_v49  ;;  %v11077_v61 = vld [vmem:[%s10722_s26 + $0x98] sm:$0xff]  }
  0x69   : > { %9842 = vmatprep.mubr.bf16.mxu1 %v10342_v0  ;;  %2042 = vmatpush1.bf16.msra.mxu1 %v10383_v10  ;;  %v11098_v0 = vld [vmem:[%s10722_s26 + $0xa0] sm:$0xff]   ;;  %v11144_v10 = vld [vmem:[%s10722_s26 + $0xa8] sm:$0xff]  }
  0x6a   : > { %2043 = vmatprep.subr.bf16.mxu1 %v14989_v1 }
  0x6b   : > { %9889 = vmatpush3.bf16.msra.mxu0 %v10430_v49 }
  0x6d   : > { %2044 = vmatpush1.bf16.msra.mxu1 %v10384_v15  ;;  %v11168_v15 = vld [vmem:[%s10722_s26 + $0xb8] sm:$0xff]  }
  0x6e   : > { %1307 = vmatmul.mubr.bf16.gmra.mrb[16].mxu0 %v10892_v3  ;;  %2784 = vmatprep.subr.bf16.mxu1 %v14989_v1 }
  0x6f   : > { %1314 = vmatprep.mubr.bf16.mxu0 %v10900_v6 }
  0x70   : > { %9843 = vmatmul.mubr.bf16.gmra.mrb[32].mxu1 %v10344_v5  ;;  %v11120_v5 = vld [vmem:[%s10722_s26 + $0x98] sm:$0xff]  }
  0x71   : > { %9846 = vmatprep.mubr.bf16.mxu1 %v10348_v7  ;;  %v10442_v7 = vld [vmem:[%s14981_s1 + $0x1d0] sm:$0xff]  }
  0x76   : > { %1315 = vmatmul.mubr.bf16.gmra.mrb[20].mxu0 %v10910_v9 }
  0x77   : > { %1322 = vmatprep.mubr.bf16.mxu0 %v10921_v13 }
  0x78   : > { %9847 = vmatmul.mubr.bf16.gmra.mrb[36].mxu1 %v10349_v11  ;;  %v11147_v11 = vld [vmem:[%s10722_s26 + $0xc0] sm:$0xff]  }
  0x79   : > { %9850 = vmatprep.mubr.bf16.mxu1 %v10353_v14  ;;  %v11160_v14 = vld [vmem:[%s10722_s26 + $0xc8] sm:$0xff]  }
  0x7e   : > { %1323 = vmatmul.mubr.bf16.gmra.mrb[24].mxu0 %v10931_v16 }
  0x7f   : > { %1330 = vmatprep.mubr.bf16.mxu0 %v10936_v18 }
  0x80   : > { %9851 = vmatmul.mubr.bf16.gmra.mrb[40].mxu1 %v10354_v17 }
  0x81   : > { %9854 = vmatprep.mubr.bf16.mxu1 %v10358_v20 }
  0x86   : > { %1331 = vmatmul.mubr.bf16.gmra.mrb[28].mxu0 %v10945_v21 }
  0x87   : > { %1338 = vmatprep.mubr.bf16.mxu0 %v10948_v23 }
  0x88   : > { %9855 = vmatmul.mubr.bf16.gmra.mrb[44].mxu1 %v10359_v24  ;;  %v11188_v24 = vld [vmem:[%s10722_s26 + $0xd8] sm:$0xff]  }
  0x89   : > { %9858 = vmatprep.mubr.bf16.mxu1 %v10363_v25 }
  0x8e   : > { %1339 = vmatmul.mubr.bf16.gmra.mrb[32].mxu0 %v10958_v27 }
  0x8f   : > { %1346 = vmatprep.mubr.bf16.mxu0 %v10961_v28 }
  0x90   : > { %9859 = vmatmul.mubr.bf16.gmra.mrb[48].mxu1 %v10365_v29  ;;  %v11204_v29 = vld [vmem:[%s10722_s26 + $0xc8] sm:$0xff]  }
  0x91   : > { %9862 = vmatprep.mubr.bf16.mxu1 %v10369_v30  ;;  %v11207_v30 = vld [vmem:[%s10722_s26 + $0xe0] sm:$0xff]  }
  0x96   : > { %1347 = vmatmul.mubr.bf16.gmra.mrb[36].mxu0 %v10968_v31 }
  0x97   : > { %1354 = vmatprep.mubr.bf16.mxu0 %v10975_v34 }
  0x98   : > { %9863 = vmatmul.mubr.bf16.gmra.mrb[52].mxu1 %v10370_v32 }
  0x99   : > { %9866 = vmatprep.mubr.bf16.mxu1 %v10375_v35  ;;  %v10448_v35 = vld [vmem:[%s14981_s1 + $0x1e8] sm:$0xff]  }
  0x9e   : > { %1355 = vmatmul.mubr.bf16.gmra.mrb[40].mxu0 %v10981_v36 }
  0x9f   : > { %1362 = vmatprep.mubr.bf16.mxu0 %v10984_v37 }
  0xa0   : > { %9867 = vmatmul.mubr.bf16.gmra.mrb[56].mxu1 %v10376_v38 }
  0xa1   : > { %9870 = vmatprep.mubr.bf16.mxu1 %v10381_v39 }
  0xa6   : > { %1363 = vmatmul.mubr.bf16.gmra.mrb[44].mxu0 %v10991_v40 }
  0xa7   : > { %1370 = vmatprep.mubr.bf16.mxu0 %v10994_v41 }
  0xa8   : > { %9871 = vmatmul.mubr.bf16.gmra.mrb[60].mxu1 %v10382_v43 }
  0xa9   : > { %2045 = vmatprep.mubr.bf16.mxu1 %v10761_v22  ;;  %v11019_v22 = vld [vmem:[%s10722_s26 + $0x68] sm:$0xff]  }
  0xae   : > { %1371 = vmatmul.mubr.bf16.gmra.mrb[48].mxu0 %v11000_v45 }
  0xaf   : > { %1378 = vmatprep.mubr.bf16.mxu0 %v11004_v46 }
  0xb0   : > { %2046 = vmatmul.mubr.bf16.vlgmr.msra.gmra.mrb[64].mxu1 %v10822_v42  ;;  %v11034_v42 = vld [vmem:[%s10722_s26 + $0x70] sm:$0xff]  }
  0xb1   : > { %2053 = vmatprep.mubr.bf16.mxu1 %v10826_v44  ;;  %2785 = vmatpush1.bf16.msra.mxu1 %v10394_v47  ;;  %v10411_v44 = vld [vmem:[%s14981_s1 + $0x198] sm:$0xff]  }
  0xb2   : > { %2786 = vmatprep.subr.bf16.mxu1 %v14989_v1  ;;  %v11246_v47 = vld [vmem:[%s10722_s26 + $0xd8] sm:$0xff]  }
  0xb5   : > { %2787 = vmatpush1.bf16.msra.mxu1 %v10400_v51  ;;  %v11249_v51 = vld [vmem:[%s10722_s26 + $0xf0] sm:$0xff]  }
  0xb6   : > { %1379 = vmatmul.mubr.bf16.gmra.mrb[52].mxu0 %v11019_v22  ;;  %2788 = vmatprep.subr.bf16.mxu1 %v14989_v1 }
  0xb7   : > { %1386 = vmatprep.mubr.bf16.mxu0 %v11023_v52 }
  0xb8   : > { %2054 = vmatmul.mubr.bf16.gmra.mrb[68].mxu1 %v10839_v48  ;;  %v10422_v48 = vld [vmem:[%s14981_s1 + $0x1a8] sm:$0xff]  }
  0xb9   : > { %2061 = vmatprep.mubr.bf16.mxu1 %v10846_v50  ;;  %2789 = vmatpush1.bf16.msra.mxu1 %v10405_v53  ;;  %v11055_v50 = vld [vmem:[%s10722_s26 + $0x78] sm:$0xff]  }
  0xba   : > { %2790 = vmatprep.subr.bf16.mxu1 %v14989_v1 }
  0xbd   : > { %2791 = vmatpush1.bf16.msra.mxu1 %v10411_v44 }
  0xbe   : > { %1387 = vmatmul.mubr.bf16.gmra.mrb[56].mxu0 %v11034_v42  ;;  %2792 = vmatprep.subr.bf16.mxu1 %v14989_v1 }
  0xbf   : > { %1394 = vmatprep.mubr.bf16.mxu0 %v11041_v55 }
  0xc0   : > { %2062 = vmatmul.mubr.bf16.gmra.mrb[72].mxu1 %v10857_v54  ;;  %v11070_v54 = vld [vmem:[%s10722_s26 + $0x80] sm:$0xff]  }
  0xc1   : > { %2069 = vmatprep.mubr.bf16.mxu1 %v10861_v56  ;;  %2793 = vmatpush1.bf16.msra.mxu1 %v10416_v57  ;;  %v10433_v56 = vld [vmem:[%s14981_s1 + $0x1b8] sm:$0xff]  }
  0xc2   : > { %2794 = vmatprep.subr.bf16.mxu1 %v14989_v1 }
  0xc5   : > { %2795 = vmatpush1.bf16.msra.mxu1 %v10422_v48 }
  0xc6   : > { %1395 = vmatmul.mubr.bf16.gmra.mrb[60].mxu0 %v11055_v50  ;;  %2796 = vmatprep.subr.bf16.mxu1 %v14989_v1 }
  0xc7   : > { %1402 = vmatprep.mubr.bf16.mxu0 %v11059_v58 }
  0xc8   : > { %2070 = vmatmul.mubr.bf16.gmra.mrb[76].mxu1 %v10874_v60  ;;  %v11088_v60 = vld [vmem:[%s14981_s1 + $0x200] sm:$0xff]  }
  0xc9   : > { %2077 = vmatprep.mubr.bf16.mxu1 %v10882_v63  ;;  %2797 = vmatpush1.bf16.msra.mxu1 %v10427_v59  ;;  %v11093_v63 = vld [vmem:[%s10722_s26 + $0x88] sm:$0xff]   ;;  %v10450_v59 = vld [vmem:[%s14981_s1 + $0x1f0] sm:$0xff]  }
  0xca   : > { %2798 = vmatprep.subr.bf16.mxu1 %v14989_v1  ;;  %9954 = vmatprep.subr.bf16.mxu0 %v11088_v60 }
  0xcd   : > { %2799 = vmatpush1.bf16.msra.mxu1 %v10433_v56 }
  0xce   : > { %1403 = vmatmul.mubr.bf16.gmra.mrb[64].mxu0 %v11070_v54  ;;  %2800 = vmatprep.subr.bf16.mxu1 %v14989_v1 }
  0xcf   : > { %1410 = vmatprep.mubr.bf16.mxu0 %v11077_v61 }
  0xd0   : > { %2078 = vmatmul.mubr.bf16.gmra.mrb[80].mxu1 %v10892_v3  ;;  %v10440_v3 = vld [vmem:[%s14981_s1 + $0x1c8] sm:$0xff]  }
  0xd1   : > { %2085 = vmatprep.mubr.bf16.mxu1 %v10900_v6  ;;  %2801 = vmatpush1.bf16.msra.mxu1 %v10438_v62  ;;  %v11123_v6 = vld [vmem:[%s10722_s26 + $0xb0] sm:$0xff]  }
  0xd2   : > { %2802 = vmatprep.subr.bf16.mxu1 %v14989_v1 }
  0xd5   : > { %2803 = vmatpush1.bf16.msra.mxu1 %v10440_v3 }
  0xd6   : > { %1411 = vmatmul.mubr.bf16.gmra.mrb[68].mxu0 %v11093_v63  ;;  %2804 = vmatprep.subr.bf16.mxu1 %v14989_v1 }
  0xd7   : > { %1418 = vmatprep.mubr.bf16.mxu0 %v11098_v0 }
  0xd8   : > { %2086 = vmatmul.mubr.bf16.gmra.mrb[84].mxu1 %v10910_v9  ;;  %v11136_v9 = vld [vmem:[%s10722_s26 + $0xb8] sm:$0xff]  }
  0xd9   : > { %2093 = vmatprep.mubr.bf16.mxu1 %v10921_v13  ;;  %2805 = vmatpush1.bf16.msra.mxu1 %v10442_v7  ;;  %v11157_v13 = vld [vmem:[%s10722_s26 + $0xb0] sm:$0xff]  }
  0xda   : > { %2806 = vmatprep.subr.bf16.mxu1 %v14989_v1 }
  0xdd   : > { %2807 = vmatpush1.bf16.msra.mxu1 %v10444_v12  ;;  %v11274_v12 = vld [vmem:[%s10722_s26 + $0xe0] sm:$0xff]  }
  0xde   : > { %1419 = vmatmul.mubr.bf16.gmra.mrb[72].mxu0 %v11105_v2  ;;  %2808 = vmatprep.subr.bf16.mxu1 %v14989_v1 }
  0xdf   : > { %1426 = vmatprep.mubr.bf16.mxu0 %v11112_v4 }
  0xe0   : > { %2094 = vmatmul.mubr.bf16.gmra.mrb[88].mxu1 %v10931_v16  ;;  %v11171_v16 = vld [vmem:[%s10722_s26 + $0xd0] sm:$0xff]  }
  0xe1   : > { %2101 = vmatprep.mubr.bf16.mxu1 %v10936_v18 }
  0xe6   : > { %1427 = vmatmul.mubr.bf16.gmra.mrb[76].mxu0 %v11120_v5 }
  0xe7   : > { %1434 = vmatprep.mubr.bf16.mxu0 %v11123_v6 }
  0xe8   : > { %2102 = vmatmul.mubr.bf16.gmra.mrb[92].mxu1 %v10945_v21  ;;  %v10446_v21 = vld [vmem:[%s14981_s1 + $0x1e0] sm:$0xff]  }
  0xe9   : > { %2109 = vmatprep.mubr.bf16.mxu1 %v10948_v23  ;;  %v11185_v23 = vld [vmem:[%s10722_s26 + $0xc0] sm:$0xff]   ;;  %2809 = vmatpush1.bf16.msra.mxu1 %v10446_v21  ;;  %v10451_v21 = vld [vmem:[%s14981_s1 + $0x1f8] sm:$0xff]  }
  0xea   : > { %2810 = vmatprep.subr.bf16.mxu1 %v14989_v1 }
  0xed   : > { %2811 = vmatpush1.bf16.msra.mxu1 %v10448_v35 }
  0xee   : > { %1435 = vmatmul.mubr.bf16.gmra.mrb[80].mxu0 %v11133_v8  ;;  %2812 = vmatprep.subr.bf16.mxu1 %v14989_v1 }
  0xef   : > { %1442 = vmatprep.mubr.bf16.mxu0 %v11136_v9 }
  0xf0   : > { %2110 = vmatmul.mubr.bf16.gmra.mrb[96].mxu1 %v10958_v27 }
  0xf1   : > { %2117 = vmatprep.mubr.bf16.mxu1 %v10961_v28  ;;  %2813 = vmatpush1.bf16.msra.mxu1 %v10450_v59 }
  0xf2   : > { %2814 = vmatprep.subr.bf16.mxu1 %v14989_v1 }
  0xf5   : > { %2815 = vmatpush1.bf16.msra.mxu1 %v10451_v21 }
  0xf6   : > { %1443 = vmatmul.mubr.bf16.gmra.mrb[84].mxu0 %v11144_v10 }
  0xf7   : > { %1450 = vmatprep.mubr.bf16.mxu0 %v11147_v11 }
  0xf8   : > { %2118 = vmatmul.mubr.bf16.gmra.mrb[100].mxu1 %v10968_v31 }
  0xf9   : > { %2125 = vmatprep.mubr.bf16.mxu1 %v10975_v34 }
  0xfe   : > { %1451 = vmatmul.mubr.bf16.gmra.mrb[88].mxu0 %v11157_v13 }
  0xff   : > { %1458 = vmatprep.mubr.bf16.mxu0 %v11160_v14 }
 0x100   : > { %2126 = vmatmul.mubr.bf16.gmra.mrb[104].mxu1 %v10981_v36  ;;  %v11225_v36 = vld [vmem:[%s10722_s26 + $0xd0] sm:$0xff]  }
 0x101   : > { %2133 = vmatprep.mubr.bf16.mxu1 %v10984_v37  ;;  %v11228_v37 = vld [vmem:[%s10722_s26 + $0xe8] sm:$0xff]  }
 0x102   : > { %v11173_v17 = vpop.f32.mrb[0].mxu1 }
 0x103   : > { %v1565_v18 = vpop.f32.mrb[1].mxu1 }
 0x104   : > { %v11175_v19 = vpop.f32.mrb[2].mxu1 }
 0x105   : > { %v1568_v20 = vpop.f32.mrb[3].mxu1 }
 0x106   : > { %1459 = vmatmul.mubr.bf16.gmra.mrb[92].mxu0 %v11168_v15 }
 0x107   : > { %1466 = vmatprep.mubr.bf16.mxu0 %v11171_v16 }
 0x108   : > { %2134 = vmatmul.mubr.bf16.gmra.mrb[108].mxu1 %v10991_v40 }
 0x109   : > { %2141 = vmatprep.mubr.bf16.mxu1 %v10994_v41 }
 0x10a   : > { %v11190_v25 = vpop.f32.mrb[4].mxu1 }
 0x10b   : > { %v11193_v26 = vpop.f32.mrb[5].mxu1 }
 0x10c   : > { %v11195_v27 = vpop.f32.mrb[6].mxu1 }
 0x10d   : > { %v11198_v28 = vpop.f32.mrb[7].mxu1 }
 0x10e   : > { %1467 = vmatmul.mubr.bf16.gmra.mrb[96].mxu0 %v11185_v23 }
 0x10f   : > { %1474 = vmatprep.mubr.bf16.mxu0 %v11188_v24 }
 0x110   : > { %2142 = vmatmul.mubr.bf16.gmra.mrb[112].mxu1 %v11000_v45 }
 0x111   : > { %2149 = vmatprep.mubr.bf16.mxu1 %v11004_v46 }
 0x112   : > { %v11209_v31 = vpop.f32.mrb[8].mxu1 }
 0x113   : > { %v11211_v32 = vpop.f32.mrb[9].mxu1 }
 0x114   : > { %v11213_v33 = vpop.f32.mrb[10].mxu1 }
 0x115   : > { %v11216_v34 = vpop.f32.mrb[11].mxu1 }
 0x116   : > { %1475 = vmatmul.mubr.bf16.gmra.mrb[100].mxu0 %v11204_v29 }
 0x117   : > { %1482 = vmatprep.mubr.bf16.mxu0 %v11207_v30 }
 0x118   : > { %2150 = vmatmul.mubr.bf16.gmra.mrb[116].mxu1 %v11019_v22 }
 0x119   : > { %2157 = vmatprep.mubr.bf16.mxu1 %v11023_v52 }
 0x11a   : > { %v11230_v38 = vpop.f32.mrb[12].mxu1 }
 0x11b   : > { %v11233_v39 = vpop.f32.mrb[13].mxu1 }
 0x11c   : > { %v11235_v40 = vpop.f32.mrb[14].mxu1 }
 0x11d   : > { %v11238_v41 = vpop.f32.mrb[15].mxu1 }
 0x11e   : > { %1483 = vmatmul.mubr.bf16.gmra.mrb[104].mxu0 %v11225_v36 }
 0x11f   : > { %1490 = vmatprep.mubr.bf16.mxu0 %v11228_v37 }
 0x120   : > { %2158 = vmatmul.mubr.bf16.gmra.mrb[120].mxu1 %v11034_v42 }
 0x121   : > { %v1276_v43 = vpop.f32.mrb[0].mxu0  ;;  %2165 = vmatprep.mubr.bf16.mxu1 %v11041_v55 }
 0x122   : > { %v11243_v45 = vadd.f32 %v1565_v18, %v1276_v43  ;;  %v1278_v46 = vpop.f32.mrb[1].mxu0 }
 0x123   : > { %v1279_v49 = vpop.f32.mrb[2].mxu0  ;;  %v11251_v22 = vpop.f32.mrb[16].mxu1 }
 0x124   : > { %15046 = vst [vmem:[#allocation3_spill] sm:$0xff] %v11243_v45  ;;  %v1569_v52 = vadd.f32 %v1568_v20, %v1279_v49  ;;  %v1281_v53 = vpop.f32.mrb[3].mxu0  ;;  %v11253_v44 = vpop.f32.mrb[17].mxu1  ;;  %v14988_v42 = vrot.slane %v11243_v45, 7  ;;  %v11278_v20 = vld [vmem:[%s10722_s26 + $0xf8] sm:$0xff]  }
 0x125   : > { %v11255_v57 = vpop.f32.mrb[18].mxu1 }
 0x126   : > { %v3428_v55 = vrot.slane %v1569_v52, 7  ;;  %1491 = vmatmul.mubr.bf16.gmra.mrb[108].mxu0 %v11246_v47  ;;  %v11259_v48 = vpop.f32.mrb[19].mxu1 }
 0x127   : > { %1498 = vmatprep.mubr.bf16.mxu0 %v11249_v51 }
 0x128   : > { %2166 = vmatmul.mubr.bf16.gmra.mrb[124].mxu1 %v11055_v50  ;;  %v11269_v56 = vsel %vm3426_vm0, %v14988_v42, %v3428_v55  ;;  %v11330_v42 = vld [vmem:[%s10722_s26 + $0x108] sm:$0xff]  }
 0x129   : > { %15047 = vst [vmem:[#allocation4_spill] sm:$0xff] %v11269_v56  ;;  %v1284_v62 = vpop.f32.mrb[4].mxu0  ;;  %2173 = vmatprep.mubr.bf16.mxu1 %v11059_v58 }
 0x12a   : > { %v1574_v3 = vadd.f32 %v11173_v17, %v1284_v62  ;;  %v1286_v7 = vpop.f32.mrb[5].mxu0  ;;  %v11301_v62 = vld [vmem:[%s10722_s26 + $0xe8] sm:$0xff]  }
 0x12b   : > { %v1287_v18 = vpop.f32.mrb[6].mxu0  ;;  %v11280_v50 = vpop.f32.mrb[20].mxu1  ;;  %v11304_v7 = vld [vmem:[%s10722_s26 + $0x100] sm:$0xff]  }
 0x12c   : > { %v3430_v35 = vrot.slane %v1574_v3, 7  ;;  %v1577_v58 = vadd.f32 %v11175_v19, %v1287_v18  ;;  %v1289_v17 = vpop.f32.mrb[7].mxu0  ;;  %v11286_v43 = vpop.f32.mrb[21].mxu1 }
 0x12d   : > { %v11288_v46 = vpop.f32.mrb[22].mxu1 }
 0x12e   : > { %1499 = vmatmul.mubr.bf16.gmra.mrb[112].mxu0 %v11274_v12  ;;  %v11291_v49 = vpop.f32.mrb[23].mxu1  ;;  %v11294_v52 = vsel %vm3426_vm0, %v3428_v55, %v3430_v35  ;;  %v3432_v21 = vrot.slane %v1577_v58, 7 }
 0x12f   : > { %15048 = vst [vmem:[#allocation5_spill] sm:$0xff] %v11294_v52  ;;  %1506 = vmatprep.mubr.bf16.mxu0 %v11278_v20 }
 0x130   : > { %2174 = vmatmul.mubr.bf16.gmra.mrb[128].mxu1 %v11070_v54 }
 0x131   : > { %v1292_v53 = vpop.f32.mrb[8].mxu0  ;;  %2181 = vmatprep.mubr.bf16.mxu1 %v11077_v61 }
 0x132   : > { %v1582_v19 = vadd.f32 %v11193_v26, %v1292_v53  ;;  %v1294_v59 = vpop.f32.mrb[9].mxu0 }
 0x133   : > { %v1295_v3 = vpop.f32.mrb[10].mxu0  ;;  %v11306_v18 = vpop.f32.mrb[24].mxu1 }
 0x134   : > { %v3434_v55 = vrot.slane %v1582_v19, 7  ;;  %v1585_v35 = vadd.f32 %v11198_v28, %v1295_v3  ;;  %v1297_v17 = vpop.f32.mrb[11].mxu0  ;;  %v11309_v54 = vpop.f32.mrb[25].mxu1 }
 0x135   : > { %v11311_v61 = vpop.f32.mrb[26].mxu1 }
 0x136   : > { %v3436_v26 = vrot.slane %v1585_v35, 7  ;;  %1507 = vmatmul.mubr.bf16.gmra.mrb[116].mxu0 %v11301_v62  ;;  %v11314_v53 = vpop.f32.mrb[27].mxu1  ;;  %v11317_v59 = vsel %vm3426_vm0, %v3432_v21, %v3434_v55  ;;  %v11327_v35 = vld [vmem:[%s10722_s26 + $0xf0] sm:$0xff]  }
 0x137   : > { %15049 = vst [vmem:[#allocation6_spill] sm:$0xff] %v11317_v59  ;;  %1514 = vmatprep.mubr.bf16.mxu0 %v11304_v7 }
 0x138   : > { %2182 = vmatmul.mubr.bf16.gmra.mrb[132].mxu1 %v11093_v63  ;;  %v11322_v28 = vsel %vm3426_vm0, %v3434_v55, %v3436_v26 }
 0x139   : > { %15050 = vst [vmem:[#allocation7_spill] sm:$0xff] %v11322_v28  ;;  %v1300_v58 = vpop.f32.mrb[12].mxu0  ;;  %2189 = vmatprep.mubr.bf16.mxu1 %v11098_v0 }
 0x13a   : > { %v1590_v19 = vadd.f32 %v11190_v25, %v1300_v58  ;;  %v1302_v3 = vpop.f32.mrb[13].mxu0 }
 0x13b   : > { %v1303_v17 = vpop.f32.mrb[14].mxu0  ;;  %v11332_v21 = vpop.f32.mrb[28].mxu1 }
 0x13c   : > { %v3438_v1 = vrot.slane %v1590_v19, 7  ;;  %v1593_v63 = vadd.f32 %v11195_v27, %v1303_v17  ;;  %v1305_v59 = vpop.f32.mrb[15].mxu0  ;;  %v11335_v55 = vpop.f32.mrb[29].mxu1  ;;  %v11350_v19 = vld [vmem:[%s10722_s26 + $0xf8] sm:$0xff]  }
 0x13d   : > { %v11337_v28 = vpop.f32.mrb[30].mxu1 }
 0x13e   : > { %1515 = vmatmul.mubr.bf16.gmra.mrb[120].mxu0 %v11327_v35  ;;  %v11340_v0 = vpop.f32.mrb[31].mxu1  ;;  %v11343_v25 = vsel %vm3426_vm0, %v3436_v26, %v3438_v1  ;;  %v3440_v56 = vrot.slane %v1593_v63, 7 }
 0x13f   : > { %15051 = vst [vmem:[#allocation8_spill] sm:$0xff] %v11343_v25  ;;  %1522 = vmatprep.mubr.bf16.mxu0 %v11330_v42 }
 0x140   : > { %2190 = vmatmul.mubr.bf16.gmra.mrb[136].mxu1 %v11105_v2 }
 0x141   : > { %v1308_v58 = vpop.f32.mrb[16].mxu0  ;;  %2197 = vmatprep.mubr.bf16.mxu1 %v11112_v4 }
 0x142   : > { %v1598_v27 = vadd.f32 %v11211_v32, %v1308_v58  ;;  %v1310_v59 = vpop.f32.mrb[17].mxu0  ;;  %v11366_v58 = vld [vmem:[%s10722_s26 + $0x20] sm:$0xff]  }
 0x143   : > { %v1311_v3 = vpop.f32.mrb[18].mxu0  ;;  %v11352_v17 = vpop.f32.mrb[32].mxu1  ;;  %15053 = vst [vmem:[#allocation10_spill] sm:$0xff] %v11366_v58 }
 0x144   : > { %v3442_v45 = vrot.slane %v1598_v27, 7  ;;  %v1601_v1 = vadd.f32 %v11216_v34, %v1311_v3  ;;  %v1313_v26 = vpop.f32.mrb[19].mxu0  ;;  %v11355_v25 = vpop.f32.mrb[33].mxu1 }
 0x145   : > { %v11357_v2 = vpop.f32.mrb[34].mxu1 }
 0x146   : > { %v3444_v52 = vrot.slane %v1601_v1, 7  ;;  %1523 = vmatmul.mubr.bf16.gmra.mrb[124].mxu0 %v11350_v19  ;;  %v11360_v4 = vpop.f32.mrb[35].mxu1  ;;  %v11363_v32 = vsel %vm3426_vm0, %v3440_v56, %v3442_v45 }
 0x147   : > { %15052 = vst [vmem:[#allocation9_spill] sm:$0xff] %v11363_v32  ;;  %9890 = vmatprep.mubr.bf16.mxu0 %v11366_v58 }
 0x148   : > { %2198 = vmatmul.mubr.bf16.gmra.mrb[140].mxu1 %v11120_v5  ;;  %v11371_v34 = vsel %vm3426_vm0, %v3442_v45, %v3444_v52  ;;  %v10441_v5 = vld [vmem:[%s14981_s1 + $0x208] sm:$0xff]  }
 0x149   : > { %15054 = vst [vmem:[#allocation11_spill] sm:$0xff] %v11371_v34  ;;  %v1316_v63 = vpop.f32.mrb[20].mxu0  ;;  %2205 = vmatprep.mubr.bf16.mxu1 %v11123_v6  ;;  %v11386_v6 = vld [vmem:[%s10722_s26 + $0x28] sm:$0xff]  }
 0x14a   : > { %v1606_v27 = vadd.f32 %v11209_v31, %v1316_v63  ;;  %v1318_v59 = vpop.f32.mrb[21].mxu0  ;;  %15055 = vst [vmem:[#allocation12_spill] sm:$0xff] %v11386_v6 }
 0x14b   : > { %v1319_v3 = vpop.f32.mrb[22].mxu0  ;;  %v11375_v56 = vpop.f32.mrb[36].mxu1 }
 0x14c   : > { %v3446_v1 = vrot.slane %v1606_v27, 7  ;;  %v1609_v26 = vadd.f32 %v11213_v33, %v1319_v3  ;;  %v1321_v32 = vpop.f32.mrb[23].mxu0  ;;  %v11381_v45 = vpop.f32.mrb[37].mxu1  ;;  %v11396_v33 = vld [vmem:[%s10722_s26 + $0x30] sm:$0xff]  }
 0x14d   : > { %v11383_v34 = vpop.f32.mrb[38].mxu1  ;;  %15057 = vst [vmem:[#allocation14_spill] sm:$0xff] %v11396_v33  ;;  %v10443_v32 = vld [vmem:[%s14981_s1 + $0x210] sm:$0xff]  }
 0x14e   : > { %9891 = vmatmul.mubr.bf16.vlgmr.msra.gmra.mrb[128].mxu0 %v11386_v6  ;;  %v11389_v31 = vpop.f32.mrb[39].mxu1  ;;  %v11392_v63 = vsel %vm3426_vm0, %v3444_v52, %v3446_v1  ;;  %v3448_v1 = vrot.slane %v1609_v26, 7 }
 0x14f   : > { %15056 = vst [vmem:[#allocation13_spill] sm:$0xff] %v11392_v63  ;;  %9955 = vmatpush3.bf16.msra.mxu0 %v11088_v60  ;;  %9894 = vmatprep.mubr.bf16.mxu0 %v11396_v33 }
 0x150   : > { %2206 = vmatmul.mubr.bf16.gmra.mrb[144].mxu1 %v11133_v8  ;;  %9956 = vmatprep.subr.bf16.mxu0 %v10441_v5 }
 0x151   : > { %v1324_v27 = vpop.f32.mrb[24].mxu0  ;;  %2213 = vmatprep.mubr.bf16.mxu1 %v11136_v9  ;;  %v10445_v9 = vld [vmem:[%s14981_s1 + $0x218] sm:$0xff]  }
 0x152   : > { %v1614_v52 = vadd.f32 %v11233_v39, %v1324_v27  ;;  %v1326_v59 = vpop.f32.mrb[25].mxu0  ;;  %v11416_v27 = vld [vmem:[%s10722_s26 + $0x38] sm:$0xff]  }
 0x153   : > { %v1327_v3 = vpop.f32.mrb[26].mxu0  ;;  %9957 = vmatpush3.bf16.msra.mxu0 %v10441_v5  ;;  %v11405_v60 = vpop.f32.mrb[40].mxu1  ;;  %15058 = vst [vmem:[#allocation15_spill] sm:$0xff] %v11416_v27 }
 0x154   : > { %v3450_v63 = vrot.slane %v1614_v52, 7  ;;  %v1617_v8 = vadd.f32 %v11238_v41, %v1327_v3  ;;  %v1329_v33 = vpop.f32.mrb[27].mxu0  ;;  %v11408_v6 = vpop.f32.mrb[41].mxu1  ;;  %9958 = vmatprep.subr.bf16.mxu0 %v10443_v32  ;;  %v11425_v41 = vld [vmem:[%s10722_s26 + $0x40] sm:$0xff]  }
 0x155   : > { %v11413_v58 = vpop.f32.mrb[42].mxu1  ;;  %15060 = vst [vmem:[#allocation17_spill] sm:$0xff] %v11425_v41  ;;  %v10447_v33 = vld [vmem:[%s14981_s1 + $0x220] sm:$0xff]  }
 0x156   : > { %v3452_v39 = vrot.slane %v1617_v8, 7  ;;  %9895 = vmatmul.mubr.bf16.gmra.mrb[132].mxu0 %v11416_v27  ;;  %v11419_v5 = vpop.f32.mrb[43].mxu1  ;;  %v11422_v26 = vsel %vm3426_vm0, %v3448_v1, %v3450_v63 }
 0x157   : > { %15059 = vst [vmem:[#allocation16_spill] sm:$0xff] %v11422_v26  ;;  %9898 = vmatprep.mubr.bf16.mxu0 %v11425_v41  ;;  %9959 = vmatpush3.bf16.msra.mxu0 %v10443_v32 }
 0x158   : > { %2214 = vmatmul.mubr.bf16.gmra.mrb[148].mxu1 %v11144_v10  ;;  %9960 = vmatprep.subr.bf16.mxu0 %v10445_v9  ;;  %v11433_v52 = vsel %vm3426_vm0, %v3450_v63, %v3452_v39  ;;  %v10449_v63 = vld [vmem:[%s14981_s1 + $0x228] sm:$0xff]  }
 0x159   : > { %15061 = vst [vmem:[#allocation18_spill] sm:$0xff] %v11433_v52  ;;  %v1332_v59 = vpop.f32.mrb[28].mxu0  ;;  %2221 = vmatprep.mubr.bf16.mxu1 %v11147_v11 }
 0x15a   : > { %v1622_v3 = vadd.f32 %v11230_v38, %v1332_v59  ;;  %v1334_v1 = vpop.f32.mrb[29].mxu0  ;;  %v11448_v38 = vld [vmem:[%s10722_s26 + $0x48] sm:$0xff]  }
 0x15b   : > { %v1335_v8 = vpop.f32.mrb[30].mxu0  ;;  %v11437_v32 = vpop.f32.mrb[44].mxu1  ;;  %9961 = vmatpush3.bf16.msra.mxu0 %v10445_v9  ;;  %15062 = vst [vmem:[#allocation19_spill] sm:$0xff] %v11448_v38 }
 0x15c   : > { %v3454_v10 = vrot.slane %v1622_v3, 7  ;;  %v1625_v26 = vadd.f32 %v11235_v40, %v1335_v8  ;;  %v1337_v41 = vpop.f32.mrb[31].mxu0  ;;  %v11440_v27 = vpop.f32.mrb[45].mxu1  ;;  %9962 = vmatprep.subr.bf16.mxu0 %v10447_v33  ;;  %v11457_v40 = vld [vmem:[%s10722_s26 + $0x50] sm:$0xff]  }
 0x15d   : > { %v11445_v11 = vpop.f32.mrb[46].mxu1  ;;  %15064 = vst [vmem:[#allocation21_spill] sm:$0xff] %v11457_v40  ;;  %v10452_v41 = vld [vmem:[%s14981_s1 + $0x230] sm:$0xff]  }
 0x15e   : > { %9899 = vmatmul.mubr.bf16.gmra.mrb[136].mxu0 %v11448_v38  ;;  %v11451_v59 = vpop.f32.mrb[47].mxu1  ;;  %v11454_v9 = vsel %vm3426_vm0, %v3452_v39, %v3454_v10 }
 0x15f   : > { %15063 = vst [vmem:[#allocation20_spill] sm:$0xff] %v11454_v9  ;;  %9902 = vmatprep.mubr.bf16.mxu0 %v11457_v40  ;;  %9963 = vmatpush3.bf16.msra.mxu0 %v10447_v33  ;;  %v3456_v33 = vrot.slane %v1625_v26, 7 }
 0x160   : > { %2222 = vmatmul.mubr.bf16.gmra.mrb[152].mxu1 %v11157_v13  ;;  %9964 = vmatprep.subr.bf16.mxu0 %v10449_v63 }
 0x161   : > { %v1340_v3 = vpop.f32.mrb[32].mxu0  ;;  %2229 = vmatprep.mubr.bf16.mxu1 %v11160_v14  ;;  %v10453_v14 = vld [vmem:[%s14981_s1 + $0x238] sm:$0xff]  }
 0x162   : > { %v1630_v1 = vadd.f32 %v11253_v44, %v1340_v3  ;;  %v1342_v39 = vpop.f32.mrb[33].mxu0  ;;  %v11477_v3 = vld [vmem:[%s10722_s26 + $0x58] sm:$0xff]  }
 0x163   : > { %v1343_v8 = vpop.f32.mrb[34].mxu0  ;;  %v11466_v10 = vpop.f32.mrb[48].mxu1  ;;  %9965 = vmatpush3.bf16.msra.mxu0 %v10449_v63 }
 0x164   : > { %15065 = vst [vmem:[#allocation22_spill] sm:$0xff] %v11466_v10  ;;  %v3458_v52 = vrot.slane %v1630_v1, 7  ;;  %v1633_v13 = vadd.f32 %v11259_v48, %v1343_v8  ;;  %v1345_v9 = vpop.f32.mrb[35].mxu0  ;;  %v11469_v40 = vpop.f32.mrb[49].mxu1  ;;  %9966 = vmatprep.subr.bf16.mxu0 %v10452_v41  ;;  %v11486_v48 = vld [vmem:[%s10722_s26 + $0x60] sm:$0xff]   ;;  %v15070_v10 = vmov 0  }
 0x165   : > { %v11474_v38 = vpop.f32.mrb[50].mxu1 }
 0x166   : > { %15066 = vst [vmem:[#allocation23_spill] sm:$0xff] %v11474_v38  ;;  %v3460_v44 = vrot.slane %v1633_v13, 7  ;;  %9903 = vmatmul.mubr.bf16.gmra.mrb[140].mxu0 %v11477_v3  ;;  %v11480_v63 = vpop.f32.mrb[51].mxu1  ;;  %v11483_v26 = vsel %vm3426_vm0, %v3456_v33, %v3458_v52 }
 0x167   : > { %15067 = vst [vmem:[#allocation24_spill] sm:$0xff] %v11483_v26  ;;  %9906 = vmatprep.mubr.bf16.mxu0 %v11486_v48  ;;  %9967 = vmatpush3.bf16.msra.mxu0 %v10452_v41 }
 0x168   : > { %2230 = vmatmul.mubr.bf16.gmra.mrb[156].mxu1 %v11168_v15  ;;  %9968 = vmatprep.subr.bf16.mxu0 %v10453_v14  ;;  %v11491_v9 = vsel %vm3426_vm0, %v3458_v52, %v3460_v44 }
 0x169   : > { %15068 = vst [vmem:[#allocation25_spill] sm:$0xff] %v11491_v9  ;;  %v1348_v1 = vpop.f32.mrb[36].mxu0  ;;  %2237 = vmatprep.mubr.bf16.mxu1 %v11171_v16  ;;  %v11504_v9 = vld [vmem:[%s10722_s26 + $0x68] sm:$0xff]  }
 0x16a   : > { %v1638_v39 = vadd.f32 %v11251_v22, %v1348_v1  ;;  %v1350_v8 = vpop.f32.mrb[37].mxu0 }
 0x16b   : > { %v1351_v33 = vpop.f32.mrb[38].mxu0  ;;  %v11495_v13 = vpop.f32.mrb[52].mxu1  ;;  %9969 = vmatpush3.bf16.msra.mxu0 %v10453_v14  ;;  %v11513_v14 = vld [vmem:[%s10722_s26 + $0x70] sm:$0xff]  }
 0x16c   : > { %15069 = vst [vmem:[#allocation26_spill] sm:$0xff] %v11495_v13  ;;  %v3462_v26 = vrot.slane %v1638_v39, 7  ;;  %v1641_v41 = vadd.f32 %v11255_v57, %v1351_v33  ;;  %v1353_v15 = vpop.f32.mrb[39].mxu0  ;;  %v11498_v38 = vpop.f32.mrb[53].mxu1  ;;  %4650 = vmatprep.subr.bf16.mxu0 %v15070_v10 }
 0x16d   : > { %v11501_v52 = vpop.f32.mrb[54].mxu1 }
 0x16e   : > { %15071 = vst [vmem:[#allocation27_spill] sm:$0xff] %v11501_v52  ;;  %9907 = vmatmul.mubr.bf16.gmra.mrb[144].mxu0 %v11504_v9  ;;  %v11507_v16 = vpop.f32.mrb[55].mxu1  ;;  %v11510_v22 = vsel %vm3426_vm0, %v3460_v44, %v3462_v26  ;;  %v3464_v15 = vrot.slane %v1641_v41, 7  ;;  %v11536_v41 = vld [vmem:[%s10722_s26 + $0x80] sm:$0xff]  }
 0x16f   : > { %15072 = vst [vmem:[#allocation28_spill] sm:$0xff] %v11507_v16  ;;  %15073 = vst [vmem:[#allocation29_spill] sm:$0xff] %v11510_v22  ;;  %9910 = vmatprep.mubr.bf16.mxu0 %v11513_v14  ;;  %v11527_v16 = vld [vmem:[%s10722_s26 + $0x78] sm:$0xff]  }
 0x170   : > { %2238 = vmatmul.mubr.bf16.gmra.mrb[160].mxu1 %v11185_v23 }
 0x171   : > { %v1356_v57 = vpop.f32.mrb[40].mxu0  ;;  %2245 = vmatprep.mubr.bf16.mxu1 %v11188_v24 }
 0x172   : > { %v1646_v1 = vadd.f32 %v11286_v43, %v1356_v57  ;;  %v1358_v39 = vpop.f32.mrb[41].mxu0 }
 0x173   : > { %v1359_v8 = vpop.f32.mrb[42].mxu0  ;;  %v11519_v33 = vpop.f32.mrb[56].mxu1 }
 0x174   : > { %15074 = vst [vmem:[#allocation30_spill] sm:$0xff] %v11519_v33  ;;  %v3466_v44 = vrot.slane %v1646_v1, 7  ;;  %v1649_v26 = vadd.f32 %v11291_v49, %v1359_v8  ;;  %v1361_v22 = vpop.f32.mrb[43].mxu0  ;;  %v11522_v52 = vpop.f32.mrb[57].mxu1  ;;  %v11551_v33 = vld [vmem:[%s10722_s26 + $0x88] sm:$0xff]  }
 0x175   : > { %v11524_v13 = vpop.f32.mrb[58].mxu1 }
 0x176   : > { %15075 = vst [vmem:[#allocation31_spill] sm:$0xff] %v11524_v13  ;;  %v3468_v23 = vrot.slane %v1649_v26, 7  ;;  %9911 = vmatmul.mubr.bf16.gmra.mrb[148].mxu0 %v11527_v16  ;;  %v11530_v24 = vpop.f32.mrb[59].mxu1  ;;  %v11533_v43 = vsel %vm3426_vm0, %v3464_v15, %v3466_v44 }
 0x177   : > { %15076 = vst [vmem:[#allocation32_spill] sm:$0xff] %v11533_v43  ;;  %9914 = vmatprep.mubr.bf16.mxu0 %v11536_v41 }
 0x178   : > { %2246 = vmatmul.mubr.bf16.gmra.mrb[164].mxu1 %v11204_v29  ;;  %v11541_v49 = vsel %vm3426_vm0, %v3466_v44, %v3468_v23 }
 0x179   : > { %15077 = vst [vmem:[#allocation33_spill] sm:$0xff] %v11541_v49  ;;  %v1364_v22 = vpop.f32.mrb[44].mxu0  ;;  %2253 = vmatprep.mubr.bf16.mxu1 %v11207_v30 }
 0x17a   : > { %v1654_v57 = vadd.f32 %v11280_v50, %v1364_v22  ;;  %v1366_v1 = vpop.f32.mrb[45].mxu0  ;;  %v11560_v50 = vld [vmem:[%s10722_s26 + $0x90] sm:$0xff]  }
 0x17b   : > { %v1367_v39 = vpop.f32.mrb[46].mxu0  ;;  %v11545_v8 = vpop.f32.mrb[60].mxu1 }
 0x17c   : > { %15078 = vst [vmem:[#allocation34_spill] sm:$0xff] %v11545_v8  ;;  %v3470_v15 = vrot.slane %v1654_v57, 7  ;;  %v1657_v26 = vadd.f32 %v11288_v46, %v1367_v39  ;;  %v1369_v43 = vpop.f32.mrb[47].mxu0  ;;  %v11548_v13 = vpop.f32.mrb[61].mxu1 }
 0x17d   : > { %v9873_v29 = vpop.f32.mrb[62].mxu1 }
 0x17e   : > { %9915 = vmatmul.mubr.bf16.gmra.mrb[152].mxu0 %v11551_v33  ;;  %v11554_v44 = vpop.f32.mrb[63].mxu1  ;;  %v11557_v30 = vsel %vm3426_vm0, %v3468_v23, %v3470_v15  ;;  %v3472_v39 = vrot.slane %v1657_v26, 7 }
 0x17f   : > { %15079 = vst [vmem:[#allocation35_spill] sm:$0xff] %v11557_v30  ;;  %9918 = vmatprep.mubr.bf16.mxu0 %v11560_v50 }
 0x180   : > { %2254 = vmatmul.mubr.bf16.gmra.mrb[168].mxu1 %v11225_v36  ;;  %v11572_v36 = vld [vmem:[%s10722_s26 + $0x98] sm:$0xff]  }
 0x181   : > { %v1372_v46 = vpop.f32.mrb[48].mxu0  ;;  %2261 = vmatprep.mubr.bf16.mxu1 %v11228_v37 }
 0x182   : > { %v1662_v43 = vadd.f32 %v11309_v54, %v1372_v46  ;;  %v1374_v22 = vpop.f32.mrb[49].mxu0  ;;  %v11579_v46 = vld [vmem:[%s10722_s26 + $0xa0] sm:$0xff]  }
 0x183   : > { %v1375_v57 = vpop.f32.mrb[50].mxu0  ;;  %v11566_v1 = vpop.f32.mrb[64].mxu1 }
 0x184   : > { %v3474_v23 = vrot.slane %v1662_v43, 7  ;;  %v1665_v15 = vadd.f32 %v11314_v53, %v1375_v57  ;;  %v1377_v29 = vpop.f32.mrb[51].mxu0  ;;  %v2049_v49 = vpop.f32.mrb[65].mxu1 }
 0x185   : > { %v11569_v30 = vpop.f32.mrb[66].mxu1 }
 0x186   : > { %v3476_v8 = vrot.slane %v1665_v15, 7  ;;  %9919 = vmatmul.mubr.bf16.gmra.mrb[156].mxu0 %v11572_v36  ;;  %v2052_v37 = vpop.f32.mrb[67].mxu1  ;;  %v11576_v54 = vsel %vm3426_vm0, %v3472_v39, %v3474_v23 }
 0x187   : > { %15080 = vst [vmem:[#allocation36_spill] sm:$0xff] %v11576_v54  ;;  %9922 = vmatprep.mubr.bf16.mxu0 %v11579_v46 }
 0x188   : > { %2262 = vmatmul.mubr.bf16.gmra.mrb[172].mxu1 %v11246_v47  ;;  %v11584_v53 = vsel %vm3426_vm0, %v3474_v23, %v3476_v8  ;;  %v11592_v47 = vld [vmem:[%s10722_s26 + $0xa8] sm:$0xff]  }
 0x189   : > { %15081 = vst [vmem:[#allocation37_spill] sm:$0xff] %v11584_v53  ;;  %v1380_v49 = vpop.f32.mrb[52].mxu0  ;;  %2269 = vmatprep.mubr.bf16.mxu1 %v11249_v51  ;;  %v11599_v51 = vld [vmem:[%s10722_s26 + $0xb0] sm:$0xff]  }
 0x18a   : > { %v1670_v26 = vadd.f32 %v11306_v18, %v1380_v49  ;;  %v1382_v43 = vpop.f32.mrb[53].mxu0 }
 0x18b   : > { %v1383_v22 = vpop.f32.mrb[54].mxu0  ;;  %v11588_v57 = vpop.f32.mrb[68].mxu1 }
 0x18c   : > { %v3478_v39 = vrot.slane %v1670_v26, 7  ;;  %v1673_v15 = vadd.f32 %v11311_v61, %v1383_v22  ;;  %v1385_v29 = vpop.f32.mrb[55].mxu0  ;;  %v2057_v37 = vpop.f32.mrb[69].mxu1 }
 0x18d   : > { %v2058_v54 = vpop.f32.mrb[70].mxu1 }
 0x18e   : > { %9923 = vmatmul.mubr.bf16.gmra.mrb[160].mxu0 %v11592_v47  ;;  %v2060_v23 = vpop.f32.mrb[71].mxu1  ;;  %v11596_v53 = vsel %vm3426_vm0, %v3476_v8, %v3478_v39  ;;  %v3480_v43 = vrot.slane %v1673_v15, 7 }
 0x18f   : > { %15082 = vst [vmem:[#allocation38_spill] sm:$0xff] %v11596_v53  ;;  %9926 = vmatprep.mubr.bf16.mxu0 %v11599_v51  ;;  %v11689_v53 = vld [vmem:[%s10722_s26 + $0xf8] sm:$0xff]  }
 0x190   : > { %2270 = vmatmul.mubr.bf16.gmra.mrb[176].mxu1 %v11274_v12  ;;  %v11611_v12 = vld [vmem:[%s10722_s26 + $0xb8] sm:$0xff]  }
 0x191   : > { %v1388_v18 = vpop.f32.mrb[56].mxu0  ;;  %2277 = vmatprep.mubr.bf16.mxu1 %v11278_v20 }
 0x192   : > { %v1678_v61 = vadd.f32 %v11335_v55, %v1388_v18  ;;  %v1390_v54 = vpop.f32.mrb[57].mxu0  ;;  %v11618_v18 = vld [vmem:[%s10722_s26 + $0xc0] sm:$0xff]  }
 0x193   : > { %v1391_v49 = vpop.f32.mrb[58].mxu0  ;;  %v11605_v26 = vpop.f32.mrb[72].mxu1 }
 0x194   : > { %v3482_v8 = vrot.slane %v1678_v61, 7  ;;  %v1681_v22 = vadd.f32 %v11340_v0, %v1391_v49  ;;  %v1393_v39 = vpop.f32.mrb[59].mxu0  ;;  %v2065_v29 = vpop.f32.mrb[73].mxu1 }
 0x195   : > { %v11608_v37 = vpop.f32.mrb[74].mxu1 }
 0x196   : > { %v3484_v23 = vrot.slane %v1681_v22, 7  ;;  %9927 = vmatmul.mubr.bf16.gmra.mrb[164].mxu0 %v11611_v12  ;;  %v2068_v20 = vpop.f32.mrb[75].mxu1  ;;  %v11615_v55 = vsel %vm3426_vm0, %v3480_v43, %v3482_v8 }
 0x197   : > { %15083 = vst [vmem:[#allocation39_spill] sm:$0xff] %v11615_v55  ;;  %9930 = vmatprep.mubr.bf16.mxu0 %v11618_v18 }
 0x198   : > { %2278 = vmatmul.mubr.bf16.gmra.mrb[180].mxu1 %v11301_v62  ;;  %v11623_v0 = vsel %vm3426_vm0, %v3482_v8, %v3484_v23  ;;  %v11631_v62 = vld [vmem:[%s10722_s26 + $0xc8] sm:$0xff]  }
 0x199   : > { %15084 = vst [vmem:[#allocation40_spill] sm:$0xff] %v11623_v0  ;;  %v1396_v15 = vpop.f32.mrb[60].mxu0  ;;  %2285 = vmatprep.mubr.bf16.mxu1 %v11304_v7  ;;  %v11638_v7 = vld [vmem:[%s10722_s26 + $0xd0] sm:$0xff]  }
 0x19a   : > { %v1686_v61 = vadd.f32 %v11332_v21, %v1396_v15  ;;  %v1398_v54 = vpop.f32.mrb[61].mxu0 }
 0x19b   : > { %v1399_v49 = vpop.f32.mrb[62].mxu0  ;;  %v11627_v43 = vpop.f32.mrb[76].mxu1 }
 0x19c   : > { %v3486_v22 = vrot.slane %v1686_v61, 7  ;;  %v1689_v39 = vadd.f32 %v11337_v28, %v1399_v49  ;;  %v1401_v29 = vpop.f32.mrb[63].mxu0  ;;  %v2073_v20 = vpop.f32.mrb[77].mxu1 }
 0x19d   : > { %v2074_v55 = vpop.f32.mrb[78].mxu1 }
 0x19e   : > { %9931 = vmatmul.mubr.bf16.gmra.mrb[168].mxu0 %v11631_v62  ;;  %v2076_v8 = vpop.f32.mrb[79].mxu1  ;;  %v11635_v0 = vsel %vm3426_vm0, %v3484_v23, %v3486_v22  ;;  %v3488_v54 = vrot.slane %v1689_v39, 7 }
 0x19f   : > { %15085 = vst [vmem:[#allocation41_spill] sm:$0xff] %v11635_v0  ;;  %9934 = vmatprep.mubr.bf16.mxu0 %v11638_v7  ;;  %v11650_v8 = vld [vmem:[%s10722_s26 + $0xd8] sm:$0xff]  }
 0x1a0   : > { %2286 = vmatmul.mubr.bf16.gmra.mrb[184].mxu1 %v11327_v35 }
 0x1a1   : > { %v1404_v21 = vpop.f32.mrb[64].mxu0  ;;  %2293 = vmatprep.mubr.bf16.mxu1 %v11330_v42 }
 0x1a2   : > { %v1694_v28 = vadd.f32 %v11355_v25, %v1404_v21  ;;  %v1406_v55 = vpop.f32.mrb[65].mxu0  ;;  %v11657_v21 = vld [vmem:[%s10722_s26 + $0xe0] sm:$0xff]  }
 0x1a3   : > { %v1407_v15 = vpop.f32.mrb[66].mxu0  ;;  %v11644_v61 = vpop.f32.mrb[80].mxu1 }
 0x1a4   : > { %v3490_v23 = vrot.slane %v1694_v28, 7  ;;  %v1697_v49 = vadd.f32 %v11360_v4, %v1407_v15  ;;  %v1409_v22 = vpop.f32.mrb[67].mxu0  ;;  %v2081_v29 = vpop.f32.mrb[81].mxu1  ;;  %v10551_v28 = vld [vmem:[%s10722_s26 + $0x10] sm:$0xff]  }
 0x1a5   : > { %v11647_v20 = vpop.f32.mrb[82].mxu1 }
 0x1a6   : > { %v3492_v35 = vrot.slane %v1697_v49, 7  ;;  %9935 = vmatmul.mubr.bf16.gmra.mrb[172].mxu0 %v11650_v8  ;;  %v2084_v42 = vpop.f32.mrb[83].mxu1  ;;  %v11654_v25 = vsel %vm3426_vm0, %v3488_v54, %v3490_v23 }
 0x1a7   : > { %15086 = vst [vmem:[#allocation42_spill] sm:$0xff] %v11654_v25  ;;  %9938 = vmatprep.mubr.bf16.mxu0 %v11657_v21 }
 0x1a8   : > { %2294 = vmatmul.mubr.bf16.gmra.mrb[188].mxu1 %v11350_v19  ;;  %v11662_v4 = vsel %vm3426_vm0, %v3490_v23, %v3492_v35  ;;  %v11670_v23 = vld [vmem:[%s10722_s26 + $0xe8] sm:$0xff]  }
 0x1a9   : > { %15087 = vst [vmem:[#allocation43_spill] sm:$0xff] %v11662_v4  ;;  %v1412_v39 = vpop.f32.mrb[68].mxu0  ;;  %2816 = vmatprep.mubr.bf16.mxu1 %v10551_v28 }
 0x1aa   : > { %v1702_v55 = vadd.f32 %v11352_v17, %v1412_v39  ;;  %v1414_v15 = vpop.f32.mrb[69].mxu0  ;;  %v11677_v17 = vld [vmem:[%s10722_s26 + $0xf0] sm:$0xff]   ;;  %v10554_v39 = vld [vmem:[%s10722_s26] sm:$0xff]  }
 0x1ab   : > { %v1415_v54 = vpop.f32.mrb[70].mxu0  ;;  %v11666_v49 = vpop.f32.mrb[84].mxu1 }
 0x1ac   : > { %v3494_v22 = vrot.slane %v1702_v55, 7  ;;  %v1705_v29 = vadd.f32 %v11357_v2, %v1415_v54  ;;  %v1417_v42 = vpop.f32.mrb[71].mxu0  ;;  %v2089_v19 = vpop.f32.mrb[85].mxu1  ;;  %v10555_v2 = vld [vmem:[%s10722_s26 + $0x18] sm:$0xff]  }
 0x1ad   : > { %v2090_v25 = vpop.f32.mrb[86].mxu1 }
 0x1ae   : > { %9939 = vmatmul.mubr.bf16.gmra.mrb[176].mxu0 %v11670_v23  ;;  %v2092_v4 = vpop.f32.mrb[87].mxu1  ;;  %v11674_v28 = vsel %vm3426_vm0, %v3492_v35, %v3494_v22  ;;  %v3496_v35 = vrot.slane %v1705_v29, 7  ;;  %v10558_v29 = vld [vmem:[%s10722_s26 + $0x8] sm:$0xff]  }
 0x1af   : > { %15088 = vst [vmem:[#allocation44_spill] sm:$0xff] %v11674_v28  ;;  %9942 = vmatprep.mubr.bf16.mxu0 %v11677_v17 }
 0x1b0   : > { %2817 = vmatmul.mubr.bf16.vlgmr.msra.gmra.mrb[192].mxu1 %v10554_v39 }
 0x1b1   : > { %v1420_v55 = vpop.f32.mrb[72].mxu0  ;;  %2824 = vmatprep.mubr.bf16.mxu1 %v10555_v2  ;;  %v11696_v2 = vld [vmem:[%s10722_s26 + $0x100] sm:$0xff]  }
 0x1b2   : > { %v1710_v25 = vadd.f32 %v11381_v45, %v1420_v55  ;;  %v1422_v15 = vpop.f32.mrb[73].mxu0 }
 0x1b3   : > { %v1423_v54 = vpop.f32.mrb[74].mxu0  ;;  %v11683_v4 = vpop.f32.mrb[88].mxu1  ;;  %v10559_v15 = vld [vmem:[%s10722_s26 + $0x20] sm:$0xff]  }
 0x1b4   : > { %v3498_v22 = vrot.slane %v1710_v25, 7  ;;  %v1713_v42 = vadd.f32 %v11389_v31, %v1423_v54  ;;  %v1425_v19 = vpop.f32.mrb[75].mxu0  ;;  %v2097_v28 = vpop.f32.mrb[89].mxu1  ;;  %v10454_v31 = vld [vmem:[%s14982_s2 + $0x80] sm:$0xff]  }
 0x1b5   : > { %v11686_v0 = vpop.f32.mrb[90].mxu1  ;;  %10034 = vmatprep.subr.bf16.mxu1 %v10454_v31 }
 0x1b6   : > { %15089 = vst [vmem:[#allocation45_spill] sm:$0xff] %v11686_v0  ;;  %v3500_v39 = vrot.slane %v1713_v42, 7  ;;  %9943 = vmatmul.mubr.bf16.gmra.mrb[180].mxu0 %v11689_v53  ;;  %v2100_v45 = vpop.f32.mrb[91].mxu1  ;;  %v11693_v55 = vsel %vm3426_vm0, %v3496_v35, %v3498_v22  ;;  %10035 = vmatpush3.bf16.msra.mxu1 %v10454_v31  ;;  %v11712_v0 = vld [vmem:[%s10722_s26 + $0x108] sm:$0xff]   ;;  %v10562_v31 = vld [vmem:[%s10722_s26 + $0x10] sm:$0xff]  }
 0x1b7   : > { %15090 = vst [vmem:[#allocation46_spill] sm:$0xff] %v11693_v55  ;;  %9946 = vmatprep.mubr.bf16.mxu0 %v11696_v2  ;;  %15092 = vst [vmem:[#allocation48_spill] sm:$0xff] %v11712_v0 }
 0x1b8   : > { %2825 = vmatmul.mubr.bf16.gmra.mrb[196].mxu1 %v10558_v29  ;;  %v11704_v28 = vsel %vm3426_vm0, %v3498_v22, %v3500_v39 }
 0x1b9   : > { %15091 = vst [vmem:[#allocation47_spill] sm:$0xff] %v11704_v28  ;;  %v1428_v25 = vpop.f32.mrb[76].mxu0  ;;  %2832 = vmatprep.mubr.bf16.mxu1 %v10559_v15 }
 0x1ba   : > { %v1718_v54 = vadd.f32 %v11375_v56, %v1428_v25  ;;  %v1430_v35 = vpop.f32.mrb[77].mxu0  ;;  %v11719_v25 = vld [vmem:[%s10722_s26 + $0x110] sm:$0xff]  }
 0x1bb   : > { %v1431_v42 = vpop.f32.mrb[78].mxu0  ;;  %v11708_v19 = vpop.f32.mrb[92].mxu1  ;;  %15094 = vst [vmem:[#allocation50_spill] sm:$0xff] %v11719_v25 }
 0x1bc   : > { %v3502_v45 = vrot.slane %v1718_v54, 7  ;;  %v1721_v29 = vadd.f32 %v11383_v34, %v1431_v42  ;;  %v1433_v55 = vpop.f32.mrb[79].mxu0  ;;  %v2105_v22 = vpop.f32.mrb[93].mxu1  ;;  %v10563_v34 = vld [vmem:[%s10722_s26 + $0x28] sm:$0xff]  }
 0x1bd   : > { %v2106_v28 = vpop.f32.mrb[94].mxu1 }
 0x1be   : > { %9947 = vmatmul.mubr.bf16.gmra.mrb[184].mxu0 %v11712_v0  ;;  %v2108_v15 = vpop.f32.mrb[95].mxu1  ;;  %v11716_v56 = vsel %vm3426_vm0, %v3500_v39, %v3502_v45  ;;  %v3504_v22 = vrot.slane %v1721_v29, 7  ;;  %v11731_v0 = vld [vmem:[%s10722_s26 + $0x118] sm:$0xff]  }
 0x1bf   : > { %15093 = vst [vmem:[#allocation49_spill] sm:$0xff] %v11716_v56  ;;  %9950 = vmatprep.mubr.bf16.mxu0 %v11719_v25  ;;  %15095 = vst [vmem:[#allocation51_spill] sm:$0xff] %v11731_v0  ;;  %v10565_v29 = vld [vmem:[%s10722_s26 + $0x18] sm:$0xff]  }
 0x1c0   : > { %2833 = vmatmul.mubr.bf16.gmra.mrb[200].mxu1 %v10562_v31 }
 0x1c1   : > { %v1436_v54 = vpop.f32.mrb[80].mxu0  ;;  %2840 = vmatprep.mubr.bf16.mxu1 %v10563_v34  ;;  %v15097_v34 = vld [vmem:[#allocation10_spill] sm:$0xff] }
 0x1c2   : > { %v1726_v55 = vadd.f32 %v11408_v6, %v1436_v54  ;;  %v1438_v28 = vpop.f32.mrb[81].mxu0 }
 0x1c3   : > { %v1439_v35 = vpop.f32.mrb[82].mxu0  ;;  %v11725_v42 = vpop.f32.mrb[96].mxu1 }
 0x1c4   : > { %v3506_v39 = vrot.slane %v1726_v55, 7  ;;  %v1729_v45 = vadd.f32 %v11419_v5, %v1439_v35  ;;  %v1441_v15 = vpop.f32.mrb[83].mxu0  ;;  %v2113_v56 = vpop.f32.mrb[97].mxu1 }
 0x1c5   : > { %v11728_v25 = vpop.f32.mrb[98].mxu1  ;;  %v10566_v56 = vld [vmem:[%s10722_s26 + $0x30] sm:$0xff]  }
 0x1c6   : > { %v3508_v31 = vrot.slane %v1729_v45, 7  ;;  %9951 = vmatmul.mubr.bf16.gmra.mrb[188].mxu0 %v11731_v0  ;;  %v2116_v6 = vpop.f32.mrb[99].mxu1  ;;  %v11735_v54 = vsel %vm3426_vm0, %v3504_v22, %v3506_v39  ;;  %v10455_v22 = vld [vmem:[%s14982_s2] sm:$0xff]  }
 0x1c7   : > { %15096 = vst [vmem:[#allocation52_spill] sm:$0xff] %v11735_v54  ;;  %9970 = vmatprep.mubr.bf16.mxu0 %v15097_v34  ;;  %v15099_v54 = vld [vmem:[#allocation12_spill] sm:$0xff]  ;;  %v10567_v0 = vld [vmem:[%s10722_s26 + $0x20] sm:$0xff]  }
 0x1c8   : > { %2841 = vmatmul.mubr.bf16.gmra.mrb[204].mxu1 %v10565_v29  ;;  %v11740_v55 = vsel %vm3426_vm0, %v3506_v39, %v3508_v31 }
 0x1c9   : > { %15098 = vst [vmem:[#allocation10_spill] sm:$0xff] %v11740_v55  ;;  %v1444_v5 = vpop.f32.mrb[84].mxu0  ;;  %2848 = vmatprep.mubr.bf16.mxu1 %v10566_v56 }
 0x1ca   : > { %v1734_v28 = vadd.f32 %v11405_v60, %v1444_v5  ;;  %v1446_v35 = vpop.f32.mrb[85].mxu0  ;;  %v15100_v5 = vld [vmem:[#allocation14_spill] sm:$0xff] }
 0x1cb   : > { %v1447_v45 = vpop.f32.mrb[86].mxu0  ;;  %v11744_v15 = vpop.f32.mrb[100].mxu1  ;;  %v10456_v35 = vld [vmem:[%s14982_s2 + $0x8] sm:$0xff]  }
 0x1cc   : > { %v3510_v6 = vrot.slane %v1734_v28, 7  ;;  %v1737_v34 = vadd.f32 %v11413_v58, %v1447_v45  ;;  %v1449_v39 = vpop.f32.mrb[87].mxu0  ;;  %v2121_v29 = vpop.f32.mrb[101].mxu1  ;;  %v10568_v28 = vld [vmem:[%s10722_s26 + $0x38] sm:$0xff]  }
 0x1cd   : > { %v2122_v55 = vpop.f32.mrb[102].mxu1 }
 0x1ce   : > { %9971 = vmatmul.mubr.bf16.vlgmr.msra.gmra.mrb[192].mxu0 %v15099_v54  ;;  %v2124_v56 = vpop.f32.mrb[103].mxu1  ;;  %v11752_v60 = vsel %vm3426_vm0, %v3508_v31, %v3510_v6  ;;  %v3512_v6 = vrot.slane %v1737_v34, 7  ;;  %v10459_v34 = vld [vmem:[%s14982_s2 + $0x88] sm:$0xff]  }
 0x1cf   : > { %9974 = vmatprep.mubr.bf16.mxu0 %v15100_v5  ;;  %4651 = vmatpush1.bf16.msra.mxu0 %v10455_v22  ;;  %v10457_v22 = vld [vmem:[%s14982_s2 + $0x10] sm:$0xff]  }
 0x1d0   : > { %2849 = vmatmul.mubr.bf16.gmra.mrb[208].mxu1 %v10567_v0  ;;  %4652 = vmatprep.subr.bf16.mxu0 %v15070_v10 }
 0x1d1   : > { %v1452_v58 = vpop.f32.mrb[88].mxu0  ;;  %2856 = vmatprep.mubr.bf16.mxu1 %v10568_v28  ;;  %10036 = vmatprep.subr.bf16.mxu1 %v10459_v34 }
 0x1d2   : > { %v1742_v54 = vadd.f32 %v11440_v27, %v1452_v58  ;;  %v1454_v55 = vpop.f32.mrb[89].mxu0  ;;  %v15101_v58 = vld [vmem:[#allocation15_spill] sm:$0xff]  ;;  %10037 = vmatpush3.bf16.msra.mxu1 %v10459_v34 }
 0x1d3   : > { %v1455_v45 = vpop.f32.mrb[90].mxu0  ;;  %v11762_v31 = vpop.f32.mrb[104].mxu1  ;;  %4653 = vmatpush1.bf16.msra.mxu0 %v10456_v35  ;;  %v15102_v55 = vld [vmem:[#allocation17_spill] sm:$0xff] }
 0x1d4   : > { %v3514_v39 = vrot.slane %v1742_v54, 7  ;;  %v1745_v0 = vadd.f32 %v11451_v59, %v1455_v45  ;;  %v1457_v29 = vpop.f32.mrb[91].mxu0  ;;  %v2129_v56 = vpop.f32.mrb[105].mxu1  ;;  %4654 = vmatprep.subr.bf16.mxu0 %v15070_v10  ;;  %v10458_v59 = vld [vmem:[%s14982_s2 + $0x18] sm:$0xff]   ;;  %v10569_v54 = vld [vmem:[%s10722_s26 + $0x28] sm:$0xff]  }
 0x1d5   : > { %v11769_v27 = vpop.f32.mrb[106].mxu1 }
 0x1d6   : > { %v3516_v5 = vrot.slane %v1745_v0, 7  ;;  %9975 = vmatmul.mubr.bf16.gmra.mrb[196].mxu0 %v15101_v58  ;;  %v2132_v35 = vpop.f32.mrb[107].mxu1  ;;  %v11773_v28 = vsel %vm3426_vm0, %v3512_v6, %v3514_v39  ;;  %v10570_v0 = vld [vmem:[%s10722_s26 + $0x40] sm:$0xff]  }
 0x1d7   : > { %9978 = vmatprep.mubr.bf16.mxu0 %v15102_v55  ;;  %4655 = vmatpush1.bf16.msra.mxu0 %v10457_v22  ;;  %v10460_v35 = vld [vmem:[%s14982_s2 + $0x20] sm:$0xff]  }
 0x1d8   : > { %2857 = vmatmul.mubr.bf16.gmra.mrb[212].mxu1 %v10569_v54  ;;  %4656 = vmatprep.subr.bf16.mxu0 %v15070_v10  ;;  %v11785_v45 = vsel %vm3426_vm0, %v3514_v39, %v3516_v5 }
 0x1d9   : > { %15103 = vst [vmem:[#allocation12_spill] sm:$0xff] %v11785_v45  ;;  %v1460_v6 = vpop.f32.mrb[92].mxu0  ;;  %2864 = vmatprep.mubr.bf16.mxu1 %v10570_v0  ;;  %v10571_v45 = vld [vmem:[%s10722_s26 + $0x30] sm:$0xff]  }
 0x1da   : > { %v1750_v22 = vadd.f32 %v11437_v32, %v1460_v6  ;;  %v1462_v29 = vpop.f32.mrb[93].mxu0  ;;  %v15104_v6 = vld [vmem:[#allocation19_spill] sm:$0xff] }
 0x1db   : > { %v1463_v56 = vpop.f32.mrb[94].mxu0  ;;  %v11789_v58 = vpop.f32.mrb[108].mxu1  ;;  %4657 = vmatpush1.bf16.msra.mxu0 %v10458_v59  ;;  %v15105_v59 = vld [vmem:[#allocation21_spill] sm:$0xff] }
 0x1dc   : > { %v3518_v55 = vrot.slane %v1750_v22, 7  ;;  %v1753_v39 = vadd.f32 %v11445_v11, %v1463_v56  ;;  %v1465_v54 = vpop.f32.mrb[95].mxu0  ;;  %v2137_v0 = vpop.f32.mrb[109].mxu1  ;;  %4658 = vmatprep.subr.bf16.mxu0 %v15070_v10  ;;  %v10461_v22 = vld [vmem:[%s14982_s2 + $0x28] sm:$0xff]  }
 0x1dd   : > { %v2138_v32 = vpop.f32.mrb[110].mxu1  ;;  %v10572_v56 = vld [vmem:[%s10722_s26 + $0x48] sm:$0xff]  }
 0x1de   : > { %9979 = vmatmul.mubr.bf16.gmra.mrb[200].mxu0 %v15104_v6  ;;  %v2140_v34 = vpop.f32.mrb[111].mxu1  ;;  %v11798_v29 = vsel %vm3426_vm0, %v3516_v5, %v3518_v55 }
 0x1df   : > { %9982 = vmatprep.mubr.bf16.mxu0 %v15105_v59  ;;  %4659 = vmatpush1.bf16.msra.mxu0 %v10460_v35  ;;  %v3520_v35 = vrot.slane %v1753_v39, 7  ;;  %v10462_v39 = vld [vmem:[%s14982_s2 + $0x30] sm:$0xff]  }
 0x1e0   : > { %2865 = vmatmul.mubr.bf16.gmra.mrb[216].mxu1 %v10571_v45  ;;  %4660 = vmatprep.subr.bf16.mxu0 %v15070_v10 }
 0x1e1   : > { %v1468_v11 = vpop.f32.mrb[96].mxu0  ;;  %2872 = vmatprep.mubr.bf16.mxu1 %v10572_v56 }
 0x1e2   : > { %v1758_v54 = vadd.f32 %v11469_v40, %v1468_v11  ;;  %v1470_v0 = vpop.f32.mrb[97].mxu0 }
 0x1e3   : > { %v1471_v32 = vpop.f32.mrb[98].mxu0  ;;  %v11808_v5 = vpop.f32.mrb[112].mxu1  ;;  %4661 = vmatpush1.bf16.msra.mxu0 %v10461_v22  ;;  %v10574_v0 = vld [vmem:[%s10722_s26 + $0x50] sm:$0xff]  }
 0x1e4   : > { %v3522_v55 = vrot.slane %v1758_v54, 7  ;;  %v1761_v6 = vadd.f32 %v11480_v63, %v1471_v32  ;;  %v1473_v34 = vpop.f32.mrb[99].mxu0  ;;  %v2145_v45 = vpop.f32.mrb[113].mxu1  ;;  %4662 = vmatprep.subr.bf16.mxu0 %v15070_v10  ;;  %v10573_v63 = vld [vmem:[%s10722_s26 + $0x38] sm:$0xff]  }
 0x1e5   : > { %v11812_v59 = vpop.f32.mrb[114].mxu1  ;;  %v15108_v45 = vld [vmem:[#allocation23_spill] sm:$0xff] }
 0x1e6   : > { %v3524_v56 = vrot.slane %v1761_v6, 7  ;;  %9983 = vmatmul.mubr.bf16.gmra.mrb[204].mxu0 %v11477_v3  ;;  %v2148_v40 = vpop.f32.mrb[115].mxu1  ;;  %v11816_v11 = vsel %vm3426_vm0, %v3520_v35, %v3522_v55  ;;  %v15107_v3 = vld [vmem:[#allocation22_spill] sm:$0xff] }
 0x1e7   : > { %9986 = vmatprep.mubr.bf16.mxu0 %v11486_v48  ;;  %4663 = vmatpush1.bf16.msra.mxu0 %v10462_v39 }
 0x1e8   : > { %2873 = vmatmul.mubr.bf16.gmra.mrb[220].mxu1 %v10573_v63  ;;  %v11824_v22 = vsel %vm3426_vm0, %v3522_v55, %v3524_v56  ;;  %4664 = vmatprep.subr.bf16.mxu0 %v15070_v10 }
 0x1e9   : > { %15106 = vst [vmem:[#allocation14_spill] sm:$0xff] %v11824_v22  ;;  %v1476_v54 = vpop.f32.mrb[100].mxu0  ;;  %2880 = vmatprep.mubr.bf16.mxu1 %v10574_v0 }
 0x1ea   : > { %v1766_v32 = vadd.f32 %v15107_v3, %v1476_v54  ;;  %v1478_v35 = vpop.f32.mrb[101].mxu0  ;;  %v10463_v54 = vld [vmem:[%s14982_s2 + $0x38] sm:$0xff]   ;;  %v10575_v3 = vld [vmem:[%s10722_s26 + $0x40] sm:$0xff]  }
 0x1eb   : > { %v1479_v48 = vpop.f32.mrb[102].mxu0  ;;  %v11829_v6 = vpop.f32.mrb[116].mxu1  ;;  %v10576_v35 = vld [vmem:[%s10722_s26 + $0x58] sm:$0xff]   ;;  %4665 = vmatpush1.bf16.msra.mxu0 %v10463_v54 }
 0x1ec   : > { %v3526_v34 = vrot.slane %v1766_v32, 7  ;;  %v1769_v40 = vadd.f32 %v15108_v45, %v1479_v48  ;;  %v1481_v63 = vpop.f32.mrb[103].mxu0  ;;  %v2153_v55 = vpop.f32.mrb[117].mxu1  ;;  %4666 = vmatprep.subr.bf16.mxu0 %v15070_v10  ;;  %v15109_v45 = vld [vmem:[#allocation28_spill] sm:$0xff] }
 0x1ed   : > { %v2154_v22 = vpop.f32.mrb[118].mxu1 }
 0x1ee   : > { %9987 = vmatmul.mubr.bf16.gmra.mrb[208].mxu0 %v11504_v9  ;;  %v2156_v0 = vpop.f32.mrb[119].mxu1  ;;  %v11834_v39 = vsel %vm3426_vm0, %v3524_v56, %v3526_v34 }
 0x1ef   : > { %9990 = vmatprep.mubr.bf16.mxu0 %v11513_v14  ;;  %v3528_v14 = vrot.slane %v1769_v40, 7  ;;  %v10464_v40 = vld [vmem:[%s14982_s2 + $0x90] sm:$0xff]  }
 0x1f0   : > { %2881 = vmatmul.mubr.bf16.gmra.mrb[224].mxu1 %v10575_v3  ;;  %10038 = vmatprep.subr.bf16.mxu1 %v10464_v40 }
 0x1f1   : > { %v1484_v32 = vpop.f32.mrb[104].mxu0  ;;  %2888 = vmatprep.mubr.bf16.mxu1 %v10576_v35  ;;  %10039 = vmatpush3.bf16.msra.mxu1 %v10464_v40  ;;  %v10466_v40 = vld [vmem:[%s14982_s2 + $0x48] sm:$0xff]  }
 0x1f2   : > { %v1774_v22 = vadd.f32 %v11498_v38, %v1484_v32  ;;  %v1486_v48 = vpop.f32.mrb[105].mxu0  ;;  %v10465_v32 = vld [vmem:[%s14982_s2 + $0x40] sm:$0xff]  }
 0x1f3   : > { %v1487_v9 = vpop.f32.mrb[106].mxu0  ;;  %v11844_v56 = vpop.f32.mrb[120].mxu1  ;;  %4667 = vmatpush1.bf16.msra.mxu0 %v10465_v32  ;;  %v10579_v32 = vld [vmem:[%s10722_s26 + $0x50] sm:$0xff]  }
 0x1f4   : > { %v3530_v34 = vrot.slane %v1774_v22, 7  ;;  %v1777_v63 = vadd.f32 %v15109_v45, %v1487_v9  ;;  %v1489_v55 = vpop.f32.mrb[107].mxu0  ;;  %v2161_v0 = vpop.f32.mrb[121].mxu1  ;;  %v10577_v22 = vld [vmem:[%s10722_s26 + $0x48] sm:$0xff]   ;;  %v10578_v9 = vld [vmem:[%s10722_s26 + $0x60] sm:$0xff]   ;;  %4668 = vmatprep.subr.bf16.mxu0 %v15070_v10 }
 0x1f5   : > { %v11847_v3 = vpop.f32.mrb[122].mxu1 }
 0x1f6   : > { %v3532_v35 = vrot.slane %v1777_v63, 7  ;;  %9991 = vmatmul.mubr.bf16.gmra.mrb[212].mxu0 %v11527_v16  ;;  %v2164_v38 = vpop.f32.mrb[123].mxu1  ;;  %v11851_v54 = vsel %vm3426_vm0, %v3528_v14, %v3530_v34  ;;  %v15112_v14 = vld [vmem:[#allocation26_spill] sm:$0xff] }
 0x1f7   : > { %15110 = vst [vmem:[#allocation15_spill] sm:$0xff] %v11851_v54  ;;  %9994 = vmatprep.mubr.bf16.mxu0 %v11536_v41  ;;  %v15113_v38 = vld [vmem:[#allocation27_spill] sm:$0xff]  ;;  %4669 = vmatpush1.bf16.msra.mxu0 %v10466_v40 }
 0x1f8   : > { %2889 = vmatmul.mubr.bf16.gmra.mrb[228].mxu1 %v10577_v22  ;;  %v11862_v48 = vsel %vm3426_vm0, %v3530_v34, %v3532_v35  ;;  %4670 = vmatprep.subr.bf16.mxu0 %v15070_v10 }
 0x1f9   : > { %15111 = vst [vmem:[#allocation17_spill] sm:$0xff] %v11862_v48  ;;  %v1492_v16 = vpop.f32.mrb[108].mxu0  ;;  %2896 = vmatprep.mubr.bf16.mxu1 %v10578_v9 }
 0x1fa   : > { %v1782_v45 = vadd.f32 %v15112_v14, %v1492_v16  ;;  %v1494_v41 = vpop.f32.mrb[109].mxu0 }
 0x1fb   : > { %v1495_v63 = vpop.f32.mrb[110].mxu0  ;;  %v11866_v55 = vpop.f32.mrb[124].mxu1 }
 0x1fc   : > { %v3534_v0 = vrot.slane %v1782_v45, 7  ;;  %v1785_v34 = vadd.f32 %v15113_v38, %v1495_v63  ;;  %v1497_v22 = vpop.f32.mrb[111].mxu0  ;;  %v2169_v48 = vpop.f32.mrb[125].mxu1  ;;  %v10580_v45 = vld [vmem:[%s10722_s26 + $0x68] sm:$0xff]  }
 0x1fd   : > { %v2170_v54 = vpop.f32.mrb[126].mxu1 }
 0x1fe   : > { %9995 = vmatmul.mubr.bf16.gmra.mrb[216].mxu0 %v11551_v33  ;;  %v2172_v9 = vpop.f32.mrb[127].mxu1  ;;  %v11872_v16 = vsel %vm3426_vm0, %v3532_v35, %v3534_v0 }
 0x1ff   : > { %9998 = vmatprep.mubr.bf16.mxu0 %v11560_v50  ;;  %v3536_v50 = vrot.slane %v1785_v34, 7  ;;  %v10467_v34 = vld [vmem:[%s14982_s2 + $0x50] sm:$0xff]  }
 0x200   : > { %2897 = vmatmul.mubr.bf16.gmra.mrb[232].mxu1 %v10579_v32  ;;  %v10581_v32 = vld [vmem:[%s10722_s26 + $0x58] sm:$0xff]   ;;  %4671 = vmatpush1.bf16.msra.mxu0 %v10467_v34 }
 0x201   : > { %v1500_v14 = vpop.f32.mrb[112].mxu0  ;;  %2904 = vmatprep.mubr.bf16.mxu1 %v10580_v45  ;;  %v10582_v45 = vld [vmem:[%s10722_s26 + $0x70] sm:$0xff]   ;;  %4672 = vmatprep.subr.bf16.mxu0 %v15070_v10 }
 0x202   : > { %v1790_v54 = vadd.f32 %v11522_v52, %v1500_v14  ;;  %v1502_v48 = vpop.f32.mrb[113].mxu0 }
 0x203   : > { %v1503_v33 = vpop.f32.mrb[114].mxu0  ;;  %v11882_v35 = vpop.f32.mrb[128].mxu1 }
 0x204   : > { %v3538_v41 = vrot.slane %v1790_v54, 7  ;;  %v1793_v63 = vadd.f32 %v11530_v24, %v1503_v33  ;;  %v1505_v0 = vpop.f32.mrb[115].mxu0  ;;  %v2177_v38 = vpop.f32.mrb[129].mxu1  ;;  %v15114_v54 = vld [vmem:[#allocation30_spill] sm:$0xff] }
 0x205   : > { %v11885_v22 = vpop.f32.mrb[130].mxu1 }
 0x206   : > { %v3540_v9 = vrot.slane %v1793_v63, 7  ;;  %v2180_v40 = vpop.f32.mrb[131].mxu1  ;;  %9999 = vmatmul.mubr.bf16.gmra.mrb[220].mxu0 %v11572_v36  ;;  %v11889_v52 = vsel %vm3426_vm0, %v3536_v50, %v3538_v41  ;;  %v15115_v63 = vld [vmem:[#allocation31_spill] sm:$0xff] }
 0x207   : > { %10002 = vmatprep.mubr.bf16.mxu0 %v11579_v46 }
 0x208   : > { %2905 = vmatmul.mubr.bf16.gmra.mrb[236].mxu1 %v10581_v32  ;;  %v11897_v24 = vsel %vm3426_vm0, %v3538_v41, %v3540_v9 }
 0x209   : > { %v1508_v14 = vpop.f32.mrb[116].mxu0  ;;  %2912 = vmatprep.mubr.bf16.mxu1 %v10582_v45  ;;  %v10583_v45 = vld [vmem:[%s10722_s26 + $0x60] sm:$0xff]  }
 0x20a   : > { %v1798_v36 = vadd.f32 %v15114_v54, %v1508_v14  ;;  %v1510_v48 = vpop.f32.mrb[117].mxu0  ;;  %v10468_v14 = vld [vmem:[%s14982_s2 + $0x58] sm:$0xff]  }
 0x20b   : > { %v1511_v46 = vpop.f32.mrb[118].mxu0  ;;  %v11902_v33 = vpop.f32.mrb[132].mxu1  ;;  %4673 = vmatpush1.bf16.msra.mxu0 %v10468_v14 }
 0x20c   : > { %v3542_v50 = vrot.slane %v1798_v36, 7  ;;  %v1801_v0 = vadd.f32 %v15115_v63, %v1511_v46  ;;  %v1513_v38 = vpop.f32.mrb[119].mxu0  ;;  %v2185_v41 = vpop.f32.mrb[133].mxu1  ;;  %v10584_v36 = vld [vmem:[%s10722_s26 + $0x78] sm:$0xff]   ;;  %4674 = vmatprep.subr.bf16.mxu0 %v15070_v10 }
 0x20d   : > { %v2186_v40 = vpop.f32.mrb[134].mxu1 }
 0x20e   : > { %v2188_v32 = vpop.f32.mrb[135].mxu1  ;;  %10003 = vmatmul.mubr.bf16.gmra.mrb[224].mxu0 %v11592_v47  ;;  %v11907_v34 = vsel %vm3426_vm0, %v3540_v9, %v3542_v50 }
 0x20f   : > { %10006 = vmatprep.mubr.bf16.mxu0 %v11599_v51  ;;  %v3544_v51 = vrot.slane %v1801_v0, 7  ;;  %v10469_v0 = vld [vmem:[%s14982_s2 + $0x98] sm:$0xff]  }
 0x210   : > { %2913 = vmatmul.mubr.bf16.gmra.mrb[240].mxu1 %v10583_v45  ;;  %v10585_v45 = vld [vmem:[%s10722_s26 + $0x68] sm:$0xff]   ;;  %10040 = vmatprep.subr.bf16.mxu1 %v10469_v0 }
 0x211   : > { %v1516_v54 = vpop.f32.mrb[120].mxu0  ;;  %2920 = vmatprep.mubr.bf16.mxu1 %v10584_v36  ;;  %10041 = vmatpush3.bf16.msra.mxu1 %v10469_v0  ;;  %v10471_v0 = vld [vmem:[%s14982_s2 + $0x68] sm:$0xff]  }
 0x212   : > { %v1806_v48 = vadd.f32 %v11548_v13, %v1516_v54  ;;  %v1518_v46 = vpop.f32.mrb[121].mxu0 }
 0x213   : > { %v1519_v47 = vpop.f32.mrb[122].mxu0  ;;  %v11917_v9 = vpop.f32.mrb[136].mxu1 }
 0x214   : > { %v3546_v50 = vrot.slane %v1806_v48, 7  ;;  %v1809_v63 = vadd.f32 %v11554_v44, %v1519_v47  ;;  %v1521_v38 = vpop.f32.mrb[123].mxu0  ;;  %v2193_v41 = vpop.f32.mrb[137].mxu1  ;;  %v10470_v44 = vld [vmem:[%s14982_s2 + $0x60] sm:$0xff]   ;;  %v15116_v48 = vld [vmem:[#allocation34_spill] sm:$0xff] }
 0x215   : > { %v11920_v40 = vpop.f32.mrb[138].mxu1  ;;  %4675 = vmatpush1.bf16.msra.mxu0 %v10470_v44  ;;  %v10587_v44 = vld [vmem:[%s10722_s26 + $0x70] sm:$0xff]  }
 0x216   : > { %v3548_v32 = vrot.slane %v1809_v63, 7  ;;  %v2196_v14 = vpop.f32.mrb[139].mxu1  ;;  %10007 = vmatmul.mubr.bf16.gmra.mrb[228].mxu0 %v11611_v12  ;;  %v11924_v13 = vsel %vm3426_vm0, %v3544_v51, %v3546_v50  ;;  %v10586_v12 = vld [vmem:[%s10722_s26 + $0x80] sm:$0xff]   ;;  %4676 = vmatprep.subr.bf16.mxu0 %v15070_v10 }
 0x217   : > { %10010 = vmatprep.mubr.bf16.mxu0 %v11618_v18 }
 0x218   : > { %2921 = vmatmul.mubr.bf16.gmra.mrb[244].mxu1 %v10585_v45  ;;  %v11935_v54 = vsel %vm3426_vm0, %v3546_v50, %v3548_v32 }
 0x219   : > { %v1524_v36 = vpop.f32.mrb[124].mxu0  ;;  %2928 = vmatprep.mubr.bf16.mxu1 %v10586_v12  ;;  %v10588_v12 = vld [vmem:[%s10722_s26 + $0x88] sm:$0xff]   ;;  %4677 = vmatpush1.bf16.msra.mxu0 %v10471_v0 }
 0x21a   : > { %v1814_v46 = vadd.f32 %v15116_v48, %v1524_v36  ;;  %v1526_v18 = vpop.f32.mrb[125].mxu0  ;;  %4678 = vmatprep.subr.bf16.mxu0 %v15070_v10 }
 0x21b   : > { %v1527_v47 = vpop.f32.mrb[126].mxu0  ;;  %v11939_v51 = vpop.f32.mrb[140].mxu1  ;;  %v15117_v18 = vld [vmem:[#allocation5_spill] sm:$0xff] }
 0x21c   : > { %v3550_v63 = vrot.slane %v1814_v46, 7  ;;  %v1529_v38 = vpop.f32.mrb[127].mxu0  ;;  %v2201_v50 = vpop.f32.mrb[141].mxu1 }
 0x21d   : > { %v2202_v41 = vpop.f32.mrb[142].mxu1 }
 0x21e   : > { %v2204_v14 = vpop.f32.mrb[143].mxu1  ;;  %10011 = vmatmul.mubr.bf16.gmra.mrb[232].mxu0 %v11631_v62  ;;  %v11944_v45 = vsel %vm3426_vm0, %v3548_v32, %v3550_v63  ;;  %v15118_v63 = vld [vmem:[#allocation3_spill] sm:$0xff] }
 0x21f   : > { %10014 = vmatprep.mubr.bf16.mxu0 %v11638_v7  ;;  %v15119_v38 = vrot.slane %v15118_v63, 7 }
 0x220   : > { %2929 = vmatmul.mubr.bf16.gmra.mrb[248].mxu1 %v10587_v44 }
 0x221   : > { %v9892_v36 = vpop.f32.mrb[128].mxu0  ;;  %2936 = vmatprep.mubr.bf16.mxu1 %v10588_v12  ;;  %v3618_v50 = vsel %vm3426_vm0, %v15118_v63, %v15119_v38 }
 0x222   : > { %v2345_v48 = vadd.f32 %v9892_v36, %v11588_v57  ;;  %v2336_v46 = vpop.f32.mrb[129].mxu0  ;;  %v15120_v36 = vld [vmem:[#allocation4_spill] sm:$0xff] }
 0x223   : > { %v2337_v62 = vadd.f32 %v2336_v46, %v11566_v1  ;;  %v9893_v32 = vpop.f32.mrb[130].mxu0  ;;  %v11955_v7 = vpop.f32.mrb[144].mxu1 }
 0x224   : > { %v11958_v47 = vadd.f32 %v15117_v18, %v2345_v48  ;;  %v2339_v41 = vpop.f32.mrb[131].mxu0  ;;  %v2209_v57 = vpop.f32.mrb[145].mxu1  ;;  %v10589_v48 = vld [vmem:[%s10722_s26 + $0x78] sm:$0xff]   ;;  %v10590_v32 = vld [vmem:[%s10722_s26 + $0x90] sm:$0xff]  }
 0x225   : > { %v11964_v14 = vadd.f32 %v3618_v50, %v2337_v62  ;;  %v2340_v0 = vadd.f32 %v2339_v41, %v11569_v30  ;;  %v11967_v44 = vpop.f32.mrb[146].mxu1 }
 0x226   : > { %v2212_v1 = vpop.f32.mrb[147].mxu1  ;;  %10015 = vmatmul.mubr.bf16.gmra.mrb[236].mxu0 %v11650_v8  ;;  %v15121_v8 = vld [vmem:[#allocation8_spill] sm:$0xff] }
 0x227   : > { %v11971_v12 = vadd.f32 %v15120_v36, %v2340_v0  ;;  %10018 = vmatprep.mubr.bf16.mxu0 %v11657_v21  ;;  %v10473_v21 = vld [vmem:[%s14982_s2 + $0xa0] sm:$0xff]   ;;  %v15122_v0 = vld [vmem:[#allocation6_spill] sm:$0xff]  ;;  %v10472_v36 = vld [vmem:[%s14982_s2 + $0x70] sm:$0xff]  }
 0x228   : > { %2937 = vmatmul.mubr.bf16.gmra.mrb[252].mxu1 %v10589_v48  ;;  %10042 = vmatprep.subr.bf16.mxu1 %v10473_v21 }
 0x229   : > { %v9896_v46 = vpop.f32.mrb[132].mxu0  ;;  %2944 = vmatprep.mubr.bf16.mxu1 %v10590_v32  ;;  %4679 = vmatpush1.bf16.msra.mxu0 %v10472_v36 }
 0x22a   : > { %v2361_v62 = vadd.f32 %v9896_v46, %v11627_v43  ;;  %v2352_v18 = vpop.f32.mrb[133].mxu0  ;;  %v15123_v46 = vld [vmem:[#allocation7_spill] sm:$0xff]  ;;  %4680 = vmatprep.subr.bf16.mxu0 %v15070_v10  ;;  %10043 = vmatpush3.bf16.msra.mxu1 %v10473_v21  ;;  %v10476_v21 = vld [vmem:[%s14982_s2 + $0xb0] sm:$0xff]  }
 0x22b   : > { %v2353_v30 = vadd.f32 %v2352_v18, %v11605_v26  ;;  %v9897_v63 = vpop.f32.mrb[134].mxu0  ;;  %v11978_v38 = vpop.f32.mrb[148].mxu1 }
 0x22c   : > { %v11981_v50 = vadd.f32 %v15121_v8, %v2361_v62  ;;  %v2355_v41 = vpop.f32.mrb[135].mxu0  ;;  %v2217_v57 = vpop.f32.mrb[149].mxu1  ;;  %v10591_v62 = vld [vmem:[%s10722_s26 + $0x80] sm:$0xff]  }
 0x22d   : > { %v11987_v1 = vadd.f32 %v15122_v0, %v2353_v30  ;;  %v2356_v43 = vadd.f32 %v2355_v41, %v11608_v37  ;;  %v2218_v26 = vpop.f32.mrb[150].mxu1  ;;  %v10475_v37 = vld [vmem:[%s14982_s2 + $0xa8] sm:$0xff]   ;;  %v10592_v30 = vld [vmem:[%s10722_s26 + $0x98] sm:$0xff]   ;;  %v15124_v0 = vld [vmem:[#allocation13_spill] sm:$0xff] }
 0x22e   : > { %v2220_v48 = vpop.f32.mrb[151].mxu1  ;;  %10019 = vmatmul.mubr.bf16.gmra.mrb[240].mxu0 %v11670_v23  ;;  %v10474_v23 = vld [vmem:[%s14982_s2 + $0x78] sm:$0xff]   ;;  %10044 = vmatprep.subr.bf16.mxu1 %v10475_v37 }
 0x22f   : > { %v11995_v32 = vadd.f32 %v15123_v46, %v2356_v43  ;;  %10022 = vmatprep.mubr.bf16.mxu0 %v11677_v17  ;;  %4681 = vmatpush1.bf16.msra.mxu0 %v10474_v23  ;;  %v10593_v23 = vld [vmem:[%s10722_s26 + $0x88] sm:$0xff]  }
 0x230   : > { %2945 = vmatmul.mubr.bf16.gmra.mrb[0].mxu1 %v10591_v62 }
 0x231   : > { %v9900_v18 = vpop.f32.mrb[136].mxu0  ;;  %2952 = vmatprep.mubr.bf16.mxu1 %v10592_v30  ;;  %10045 = vmatpush3.bf16.msra.mxu1 %v10475_v37 }
 0x232   : > { %v2377_v63 = vadd.f32 %v9900_v18, %v11666_v49  ;;  %v2368_v17 = vpop.f32.mrb[137].mxu0  ;;  %v15125_v49 = vld [vmem:[#allocation9_spill] sm:$0xff]  ;;  %10046 = vmatprep.subr.bf16.mxu1 %v10476_v21  ;;  %v15126_v18 = vld [vmem:[#allocation11_spill] sm:$0xff] }
 0x233   : > { %v2369_v8 = vadd.f32 %v2368_v17, %v11644_v61  ;;  %v9901_v41 = vpop.f32.mrb[138].mxu0  ;;  %v12009_v57 = vpop.f32.mrb[152].mxu1 }
 0x234   : > { %v12012_v43 = vadd.f32 %v15124_v0, %v2377_v63  ;;  %v2371_v26 = vpop.f32.mrb[139].mxu0  ;;  %v2225_v36 = vpop.f32.mrb[153].mxu1  ;;  %v10478_v63 = vld [vmem:[%s14982_s2 + $0xb8] sm:$0xff]  }
 0x235   : > { %v12018_v48 = vadd.f32 %v15125_v49, %v2369_v8  ;;  %v2372_v61 = vadd.f32 %v2371_v26, %v11647_v20  ;;  %v12021_v46 = vpop.f32.mrb[154].mxu1  ;;  %v10594_v20 = vld [vmem:[%s10722_s26 + $0xa0] sm:$0xff]   ;;  %10047 = vmatpush3.bf16.msra.mxu1 %v10476_v21  ;;  %v15130_v21 = vld [vmem:[#allocation45_spill] sm:$0xff] }
 0x236   : > { %v2228_v62 = vpop.f32.mrb[155].mxu1  ;;  %10023 = vmatmul.mubr.bf16.gmra.mrb[244].mxu0 %v11689_v53  ;;  %10048 = vmatprep.subr.bf16.mxu1 %v10478_v63 }
 0x237   : > { %v12025_v30 = vadd.f32 %v15126_v18, %v2372_v61  ;;  %10026 = vmatprep.mubr.bf16.mxu0 %v11696_v2  ;;  %v15127_v2 = vld [vmem:[#allocation20_spill] sm:$0xff] }
 0x238   : > { %2953 = vmatmul.mubr.bf16.gmra.mrb[4].mxu1 %v10593_v23  ;;  %v15129_v61 = vld [vmem:[#allocation16_spill] sm:$0xff] }
 0x239   : > { %v9904_v17 = vpop.f32.mrb[140].mxu0  ;;  %2960 = vmatprep.mubr.bf16.mxu1 %v10594_v20  ;;  %10049 = vmatpush3.bf16.msra.mxu1 %v10478_v63  ;;  %v12056_v63 = vld [vmem:[%s14982_s2 + $0x140] sm:$0xff]  }
 0x23a   : > { %v2393_v37 = vadd.f32 %v9904_v17, %v11708_v19  ;;  %v2384_v8 = vpop.f32.mrb[141].mxu0  ;;  %v15131_v17 = vld [vmem:[#allocation48_spill] sm:$0xff]  ;;  %5421 = vmatprep.subr.bf16.mxu1 %v15070_v10  ;;  %10114 = vmatprep.subr.bf16.mxu0 %v12056_v63 }
 0x23b   : > { %v2385_v53 = vadd.f32 %v2384_v8, %v11683_v4  ;;  %v9905_v41 = vpop.f32.mrb[142].mxu0  ;;  %v12035_v0 = vpop.f32.mrb[156].mxu1  ;;  %v15132_v4 = vld [vmem:[#allocation18_spill] sm:$0xff] }
 0x23c   : > { %v12038_v26 = vadd.f32 %v15127_v2, %v2393_v37  ;;  %v2387_v36 = vpop.f32.mrb[143].mxu0  ;;  %v2233_v49 = vpop.f32.mrb[157].mxu1  ;;  %v15133_v8 = vld [vmem:[#allocation50_spill] sm:$0xff]  ;;  %v10595_v37 = vld [vmem:[%s10722_s26 + $0x90] sm:$0xff]   ;;  %v10596_v2 = vld [vmem:[%s10722_s26 + $0xa8] sm:$0xff]  }
 0x23d   : > { %v12041_v62 = vadd.f32 %v15129_v61, %v2385_v53  ;;  %v2388_v18 = vadd.f32 %v2387_v36, %v15130_v21  ;;  %v2234_v19 = vpop.f32.mrb[158].mxu1 }
 0x23e   : > { %15128 = vst [vmem:[#allocation19_spill] sm:$0xff] %v12038_v26  ;;  %v2236_v23 = vpop.f32.mrb[159].mxu1  ;;  %10027 = vmatmul.mubr.bf16.gmra.mrb[248].mxu0 %v15131_v17  ;;  %v10599_v26 = vld [vmem:[%s10722_s26 + $0xa0] sm:$0xff]  }
 0x23f   : > { %v12047_v20 = vadd.f32 %v15132_v4, %v2388_v18  ;;  %10030 = vmatprep.mubr.bf16.mxu0 %v15133_v8  ;;  %v15134_v18 = vld [vmem:[#allocation29_spill] sm:$0xff] }
 0x240   : > { %2961 = vmatmul.mubr.bf16.gmra.mrb[8].mxu1 %v10595_v37 }
 0x241   : > { %v9908_v41 = vpop.f32.mrb[144].mxu0  ;;  %2968 = vmatprep.mubr.bf16.mxu1 %v10596_v2  ;;  %v15139_v2 = vld [vmem:[#allocation25_spill] sm:$0xff] }
 0x242   : > { %v2409_v53 = vadd.f32 %v9908_v41, %v11744_v15  ;;  %v2400_v36 = vpop.f32.mrb[145].mxu0  ;;  %v15136_v15 = vld [vmem:[#allocation24_spill] sm:$0xff] }
 0x243   : > { %v2401_v49 = vadd.f32 %v2400_v36, %v11725_v42  ;;  %v9909_v61 = vpop.f32.mrb[146].mxu0  ;;  %v12059_v21 = vpop.f32.mrb[160].mxu1  ;;  %v15138_v42 = vld [vmem:[#allocation51_spill] sm:$0xff] }
 0x244   : > { %v12062_v19 = vadd.f32 %v15134_v18, %v2409_v53  ;;  %v2403_v23 = vpop.f32.mrb[147].mxu0  ;;  %v2241_v17 = vpop.f32.mrb[161].mxu1  ;;  %v10597_v61 = vld [vmem:[%s10722_s26 + $0x98] sm:$0xff]   ;;  %v10598_v18 = vld [vmem:[%s10722_s26 + $0xb0] sm:$0xff]  }
 0x245   : > { %v12066_v4 = vadd.f32 %v15136_v15, %v2401_v49  ;;  %v2404_v8 = vadd.f32 %v2403_v23, %v11728_v25  ;;  %v12069_v37 = vpop.f32.mrb[162].mxu1 }
 0x246   : > { %15135 = vst [vmem:[#allocation21_spill] sm:$0xff] %v12062_v19  ;;  %v2244_v41 = vpop.f32.mrb[163].mxu1  ;;  %10031 = vmatmul.mubr.bf16.gmra.mrb[252].mxu0 %v15138_v42  ;;  %v15142_v19 = vld [vmem:[#allocation32_spill] sm:$0xff] }
 0x247   : > { %15137 = vst [vmem:[#allocation22_spill] sm:$0xff] %v12066_v4  ;;  %v12073_v36 = vadd.f32 %v15139_v2, %v2404_v8  ;;  %v15141_v41 = vld [vmem:[#allocation35_spill] sm:$0xff] }
 0x248   : > { %2969 = vmatmul.mubr.bf16.gmra.mrb[12].mxu1 %v10597_v61 }
 0x249   : > { %15140 = vst [vmem:[#allocation23_spill] sm:$0xff] %v12073_v36  ;;  %v9912_v53 = vpop.f32.mrb[148].mxu0  ;;  %2976 = vmatprep.mubr.bf16.mxu1 %v10598_v18 }
 0x24a   : > { %v2425_v17 = vadd.f32 %v9912_v53, %v11789_v58  ;;  %v2416_v49 = vpop.f32.mrb[149].mxu0  ;;  %v15143_v58 = vld [vmem:[#allocation33_spill] sm:$0xff] }
 0x24b   : > { %v2417_v25 = vadd.f32 %v2416_v49, %v11762_v31  ;;  %v9913_v23 = vpop.f32.mrb[150].mxu0  ;;  %v12079_v15 = vpop.f32.mrb[164].mxu1  ;;  %v10600_v49 = vld [vmem:[%s10722_s26 + $0xb8] sm:$0xff]  }
 0x24c   : > { %v12082_v42 = vadd.f32 %v15141_v41, %v2425_v17  ;;  %v2419_v8 = vpop.f32.mrb[151].mxu0  ;;  %v2249_v2 = vpop.f32.mrb[165].mxu1 }
 0x24d   : > { %v12085_v61 = vadd.f32 %v15142_v19, %v2417_v25  ;;  %v2420_v36 = vadd.f32 %v2419_v8, %v11769_v27  ;;  %v2250_v18 = vpop.f32.mrb[166].mxu1  ;;  %v15144_v27 = vld [vmem:[#allocation38_spill] sm:$0xff]  ;;  %v15146_v2 = vld [vmem:[#allocation36_spill] sm:$0xff] }
 0x24e   : > { %v2252_v4 = vpop.f32.mrb[167].mxu1 }
 0x24f   : > { %v12089_v53 = vadd.f32 %v15143_v58, %v2420_v36 }
 0x250   : > { %2977 = vmatmul.mubr.bf16.gmra.mrb[16].mxu1 %v10599_v26 }
 0x251   : > { %v9916_v31 = vpop.f32.mrb[152].mxu0  ;;  %2984 = vmatprep.mubr.bf16.mxu1 %v10600_v49 }
 0x252   : > { %v2441_v17 = vadd.f32 %v9916_v31, %v11829_v6  ;;  %v2432_v23 = vpop.f32.mrb[153].mxu0  ;;  %v15148_v31 = vld [vmem:[#allocation37_spill] sm:$0xff] }
 0x253   : > { %v2433_v19 = vadd.f32 %v2432_v23, %v11808_v5  ;;  %v9917_v25 = vpop.f32.mrb[154].mxu0  ;;  %v12095_v41 = vpop.f32.mrb[168].mxu1  ;;  %v10601_v5 = vld [vmem:[%s10722_s26 + $0xa8] sm:$0xff]  }
 0x254   : > { %v12098_v4 = vadd.f32 %v15144_v27, %v2441_v17  ;;  %v2435_v36 = vpop.f32.mrb[155].mxu0  ;;  %v2257_v8 = vpop.f32.mrb[169].mxu1  ;;  %v10602_v25 = vld [vmem:[%s10722_s26 + $0xc0] sm:$0xff]  }
 0x255   : > { %v12101_v26 = vadd.f32 %v15146_v2, %v2433_v19  ;;  %v2436_v18 = vadd.f32 %v2435_v36, %v11812_v59  ;;  %v12104_v58 = vpop.f32.mrb[170].mxu1  ;;  %v15150_v36 = vld [vmem:[#allocation41_spill] sm:$0xff] }
 0x256   : > { %15145 = vst [vmem:[#allocation28_spill] sm:$0xff] %v12098_v4  ;;  %v2260_v6 = vpop.f32.mrb[171].mxu1 }
 0x257   : > { %15147 = vst [vmem:[#allocation26_spill] sm:$0xff] %v12101_v26  ;;  %v12107_v49 = vadd.f32 %v15148_v31, %v2436_v18  ;;  %v15151_v31 = vld [vmem:[#allocation39_spill] sm:$0xff]  ;;  %v10603_v26 = vld [vmem:[%s10722_s26 + $0xb0] sm:$0xff]  }
 0x258   : > { %2985 = vmatmul.mubr.bf16.gmra.mrb[20].mxu1 %v10601_v5 }
 0x259   : > { %15149 = vst [vmem:[#allocation27_spill] sm:$0xff] %v12107_v49  ;;  %v9920_v23 = vpop.f32.mrb[156].mxu0  ;;  %2992 = vmatprep.mubr.bf16.mxu1 %v10602_v25 }
 0x25a   : > { %v2457_v17 = vadd.f32 %v9920_v23, %v11866_v55  ;;  %v2448_v27 = vpop.f32.mrb[157].mxu0  ;;  %v15152_v55 = vld [vmem:[#allocation40_spill] sm:$0xff] }
 0x25b   : > { %v2449_v19 = vadd.f32 %v2448_v27, %v11844_v56  ;;  %v9921_v8 = vpop.f32.mrb[158].mxu0  ;;  %v12113_v59 = vpop.f32.mrb[172].mxu1  ;;  %v10604_v27 = vld [vmem:[%s10722_s26 + $0xc8] sm:$0xff]  }
 0x25c   : > { %v12116_v2 = vadd.f32 %v15150_v36, %v2457_v17  ;;  %v2451_v18 = vpop.f32.mrb[159].mxu0  ;;  %v2265_v6 = vpop.f32.mrb[173].mxu1 }
 0x25d   : > { %v12119_v5 = vadd.f32 %v15151_v31, %v2449_v19  ;;  %v2452_v4 = vadd.f32 %v2451_v18, %v11847_v3  ;;  %v2266_v25 = vpop.f32.mrb[174].mxu1  ;;  %v15153_v3 = vld [vmem:[#allocation44_spill] sm:$0xff]  ;;  %v15155_v31 = vld [vmem:[#allocation42_spill] sm:$0xff] }
 0x25e   : > { %v2268_v49 = vpop.f32.mrb[175].mxu1 }
 0x25f   : > { %v12123_v23 = vadd.f32 %v15152_v55, %v2452_v4 }
 0x260   : > { %2993 = vmatmul.mubr.bf16.gmra.mrb[24].mxu1 %v10603_v26 }
 0x261   : > { %v9924_v56 = vpop.f32.mrb[160].mxu0  ;;  %3000 = vmatprep.mubr.bf16.mxu1 %v10604_v27 }
 0x262   : > { %v2473_v17 = vadd.f32 %v9924_v56, %v11902_v33  ;;  %v2464_v8 = vpop.f32.mrb[161].mxu0  ;;  %v15157_v56 = vld [vmem:[#allocation43_spill] sm:$0xff] }
 0x263   : > { %v2465_v19 = vadd.f32 %v2464_v8, %v11882_v35  ;;  %v9925_v36 = vpop.f32.mrb[162].mxu0  ;;  %v12129_v6 = vpop.f32.mrb[176].mxu1  ;;  %v10605_v35 = vld [vmem:[%s10722_s26 + $0xb8] sm:$0xff]  }
 0x264   : > { %v12132_v49 = vadd.f32 %v15153_v3, %v2473_v17  ;;  %v2467_v4 = vpop.f32.mrb[163].mxu0  ;;  %v2273_v18 = vpop.f32.mrb[177].mxu1  ;;  %v10606_v36 = vld [vmem:[%s10722_s26 + $0xd0] sm:$0xff]  }
 0x265   : > { %v12135_v26 = vadd.f32 %v15155_v31, %v2465_v19  ;;  %v2468_v25 = vadd.f32 %v2467_v4, %v11885_v22  ;;  %v12138_v55 = vpop.f32.mrb[178].mxu1  ;;  %v15159_v4 = vld [vmem:[#allocation49_spill] sm:$0xff] }
 0x266   : > { %15154 = vst [vmem:[#allocation30_spill] sm:$0xff] %v12132_v49  ;;  %v2276_v33 = vpop.f32.mrb[179].mxu1 }
 0x267   : > { %15156 = vst [vmem:[#allocation31_spill] sm:$0xff] %v12135_v26  ;;  %v12141_v27 = vadd.f32 %v15157_v56, %v2468_v25  ;;  %v15160_v56 = vld [vmem:[#allocation46_spill] sm:$0xff]  ;;  %v10607_v26 = vld [vmem:[%s10722_s26 + $0xc0] sm:$0xff]  }
 0x268   : > { %3001 = vmatmul.mubr.bf16.gmra.mrb[28].mxu1 %v10605_v35 }
 0x269   : > { %15158 = vst [vmem:[#allocation34_spill] sm:$0xff] %v12141_v27  ;;  %v9928_v8 = vpop.f32.mrb[164].mxu0  ;;  %3008 = vmatprep.mubr.bf16.mxu1 %v10606_v36 }
 0x26a   : > { %v2489_v17 = vadd.f32 %v9928_v8, %v11939_v51  ;;  %v2480_v3 = vpop.f32.mrb[165].mxu0  ;;  %v15161_v51 = vld [vmem:[#allocation47_spill] sm:$0xff] }
 0x26b   : > { %v2481_v19 = vadd.f32 %v2480_v3, %v11917_v9  ;;  %v9929_v18 = vpop.f32.mrb[166].mxu0  ;;  %v12147_v22 = vpop.f32.mrb[180].mxu1  ;;  %v10608_v3 = vld [vmem:[%s10722_s26 + $0xd8] sm:$0xff]  }
 0x26c   : > { %v12150_v31 = vadd.f32 %v15159_v4, %v2489_v17  ;;  %v2483_v25 = vpop.f32.mrb[167].mxu0  ;;  %v2281_v33 = vpop.f32.mrb[181].mxu1 }
 0x26d   : > { %v12153_v35 = vadd.f32 %v15160_v56, %v2481_v19  ;;  %v2484_v49 = vadd.f32 %v2483_v25, %v11920_v40  ;;  %v2282_v36 = vpop.f32.mrb[182].mxu1  ;;  %v15162_v25 = vld [vmem:[#allocation52_spill] sm:$0xff] }
 0x26e   : > { %v2284_v27 = vpop.f32.mrb[183].mxu1 }
 0x26f   : > { %v12157_v8 = vadd.f32 %v15161_v51, %v2484_v49  ;;  %v15163_v51 = vld [vmem:[#allocation10_spill] sm:$0xff] }
 0x270   : > { %3009 = vmatmul.mubr.bf16.gmra.mrb[32].mxu1 %v10607_v26 }
 0x271   : > { %v9932_v9 = vpop.f32.mrb[168].mxu0  ;;  %3016 = vmatprep.mubr.bf16.mxu1 %v10608_v3 }
 0x272   : > { %v2505_v17 = vadd.f32 %v9932_v9, %v11978_v38  ;;  %v2496_v18 = vpop.f32.mrb[169].mxu0 }
 0x273   : > { %v2497_v19 = vadd.f32 %v2496_v18, %v11955_v7  ;;  %v9933_v4 = vpop.f32.mrb[170].mxu0  ;;  %v12163_v33 = vpop.f32.mrb[184].mxu1  ;;  %v10609_v7 = vld [vmem:[%s10722_s26 + $0xc8] sm:$0xff]   ;;  %v10610_v18 = vld [vmem:[%s10722_s26 + $0xe0] sm:$0xff]  }
 0x274   : > { %v12166_v40 = vadd.f32 %v11752_v60, %v2505_v17  ;;  %v2499_v49 = vpop.f32.mrb[171].mxu0  ;;  %v2289_v27 = vpop.f32.mrb[185].mxu1 }
 0x275   : > { %v12169_v26 = vadd.f32 %v15162_v25, %v2497_v19  ;;  %v2500_v56 = vadd.f32 %v2499_v49, %v11967_v44  ;;  %v12172_v36 = vpop.f32.mrb[186].mxu1 }
 0x276   : > { %v2292_v38 = vpop.f32.mrb[187].mxu1 }
 0x277   : > { %v12175_v9 = vadd.f32 %v15163_v51, %v2500_v56 }
 0x278   : > { %3017 = vmatmul.mubr.bf16.gmra.mrb[36].mxu1 %v10609_v7 }
 0x279   : > { %v9936_v3 = vpop.f32.mrb[172].mxu0  ;;  %3024 = vmatprep.mubr.bf16.mxu1 %v10610_v18  ;;  %v10611_v18 = vld [vmem:[%s10722_s26 + $0xd0] sm:$0xff]  }
 0x27a   : > { %v2521_v60 = vadd.f32 %v9936_v3, %v12035_v0  ;;  %v2512_v17 = vpop.f32.mrb[173].mxu0  ;;  %v15164_v0 = vld [vmem:[#allocation12_spill] sm:$0xff] }
 0x27b   : > { %v2513_v19 = vadd.f32 %v2512_v17, %v12009_v57  ;;  %v9937_v4 = vpop.f32.mrb[174].mxu0  ;;  %v12181_v44 = vpop.f32.mrb[188].mxu1  ;;  %v10612_v17 = vld [vmem:[%s10722_s26 + $0xe8] sm:$0xff]  }
 0x27c   : > { %v12184_v49 = vadd.f32 %v11798_v29, %v2521_v60  ;;  %v2515_v27 = vpop.f32.mrb[175].mxu0  ;;  %v2297_v25 = vpop.f32.mrb[189].mxu1 }
 0x27d   : > { %v12187_v56 = vadd.f32 %v11773_v28, %v2513_v19  ;;  %v2516_v38 = vadd.f32 %v2515_v27, %v12021_v46  ;;  %v2298_v51 = vpop.f32.mrb[190].mxu1 }
 0x27e   : > { %v2300_v7 = vpop.f32.mrb[191].mxu1 }
 0x27f   : > { %v12191_v3 = vadd.f32 %v15164_v0, %v2516_v38  ;;  %v15165_v0 = vld [vmem:[#allocation14_spill] sm:$0xff] }
 0x280   : > { %3025 = vmatmul.mubr.bf16.gmra.mrb[40].mxu1 %v10611_v18 }
 0x281   : > { %v9940_v57 = vpop.f32.mrb[176].mxu0  ;;  %3032 = vmatprep.mubr.bf16.mxu1 %v10612_v17  ;;  %v10614_v17 = vld [vmem:[%s10722_s26 + $0xf0] sm:$0xff]  }
 0x282   : > { %v2537_v29 = vadd.f32 %v9940_v57, %v12079_v15  ;;  %v2528_v60 = vpop.f32.mrb[177].mxu0 }
 0x283   : > { %v2529_v28 = vadd.f32 %v2528_v60, %v12059_v21  ;;  %v9941_v19 = vpop.f32.mrb[178].mxu0  ;;  %v12197_v4 = vpop.f32.mrb[192].mxu1  ;;  %v10613_v21 = vld [vmem:[%s10722_s26 + $0xd8] sm:$0xff]  }
 0x284   : > { %v12200_v46 = vadd.f32 %v11834_v39, %v2537_v29  ;;  %v2531_v27 = vpop.f32.mrb[179].mxu0  ;;  %v2820_v25 = vpop.f32.mrb[193].mxu1 }
 0x285   : > { %v12203_v38 = vadd.f32 %v11816_v11, %v2529_v28  ;;  %v2532_v51 = vadd.f32 %v2531_v27, %v12069_v37  ;;  %v12206_v7 = vpop.f32.mrb[194].mxu1  ;;  %v15166_v25 = vld [vmem:[#allocation15_spill] sm:$0xff] }
 0x286   : > { %v2823_v15 = vpop.f32.mrb[195].mxu1 }
 0x287   : > { %v12209_v18 = vadd.f32 %v15165_v0, %v2532_v51 }
 0x288   : > { %3033 = vmatmul.mubr.bf16.gmra.mrb[44].mxu1 %v10613_v21 }
 0x289   : > { %v9944_v57 = vpop.f32.mrb[180].mxu0  ;;  %3040 = vmatprep.mubr.bf16.mxu1 %v10614_v17  ;;  %v15167_v17 = vld [vmem:[#allocation17_spill] sm:$0xff] }
 0x28a   : > { %v2553_v39 = vadd.f32 %v9944_v57, %v12113_v59  ;;  %v2544_v29 = vpop.f32.mrb[181].mxu0  ;;  %v10615_v57 = vld [vmem:[%s10722_s26 + $0xe0] sm:$0xff]  }
 0x28b   : > { %v2545_v11 = vadd.f32 %v2544_v29, %v12095_v41  ;;  %v9945_v60 = vpop.f32.mrb[182].mxu0  ;;  %v2826_v37 = vpop.f32.mrb[196].mxu1  ;;  %v10616_v29 = vld [vmem:[%s10722_s26 + $0xf8] sm:$0xff]  }
 0x28c   : > { %v12216_v28 = vadd.f32 %v11872_v16, %v2553_v39  ;;  %v2547_v19 = vpop.f32.mrb[183].mxu0  ;;  %v2828_v27 = vpop.f32.mrb[197].mxu1 }
 0x28d   : > { %v12219_v51 = vadd.f32 %v15166_v25, %v2545_v11  ;;  %v2548_v15 = vadd.f32 %v2547_v19, %v12104_v58  ;;  %v2829_v0 = vpop.f32.mrb[198].mxu1 }
 0x28e   : > { %v2831_v21 = vpop.f32.mrb[199].mxu1 }
 0x28f   : > { %v12223_v59 = vadd.f32 %v15167_v17, %v2548_v15 }
 0x290   : > { %3041 = vmatmul.mubr.bf16.gmra.mrb[48].mxu1 %v10615_v57 }
 0x291   : > { %v9948_v41 = vpop.f32.mrb[184].mxu0  ;;  %3048 = vmatprep.mubr.bf16.mxu1 %v10616_v29  ;;  %v10618_v29 = vld [vmem:[%s10722_s26 + $0x100] sm:$0xff]  }
 0x292   : > { %v2569_v16 = vadd.f32 %v9948_v41, %v12147_v22  ;;  %v2560_v39 = vpop.f32.mrb[185].mxu0 }
 0x293   : > { %v2561_v11 = vadd.f32 %v2560_v39, %v12129_v6  ;;  %v9949_v60 = vpop.f32.mrb[186].mxu0  ;;  %v12229_v27 = vpop.f32.mrb[200].mxu1  ;;  %v10617_v6 = vld [vmem:[%s10722_s26 + $0xe8] sm:$0xff]  }
 0x294   : > { %v12232_v58 = vadd.f32 %v11907_v34, %v2569_v16  ;;  %v2563_v19 = vpop.f32.mrb[187].mxu0  ;;  %v2836_v25 = vpop.f32.mrb[201].mxu1 }
 0x295   : > { %v12235_v15 = vadd.f32 %v11889_v52, %v2561_v11  ;;  %v2564_v21 = vadd.f32 %v2563_v19, %v12138_v55  ;;  %v12238_v17 = vpop.f32.mrb[202].mxu1 }
 0x296   : > { %15168 = vst [vmem:[#allocation5_spill] sm:$0xff] %v12232_v58  ;;  %v2839_v22 = vpop.f32.mrb[203].mxu1 }
 0x297   : > { %v12241_v57 = vadd.f32 %v11897_v24, %v2564_v21 }
 0x298   : > { %3049 = vmatmul.mubr.bf16.gmra.mrb[52].mxu1 %v10617_v6  ;;  %v10619_v6 = vld [vmem:[%s10722_s26 + $0xf0] sm:$0xff]  }
 0x299   : > { %15169 = vst [vmem:[#allocation3_spill] sm:$0xff] %v12241_v57  ;;  %v9952_v41 = vpop.f32.mrb[188].mxu0  ;;  %3056 = vmatprep.mubr.bf16.mxu1 %v10618_v29 }
 0x29a   : > { %v2585_v34 = vadd.f32 %v9952_v41, %v12181_v44  ;;  %v2576_v16 = vpop.f32.mrb[189].mxu0  ;;  %v10620_v41 = vld [vmem:[%s10722_s26 + $0x108] sm:$0xff]  }
 0x29b   : > { %v2577_v52 = vadd.f32 %v2576_v16, %v12163_v33  ;;  %v9953_v39 = vpop.f32.mrb[190].mxu0  ;;  %v2842_v55 = vpop.f32.mrb[204].mxu1 }
 0x29c   : > { %v12248_v11 = vadd.f32 %v11944_v45, %v2585_v34  ;;  %v2579_v60 = vpop.f32.mrb[191].mxu0  ;;  %v2844_v24 = vpop.f32.mrb[205].mxu1 }
 0x29d   : > { %v12251_v19 = vadd.f32 %v11924_v13, %v2577_v52  ;;  %v2580_v25 = vadd.f32 %v2579_v60, %v12172_v36  ;;  %v2845_v21 = vpop.f32.mrb[206].mxu1  ;;  %v4210_v13 = vlaneseq }
 0x29e   : > { %15170 = vst [vmem:[#allocation4_spill] sm:$0xff] %v12248_v11  ;;  %v2847_v22 = vpop.f32.mrb[207].mxu1 }
 0x29f   : > { %15171 = vst [vmem:[#allocation8_spill] sm:$0xff] %v12251_v19  ;;  %v12255_v44 = vadd.f32 %v11935_v54, %v2580_v25 }
 0x2a0   : > { %3057 = vmatmul.mubr.bf16.gmra.mrb[56].mxu1 %v10619_v6 }
 0x2a1   : > { %15172 = vst [vmem:[#allocation6_spill] sm:$0xff] %v12255_v44  ;;  %v9972_v33 = vpop.f32.mrb[192].mxu0  ;;  %3064 = vmatprep.mubr.bf16.mxu1 %v10620_v41  ;;  %v4211_v41 = vshrl.u32 %v4210_v13, 7 }
 0x2a2   : > { %v3116_v29 = vadd.f32 %v9972_v33, %v2826_v37  ;;  %v3107_v45 = vpop.f32.mrb[193].mxu0 }
 0x2a3   : > { %v3108_v34 = vadd.f32 %v3107_v45, %v12197_v4  ;;  %v9973_v16 = vpop.f32.mrb[194].mxu0  ;;  %v12260_v39 = vpop.f32.mrb[208].mxu1  ;;  %v12269_v45 = vld [vmem:[%s14983_s3] ss:$0 sm:$0xff]  ;;  %vm4215_vm2 = vcmp.ge.s32.totalorder %v4211_v41, 1 }
 0x2a4   : > { %v3119_v36 = vadd.f32 %v9973_v16, %v2829_v0  ;;  %v3110_v52 = vpop.f32.mrb[195].mxu0  ;;  %v2852_v60 = vpop.f32.mrb[209].mxu1  ;;  %v3687_v25 = vrot.slane %v3116_v29, 1  ;;  %v10621_v0 = vld [vmem:[%s10722_s26 + $0xf8] sm:$0xff]   ;;  %vm12295_vm5 = vmpackc.low %vm10635_vm4, %vm4215_vm2 }
 0x2a5   : > { %v3111_v54 = vadd.f32 %v3110_v52, %v12206_v7  ;;  %v12263_v24 = vpop.f32.mrb[210].mxu1  ;;  %v3684_v37 = vrot.slane %v3108_v34, 1  ;;  %v12278_v34 = vld [vmem:[%s14984_s4] ss:$0 sm:$0xff] }
 0x2a6   : > { %v3689_v22 = vrot.slane %v3119_v36, 1  ;;  %v2855_v6 = vpop.f32.mrb[211].mxu1 }
 0x2a7   : > { %v3685_v33 = vrot.slane %v3111_v54, 1 }
 0x2a8   : > { %v3690_v4 = vsel %vm3683_vm1, %v3687_v25, %v3689_v22  ;;  %3065 = vmatmul.mubr.bf16.gmra.mrb[60].mxu1 %v10621_v0 }
 0x2a9   : > { %v3942_v16 = vadd.f32 %v11958_v47, %v3690_v4  ;;  %v3686_v7 = vsel %vm3683_vm1, %v3684_v37, %v3685_v33  ;;  %v3688_v29 = vsel %vm3683_vm1, %v3685_v33, %v3687_v25  ;;  %v9976_v36 = vpop.f32.mrb[196].mxu0  ;;  %v4213_v4 = vadd.s32 16, %v4211_v41 }
 0x2aa   : > { %v3940_v13 = vadd.f32 %v11964_v14, %v3686_v7  ;;  %v3941_v52 = vadd.f32 %v11971_v12, %v3688_v29  ;;  %v3132_v60 = vadd.f32 %v9976_v36, %v2842_v55  ;;  %v3123_v54 = vpop.f32.mrb[197].mxu0 }
 0x2ab   : > { %v4013_v22 = vmul.f32 %v12269_v45, %v3942_v16  ;;  %v3124_v47 = vadd.f32 %v3123_v54, %v12229_v27  ;;  %v9977_v6 = vpop.f32.mrb[198].mxu0  ;;  %v2858_v37 = vpop.f32.mrb[212].mxu1  ;;  %vm4221_vm3 = vcmp.le.s32.totalorder %v4213_v4, 16 }
 0x2ac   : > { %v4011_v25 = vmul.f32 %v12269_v45, %v3940_v13  ;;  %v4012_v33 = vmul.f32 %v12269_v45, %v3941_v52  ;;  %v3695_v0 = vrot.slane %v3132_v60, 1  ;;  %v3135_v11 = vadd.f32 %v9977_v6, %v2845_v21  ;;  %v3126_v44 = vpop.f32.mrb[199].mxu0  ;;  %v2860_v19 = vpop.f32.mrb[213].mxu1  ;;  %vm12309_vm6 = vmpackc.low %vm10635_vm4, %vm4221_vm3 }
 0x2ad   : > { %v4084_v14 = vadd.f32 %v12278_v34, %v4013_v22  ;;  %v3127_v12 = vadd.f32 %v3126_v44, %v12238_v17  ;;  %v2861_v55 = vpop.f32.mrb[214].mxu1  ;;  %v3691_v13 = vrot.slane %v3124_v47, 1 }
 0x2ae   : > { %v4082_v16 = vadd.f32 %v12278_v34, %v4011_v25  ;;  %v4083_v27 = vadd.f32 %v12278_v34, %v4012_v33  ;;  %v3697_v7 = vrot.slane %v3135_v11, 1  ;;  %v2863_v29 = vpop.f32.mrb[215].mxu1 }
 0x2af   : > { %v4148_v36 = vmax.f32 %v4084_v14, 0.0  ;;  %v3693_v54 = vrot.slane %v3127_v12, 1 }
 0x2b0   : > { %v4146_v52 = vmax.f32 %v4082_v16, 0.0  ;;  %v4147_v60 = vmax.f32 %v4083_v27, 0.0  ;;  %v3698_v21 = vsel %vm3683_vm1, %v3695_v0, %v3697_v7 }
 0x2b1   : > { %v3946_v19 = vadd.f32 %v11981_v50, %v3698_v21  ;;  %v3694_v17 = vsel %vm3683_vm1, %v3691_v13, %v3693_v54  ;;  %v3696_v44 = vsel %vm3683_vm1, %v3693_v54, %v3695_v0  ;;  %v9980_v22 = vpop.f32.mrb[200].mxu0  ;;  %v15005_v50 = vmov 0.0  }
 0x2b2   : > { %v12299_v47 = vpack.c.bf16 %v4147_v60, %v4146_v52  ;;  %v3944_v6 = vadd.f32 %v11987_v1, %v3694_v17  ;;  %v3945_v25 = vadd.f32 %v11995_v32, %v3696_v44  ;;  %v3148_v33 = vadd.f32 %v9980_v22, %v2858_v37  ;;  %v3139_v14 = vpop.f32.mrb[201].mxu0  ;;  %v10479_v1 = vld [vmem:[%s14982_s2 + $0x148] sm:$0xff]  }
 0x2b3   : > { %v12304_v12 = vpack.c.bf16 %v15005_v50, %v4148_v36  ;;  %v4017_v0 = vmul.f32 %v12269_v45, %v3946_v19  ;;  %v3140_v41 = vadd.f32 %v3139_v14, %v12260_v39  ;;  %v9981_v16 = vpop.f32.mrb[202].mxu0  ;;  %v2866_v27 = vpop.f32.mrb[216].mxu1 }
 0x2b4   : > { %15175 = vst [vmem:[#allocation7_spill] sm:$0xff] %v12299_v47  ;;  %v4015_v32 = vmul.f32 %v12269_v45, %v3944_v6  ;;  %v4016_v37 = vmul.f32 %v12269_v45, %v3945_v25  ;;  %v3703_v29 = vrot.slane %v3148_v33, 1  ;;  %v3151_v36 = vadd.f32 %v9981_v16, %v2861_v55  ;;  %v3142_v13 = vpop.f32.mrb[203].mxu0  ;;  %8728 = vmatprep.mubr.msk.bf16.mxu0 %vm12295_vm5, %v12299_v47  ;;  %v2868_v39 = vpop.f32.mrb[217].mxu1 }
 0x2b5   : > { %15176 = vst [vmem:[#allocation13_spill] sm:$0xff] %v12304_v12  ;;  %v4088_v4 = vadd.f32 %v12278_v34, %v4017_v0  ;;  %v3699_v54 = vrot.slane %v3140_v41, 1  ;;  %v3143_v52 = vadd.f32 %v3142_v13, %v12263_v24  ;;  %4683 = vmatmul.mubr.bf16.vlgmr.msra.gmra.mrb[0].mxu0 %v15070_v10  ;;  %v2869_v60 = vpop.f32.mrb[218].mxu1  ;;  %v10480_v24 = vld [vmem:[%s14982_s2 + $0x150] sm:$0xff]  }
 0x2b6   : > { %v4086_v21 = vadd.f32 %v12278_v34, %v4015_v32  ;;  %v4087_v19 = vadd.f32 %v12278_v34, %v4016_v37  ;;  %v3705_v17 = vrot.slane %v3151_v36, 1  ;;  %8731 = vmatprep.mubr.msk.bf16.mxu0 %vm12309_vm6, %v12304_v12  ;;  %10115 = vmatpush3.bf16.msra.mxu0 %v12056_v63  ;;  %v2871_v55 = vpop.f32.mrb[219].mxu1 }
 0x2b7   : > { %v4152_v44 = vmax.f32 %v4088_v4, 0.0  ;;  %v3701_v22 = vrot.slane %v3143_v52, 1  ;;  %10116 = vmatprep.subr.bf16.mxu0 %v10479_v1 }
 0x2b8   : > { %v4150_v6 = vmax.f32 %v4086_v21, 0.0  ;;  %v4151_v25 = vmax.f32 %v4087_v19, 0.0  ;;  %v3706_v33 = vsel %vm3683_vm1, %v3703_v29, %v3705_v17 }
 0x2b9   : > { %v3950_v14 = vadd.f32 %v12012_v43, %v3706_v33  ;;  %v3702_v0 = vsel %vm3683_vm1, %v3699_v54, %v3701_v22  ;;  %v3704_v41 = vsel %vm3683_vm1, %v3701_v22, %v3703_v29  ;;  %v9984_v16 = vpop.f32.mrb[204].mxu0  ;;  %v12342_v13 = vpack.c.bf16 %v15005_v50, %v4152_v44  ;;  %v10481_v29 = vld [vmem:[%s14982_s2 + $0x158] sm:$0xff]  }
 0x2ba   : > { %v12337_v63 = vpack.c.bf16 %v4151_v25, %v4150_v6  ;;  %v3948_v32 = vadd.f32 %v12018_v48, %v3702_v0  ;;  %v3949_v37 = vadd.f32 %v12025_v30, %v3704_v41  ;;  %v3155_v36 = vpop.f32.mrb[205].mxu0  ;;  %10117 = vmatpush3.bf16.msra.mxu0 %v10479_v1 }
 0x2bb   : > { %15180 = vst [vmem:[#allocation11_spill] sm:$0xff] %v12342_v13  ;;  %v4021_v39 = vmul.f32 %v12269_v45, %v3950_v14  ;;  %v2874_v4 = vpop.f32.mrb[220].mxu1  ;;  %v3156_v43 = vadd.f32 %v3155_v36, %v2866_v27  ;;  %v9985_v52 = vpop.f32.mrb[206].mxu0  ;;  %10118 = vmatprep.subr.bf16.mxu0 %v10480_v24 }
 0x2bc   : > { %15179 = vst [vmem:[#allocation9_spill] sm:$0xff] %v12337_v63  ;;  %v4019_v54 = vmul.f32 %v12269_v45, %v3948_v32  ;;  %v4020_v48 = vmul.f32 %v12269_v45, %v3949_v37  ;;  %v3164_v30 = vadd.f32 %v9984_v16, %v2874_v4  ;;  %v2876_v21 = vpop.f32.mrb[221].mxu1  ;;  %v3158_v1 = vpop.f32.mrb[207].mxu0  ;;  %10050 = vmatprep.mubr.msk.bf16.mxu1 %vm12295_vm5, %v12337_v63  ;;  %v10483_v4 = vld [vmem:[%s14982_s2 + $0x160] sm:$0xff]  }
 0x2bd   : > { %v4092_v19 = vadd.f32 %v12278_v34, %v4021_v39  ;;  %v3707_v27 = vrot.slane %v3156_v43, 1  ;;  %v2877_v17 = vpop.f32.mrb[222].mxu1  ;;  %v3159_v55 = vadd.f32 %v3158_v1, %v2869_v60  ;;  %4691 = vmatmul.mubr.bf16.gmra.mrb[4].mxu0 %v15070_v10  ;;  %10051 = vmatmul.mubr.msk.bf16.vlgmr.msra.gmra.mrb[64].mxu1 %vm12309_vm6, %v12342_v13  ;;  %v10482_v39 = vld [vmem:[%s14982_s2 + $0xc0] sm:$0xff]  }
 0x2be   : > { %v4090_v44 = vadd.f32 %v12278_v34, %v4019_v54  ;;  %v4091_v22 = vadd.f32 %v12278_v34, %v4020_v48  ;;  %v3711_v6 = vrot.slane %v3164_v30, 1  ;;  %v3167_v25 = vadd.f32 %v9985_v52, %v2877_v17  ;;  %8734 = vmatprep.mubr.msk.bf16.mxu0 %vm12295_vm5, %v12337_v63  ;;  %v2879_v33 = vpop.f32.mrb[223].mxu1  ;;  %10119 = vmatpush3.bf16.msra.mxu0 %v10480_v24  ;;  %v15183_v21 = vld [vmem:[#allocation19_spill] sm:$0xff] }
 0x2bf   : > { %v4156_v14 = vmax.f32 %v4092_v19, 0.0  ;;  %v3709_v60 = vrot.slane %v3159_v55, 1  ;;  %10120 = vmatprep.subr.bf16.mxu0 %v10481_v29  ;;  %5422 = vmatpush1.bf16.msra.mxu1 %v10482_v39 }
 0x2c0   : > { %v4154_v0 = vmax.f32 %v4090_v44, 0.0  ;;  %v4155_v41 = vmax.f32 %v4091_v22, 0.0  ;;  %v3713_v16 = vrot.slane %v3167_v25, 1  ;;  %5423 = vmatprep.subr.bf16.mxu1 %v15070_v10 }
 0x2c1   : > { %v3710_v32 = vsel %vm3683_vm1, %v3707_v27, %v3709_v60  ;;  %v3712_v37 = vsel %vm3683_vm1, %v3709_v60, %v3711_v6  ;;  %v9988_v36 = vpop.f32.mrb[208].mxu0  ;;  %v12377_v30 = vpack.c.bf16 %v15005_v50, %v4156_v14 }
 0x2c2   : > { %v12371_v24 = vpack.c.bf16 %v4155_v41, %v4154_v0  ;;  %v3714_v43 = vsel %vm3683_vm1, %v3711_v6, %v3713_v16  ;;  %v3952_v52 = vadd.f32 %v12041_v62, %v3710_v32  ;;  %v3953_v54 = vadd.f32 %v12047_v20, %v3712_v37  ;;  %v3171_v48 = vpop.f32.mrb[209].mxu0  ;;  %10121 = vmatpush3.bf16.msra.mxu0 %v10481_v29 }
 0x2c3   : > { %15182 = vst [vmem:[#allocation16_spill] sm:$0xff] %v12377_v30  ;;  %v3954_v1 = vadd.f32 %v15183_v21, %v3714_v43  ;;  %v2882_v19 = vpop.f32.mrb[224].mxu1  ;;  %v9989_v27 = vpop.f32.mrb[210].mxu0  ;;  %10122 = vmatprep.subr.bf16.mxu0 %v10483_v4  ;;  %v15186_v21 = vld [vmem:[#allocation22_spill] sm:$0xff] }
 0x2c4   : > { %15181 = vst [vmem:[#allocation20_spill] sm:$0xff] %v12371_v24  ;;  %v4023_v17 = vmul.f32 %v12269_v45, %v3952_v52  ;;  %v4024_v55 = vmul.f32 %v12269_v45, %v3953_v54  ;;  %v3172_v44 = vadd.f32 %v3171_v48, %v2882_v19  ;;  %v2884_v22 = vpop.f32.mrb[225].mxu1  ;;  %v3174_v62 = vpop.f32.mrb[211].mxu0  ;;  %10054 = vmatprep.mubr.msk.bf16.mxu1 %vm12295_vm5, %v12371_v24 }
 0x2c5   : > { %v4025_v20 = vmul.f32 %v12269_v45, %v3954_v1  ;;  %v2885_v29 = vpop.f32.mrb[226].mxu1  ;;  %8737 = vmatmul.mubr.msk.bf16.gmra.mrb[8].mxu0 %vm12295_vm5, %v12299_v47  ;;  %10055 = vmatmul.mubr.msk.bf16.gmra.mrb[68].mxu1 %vm12309_vm6, %v12377_v30 }
 0x2c6   : > { %v4094_v6 = vadd.f32 %v12278_v34, %v4023_v17  ;;  %v4095_v25 = vadd.f32 %v12278_v34, %v4024_v55  ;;  %v3715_v33 = vrot.slane %v3172_v44, 1  ;;  %v3175_v14 = vadd.f32 %v3174_v62, %v2885_v29  ;;  %8740 = vmatprep.mubr.msk.bf16.mxu0 %vm12309_vm6, %v12342_v13  ;;  %v2887_v60 = vpop.f32.mrb[227].mxu1  ;;  %10123 = vmatpush3.bf16.msra.mxu0 %v10483_v4  ;;  %v10484_v17 = vld [vmem:[%s14982_s2 + $0xc8] sm:$0xff]  }
 0x2c7   : > { %v4096_v0 = vadd.f32 %v12278_v34, %v4025_v20  ;;  %5424 = vmatpush1.bf16.msra.mxu1 %v10484_v17 }
 0x2c8   : > { %v4158_v41 = vmax.f32 %v4094_v6, 0.0  ;;  %v4159_v16 = vmax.f32 %v4095_v25, 0.0  ;;  %v3717_v32 = vrot.slane %v3175_v14, 1  ;;  %5425 = vmatprep.subr.bf16.mxu1 %v15070_v10  ;;  %v15187_v14 = vld [vmem:[#allocation23_spill] sm:$0xff] }
 0x2c9   : > { %v4160_v37 = vmax.f32 %v4096_v0, 0.0  ;;  %v12399_v39 = vpop.f32.mrb[212].mxu0 }
 0x2ca   : > { %v12401_v43 = vpack.c.bf16 %v4159_v16, %v4158_v41  ;;  %v3718_v52 = vsel %vm3683_vm1, %v3715_v33, %v3717_v32  ;;  %v3187_v54 = vpop.f32.mrb[213].mxu0 }
 0x2cb   : > { %v12405_v48 = vpack.c.bf16 %v15005_v50, %v4160_v37  ;;  %v3956_v1 = vadd.f32 %v15186_v21, %v3718_v52  ;;  %v2890_v19 = vpop.f32.mrb[228].mxu1  ;;  %v12408_v4 = vpop.f32.mrb[214].mxu0  ;;  %v15188_v21 = vld [vmem:[#allocation21_spill] sm:$0xff] }
 0x2cc   : > { %15184 = vst [vmem:[#allocation45_spill] sm:$0xff] %v12401_v43  ;;  %v3180_v55 = vadd.f32 %v9988_v36, %v2890_v19  ;;  %v2892_v44 = vpop.f32.mrb[229].mxu1  ;;  %10058 = vmatprep.mubr.msk.bf16.mxu1 %vm12295_vm5, %v12401_v43  ;;  %v3190_v22 = vpop.f32.mrb[215].mxu0 }
 0x2cd   : > { %15185 = vst [vmem:[#allocation48_spill] sm:$0xff] %v12405_v48  ;;  %v2893_v62 = vpop.f32.mrb[230].mxu1  ;;  %8743 = vmatmul.mubr.msk.bf16.gmra.mrb[12].mxu0 %vm12309_vm6, %v12304_v12  ;;  %10059 = vmatmul.mubr.msk.bf16.gmra.mrb[72].mxu1 %vm12309_vm6, %v12405_v48  ;;  %v4027_v6 = vmul.f32 %v12269_v45, %v3956_v1 }
 0x2ce   : > { %v3719_v20 = vrot.slane %v3180_v55, 1  ;;  %v3183_v29 = vadd.f32 %v9989_v27, %v2893_v62  ;;  %8746 = vmatprep.mubr.msk.bf16.mxu0 %vm12295_vm5, %v12371_v24  ;;  %v2895_v36 = vpop.f32.mrb[231].mxu1  ;;  %v10485_v27 = vld [vmem:[%s14982_s2 + $0xd0] sm:$0xff]  }
 0x2cf   : > { %v4098_v37 = vadd.f32 %v12278_v34, %v4027_v6  ;;  %5426 = vmatpush1.bf16.msra.mxu1 %v10485_v27 }
 0x2d0   : > { %v3720_v25 = vsel %vm3683_vm1, %v3717_v32, %v3719_v20  ;;  %v3721_v33 = vrot.slane %v3183_v29, 1  ;;  %5427 = vmatprep.subr.bf16.mxu1 %v15070_v10 }
 0x2d1   : > { %v3957_v60 = vadd.f32 %v15187_v14, %v3720_v25  ;;  %v12429_v0 = vpop.f32.mrb[216].mxu0  ;;  %v4162_v25 = vmax.f32 %v4098_v37, 0.0 }
 0x2d2   : > { %v3722_v41 = vsel %vm3683_vm1, %v3719_v20, %v3721_v33  ;;  %v3203_v16 = vpop.f32.mrb[217].mxu0 }
 0x2d3   : > { %v4028_v52 = vmul.f32 %v12269_v45, %v3957_v60  ;;  %v3958_v1 = vadd.f32 %v15188_v21, %v3722_v41  ;;  %v2898_v19 = vpop.f32.mrb[232].mxu1  ;;  %v12438_v32 = vpop.f32.mrb[218].mxu0 }
 0x2d4   : > { %v3188_v17 = vadd.f32 %v3187_v54, %v2898_v19  ;;  %v2900_v55 = vpop.f32.mrb[233].mxu1  ;;  %v12440_v44 = vpop.f32.mrb[219].mxu0 }
 0x2d5   : > { %v4099_v62 = vadd.f32 %v12278_v34, %v4028_v52  ;;  %v4029_v20 = vmul.f32 %v12269_v45, %v3958_v1  ;;  %v2901_v29 = vpop.f32.mrb[234].mxu1  ;;  %8749 = vmatmul.mubr.msk.bf16.gmra.mrb[16].mxu0 %vm12295_vm5, %v12337_v63  ;;  %v10486_v55 = vld [vmem:[%s14982_s2 + $0xd8] sm:$0xff]  }
 0x2d6   : > { %v3723_v36 = vrot.slane %v3188_v17, 1  ;;  %v3191_v6 = vadd.f32 %v3190_v22, %v2901_v29  ;;  %8752 = vmatprep.mubr.msk.bf16.mxu0 %vm12309_vm6, %v12377_v30  ;;  %v2903_v54 = vpop.f32.mrb[235].mxu1  ;;  %5428 = vmatpush1.bf16.msra.mxu1 %v10486_v55 }
 0x2d7   : > { %v4163_v33 = vmax.f32 %v4099_v62, 0.0  ;;  %v4100_v14 = vadd.f32 %v12278_v34, %v4029_v20  ;;  %5429 = vmatprep.subr.bf16.mxu1 %v15070_v10 }
 0x2d8   : > { %v3725_v60 = vrot.slane %v3191_v6, 1 }
 0x2d9   : > { %v12452_v27 = vpack.c.bf16 %v4163_v33, %v4162_v25  ;;  %v4164_v41 = vmax.f32 %v4100_v14, 0.0  ;;  %v12454_v52 = vpop.f32.mrb[220].mxu0 }
 0x2da   : > { %v3726_v21 = vsel %vm3683_vm1, %v3723_v36, %v3725_v60  ;;  %v12457_v1 = vpop.f32.mrb[221].mxu0 }
 0x2db   : > { %15189 = vst [vmem:[#allocation18_spill] sm:$0xff] %v12452_v27  ;;  %v12460_v22 = vpack.c.bf16 %v15005_v50, %v4164_v41  ;;  %v3960_v19 = vadd.f32 %v12085_v61, %v3726_v21  ;;  %v2906_v17 = vpop.f32.mrb[236].mxu1  ;;  %10062 = vmatprep.mubr.msk.bf16.mxu1 %vm12295_vm5, %v12452_v27  ;;  %v12466_v37 = vpop.f32.mrb[222].mxu0  ;;  %v10488_v21 = vld [vmem:[%s14982_s2 + $0x168] sm:$0xff]  }
 0x2dc   : > { %v3196_v62 = vadd.f32 %v12399_v39, %v2906_v17  ;;  %v2908_v20 = vpop.f32.mrb[237].mxu1  ;;  %v12472_v29 = vpop.f32.mrb[223].mxu0  ;;  %10124 = vmatprep.subr.bf16.mxu0 %v10488_v21 }
 0x2dd   : > { %15190 = vst [vmem:[#allocation50_spill] sm:$0xff] %v12460_v22  ;;  %v2909_v36 = vpop.f32.mrb[238].mxu1  ;;  %10063 = vmatmul.mubr.msk.bf16.gmra.mrb[76].mxu1 %vm12309_vm6, %v12460_v22  ;;  %8755 = vmatmul.mubr.msk.bf16.gmra.mrb[20].mxu0 %vm12309_vm6, %v12342_v13  ;;  %v4031_v54 = vmul.f32 %v12269_v45, %v3960_v19 }
 0x2de   : > { %v3727_v61 = vrot.slane %v3196_v62, 1  ;;  %v3199_v6 = vadd.f32 %v12408_v4, %v2909_v36  ;;  %8758 = vmatprep.mubr.msk.bf16.mxu0 %vm12295_vm5, %v12401_v43  ;;  %v2911_v39 = vpop.f32.mrb[239].mxu1  ;;  %v10487_v4 = vld [vmem:[%s14982_s2 + $0xe0] sm:$0xff]   ;;  %10125 = vmatpush3.bf16.msra.mxu0 %v10488_v21 }
 0x2df   : > { %v4102_v55 = vadd.f32 %v12278_v34, %v4031_v54  ;;  %5430 = vmatpush1.bf16.msra.mxu1 %v10487_v4 }
 0x2e0   : > { %v3728_v25 = vsel %vm3683_vm1, %v3725_v60, %v3727_v61  ;;  %v3729_v33 = vrot.slane %v3199_v6, 1  ;;  %5431 = vmatprep.subr.bf16.mxu1 %v15070_v10 }
 0x2e1   : > { %v3961_v14 = vadd.f32 %v12089_v53, %v3728_v25  ;;  %v12488_v41 = vpop.f32.mrb[224].mxu0 }
 0x2e2   : > { %v3730_v17 = vsel %vm3683_vm1, %v3727_v61, %v3729_v33  ;;  %v12497_v19 = vpop.f32.mrb[225].mxu0 }
 0x2e3   : > { %v4032_v60 = vmul.f32 %v12269_v45, %v3961_v14  ;;  %v3962_v53 = vadd.f32 %v12082_v42, %v3730_v17  ;;  %v2914_v62 = vpop.f32.mrb[240].mxu1  ;;  %v12502_v20 = vpop.f32.mrb[226].mxu0  ;;  %v4166_v14 = vmax.f32 %v4102_v55, 0.0 }
 0x2e4   : > { %v3204_v36 = vadd.f32 %v3203_v16, %v2914_v62  ;;  %v2916_v6 = vpop.f32.mrb[241].mxu1  ;;  %v12504_v39 = vpop.f32.mrb[227].mxu0 }
 0x2e5   : > { %v4103_v61 = vadd.f32 %v12278_v34, %v4032_v60  ;;  %v4033_v54 = vmul.f32 %v12269_v45, %v3962_v53  ;;  %v2917_v25 = vpop.f32.mrb[242].mxu1  ;;  %8761 = vmatmul.mubr.msk.bf16.gmra.mrb[24].mxu0 %vm12295_vm5, %v12371_v24 }
 0x2e6   : > { %v3731_v42 = vrot.slane %v3204_v36, 1  ;;  %v3207_v33 = vadd.f32 %v12440_v44, %v2917_v25  ;;  %8764 = vmatprep.mubr.msk.bf16.mxu0 %vm12309_vm6, %v12405_v48  ;;  %v2919_v16 = vpop.f32.mrb[243].mxu1  ;;  %v15193_v25 = vld [vmem:[#allocation26_spill] sm:$0xff] }
 0x2e7   : > { %v4167_v4 = vmax.f32 %v4103_v61, 0.0  ;;  %v4104_v21 = vadd.f32 %v12278_v34, %v4033_v54  ;;  %v10489_v61 = vld [vmem:[%s14982_s2 + $0xe8] sm:$0xff]  }
 0x2e8   : > { %v3733_v17 = vrot.slane %v3207_v33, 1  ;;  %5432 = vmatpush1.bf16.msra.mxu1 %v10489_v61 }
 0x2e9   : > { %v12517_v60 = vpack.c.bf16 %v4167_v4, %v4166_v14  ;;  %v4168_v53 = vmax.f32 %v4104_v21, 0.0  ;;  %v12519_v62 = vpop.f32.mrb[228].mxu0  ;;  %5433 = vmatprep.subr.bf16.mxu1 %v15070_v10 }
 0x2ea   : > { %v3734_v6 = vsel %vm3683_vm1, %v3731_v42, %v3733_v17  ;;  %v12522_v36 = vpop.f32.mrb[229].mxu0 }
 0x2eb   : > { %15191 = vst [vmem:[#allocation29_spill] sm:$0xff] %v12517_v60  ;;  %v12525_v44 = vpack.c.bf16 %v15005_v50, %v4168_v53  ;;  %v3964_v24 = vadd.f32 %v15193_v25, %v3734_v6  ;;  %v2922_v16 = vpop.f32.mrb[244].mxu1  ;;  %10066 = vmatprep.mubr.msk.bf16.mxu1 %vm12295_vm5, %v12517_v60  ;;  %v12531_v55 = vpop.f32.mrb[230].mxu0 }
 0x2ec   : > { %v3212_v54 = vadd.f32 %v12429_v0, %v2922_v16  ;;  %v2924_v42 = vpop.f32.mrb[245].mxu1  ;;  %v12537_v33 = vpop.f32.mrb[231].mxu0  ;;  %v15194_v16 = vld [vmem:[#allocation27_spill] sm:$0xff] }
 0x2ed   : > { %15192 = vst [vmem:[#allocation24_spill] sm:$0xff] %v12525_v44  ;;  %v2925_v14 = vpop.f32.mrb[246].mxu1  ;;  %10067 = vmatmul.mubr.msk.bf16.gmra.mrb[80].mxu1 %vm12309_vm6, %v12525_v44  ;;  %8767 = vmatmul.mubr.msk.bf16.gmra.mrb[28].mxu0 %vm12309_vm6, %v12377_v30  ;;  %v4035_v53 = vmul.f32 %v12269_v45, %v3964_v24 }
 0x2ee   : > { %v3735_v4 = vrot.slane %v3212_v54, 1  ;;  %v3215_v21 = vadd.f32 %v12438_v32, %v2925_v14  ;;  %8770 = vmatprep.mubr.msk.bf16.mxu0 %vm12295_vm5, %v12452_v27  ;;  %v2927_v0 = vpop.f32.mrb[247].mxu1  ;;  %v10490_v32 = vld [vmem:[%s14982_s2 + $0xf0] sm:$0xff]  }
 0x2ef   : > { %v4106_v61 = vadd.f32 %v12278_v34, %v4035_v53  ;;  %v15195_v0 = vld [vmem:[#allocation28_spill] sm:$0xff]  ;;  %5434 = vmatpush1.bf16.msra.mxu1 %v10490_v32 }
 0x2f0   : > { %v3736_v6 = vsel %vm3683_vm1, %v3733_v17, %v3735_v4  ;;  %v3737_v25 = vrot.slane %v3215_v21, 1  ;;  %5435 = vmatprep.subr.bf16.mxu1 %v15070_v10 }
 0x2f1   : > { %v3965_v42 = vadd.f32 %v15194_v16, %v3736_v6  ;;  %v12553_v50 = vpop.f32.mrb[232].mxu0  ;;  %v4170_v32 = vmax.f32 %v4106_v61, 0.0 }
 0x2f2   : > { %v3738_v54 = vsel %vm3683_vm1, %v3735_v4, %v3737_v25  ;;  %v12559_v14 = vpop.f32.mrb[233].mxu0 }
 0x2f3   : > { %v4036_v24 = vmul.f32 %v12269_v45, %v3965_v42  ;;  %v3966_v30 = vadd.f32 %v15195_v0, %v3738_v54  ;;  %v2930_v17 = vpop.f32.mrb[248].mxu1  ;;  %v12564_v21 = vpop.f32.mrb[234].mxu0 }
 0x2f4   : > { %v3220_v6 = vadd.f32 %v12457_v1, %v2930_v17  ;;  %v2932_v16 = vpop.f32.mrb[249].mxu1  ;;  %v12567_v13 = vpop.f32.mrb[235].mxu0 }
 0x2f5   : > { %v4107_v4 = vadd.f32 %v12278_v34, %v4036_v24  ;;  %v4037_v25 = vmul.f32 %v12269_v45, %v3966_v30  ;;  %v2933_v53 = vpop.f32.mrb[250].mxu1  ;;  %8773 = vmatmul.mubr.msk.bf16.gmra.mrb[32].mxu0 %vm12295_vm5, %v12401_v43  ;;  %v10491_v30 = vld [vmem:[%s14982_s2 + $0xf8] sm:$0xff]  }
 0x2f6   : > { %v3739_v42 = vrot.slane %v3220_v6, 1  ;;  %v3223_v54 = vadd.f32 %v12472_v29, %v2933_v53  ;;  %8776 = vmatprep.mubr.msk.bf16.mxu0 %vm12309_vm6, %v12460_v22  ;;  %v2935_v1 = vpop.f32.mrb[251].mxu1  ;;  %5436 = vmatpush1.bf16.msra.mxu1 %v10491_v30 }
 0x2f7   : > { %v4171_v0 = vmax.f32 %v4107_v4, 0.0  ;;  %v4108_v17 = vadd.f32 %v12278_v34, %v4037_v25  ;;  %v15196_v1 = vmov 0.0   ;;  %5437 = vmatprep.subr.bf16.mxu1 %v15070_v10 }
 0x2f8   : > { %v3741_v24 = vrot.slane %v3223_v54, 1 }
 0x2f9   : > { %v12583_v16 = vpack.c.bf16 %v4171_v0, %v4170_v32  ;;  %v4172_v43 = vmax.f32 %v4108_v17, 0.0  ;;  %v12585_v6 = vpop.f32.mrb[236].mxu0 }
 0x2fa   : > { %v3742_v29 = vsel %vm3683_vm1, %v3739_v42, %v3741_v24  ;;  %v12588_v53 = vpop.f32.mrb[237].mxu0 }
 0x2fb   : > { %v12591_v61 = vpack.c.bf16 %v15196_v1, %v4172_v43  ;;  %v3968_v4 = vadd.f32 %v12119_v5, %v3742_v29  ;;  %v2938_v25 = vpop.f32.mrb[252].mxu1  ;;  %10070 = vmatprep.mubr.msk.bf16.mxu1 %vm12295_vm5, %v12583_v16  ;;  %v12597_v54 = vpop.f32.mrb[238].mxu0  ;;  %v10492_v43 = vld [vmem:[%s14982_s2 + $0x100] sm:$0xff]  }
 0x2fc   : > { %v3228_v32 = vadd.f32 %v12454_v52, %v2938_v25  ;;  %v2940_v42 = vpop.f32.mrb[253].mxu1  ;;  %v12601_v0 = vpop.f32.mrb[239].mxu0  ;;  %5438 = vmatpush1.bf16.msra.mxu1 %v10492_v43 }
 0x2fd   : > { %v2941_v17 = vpop.f32.mrb[254].mxu1  ;;  %10071 = vmatmul.mubr.msk.bf16.gmra.mrb[84].mxu1 %vm12309_vm6, %v12591_v61  ;;  %8779 = vmatmul.mubr.msk.bf16.gmra.mrb[36].mxu0 %vm12309_vm6, %v12405_v48  ;;  %v4039_v29 = vmul.f32 %v12269_v45, %v3968_v4  ;;  %v10494_v48 = vld [vmem:[%s14982_s2 + $0x108] sm:$0xff]  }
 0x2fe   : > { %v3743_v5 = vrot.slane %v3228_v32, 1  ;;  %v3231_v30 = vadd.f32 %v12466_v37, %v2941_v17  ;;  %8782 = vmatprep.mubr.msk.bf16.mxu0 %vm12295_vm5, %v12517_v60  ;;  %v2943_v52 = vpop.f32.mrb[255].mxu1  ;;  %5439 = vmatprep.subr.bf16.mxu1 %v15070_v10  ;;  %v10493_v17 = vld [vmem:[%s14982_s2 + $0x170] sm:$0xff]  }
 0x2ff   : > { %10126 = vmatprep.subr.bf16.mxu0 %v10493_v17 }
 0x300   : > { %v3744_v25 = vsel %vm3683_vm1, %v3741_v24, %v3743_v5  ;;  %v3745_v42 = vrot.slane %v3231_v30, 1  ;;  %5440 = vmatpush1.bf16.msra.mxu1 %v10494_v48  ;;  %v4110_v24 = vadd.f32 %v12278_v34, %v4039_v29  ;;  %10127 = vmatpush3.bf16.msra.mxu0 %v10493_v17  ;;  %v10495_v48 = vld [vmem:[%s14982_s2 + $0x110] sm:$0xff]  }
 0x301   : > { %v3969_v32 = vadd.f32 %v12123_v23, %v3744_v25  ;;  %v12623_v37 = vpop.f32.mrb[240].mxu0  ;;  %5441 = vmatprep.subr.bf16.mxu1 %v15070_v10 }
 0x302   : > { %v3746_v43 = vsel %vm3683_vm1, %v3743_v5, %v3745_v42  ;;  %v12629_v4 = vpop.f32.mrb[241].mxu0 }
 0x303   : > { %v4040_v30 = vmul.f32 %v12269_v45, %v3969_v32  ;;  %v3970_v52 = vadd.f32 %v12116_v2, %v3746_v43  ;;  %v2946_v63 = vpop.f32.mrb[0].mxu1  ;;  %v12634_v12 = vpop.f32.mrb[242].mxu0  ;;  %v4174_v32 = vmax.f32 %v4110_v24, 0.0 }
 0x304   : > { %v3236_v23 = vadd.f32 %v12497_v19, %v2946_v63  ;;  %v2948_v25 = vpop.f32.mrb[1].mxu1  ;;  %v12638_v47 = vpop.f32.mrb[243].mxu0  ;;  %5442 = vmatpush1.bf16.msra.mxu1 %v10495_v48  ;;  %v15197_v48 = vld [vmem:[#allocation31_spill] sm:$0xff] }
 0x305   : > { %v4111_v5 = vadd.f32 %v12278_v34, %v4040_v30  ;;  %v4041_v2 = vmul.f32 %v12269_v45, %v3970_v52  ;;  %v2949_v29 = vpop.f32.mrb[2].mxu1  ;;  %8785 = vmatmul.mubr.msk.bf16.gmra.mrb[40].mxu0 %vm12295_vm5, %v12452_v27  ;;  %5443 = vmatprep.subr.bf16.mxu1 %v15070_v10  ;;  %v10496_v52 = vld [vmem:[%s14982_s2 + $0x118] sm:$0xff]  }
 0x306   : > { %v3747_v42 = vrot.slane %v3236_v23, 1  ;;  %v3239_v63 = vadd.f32 %v12504_v39, %v2949_v29  ;;  %8788 = vmatprep.mubr.msk.bf16.mxu0 %vm12309_vm6, %v12525_v44  ;;  %v2951_v19 = vpop.f32.mrb[3].mxu1 }
 0x307   : > { %v4175_v17 = vmax.f32 %v4111_v5, 0.0  ;;  %v4112_v43 = vadd.f32 %v12278_v34, %v4041_v2 }
 0x308   : > { %v3749_v30 = vrot.slane %v3239_v63, 1  ;;  %5444 = vmatpush1.bf16.msra.mxu1 %v10496_v52 }
 0x309   : > { %v12657_v23 = vpack.c.bf16 %v4175_v17, %v4174_v32  ;;  %v4176_v39 = vmax.f32 %v4112_v43, 0.0  ;;  %v12659_v25 = vpop.f32.mrb[244].mxu0  ;;  %5445 = vmatprep.subr.bf16.mxu1 %v15070_v10  ;;  %v10497_v43 = vld [vmem:[%s14982_s2 + $0x120] sm:$0xff]  }
 0x30a   : > { %v3750_v29 = vsel %vm3683_vm1, %v3747_v42, %v3749_v30  ;;  %v12662_v19 = vpop.f32.mrb[245].mxu0 }
 0x30b   : > { %v12665_v24 = vpack.c.bf16 %v15196_v1, %v4176_v39  ;;  %v3972_v5 = vadd.f32 %v15197_v48, %v3750_v29  ;;  %v2954_v2 = vpop.f32.mrb[4].mxu1  ;;  %10074 = vmatprep.mubr.msk.bf16.mxu1 %vm12295_vm5, %v12657_v23  ;;  %v12671_v63 = vpop.f32.mrb[246].mxu0 }
 0x30c   : > { %v3244_v32 = vadd.f32 %v12488_v41, %v2954_v2  ;;  %v2956_v42 = vpop.f32.mrb[5].mxu1  ;;  %v12675_v17 = vpop.f32.mrb[247].mxu0  ;;  %5446 = vmatpush1.bf16.msra.mxu1 %v10497_v43 }
 0x30d   : > { %v2957_v52 = vpop.f32.mrb[6].mxu1  ;;  %10075 = vmatmul.mubr.msk.bf16.gmra.mrb[88].mxu1 %vm12309_vm6, %v12665_v24  ;;  %8791 = vmatmul.mubr.msk.bf16.gmra.mrb[44].mxu0 %vm12309_vm6, %v12460_v22  ;;  %v4043_v48 = vmul.f32 %v12269_v45, %v3972_v5  ;;  %v10498_v22 = vld [vmem:[%s14982_s2 + $0x128] sm:$0xff]  }
 0x30e   : > { %v3751_v39 = vrot.slane %v3244_v32, 1  ;;  %v3247_v29 = vadd.f32 %v12502_v20, %v2957_v52  ;;  %8794 = vmatprep.mubr.msk.bf16.mxu0 %vm12295_vm5, %v12583_v16  ;;  %v2959_v41 = vpop.f32.mrb[7].mxu1  ;;  %5447 = vmatprep.subr.bf16.mxu1 %v15070_v10  ;;  %v15198_v32 = vld [vmem:[#allocation34_spill] sm:$0xff] }
 0x30f   : > { %v4114_v5 = vadd.f32 %v12278_v34, %v4043_v48  ;;  %v15200_v41 = vld [vmem:[#allocation30_spill] sm:$0xff] }
 0x310   : > { %v3752_v2 = vsel %vm3683_vm1, %v3749_v30, %v3751_v39  ;;  %v3753_v42 = vrot.slane %v3247_v29, 1  ;;  %5448 = vmatpush1.bf16.msra.mxu1 %v10498_v22  ;;  %v10499_v22 = vld [vmem:[%s14982_s2 + $0x130] sm:$0xff]  }
 0x311   : > { %v3973_v27 = vadd.f32 %v15198_v32, %v3752_v2  ;;  %v12697_v20 = vpop.f32.mrb[248].mxu0  ;;  %5449 = vmatprep.subr.bf16.mxu1 %v15070_v10 }
 0x312   : > { %15199 = vst [vmem:[#allocation51_spill] sm:$0xff] %v12697_v20  ;;  %v3754_v52 = vsel %vm3683_vm1, %v3751_v39, %v3753_v42  ;;  %v12700_v58 = vpop.f32.mrb[249].mxu0 }
 0x313   : > { %v4044_v43 = vmul.f32 %v12269_v45, %v3973_v27  ;;  %v3974_v30 = vadd.f32 %v15200_v41, %v3754_v52  ;;  %v2962_v29 = vpop.f32.mrb[8].mxu1  ;;  %v12705_v57 = vpop.f32.mrb[250].mxu0  ;;  %v4178_v41 = vmax.f32 %v4114_v5, 0.0 }
 0x314   : > { %v3252_v2 = vadd.f32 %v12522_v36, %v2962_v29  ;;  %v2964_v32 = vpop.f32.mrb[9].mxu1  ;;  %v12709_v20 = vpop.f32.mrb[251].mxu0  ;;  %5450 = vmatpush1.bf16.msra.mxu1 %v10499_v22 }
 0x315   : > { %v4115_v39 = vadd.f32 %v12278_v34, %v4044_v43  ;;  %v4045_v27 = vmul.f32 %v12269_v45, %v3974_v30  ;;  %v2965_v48 = vpop.f32.mrb[10].mxu1  ;;  %8797 = vmatmul.mubr.msk.bf16.gmra.mrb[48].mxu0 %vm12295_vm5, %v12517_v60  ;;  %v10500_v43 = vld [vmem:[%s14982_s2 + $0x178] sm:$0xff]   ;;  %5451 = vmatprep.subr.bf16.mxu1 %v15070_v10 }
 0x316   : > { %v3755_v42 = vrot.slane %v3252_v2, 1  ;;  %v3255_v52 = vadd.f32 %v12537_v33, %v2965_v48  ;;  %8800 = vmatprep.mubr.msk.bf16.mxu0 %vm12309_vm6, %v12591_v61  ;;  %v2967_v36 = vpop.f32.mrb[11].mxu1  ;;  %10128 = vmatprep.subr.bf16.mxu0 %v10500_v43  ;;  %v10501_v33 = vld [vmem:[%s14982_s2 + $0x138] sm:$0xff]  }
 0x317   : > { %v4179_v30 = vmax.f32 %v4115_v39, 0.0  ;;  %v4116_v29 = vadd.f32 %v12278_v34, %v4045_v27  ;;  %10129 = vmatpush3.bf16.msra.mxu0 %v10500_v43 }
 0x318   : > { %v3757_v32 = vrot.slane %v3255_v52, 1  ;;  %5452 = vmatpush1.bf16.msra.mxu1 %v10501_v33  ;;  %6192 = vmatprep.subr.bf16.mxu0 %v15070_v10 }
 0x319   : > { %v12731_v2 = vpack.c.bf16 %v4179_v30, %v4178_v41  ;;  %v4180_v48 = vmax.f32 %v4116_v29, 0.0  ;;  %v12733_v22 = vpop.f32.mrb[252].mxu0 }
 0x31a   : > { %v3758_v36 = vsel %vm3683_vm1, %v3755_v42, %v3757_v32  ;;  %v12736_v5 = vpop.f32.mrb[253].mxu0 }
 0x31b   : > { %v12740_v39 = vpack.c.bf16 %v15196_v1, %v4180_v48  ;;  %v3976_v27 = vadd.f32 %v12153_v35, %v3758_v36  ;;  %v2970_v52 = vpop.f32.mrb[12].mxu1  ;;  %10078 = vmatprep.mubr.msk.bf16.mxu1 %vm12295_vm5, %v12731_v2  ;;  %v12746_v41 = vpop.f32.mrb[254].mxu0 }
 0x31c   : > { %15201 = vst [vmem:[#allocation25_spill] sm:$0xff] %v12746_v41  ;;  %v3260_v43 = vadd.f32 %v12519_v62, %v2970_v52  ;;  %v2972_v42 = vpop.f32.mrb[13].mxu1  ;;  %v12749_v30 = vpop.f32.mrb[255].mxu0 }
 0x31d   : > { %v2973_v29 = vpop.f32.mrb[14].mxu1  ;;  %10079 = vmatmul.mubr.msk.bf16.gmra.mrb[92].mxu1 %vm12309_vm6, %v12740_v39  ;;  %8803 = vmatmul.mubr.msk.bf16.gmra.mrb[52].mxu0 %vm12309_vm6, %v12525_v44  ;;  %v4047_v48 = vmul.f32 %v12269_v45, %v3976_v27 }
 0x31e   : > { %v3759_v35 = vrot.slane %v3260_v43, 1  ;;  %v3263_v33 = vadd.f32 %v12531_v55, %v2973_v29  ;;  %8806 = vmatprep.mubr.msk.bf16.mxu0 %vm12295_vm5, %v12657_v23  ;;  %v2975_v62 = vpop.f32.mrb[15].mxu1 }
 0x31f   : > { %v4118_v10 = vadd.f32 %v12278_v34, %v4047_v48 }
 0x320   : > { %v3760_v36 = vsel %vm3683_vm1, %v3757_v32, %v3759_v35  ;;  %v3761_v52 = vrot.slane %v3263_v33, 1 }
 0x321   : > { %v3977_v42 = vadd.f32 %v12157_v8, %v3760_v36 }
 0x322   : > { %v3762_v60 = vsel %vm3683_vm1, %v3759_v35, %v3761_v52 }
 0x323   : > { %v4048_v43 = vmul.f32 %v12269_v45, %v3977_v42  ;;  %v3978_v55 = vadd.f32 %v12150_v31, %v3762_v60  ;;  %v2978_v29 = vpop.f32.mrb[16].mxu1  ;;  %v4182_v60 = vmax.f32 %v4118_v10, 0.0 }
 0x324   : > { %v3268_v44 = vadd.f32 %v12559_v14, %v2978_v29  ;;  %v2980_v41 = vpop.f32.mrb[17].mxu1 }
 0x325   : > { %v4119_v62 = vadd.f32 %v12278_v34, %v4048_v43  ;;  %v4049_v27 = vmul.f32 %v12269_v45, %v3978_v55  ;;  %v2981_v32 = vpop.f32.mrb[18].mxu1  ;;  %8809 = vmatmul.mubr.msk.bf16.gmra.mrb[56].mxu0 %vm12295_vm5, %v12583_v16 }
 0x326   : > { %v3763_v8 = vrot.slane %v3268_v44, 1  ;;  %v3271_v35 = vadd.f32 %v12567_v13, %v2981_v32  ;;  %8812 = vmatprep.mubr.msk.bf16.mxu0 %vm12309_vm6, %v12665_v24  ;;  %v2983_v31 = vpop.f32.mrb[19].mxu1 }
 0x327   : > { %v4183_v14 = vmax.f32 %v4119_v62, 0.0  ;;  %v4120_v41 = vadd.f32 %v12278_v34, %v4049_v27 }
 0x328   : > { %v3765_v33 = vrot.slane %v3271_v35, 1 }
 0x329   : > { %v12779_v48 = vpack.c.bf16 %v4183_v14, %v4182_v60  ;;  %v4184_v36 = vmax.f32 %v4120_v41, 0.0 }
 0x32a   : > { %v3766_v52 = vsel %vm3683_vm1, %v3763_v8, %v3765_v33 }
 0x32b   : > { %v12783_v42 = vpack.c.bf16 %v15196_v1, %v4184_v36  ;;  %v3980_v13 = vadd.f32 %v12169_v26, %v3766_v52  ;;  %v2986_v44 = vpop.f32.mrb[20].mxu1  ;;  %10082 = vmatprep.mubr.msk.bf16.mxu1 %vm12295_vm5, %v12779_v48 }
 0x32c   : > { %v3276_v10 = vadd.f32 %v12553_v50, %v2986_v44  ;;  %v2988_v43 = vpop.f32.mrb[21].mxu1 }
 0x32d   : > { %v2989_v55 = vpop.f32.mrb[22].mxu1  ;;  %10083 = vmatmul.mubr.msk.bf16.gmra.mrb[96].mxu1 %vm12309_vm6, %v12783_v42  ;;  %8815 = vmatmul.mubr.msk.bf16.gmra.mrb[60].mxu0 %vm12309_vm6, %v12591_v61  ;;  %v4051_v50 = vmul.f32 %v12269_v45, %v3980_v13 }
 0x32e   : > { %v3767_v29 = vrot.slane %v3276_v10, 1  ;;  %v3279_v26 = vadd.f32 %v12564_v21, %v2989_v55  ;;  %8818 = vmatprep.mubr.msk.bf16.mxu0 %vm12295_vm5, %v12731_v2  ;;  %v2991_v62 = vpop.f32.mrb[23].mxu1  ;;  %v12808_v21 = vld [vmem:[%s14983_s3] ss:$0 sm:$0xff] }
 0x32f   : > { %v4122_v31 = vadd.f32 %v12278_v34, %v4051_v50 }
 0x330   : > { %v3768_v27 = vsel %vm3683_vm1, %v3765_v33, %v3767_v29  ;;  %v3769_v32 = vrot.slane %v3279_v26, 1 }
 0x331   : > { %v3981_v8 = vadd.f32 %v12175_v9, %v3768_v27  ;;  %v12816_v9 = vld [vmem:[%s14984_s4] ss:$0 sm:$0xff]  ;;  %v4186_v10 = vmax.f32 %v4122_v31, 0.0 }
 0x332   : > { %v3770_v35 = vsel %vm3683_vm1, %v3767_v29, %v3769_v32 }
 0x333   : > { %v4052_v60 = vmul.f32 %v12808_v21, %v3981_v8  ;;  %v3982_v14 = vadd.f32 %v12166_v40, %v3770_v35  ;;  %v2994_v41 = vpop.f32.mrb[24].mxu1  ;;  %v12826_v40 = vld [vmem:[%s14982_s2 + $0x200] sm:$0xff]  }
 0x334   : > { %v3284_v45 = vadd.f32 %v12588_v53, %v2994_v41  ;;  %v2996_v33 = vpop.f32.mrb[25].mxu1  ;;  %10194 = vmatprep.subr.bf16.mxu1 %v12826_v40 }
 0x335   : > { %v4123_v34 = vadd.f32 %v12816_v9, %v4052_v60  ;;  %v4053_v36 = vmul.f32 %v12808_v21, %v3982_v14  ;;  %v2997_v52 = vpop.f32.mrb[26].mxu1  ;;  %8821 = vmatmul.mubr.msk.bf16.gmra.mrb[64].mxu0 %vm12295_vm5, %v12657_v23 }
 0x336   : > { %v3771_v53 = vrot.slane %v3284_v45, 1  ;;  %v3287_v13 = vadd.f32 %v12601_v0, %v2997_v52  ;;  %8824 = vmatprep.mubr.msk.bf16.mxu0 %vm12309_vm6, %v12740_v39  ;;  %v2999_v44 = vpop.f32.mrb[27].mxu1 }
 0x337   : > { %v4187_v43 = vmax.f32 %v4123_v34, 0.0  ;;  %v4124_v55 = vadd.f32 %v12816_v9, %v4053_v36 }
 0x338   : > { %v3773_v29 = vrot.slane %v3287_v13, 1 }
 0x339   : > { %v12834_v26 = vpack.c.bf16 %v4187_v43, %v4186_v10  ;;  %v4188_v62 = vmax.f32 %v4124_v55, 0.0 }
 0x33a   : > { %v3774_v50 = vsel %vm3683_vm1, %v3771_v53, %v3773_v29 }
 0x33b   : > { %v12838_v27 = vpack.c.bf16 %v15196_v1, %v4188_v62  ;;  %v3984_v0 = vadd.f32 %v12187_v56, %v3774_v50  ;;  %v3002_v32 = vpop.f32.mrb[28].mxu1  ;;  %10086 = vmatprep.mubr.msk.bf16.mxu1 %vm12295_vm5, %v12834_v26 }
 0x33c   : > { %v3292_v8 = vadd.f32 %v12585_v6, %v3002_v32  ;;  %v3004_v35 = vpop.f32.mrb[29].mxu1 }
 0x33d   : > { %v3005_v31 = vpop.f32.mrb[30].mxu1  ;;  %10087 = vmatmul.mubr.msk.bf16.gmra.mrb[100].mxu1 %vm12309_vm6, %v12838_v27  ;;  %8827 = vmatmul.mubr.msk.bf16.gmra.mrb[68].mxu0 %vm12309_vm6, %v12665_v24  ;;  %v4055_v6 = vmul.f32 %v12808_v21, %v3984_v0 }
 0x33e   : > { %v3775_v60 = vrot.slane %v3292_v8, 1  ;;  %v3295_v56 = vadd.f32 %v12597_v54, %v3005_v31  ;;  %8830 = vmatprep.mubr.msk.bf16.mxu0 %vm12295_vm5, %v12779_v48  ;;  %v3007_v14 = vpop.f32.mrb[31].mxu1 }
 0x33f   : > { %v4126_v36 = vadd.f32 %v12816_v9, %v4055_v6 }
 0x340   : > { %v3776_v41 = vsel %vm3683_vm1, %v3773_v29, %v3775_v60  ;;  %v3777_v45 = vrot.slane %v3295_v56, 1 }
 0x341   : > { %v3985_v33 = vadd.f32 %v12191_v3, %v3776_v41  ;;  %v4190_v62 = vmax.f32 %v4126_v36, 0.0 }
 0x342   : > { %v3778_v34 = vsel %vm3683_vm1, %v3775_v60, %v3777_v45 }
 0x343   : > { %v4056_v52 = vmul.f32 %v12808_v21, %v3985_v33  ;;  %v3986_v54 = vadd.f32 %v12184_v49, %v3778_v34  ;;  %v3010_v53 = vpop.f32.mrb[32].mxu1 }
 0x344   : > { %v3300_v13 = vadd.f32 %v12629_v4, %v3010_v53  ;;  %v3012_v44 = vpop.f32.mrb[33].mxu1 }
 0x345   : > { %v4127_v10 = vadd.f32 %v12816_v9, %v4056_v52  ;;  %v4057_v43 = vmul.f32 %v12808_v21, %v3986_v54  ;;  %v3013_v55 = vpop.f32.mrb[34].mxu1  ;;  %8833 = vmatmul.mubr.msk.bf16.gmra.mrb[72].mxu0 %vm12295_vm5, %v12731_v2 }
 0x346   : > { %v3779_v3 = vrot.slane %v3300_v13, 1  ;;  %v3303_v29 = vadd.f32 %v12638_v47, %v3013_v55  ;;  %8836 = vmatprep.mubr.msk.bf16.mxu0 %vm12309_vm6, %v12783_v42  ;;  %v3015_v49 = vpop.f32.mrb[35].mxu1 }
 0x347   : > { %v4191_v4 = vmax.f32 %v4127_v10, 0.0  ;;  %v4128_v50 = vadd.f32 %v12816_v9, %v4057_v43 }
 0x348   : > { %v3781_v0 = vrot.slane %v3303_v29, 1 }
 0x349   : > { %v12873_v32 = vpack.c.bf16 %v4191_v4, %v4190_v62  ;;  %v4192_v8 = vmax.f32 %v4128_v50, 0.0 }
 0x34a   : > { %v3782_v35 = vsel %vm3683_vm1, %v3779_v3, %v3781_v0 }
 0x34b   : > { %v12877_v31 = vpack.c.bf16 %v15196_v1, %v4192_v8  ;;  %v3988_v47 = vadd.f32 %v12203_v38, %v3782_v35  ;;  %v3018_v60 = vpop.f32.mrb[36].mxu1  ;;  %10090 = vmatprep.mubr.msk.bf16.mxu1 %vm12295_vm5, %v12873_v32 }
 0x34c   : > { %v3308_v56 = vadd.f32 %v12623_v37, %v3018_v60  ;;  %v3020_v14 = vpop.f32.mrb[37].mxu1 }
 0x34d   : > { %v3021_v6 = vpop.f32.mrb[38].mxu1  ;;  %10091 = vmatmul.mubr.msk.bf16.gmra.mrb[104].mxu1 %vm12309_vm6, %v12877_v31  ;;  %8839 = vmatmul.mubr.msk.bf16.gmra.mrb[76].mxu0 %vm12309_vm6, %v12740_v39  ;;  %v4059_v37 = vmul.f32 %v12808_v21, %v3988_v47 }
 0x34e   : > { %v3783_v41 = vrot.slane %v3308_v56, 1  ;;  %v3311_v38 = vadd.f32 %v12634_v12, %v3021_v6  ;;  %8842 = vmatprep.mubr.msk.bf16.mxu0 %vm12295_vm5, %v12834_v26  ;;  %v3023_v45 = vpop.f32.mrb[39].mxu1 }
 0x34f   : > { %v4130_v54 = vadd.f32 %v12816_v9, %v4059_v37 }
 0x350   : > { %v3784_v33 = vsel %vm3683_vm1, %v3781_v0, %v3783_v41  ;;  %v3785_v34 = vrot.slane %v3311_v38, 1 }
 0x351   : > { %v3989_v36 = vadd.f32 %v12209_v18, %v3784_v33  ;;  %v4194_v49 = vmax.f32 %v4130_v54, 0.0 }
 0x352   : > { %v3786_v52 = vsel %vm3683_vm1, %v3783_v41, %v3785_v34 }
 0x353   : > { %v4060_v53 = vmul.f32 %v12808_v21, %v3989_v36  ;;  %v3990_v12 = vadd.f32 %v12200_v46, %v3786_v52  ;;  %v3026_v13 = vpop.f32.mrb[40].mxu1 }
 0x354   : > { %v3316_v44 = vadd.f32 %v12662_v19, %v3026_v13  ;;  %v3028_v10 = vpop.f32.mrb[41].mxu1 }
 0x355   : > { %v4131_v43 = vadd.f32 %v12816_v9, %v4060_v53  ;;  %v4061_v55 = vmul.f32 %v12808_v21, %v3990_v12  ;;  %v3029_v3 = vpop.f32.mrb[42].mxu1  ;;  %8845 = vmatmul.mubr.msk.bf16.gmra.mrb[80].mxu0 %vm12295_vm5, %v12779_v48 }
 0x356   : > { %v3787_v18 = vrot.slane %v3316_v44, 1  ;;  %v3319_v29 = vadd.f32 %v12675_v17, %v3029_v3  ;;  %8848 = vmatprep.mubr.msk.bf16.mxu0 %vm12309_vm6, %v12838_v27  ;;  %v3031_v46 = vpop.f32.mrb[43].mxu1 }
 0x357   : > { %v4195_v19 = vmax.f32 %v4131_v43, 0.0  ;;  %v4132_v62 = vadd.f32 %v12816_v9, %v4061_v55 }
 0x358   : > { %v3789_v4 = vrot.slane %v3319_v29, 1 }
 0x359   : > { %v12912_v50 = vpack.c.bf16 %v4195_v19, %v4194_v49  ;;  %v4196_v0 = vmax.f32 %v4132_v62, 0.0  ;;  %v15203_v62 = vld [vmem:[#allocation51_spill] sm:$0xff] }
 0x35a   : > { %v3790_v8 = vsel %vm3683_vm1, %v3787_v18, %v3789_v4 }
 0x35b   : > { %15202 = vst [vmem:[#allocation35_spill] sm:$0xff] %v12912_v50  ;;  %v12916_v35 = vpack.c.bf16 %v15196_v1, %v4196_v0  ;;  %v3992_v17 = vadd.f32 %v12219_v51, %v3790_v8  ;;  %v3034_v47 = vpop.f32.mrb[44].mxu1  ;;  %10094 = vmatprep.mubr.msk.bf16.mxu1 %vm12295_vm5, %v12912_v50 }
 0x35c   : > { %v3324_v60 = vadd.f32 %v12659_v25, %v3034_v47  ;;  %v3036_v56 = vpop.f32.mrb[45].mxu1 }
 0x35d   : > { %v3037_v14 = vpop.f32.mrb[46].mxu1  ;;  %10095 = vmatmul.mubr.msk.bf16.gmra.mrb[108].mxu1 %vm12309_vm6, %v12916_v35  ;;  %8851 = vmatmul.mubr.msk.bf16.gmra.mrb[84].mxu0 %vm12309_vm6, %v12783_v42  ;;  %v4063_v25 = vmul.f32 %v12808_v21, %v3992_v17 }
 0x35e   : > { %v3791_v6 = vrot.slane %v3324_v60, 1  ;;  %v3327_v51 = vadd.f32 %v12671_v63, %v3037_v14  ;;  %8854 = vmatprep.mubr.msk.bf16.mxu0 %vm12295_vm5, %v12873_v32  ;;  %v3039_v41 = vpop.f32.mrb[47].mxu1 }
 0x35f   : > { %v4134_v34 = vadd.f32 %v12816_v9, %v4063_v25 }
 0x360   : > { %v3792_v38 = vsel %vm3683_vm1, %v3789_v4, %v3791_v6  ;;  %v3793_v45 = vrot.slane %v3327_v51, 1 }
 0x361   : > { %v3993_v37 = vadd.f32 %v12223_v59, %v3792_v38  ;;  %v4198_v43 = vmax.f32 %v4134_v34, 0.0 }
 0x362   : > { %v3794_v33 = vsel %vm3683_vm1, %v3791_v6, %v3793_v45  ;;  %v15204_v6 = vld [vmem:[#allocation3_spill] sm:$0xff]  ;;  %v15205_v45 = vld [vmem:[#allocation5_spill] sm:$0xff] }
 0x363   : > { %v4064_v36 = vmul.f32 %v12808_v21, %v3993_v37  ;;  %v3994_v63 = vadd.f32 %v12216_v28, %v3794_v33  ;;  %v3042_v52 = vpop.f32.mrb[48].mxu1 }
 0x364   : > { %v3332_v54 = vadd.f32 %v12700_v58, %v3042_v52  ;;  %v3044_v53 = vpop.f32.mrb[49].mxu1 }
 0x365   : > { %v4135_v12 = vadd.f32 %v12816_v9, %v4064_v36  ;;  %v4065_v13 = vmul.f32 %v12808_v21, %v3994_v63  ;;  %v3045_v44 = vpop.f32.mrb[50].mxu1  ;;  %8857 = vmatmul.mubr.msk.bf16.gmra.mrb[88].mxu0 %vm12295_vm5, %v12834_v26 }
 0x366   : > { %v3795_v59 = vrot.slane %v3332_v54, 1  ;;  %v3335_v10 = vadd.f32 %v12709_v20, %v3045_v44  ;;  %8860 = vmatprep.mubr.msk.bf16.mxu0 %vm12309_vm6, %v12877_v31  ;;  %v3047_v28 = vpop.f32.mrb[51].mxu1 }
 0x367   : > { %v4199_v58 = vmax.f32 %v4135_v12, 0.0  ;;  %v4136_v55 = vadd.f32 %v12816_v9, %v4065_v13 }
 0x368   : > { %v3797_v3 = vrot.slane %v3335_v10, 1 }
 0x369   : > { %v12951_v18 = vpack.c.bf16 %v4199_v58, %v4198_v43  ;;  %v4200_v29 = vmax.f32 %v4136_v55, 0.0  ;;  %v15206_v55 = vld [vmem:[#allocation8_spill] sm:$0xff] }
 0x36a   : > { %v3798_v46 = vsel %vm3683_vm1, %v3795_v59, %v3797_v3 }
 0x36b   : > { %v12955_v49 = vpack.c.bf16 %v15196_v1, %v4200_v29  ;;  %v3996_v20 = vadd.f32 %v12235_v15, %v3798_v46  ;;  %v3050_v19 = vpop.f32.mrb[52].mxu1  ;;  %10098 = vmatprep.mubr.msk.bf16.mxu1 %vm12295_vm5, %v12951_v18 }
 0x36c   : > { %v3340_v4 = vadd.f32 %v15203_v62, %v3050_v19  ;;  %v3052_v0 = vpop.f32.mrb[53].mxu1  ;;  %v15207_v62 = vld [vmem:[#allocation25_spill] sm:$0xff] }
 0x36d   : > { %v3053_v8 = vpop.f32.mrb[54].mxu1  ;;  %10099 = vmatmul.mubr.msk.bf16.gmra.mrb[112].mxu1 %vm12309_vm6, %v12955_v49  ;;  %8863 = vmatmul.mubr.msk.bf16.gmra.mrb[92].mxu0 %vm12309_vm6, %v12838_v27  ;;  %v4067_v60 = vmul.f32 %v12808_v21, %v3996_v20 }
 0x36e   : > { %v3799_v17 = vrot.slane %v3340_v4, 1  ;;  %v3343_v15 = vadd.f32 %v12705_v57, %v3053_v8  ;;  %8866 = vmatprep.mubr.msk.bf16.mxu0 %vm12295_vm5, %v12912_v50  ;;  %v3055_v47 = vpop.f32.mrb[55].mxu1 }
 0x36f   : > { %v4138_v25 = vadd.f32 %v12816_v9, %v4067_v60 }
 0x370   : > { %v3800_v56 = vsel %vm3683_vm1, %v3797_v3, %v3799_v17  ;;  %v3801_v14 = vrot.slane %v3343_v15, 1  ;;  %v15208_v15 = vld [vmem:[#allocation6_spill] sm:$0xff] }
 0x371   : > { %v3997_v51 = vadd.f32 %v15204_v6, %v3800_v56  ;;  %v4202_v13 = vmax.f32 %v4138_v25, 0.0  ;;  %v15209_v6 = vld [vmem:[#allocation4_spill] sm:$0xff] }
 0x372   : > { %v3802_v41 = vsel %vm3683_vm1, %v3799_v17, %v3801_v14 }
 0x373   : > { %v4068_v38 = vmul.f32 %v12808_v21, %v3997_v51  ;;  %v3998_v57 = vadd.f32 %v15205_v45, %v3802_v41  ;;  %v3058_v37 = vpop.f32.mrb[56].mxu1 }
 0x374   : > { %v3348_v33 = vadd.f32 %v12736_v5, %v3058_v37  ;;  %v3060_v34 = vpop.f32.mrb[57].mxu1 }
 0x375   : > { %v4139_v36 = vadd.f32 %v12816_v9, %v4068_v38  ;;  %v4069_v63 = vmul.f32 %v12808_v21, %v3998_v57  ;;  %v3061_v52 = vpop.f32.mrb[58].mxu1  ;;  %8869 = vmatmul.mubr.msk.bf16.gmra.mrb[96].mxu0 %vm12295_vm5, %v12873_v32 }
 0x376   : > { %v3803_v54 = vrot.slane %v3348_v33, 1  ;;  %v3351_v53 = vadd.f32 %v12749_v30, %v3061_v52  ;;  %8872 = vmatprep.mubr.msk.bf16.mxu0 %vm12309_vm6, %v12916_v35  ;;  %v3063_v12 = vpop.f32.mrb[59].mxu1 }
 0x377   : > { %v4203_v5 = vmax.f32 %v4139_v36, 0.0  ;;  %v4140_v44 = vadd.f32 %v12816_v9, %v4069_v63 }
 0x378   : > { %v3805_v59 = vrot.slane %v3351_v53, 1 }
 0x379   : > { %v12990_v10 = vpack.c.bf16 %v4203_v5, %v4202_v13  ;;  %v4204_v28 = vmax.f32 %v4140_v44, 0.0 }
 0x37a   : > { %v3806_v43 = vsel %vm3683_vm1, %v3803_v54, %v3805_v59 }
 0x37b   : > { %v12994_v58 = vpack.c.bf16 %v15196_v1, %v4204_v28  ;;  %v4000_v30 = vadd.f32 %v15206_v55, %v3806_v43  ;;  %v3066_v3 = vpop.f32.mrb[60].mxu1  ;;  %10102 = vmatprep.mubr.msk.bf16.mxu1 %vm12295_vm5, %v12990_v10 }
 0x37c   : > { %v3356_v29 = vadd.f32 %v12733_v22, %v3066_v3  ;;  %v3068_v46 = vpop.f32.mrb[61].mxu1 }
 0x37d   : > { %v3069_v20 = vpop.f32.mrb[62].mxu1  ;;  %10103 = vmatmul.mubr.msk.bf16.gmra.mrb[116].mxu1 %vm12309_vm6, %v12994_v58  ;;  %8875 = vmatmul.mubr.msk.bf16.gmra.mrb[100].mxu0 %vm12309_vm6, %v12877_v31  ;;  %v4071_v22 = vmul.f32 %v12808_v21, %v4000_v30 }
 0x37e   : > { %v3807_v19 = vrot.slane %v3356_v29, 1  ;;  %v3359_v4 = vadd.f32 %v15207_v62, %v3069_v20  ;;  %8878 = vmatprep.mubr.msk.bf16.mxu0 %vm12295_vm5, %v12951_v18  ;;  %v3071_v0 = vpop.f32.mrb[63].mxu1 }
 0x37f   : > { %v4142_v56 = vadd.f32 %v12816_v9, %v4071_v22 }
 0x380   : > { %v3808_v8 = vsel %vm3683_vm1, %v3805_v59, %v3807_v19  ;;  %v3809_v17 = vrot.slane %v3359_v4, 1 }
 0x381   : > { %v4001_v47 = vadd.f32 %v15208_v15, %v3808_v8  ;;  %v4206_v38 = vmax.f32 %v4142_v56, 0.0 }
 0x382   : > { %v3810_v60 = vsel %vm3683_vm1, %v3807_v19, %v3809_v17  ;;  %v15212_v19 = vld [vmem:[#allocation7_spill] sm:$0xff] }
 0x383   : > { %v4072_v14 = vmul.f32 %v12808_v21, %v4001_v47  ;;  %v4002_v51 = vadd.f32 %v15209_v6, %v3810_v60 }
 0x385   : > { %v4143_v41 = vadd.f32 %v12816_v9, %v4072_v14  ;;  %v4073_v25 = vmul.f32 %v12808_v21, %v4002_v51  ;;  %8881 = vmatmul.mubr.msk.bf16.gmra.mrb[104].mxu0 %vm12295_vm5, %v12912_v50 }
 0x386   : > { %8884 = vmatprep.mubr.msk.bf16.mxu0 %vm12309_vm6, %v12955_v49 }
 0x387   : > { %v4207_v45 = vmax.f32 %v4143_v41, 0.0  ;;  %v4144_v57 = vadd.f32 %v12816_v9, %v4073_v25  ;;  %v15211_v9 = vmov 0   ;;  %v10507_v25 = vld [vmem:[%s14982_s2 + $0x208] sm:$0xff]  }
 0x388   : > { %v4684_v37 = vpop.f32.mrb[0].mxu0 }
 0x389   : > { %v13027_v33 = vpack.c.bf16 %v4207_v45, %v4206_v38  ;;  %v4208_v34 = vmax.f32 %v4144_v57, 0.0  ;;  %v4686_v36 = vpop.f32.mrb[1].mxu0  ;;  %v15213_v45 = vld [vmem:[#allocation13_spill] sm:$0xff] }
 0x38a   : > { %v4687_v63 = vpop.f32.mrb[2].mxu0  ;;  %v10512_v36 = vld [vmem:[%s14982_s2 + $0x210] sm:$0xff]  }
 0x38b   : > { %15210 = vst [vmem:[#allocation32_spill] sm:$0xff] %v13027_v33  ;;  %v13030_v21 = vpack.c.bf16 %v15196_v1, %v4208_v34  ;;  %10106 = vmatprep.mubr.msk.bf16.mxu1 %vm12295_vm5, %v13027_v33  ;;  %v4689_v52 = vpop.f32.mrb[3].mxu0 }
 0x38d   : > { %10107 = vmatmul.mubr.msk.bf16.gmra.mrb[120].mxu1 %vm12309_vm6, %v13030_v21  ;;  %8887 = vmatmul.mubr.msk.bf16.gmra.mrb[108].mxu0 %vm12309_vm6, %v12916_v35 }
 0x38e   : > { %8890 = vmatprep.mubr.msk.bf16.mxu0 %vm12295_vm5, %v12990_v10  ;;  %10110 = vmatprep.mubr.bf16.mxu1 %v15211_v9 }
 0x390   : > { %v4692_v1 = vpop.f32.mrb[4].mxu0  ;;  %v10052_v54 = vpop.f32.mrb[64].mxu1 }
 0x391   : > { %v4982_v53 = vadd.f32 %v10052_v54, %v4692_v1  ;;  %v4694_v12 = vpop.f32.mrb[5].mxu0  ;;  %v4973_v13 = vpop.f32.mrb[65].mxu1 }
 0x392   : > { %v13045_v5 = vadd.f32 %v4973_v13, %v4684_v37  ;;  %v4695_v44 = vpop.f32.mrb[6].mxu0  ;;  %v10053_v59 = vpop.f32.mrb[66].mxu1 }
 0x393   : > { %v4985_v28 = vadd.f32 %v10053_v59, %v4695_v44  ;;  %v4697_v43 = vpop.f32.mrb[7].mxu0  ;;  %v4976_v55 = vpop.f32.mrb[67].mxu1  ;;  %v6837_v3 = vrot.slane %v4982_v53, 7 }
 0x394   : > { %v4977_v30 = vadd.f32 %v4976_v55, %v4687_v63  ;;  %v15030_v46 = vrot.slane %v13045_v5, 7 }
 0x395   : > { %v6839_v29 = vrot.slane %v4985_v28, 7  ;;  %10111 = vmatmul.mubr.bf16.gmra.mrb[124].mxu1 %v15211_v9  ;;  %8893 = vmatmul.mubr.msk.bf16.gmra.mrb[112].mxu0 %vm12295_vm5, %v12951_v18 }
 0x396   : > { %v6835_v20 = vrot.slane %v4977_v30, 7  ;;  %9004 = vmatprep.mubr.msk.bf16.mxu1 %vm12295_vm5, %v15212_v19  ;;  %8896 = vmatprep.mubr.msk.bf16.mxu0 %vm12309_vm6, %v12994_v58  ;;  %v15214_v30 = vld [vmem:[#allocation9_spill] sm:$0xff] }
 0x397   : > { %v13059_v62 = vsel %vm3426_vm0, %v6837_v3, %v6839_v29 }
 0x398   : > { %v4700_v4 = vpop.f32.mrb[8].mxu0  ;;  %v10056_v0 = vpop.f32.mrb[68].mxu1  ;;  %v13062_v22 = vsel %vm3426_vm0, %v6835_v20, %v6837_v3  ;;  %v13067_v8 = vsel %vm3426_vm0, %v15030_v46, %v6835_v20 }
 0x399   : > { %v4702_v17 = vpop.f32.mrb[9].mxu0  ;;  %v4989_v15 = vpop.f32.mrb[69].mxu1 }
 0x39a   : > { %v4990_v47 = vadd.f32 %v4989_v15, %v4700_v4  ;;  %v4703_v60 = vpop.f32.mrb[10].mxu0  ;;  %v10057_v56 = vpop.f32.mrb[70].mxu1 }
 0x39b   : > { %v4705_v14 = vpop.f32.mrb[11].mxu0  ;;  %v4992_v6 = vpop.f32.mrb[71].mxu1 }
 0x39c   : > { %v6841_v51 = vrot.slane %v4990_v47, 7  ;;  %v4993_v41 = vadd.f32 %v4992_v6, %v4703_v60  ;;  %v15215_v14 = vld [vmem:[#allocation11_spill] sm:$0xff] }
 0x39d   : > { %5454 = vmatmul.mubr.bf16.vlgmr.msra.gmra.mrb[128].mxu1 %v15211_v9  ;;  %8899 = vmatmul.mubr.msk.bf16.gmra.mrb[116].mxu0 %vm12309_vm6, %v12955_v49 }
 0x39e   : > { %v6843_v38 = vrot.slane %v4993_v41, 7  ;;  %9007 = vmatprep.mubr.msk.bf16.mxu1 %vm12309_vm6, %v15213_v45  ;;  %8902 = vmatprep.mubr.msk.bf16.mxu0 %vm12295_vm5, %v13027_v33  ;;  %v13083_v57 = vsel %vm3426_vm0, %v6839_v29, %v6841_v51 }
 0x39f   : > { %10195 = vmatpush3.bf16.msra.mxu1 %v12826_v40  ;;  %v10517_v40 = vld [vmem:[%s14982_s2 + $0x218] sm:$0xff]  }
 0x3a0   : > { %v4708_v37 = vpop.f32.mrb[12].mxu0  ;;  %v10060_v34 = vpop.f32.mrb[72].mxu1  ;;  %10196 = vmatprep.subr.bf16.mxu1 %v10507_v25  ;;  %v13090_v63 = vsel %vm3426_vm0, %v6841_v51, %v6843_v38 }
 0x3a1   : > { %v4998_v52 = vadd.f32 %v10056_v0, %v4708_v37  ;;  %v4710_v1 = vpop.f32.mrb[13].mxu0  ;;  %v5005_v54 = vpop.f32.mrb[73].mxu1 }
 0x3a2   : > { %v4711_v53 = vpop.f32.mrb[14].mxu0  ;;  %v10061_v12 = vpop.f32.mrb[74].mxu1 }
 0x3a3   : > { %v6845_v13 = vrot.slane %v4998_v52, 7  ;;  %v5001_v44 = vadd.f32 %v10057_v56, %v4711_v53  ;;  %v4713_v59 = vpop.f32.mrb[15].mxu0  ;;  %v5008_v28 = vpop.f32.mrb[75].mxu1  ;;  %10197 = vmatpush3.bf16.msra.mxu1 %v10507_v25 }
 0x3a4   : > { %10198 = vmatprep.subr.bf16.mxu1 %v10512_v36 }
 0x3a5   : > { %v6847_v43 = vrot.slane %v5001_v44, 7  ;;  %5462 = vmatmul.mubr.bf16.gmra.mrb[132].mxu1 %v15211_v9  ;;  %8905 = vmatmul.mubr.msk.bf16.gmra.mrb[120].mxu0 %vm12295_vm5, %v12990_v10  ;;  %v13100_v55 = vsel %vm3426_vm0, %v6843_v38, %v6845_v13  ;;  %v10503_v44 = vld [vmem:[%s14982_s2 + $0x180] sm:$0xff]  }
 0x3a6   : > { %9010 = vmatprep.mubr.msk.bf16.mxu1 %vm12295_vm5, %v15214_v30  ;;  %8908 = vmatprep.mubr.msk.bf16.mxu0 %vm12309_vm6, %v13030_v21 }
 0x3a7   : > { %10199 = vmatpush3.bf16.msra.mxu1 %v10512_v36  ;;  %v13109_v3 = vsel %vm3426_vm0, %v6845_v13, %v6847_v43 }
 0x3a8   : > { %v4716_v29 = vpop.f32.mrb[16].mxu0  ;;  %10200 = vmatprep.subr.bf16.mxu1 %v10517_v40 }
 0x3a9   : > { %v5006_v20 = vadd.f32 %v5005_v54, %v4716_v29  ;;  %v4718_v4 = vpop.f32.mrb[17].mxu0 }
 0x3aa   : > { %v4719_v0 = vpop.f32.mrb[18].mxu0 }
 0x3ab   : > { %v6849_v17 = vrot.slane %v5006_v20, 7  ;;  %v5009_v15 = vadd.f32 %v5008_v28, %v4719_v0  ;;  %v4721_v47 = vpop.f32.mrb[19].mxu0  ;;  %10201 = vmatpush3.bf16.msra.mxu1 %v10517_v40  ;;  %v15217_v28 = vld [vmem:[#allocation20_spill] sm:$0xff] }
 0x3ac   : > { %v10504_v40 = vld [vmem:[%s14982_s2 + $0x188] sm:$0xff]  }
 0x3ad   : > { %v6851_v60 = vrot.slane %v5009_v15, 7  ;;  %9013 = vmatmul.mubr.msk.bf16.gmra.mrb[136].mxu1 %vm12295_vm5, %v15212_v19  ;;  %8911 = vmatmul.mubr.msk.bf16.gmra.mrb[124].mxu0 %vm12309_vm6, %v12994_v58  ;;  %v13118_v56 = vsel %vm3426_vm0, %v6847_v43, %v6849_v17 }
 0x3ae   : > { %9016 = vmatprep.mubr.msk.bf16.mxu1 %vm12309_vm6, %v15215_v14  ;;  %10130 = vmatprep.mubr.msk.bf16.mxu0 %vm12295_vm5, %v15214_v30 }
 0x3af   : > { %v13127_v6 = vsel %vm3426_vm0, %v6849_v17, %v6851_v60 }
 0x3b0   : > { %15216 = vst [vmem:[#allocation33_spill] sm:$0xff] %v13127_v6  ;;  %v10064_v51 = vpop.f32.mrb[76].mxu1  ;;  %v4724_v41 = vpop.f32.mrb[20].mxu0 }
 0x3b1   : > { %v5014_v25 = vadd.f32 %v10060_v34, %v4724_v41  ;;  %v5021_v38 = vpop.f32.mrb[77].mxu1  ;;  %v4726_v37 = vpop.f32.mrb[21].mxu0  ;;  %v10522_v34 = vld [vmem:[%s14982_s2 + $0x220] sm:$0xff]  }
 0x3b2   : > { %v10065_v36 = vpop.f32.mrb[78].mxu1  ;;  %v4727_v52 = vpop.f32.mrb[22].mxu0  ;;  %10202 = vmatprep.subr.bf16.mxu1 %v10522_v34  ;;  %v15220_v37 = vld [vmem:[#allocation45_spill] sm:$0xff] }
 0x3b3   : > { %v6853_v1 = vrot.slane %v5014_v25, 7  ;;  %v5017_v54 = vadd.f32 %v10061_v12, %v4727_v52  ;;  %v5024_v53 = vpop.f32.mrb[79].mxu1  ;;  %v4729_v13 = vpop.f32.mrb[23].mxu0  ;;  %10203 = vmatpush3.bf16.msra.mxu1 %v10522_v34  ;;  %v15218_v25 = vld [vmem:[#allocation16_spill] sm:$0xff]  ;;  %v10506_v52 = vld [vmem:[%s14982_s2 + $0x198] sm:$0xff]  }
 0x3b5   : > { %v6855_v59 = vrot.slane %v5017_v54, 7  ;;  %9019 = vmatmul.mubr.msk.bf16.gmra.mrb[140].mxu1 %vm12309_vm6, %v15213_v45  ;;  %10131 = vmatmul.mubr.msk.bf16.vlgmr.msra.gmra.mrb[128].mxu0 %vm12309_vm6, %v15215_v14  ;;  %v13142_v12 = vsel %vm3426_vm0, %v6851_v60, %v6853_v1  ;;  %v10505_v60 = vld [vmem:[%s14982_s2 + $0x190] sm:$0xff]  }
 0x3b6   : > { %9022 = vmatprep.mubr.msk.bf16.mxu1 %vm12295_vm5, %v15217_v28  ;;  %10134 = vmatprep.mubr.msk.bf16.mxu0 %vm12295_vm5, %v15217_v28 }
 0x3b7   : > { %6193 = vmatpush1.bf16.msra.mxu0 %v10503_v44  ;;  %v13154_v43 = vsel %vm3426_vm0, %v6853_v1, %v6855_v59 }
 0x3b8   : > { %v4732_v29 = vpop.f32.mrb[24].mxu0  ;;  %6194 = vmatprep.subr.bf16.mxu0 %v15211_v9 }
 0x3b9   : > { %v5022_v20 = vadd.f32 %v5021_v38, %v4732_v29  ;;  %v4734_v4 = vpop.f32.mrb[25].mxu0 }
 0x3ba   : > { %v4735_v0 = vpop.f32.mrb[26].mxu0 }
 0x3bb   : > { %v6857_v17 = vrot.slane %v5022_v20, 7  ;;  %v5025_v15 = vadd.f32 %v5024_v53, %v4735_v0  ;;  %v4737_v47 = vpop.f32.mrb[27].mxu0  ;;  %6195 = vmatpush1.bf16.msra.mxu0 %v10504_v40 }
 0x3bc   : > { %6196 = vmatprep.subr.bf16.mxu0 %v15211_v9  ;;  %v15224_v47 = vld [vmem:[#allocation18_spill] sm:$0xff] }
 0x3bd   : > { %v6859_v41 = vrot.slane %v5025_v15, 7  ;;  %9025 = vmatmul.mubr.msk.bf16.gmra.mrb[144].mxu1 %vm12295_vm5, %v15214_v30  ;;  %10135 = vmatmul.mubr.msk.bf16.gmra.mrb[132].mxu0 %vm12309_vm6, %v15218_v25  ;;  %v13168_v38 = vsel %vm3426_vm0, %v6855_v59, %v6857_v17  ;;  %v10508_v15 = vld [vmem:[%s14982_s2 + $0x1a0] sm:$0xff]  }
 0x3be   : > { %15219 = vst [vmem:[#allocation38_spill] sm:$0xff] %v13168_v38  ;;  %9028 = vmatprep.mubr.msk.bf16.mxu1 %vm12309_vm6, %v15218_v25  ;;  %10138 = vmatprep.mubr.msk.bf16.mxu0 %vm12295_vm5, %v15220_v37  ;;  %v10513_v38 = vld [vmem:[%s14982_s2 + $0x1c0] sm:$0xff]  }
 0x3bf   : > { %6197 = vmatpush1.bf16.msra.mxu0 %v10505_v60  ;;  %v13180_v1 = vsel %vm3426_vm0, %v6857_v17, %v6859_v41  ;;  %v10509_v60 = vld [vmem:[%s14982_s2 + $0x1a8] sm:$0xff]  }
 0x3c0   : > { %15221 = vst [vmem:[#allocation36_spill] sm:$0xff] %v13180_v1  ;;  %v10068_v54 = vpop.f32.mrb[80].mxu1  ;;  %v4740_v53 = vpop.f32.mrb[28].mxu0  ;;  %6198 = vmatprep.subr.bf16.mxu0 %v15211_v9 }
 0x3c1   : > { %v5030_v13 = vadd.f32 %v10064_v51, %v4740_v53  ;;  %v5037_v44 = vpop.f32.mrb[81].mxu1  ;;  %v4742_v59 = vpop.f32.mrb[29].mxu0  ;;  %v15222_v51 = vld [vmem:[#allocation48_spill] sm:$0xff] }
 0x3c2   : > { %v10069_v34 = vpop.f32.mrb[82].mxu1  ;;  %v4743_v40 = vpop.f32.mrb[30].mxu0 }
 0x3c3   : > { %v6861_v29 = vrot.slane %v5030_v13, 7  ;;  %v5033_v20 = vadd.f32 %v10065_v36, %v4743_v40  ;;  %v5040_v4 = vpop.f32.mrb[83].mxu1  ;;  %v4745_v0 = vpop.f32.mrb[31].mxu0  ;;  %6199 = vmatpush1.bf16.msra.mxu0 %v10506_v52 }
 0x3c4   : > { %6200 = vmatprep.subr.bf16.mxu0 %v15211_v9 }
 0x3c5   : > { %v6863_v17 = vrot.slane %v5033_v20, 7  ;;  %9031 = vmatmul.mubr.msk.bf16.gmra.mrb[148].mxu1 %vm12309_vm6, %v15215_v14  ;;  %10139 = vmatmul.mubr.msk.bf16.gmra.mrb[136].mxu0 %vm12309_vm6, %v15222_v51  ;;  %v13194_v36 = vsel %vm3426_vm0, %v6859_v41, %v6861_v29 }
 0x3c6   : > { %15223 = vst [vmem:[#allocation37_spill] sm:$0xff] %v13194_v36  ;;  %9034 = vmatprep.mubr.msk.bf16.mxu1 %vm12295_vm5, %v15220_v37  ;;  %10142 = vmatprep.mubr.msk.bf16.mxu0 %vm12295_vm5, %v15224_v47 }
 0x3c7   : > { %6201 = vmatpush1.bf16.msra.mxu0 %v10508_v15  ;;  %v13206_v52 = vsel %vm3426_vm0, %v6861_v29, %v6863_v17  ;;  %v10510_v15 = vld [vmem:[%s14982_s2 + $0x1b0] sm:$0xff]   ;;  %v15226_v29 = vld [vmem:[#allocation50_spill] sm:$0xff] }
 0x3c8   : > { %15225 = vst [vmem:[#allocation41_spill] sm:$0xff] %v13206_v52  ;;  %v4748_v53 = vpop.f32.mrb[32].mxu0  ;;  %6202 = vmatprep.subr.bf16.mxu0 %v15211_v9 }
 0x3c9   : > { %v5038_v41 = vadd.f32 %v5037_v44, %v4748_v53  ;;  %v4750_v13 = vpop.f32.mrb[33].mxu0 }
 0x3ca   : > { %v4751_v59 = vpop.f32.mrb[34].mxu0 }
 0x3cb   : > { %v6865_v40 = vrot.slane %v5038_v41, 7  ;;  %v5041_v20 = vadd.f32 %v5040_v4, %v4751_v59  ;;  %v4753_v0 = vpop.f32.mrb[35].mxu0  ;;  %6203 = vmatpush1.bf16.msra.mxu0 %v10509_v60  ;;  %v15228_v4 = vld [vmem:[#allocation29_spill] sm:$0xff]  ;;  %v10511_v60 = vld [vmem:[%s14982_s2 + $0x1b8] sm:$0xff]  }
 0x3cc   : > { %6204 = vmatprep.subr.bf16.mxu0 %v15211_v9 }
 0x3cd   : > { %v6867_v46 = vrot.slane %v5041_v20, 7  ;;  %9037 = vmatmul.mubr.msk.bf16.gmra.mrb[152].mxu1 %vm12295_vm5, %v15217_v28  ;;  %10143 = vmatmul.mubr.msk.bf16.gmra.mrb[140].mxu0 %vm12309_vm6, %v15226_v29  ;;  %v13220_v44 = vsel %vm3426_vm0, %v6863_v17, %v6865_v40 }
 0x3ce   : > { %15227 = vst [vmem:[#allocation39_spill] sm:$0xff] %v13220_v44  ;;  %9040 = vmatprep.mubr.msk.bf16.mxu1 %vm12309_vm6, %v15222_v51  ;;  %10146 = vmatprep.mubr.msk.bf16.mxu0 %vm12295_vm5, %v15228_v4 }
 0x3cf   : > { %6205 = vmatpush1.bf16.msra.mxu0 %v10510_v15  ;;  %v13232_v53 = vsel %vm3426_vm0, %v6865_v40, %v6867_v46 }
 0x3d0   : > { %15229 = vst [vmem:[#allocation40_spill] sm:$0xff] %v13232_v53  ;;  %v10072_v41 = vpop.f32.mrb[84].mxu1  ;;  %v4756_v13 = vpop.f32.mrb[36].mxu0  ;;  %6206 = vmatprep.subr.bf16.mxu0 %v15211_v9 }
 0x3d1   : > { %v5046_v17 = vadd.f32 %v10068_v54, %v4756_v13  ;;  %v5053_v59 = vpop.f32.mrb[85].mxu1  ;;  %v4758_v20 = vpop.f32.mrb[37].mxu0  ;;  %v15230_v54 = vld [vmem:[#allocation24_spill] sm:$0xff] }
 0x3d2   : > { %v10073_v0 = vpop.f32.mrb[86].mxu1  ;;  %v4759_v44 = vpop.f32.mrb[38].mxu0 }
 0x3d3   : > { %v6869_v52 = vrot.slane %v5046_v17, 7  ;;  %v5049_v36 = vadd.f32 %v10069_v34, %v4759_v44  ;;  %v5056_v1 = vpop.f32.mrb[87].mxu1  ;;  %v4761_v15 = vpop.f32.mrb[39].mxu0  ;;  %6207 = vmatpush1.bf16.msra.mxu0 %v10511_v60  ;;  %v10523_v34 = vld [vmem:[%s14982_s2 + $0x228] sm:$0xff]  }
 0x3d4   : > { %6208 = vmatprep.subr.bf16.mxu0 %v15211_v9  ;;  %10204 = vmatprep.subr.bf16.mxu1 %v10523_v34 }
 0x3d5   : > { %v6871_v40 = vrot.slane %v5049_v36, 7  ;;  %9043 = vmatmul.mubr.msk.bf16.gmra.mrb[156].mxu1 %vm12309_vm6, %v15218_v25  ;;  %10147 = vmatmul.mubr.msk.bf16.gmra.mrb[144].mxu0 %vm12309_vm6, %v15230_v54  ;;  %v13249_v44 = vsel %vm3426_vm0, %v6867_v46, %v6869_v52  ;;  %v10514_v36 = vld [vmem:[%s14982_s2 + $0x1c8] sm:$0xff]  }
 0x3d6   : > { %15231 = vst [vmem:[#allocation44_spill] sm:$0xff] %v13249_v44  ;;  %9046 = vmatprep.mubr.msk.bf16.mxu1 %vm12295_vm5, %v15224_v47  ;;  %10150 = vmatprep.mubr.msk.bf16.mxu0 %vm12295_vm5, %v12583_v16 }
 0x3d7   : > { %6209 = vmatpush1.bf16.msra.mxu0 %v10513_v38  ;;  %v13261_v60 = vsel %vm3426_vm0, %v6869_v52, %v6871_v40  ;;  %10205 = vmatpush3.bf16.msra.mxu1 %v10523_v34  ;;  %v10515_v38 = vld [vmem:[%s14982_s2 + $0x1d0] sm:$0xff]  }
 0x3d8   : > { %15232 = vst [vmem:[#allocation42_spill] sm:$0xff] %v13261_v60  ;;  %v4764_v13 = vpop.f32.mrb[40].mxu0  ;;  %6210 = vmatprep.subr.bf16.mxu0 %v15211_v9  ;;  %v10518_v60 = vld [vmem:[%s14982_s2 + $0x1e0] sm:$0xff]  }
 0x3d9   : > { %v5054_v46 = vadd.f32 %v5053_v59, %v4764_v13  ;;  %v4766_v17 = vpop.f32.mrb[41].mxu0 }
 0x3da   : > { %v4767_v20 = vpop.f32.mrb[42].mxu0 }
 0x3db   : > { %v6873_v15 = vrot.slane %v5054_v46, 7  ;;  %v5057_v44 = vadd.f32 %v5056_v1, %v4767_v20  ;;  %v4769_v53 = vpop.f32.mrb[43].mxu0  ;;  %6211 = vmatpush1.bf16.msra.mxu0 %v10514_v36  ;;  %v10516_v1 = vld [vmem:[%s14982_s2 + $0x1d8] sm:$0xff]  }
 0x3dc   : > { %6212 = vmatprep.subr.bf16.mxu0 %v15211_v9 }
 0x3dd   : > { %v6875_v6 = vrot.slane %v5057_v44, 7  ;;  %9049 = vmatmul.mubr.msk.bf16.gmra.mrb[160].mxu1 %vm12295_vm5, %v15220_v37  ;;  %10151 = vmatmul.mubr.msk.bf16.gmra.mrb[148].mxu0 %vm12309_vm6, %v12591_v61  ;;  %v13275_v52 = vsel %vm3426_vm0, %v6871_v40, %v6873_v15 }
 0x3de   : > { %15233 = vst [vmem:[#allocation43_spill] sm:$0xff] %v13275_v52  ;;  %9052 = vmatprep.mubr.msk.bf16.mxu1 %vm12309_vm6, %v15226_v29  ;;  %10154 = vmatprep.mubr.msk.bf16.mxu0 %vm12295_vm5, %v12657_v23 }
 0x3df   : > { %6213 = vmatpush1.bf16.msra.mxu0 %v10515_v38  ;;  %v13287_v53 = vsel %vm3426_vm0, %v6873_v15, %v6875_v6 }
 0x3e0   : > { %15234 = vst [vmem:[#allocation49_spill] sm:$0xff] %v13287_v53  ;;  %v10076_v59 = vpop.f32.mrb[88].mxu1  ;;  %v4772_v34 = vpop.f32.mrb[44].mxu0  ;;  %6214 = vmatprep.subr.bf16.mxu0 %v15211_v9 }
 0x3e1   : > { %v5062_v40 = vadd.f32 %v10072_v41, %v4772_v34  ;;  %v5069_v44 = vpop.f32.mrb[89].mxu1  ;;  %v4774_v36 = vpop.f32.mrb[45].mxu0 }
 0x3e2   : > { %v10077_v13 = vpop.f32.mrb[90].mxu1  ;;  %v4775_v46 = vpop.f32.mrb[46].mxu0 }
 0x3e3   : > { %v6877_v17 = vrot.slane %v5062_v40, 7  ;;  %v5065_v20 = vadd.f32 %v10073_v0, %v4775_v46  ;;  %v5072_v52 = vpop.f32.mrb[91].mxu1  ;;  %v4777_v38 = vpop.f32.mrb[47].mxu0  ;;  %6215 = vmatpush1.bf16.msra.mxu0 %v10516_v1  ;;  %v10519_v0 = vld [vmem:[%s14982_s2 + $0x1e8] sm:$0xff]  }
 0x3e4   : > { %6216 = vmatprep.subr.bf16.mxu0 %v15211_v9 }
 0x3e5   : > { %v6879_v15 = vrot.slane %v5065_v20, 7  ;;  %9055 = vmatmul.mubr.msk.bf16.gmra.mrb[164].mxu1 %vm12309_vm6, %v15222_v51  ;;  %10155 = vmatmul.mubr.msk.bf16.gmra.mrb[152].mxu0 %vm12309_vm6, %v12665_v24  ;;  %v13301_v41 = vsel %vm3426_vm0, %v6875_v6, %v6877_v17 }
 0x3e6   : > { %15235 = vst [vmem:[#allocation46_spill] sm:$0xff] %v13301_v41  ;;  %9058 = vmatprep.mubr.msk.bf16.mxu1 %vm12295_vm5, %v15228_v4  ;;  %10158 = vmatprep.mubr.msk.bf16.mxu0 %vm12295_vm5, %v12731_v2 }
 0x3e7   : > { %6217 = vmatpush1.bf16.msra.mxu0 %v10518_v60  ;;  %v13313_v1 = vsel %vm3426_vm0, %v6877_v17, %v6879_v15  ;;  %v10520_v60 = vld [vmem:[%s14982_s2 + $0x1f0] sm:$0xff]  }
 0x3e8   : > { %15236 = vst [vmem:[#allocation47_spill] sm:$0xff] %v13313_v1  ;;  %v4780_v34 = vpop.f32.mrb[48].mxu0  ;;  %6218 = vmatprep.subr.bf16.mxu0 %v15211_v9 }
 0x3e9   : > { %v5070_v6 = vadd.f32 %v5069_v44, %v4780_v34  ;;  %v4782_v40 = vpop.f32.mrb[49].mxu0 }
 0x3ea   : > { %v4783_v36 = vpop.f32.mrb[50].mxu0 }
 0x3eb   : > { %v6881_v46 = vrot.slane %v5070_v6, 7  ;;  %v5073_v20 = vadd.f32 %v5072_v52, %v4783_v36  ;;  %v4785_v38 = vpop.f32.mrb[51].mxu0  ;;  %6219 = vmatpush1.bf16.msra.mxu0 %v10519_v0  ;;  %v10521_v52 = vld [vmem:[%s14982_s2 + $0x1f8] sm:$0xff]  }
 0x3ec   : > { %6220 = vmatprep.subr.bf16.mxu0 %v15211_v9 }
 0x3ed   : > { %v6883_v41 = vrot.slane %v5073_v20, 7  ;;  %9061 = vmatmul.mubr.msk.bf16.gmra.mrb[168].mxu1 %vm12295_vm5, %v15224_v47  ;;  %10159 = vmatmul.mubr.msk.bf16.gmra.mrb[156].mxu0 %vm12309_vm6, %v12740_v39  ;;  %v13327_v44 = vsel %vm3426_vm0, %v6879_v15, %v6881_v46 }
 0x3ee   : > { %15237 = vst [vmem:[#allocation52_spill] sm:$0xff] %v13327_v44  ;;  %9064 = vmatprep.mubr.msk.bf16.mxu1 %vm12309_vm6, %v15230_v54  ;;  %10162 = vmatprep.mubr.msk.bf16.mxu0 %vm12295_vm5, %v12779_v48 }
 0x3ef   : > { %6221 = vmatpush1.bf16.msra.mxu0 %v10520_v60  ;;  %v13339_v17 = vsel %vm3426_vm0, %v6881_v46, %v6883_v41 }
 0x3f0   : > { %v10080_v0 = vpop.f32.mrb[92].mxu1  ;;  %v4788_v34 = vpop.f32.mrb[52].mxu0  ;;  %6222 = vmatprep.subr.bf16.mxu0 %v15211_v9 }
 0x3f1   : > { %v5078_v15 = vadd.f32 %v10076_v59, %v4788_v34  ;;  %v5085_v6 = vpop.f32.mrb[93].mxu1  ;;  %v4790_v40 = vpop.f32.mrb[53].mxu0  ;;  %v10524_v59 = vld [vmem:[%s14982_s2 + $0x230] sm:$0xff]  }
 0x3f2   : > { %v10081_v36 = vpop.f32.mrb[94].mxu1  ;;  %v4791_v20 = vpop.f32.mrb[54].mxu0  ;;  %10206 = vmatprep.subr.bf16.mxu1 %v10524_v59 }
 0x3f3   : > { %v6885_v38 = vrot.slane %v5078_v15, 7  ;;  %v5081_v44 = vadd.f32 %v10077_v13, %v4791_v20  ;;  %v5088_v1 = vpop.f32.mrb[95].mxu1  ;;  %v4793_v60 = vpop.f32.mrb[55].mxu0  ;;  %6223 = vmatpush1.bf16.msra.mxu0 %v10521_v52  ;;  %10207 = vmatpush3.bf16.msra.mxu1 %v10524_v59 }
 0x3f5   : > { %v6887_v53 = vrot.slane %v5081_v44, 7  ;;  %9067 = vmatmul.mubr.msk.bf16.gmra.mrb[172].mxu1 %vm12309_vm6, %v15226_v29  ;;  %10163 = vmatmul.mubr.msk.bf16.gmra.mrb[160].mxu0 %vm12309_vm6, %v12783_v42  ;;  %v13352_v46 = vsel %vm3426_vm0, %v6883_v41, %v6885_v38 }
 0x3f6   : > { %15238 = vst [vmem:[#allocation10_spill] sm:$0xff] %v13352_v46  ;;  %9070 = vmatprep.mubr.msk.bf16.mxu1 %vm12295_vm5, %v12583_v16  ;;  %10166 = vmatprep.mubr.msk.bf16.mxu0 %vm12295_vm5, %v12834_v26 }
 0x3f7   : > { %v13361_v13 = vsel %vm3426_vm0, %v6885_v38, %v6887_v53 }
 0x3f8   : > { %15239 = vst [vmem:[#allocation12_spill] sm:$0xff] %v13361_v13  ;;  %v4796_v44 = vpop.f32.mrb[56].mxu0 }
 0x3f9   : > { %v5086_v52 = vadd.f32 %v5085_v6, %v4796_v44  ;;  %v4798_v34 = vpop.f32.mrb[57].mxu0 }
 0x3fa   : > { %v4799_v15 = vpop.f32.mrb[58].mxu0 }
 0x3fb   : > { %v6889_v40 = vrot.slane %v5086_v52, 7  ;;  %v5089_v41 = vadd.f32 %v5088_v1, %v4799_v15  ;;  %v4801_v20 = vpop.f32.mrb[59].mxu0 }
 0x3fd   : > { %v6891_v60 = vrot.slane %v5089_v41, 7  ;;  %9073 = vmatmul.mubr.msk.bf16.gmra.mrb[176].mxu1 %vm12295_vm5, %v15228_v4  ;;  %10167 = vmatmul.mubr.msk.bf16.gmra.mrb[164].mxu0 %vm12309_vm6, %v12838_v27  ;;  %v13370_v38 = vsel %vm3426_vm0, %v6887_v53, %v6889_v40 }
 0x3fe   : > { %15240 = vst [vmem:[#allocation14_spill] sm:$0xff] %v13370_v38  ;;  %9076 = vmatprep.mubr.msk.bf16.mxu1 %vm12309_vm6, %v12591_v61  ;;  %10170 = vmatprep.mubr.msk.bf16.mxu0 %vm12295_vm5, %v12873_v32 }
 0x3ff   : > { %v13379_v1 = vsel %vm3426_vm0, %v6889_v40, %v6891_v60 }
 0x400   : > { %15241 = vst [vmem:[#allocation15_spill] sm:$0xff] %v13379_v1  ;;  %v10084_v6 = vpop.f32.mrb[96].mxu1  ;;  %v4804_v59 = vpop.f32.mrb[60].mxu0 }
 0x401   : > { %v5094_v44 = vadd.f32 %v10080_v0, %v4804_v59  ;;  %v5101_v52 = vpop.f32.mrb[97].mxu1  ;;  %v4806_v34 = vpop.f32.mrb[61].mxu0 }
 0x402   : > { %v10085_v15 = vpop.f32.mrb[98].mxu1  ;;  %v4807_v41 = vpop.f32.mrb[62].mxu0 }
 0x403   : > { %v6893_v53 = vrot.slane %v5094_v44, 7  ;;  %v5097_v20 = vadd.f32 %v10081_v36, %v4807_v41  ;;  %v5104_v38 = vpop.f32.mrb[99].mxu1  ;;  %v4809_v13 = vpop.f32.mrb[63].mxu0 }
 0x405   : > { %v6895_v46 = vrot.slane %v5097_v20, 7  ;;  %9079 = vmatmul.mubr.msk.bf16.gmra.mrb[180].mxu1 %vm12309_vm6, %v15230_v54  ;;  %10171 = vmatmul.mubr.msk.bf16.gmra.mrb[168].mxu0 %vm12309_vm6, %v12877_v31  ;;  %v13388_v40 = vsel %vm3426_vm0, %v6891_v60, %v6893_v53 }
 0x406   : > { %15242 = vst [vmem:[#allocation17_spill] sm:$0xff] %v13388_v40  ;;  %9082 = vmatprep.mubr.msk.bf16.mxu1 %vm12295_vm5, %v12657_v23  ;;  %10174 = vmatprep.mubr.msk.bf16.mxu0 %vm12295_vm5, %v12912_v50 }
 0x407   : > { %v13397_v0 = vsel %vm3426_vm0, %v6893_v53, %v6895_v46 }
 0x408   : > { %15243 = vst [vmem:[#allocation19_spill] sm:$0xff] %v13397_v0  ;;  %v4812_v36 = vpop.f32.mrb[64].mxu0 }
 0x409   : > { %v5102_v13 = vadd.f32 %v5101_v52, %v4812_v36  ;;  %v4814_v59 = vpop.f32.mrb[65].mxu0 }
 0x40a   : > { %v4815_v44 = vpop.f32.mrb[66].mxu0 }
 0x40b   : > { %v6897_v34 = vrot.slane %v5102_v13, 7  ;;  %v5105_v41 = vadd.f32 %v5104_v38, %v4815_v44  ;;  %v4817_v20 = vpop.f32.mrb[67].mxu0 }
 0x40d   : > { %v6899_v60 = vrot.slane %v5105_v41, 7  ;;  %9085 = vmatmul.mubr.msk.bf16.gmra.mrb[184].mxu1 %vm12295_vm5, %v12583_v16  ;;  %10175 = vmatmul.mubr.msk.bf16.gmra.mrb[172].mxu0 %vm12309_vm6, %v12916_v35  ;;  %v13406_v40 = vsel %vm3426_vm0, %v6895_v46, %v6897_v34 }
 0x40e   : > { %15244 = vst [vmem:[#allocation22_spill] sm:$0xff] %v13406_v40  ;;  %9088 = vmatprep.mubr.msk.bf16.mxu1 %vm12309_vm6, %v12665_v24  ;;  %10178 = vmatprep.mubr.msk.bf16.mxu0 %vm12295_vm5, %v12951_v18 }
 0x40f   : > { %v13415_v38 = vsel %vm3426_vm0, %v6897_v34, %v6899_v60 }
 0x410   : > { %15245 = vst [vmem:[#allocation23_spill] sm:$0xff] %v13415_v38  ;;  %v10088_v52 = vpop.f32.mrb[100].mxu1  ;;  %v4820_v53 = vpop.f32.mrb[68].mxu0 }
 0x411   : > { %v5110_v36 = vadd.f32 %v10084_v6, %v4820_v53  ;;  %v5117_v13 = vpop.f32.mrb[101].mxu1  ;;  %v4822_v59 = vpop.f32.mrb[69].mxu0  ;;  %v10525_v6 = vld [vmem:[%s14982_s2 + $0x238] sm:$0xff]  }
 0x412   : > { %v10089_v44 = vpop.f32.mrb[102].mxu1  ;;  %v4823_v41 = vpop.f32.mrb[70].mxu0  ;;  %10208 = vmatprep.subr.bf16.mxu1 %v10525_v6 }
 0x413   : > { %v6901_v46 = vrot.slane %v5110_v36, 7  ;;  %v5113_v20 = vadd.f32 %v10085_v15, %v4823_v41  ;;  %v5120_v40 = vpop.f32.mrb[103].mxu1  ;;  %v4825_v0 = vpop.f32.mrb[71].mxu0  ;;  %10209 = vmatpush3.bf16.msra.mxu1 %v10525_v6 }
 0x415   : > { %v6903_v1 = vrot.slane %v5113_v20, 7  ;;  %9091 = vmatmul.mubr.msk.bf16.gmra.mrb[188].mxu1 %vm12309_vm6, %v12591_v61  ;;  %10179 = vmatmul.mubr.msk.bf16.gmra.mrb[176].mxu0 %vm12309_vm6, %v12955_v49  ;;  %v13424_v34 = vsel %vm3426_vm0, %v6899_v60, %v6901_v46 }
 0x416   : > { %15246 = vst [vmem:[#allocation21_spill] sm:$0xff] %v13424_v34  ;;  %9094 = vmatprep.mubr.msk.bf16.mxu1 %vm12295_vm5, %v12731_v2  ;;  %10182 = vmatprep.mubr.msk.bf16.mxu0 %vm12295_vm5, %v12990_v10 }
 0x417   : > { %v13436_v15 = vsel %vm3426_vm0, %v6901_v46, %v6903_v1 }
 0x418   : > { %15247 = vst [vmem:[#allocation26_spill] sm:$0xff] %v13436_v15  ;;  %v4828_v0 = vpop.f32.mrb[72].mxu0 }
 0x419   : > { %v5118_v53 = vadd.f32 %v5117_v13, %v4828_v0  ;;  %v4830_v60 = vpop.f32.mrb[73].mxu0 }
 0x41a   : > { %v4831_v36 = vpop.f32.mrb[74].mxu0 }
 0x41b   : > { %v6905_v59 = vrot.slane %v5118_v53, 7  ;;  %v5121_v41 = vadd.f32 %v5120_v40, %v4831_v36  ;;  %v4833_v20 = vpop.f32.mrb[75].mxu0 }
 0x41d   : > { %v6907_v34 = vrot.slane %v5121_v41, 7  ;;  %9097 = vmatmul.mubr.msk.bf16.gmra.mrb[192].mxu1 %vm12295_vm5, %v12657_v23  ;;  %10183 = vmatmul.mubr.msk.bf16.gmra.mrb[180].mxu0 %vm12309_vm6, %v12994_v58  ;;  %v13445_v46 = vsel %vm3426_vm0, %v6903_v1, %v6905_v59 }
 0x41e   : > { %15248 = vst [vmem:[#allocation27_spill] sm:$0xff] %v13445_v46  ;;  %9100 = vmatprep.mubr.msk.bf16.mxu1 %vm12309_vm6, %v12740_v39  ;;  %10186 = vmatprep.mubr.msk.bf16.mxu0 %vm12295_vm5, %v13027_v33 }
 0x41f   : > { %v13454_v40 = vsel %vm3426_vm0, %v6905_v59, %v6907_v34 }
 0x420   : > { %15249 = vst [vmem:[#allocation28_spill] sm:$0xff] %v13454_v40  ;;  %v10092_v13 = vpop.f32.mrb[104].mxu1  ;;  %v4836_v6 = vpop.f32.mrb[76].mxu0 }
 0x421   : > { %v5126_v0 = vadd.f32 %v10088_v52, %v4836_v6  ;;  %v5133_v53 = vpop.f32.mrb[105].mxu1  ;;  %v4838_v60 = vpop.f32.mrb[77].mxu0 }
 0x422   : > { %v10093_v36 = vpop.f32.mrb[106].mxu1  ;;  %v4839_v41 = vpop.f32.mrb[78].mxu0 }
 0x423   : > { %v6909_v1 = vrot.slane %v5126_v0, 7  ;;  %v5129_v20 = vadd.f32 %v10089_v44, %v4839_v41  ;;  %v5136_v46 = vpop.f32.mrb[107].mxu1  ;;  %v4841_v15 = vpop.f32.mrb[79].mxu0 }
 0x425   : > { %v6911_v38 = vrot.slane %v5129_v20, 7  ;;  %9103 = vmatmul.mubr.msk.bf16.gmra.mrb[196].mxu1 %vm12309_vm6, %v12665_v24  ;;  %10187 = vmatmul.mubr.msk.bf16.gmra.mrb[184].mxu0 %vm12309_vm6, %v13030_v21  ;;  %v13463_v59 = vsel %vm3426_vm0, %v6907_v34, %v6909_v1 }
 0x426   : > { %15250 = vst [vmem:[#allocation31_spill] sm:$0xff] %v13463_v59  ;;  %9106 = vmatprep.mubr.msk.bf16.mxu1 %vm12295_vm5, %v12779_v48  ;;  %10190 = vmatprep.mubr.bf16.mxu0 %v15211_v9 }
 0x427   : > { %v13470_v52 = vsel %vm3426_vm0, %v6909_v1, %v6911_v38 }
 0x428   : > { %15251 = vst [vmem:[#allocation34_spill] sm:$0xff] %v13470_v52  ;;  %v4844_v44 = vpop.f32.mrb[80].mxu0 }
 0x429   : > { %v5134_v15 = vadd.f32 %v5133_v53, %v4844_v44  ;;  %v4846_v6 = vpop.f32.mrb[81].mxu0 }
 0x42a   : > { %v4847_v0 = vpop.f32.mrb[82].mxu0 }
 0x42b   : > { %v6913_v60 = vrot.slane %v5134_v15, 7  ;;  %v5137_v41 = vadd.f32 %v5136_v46, %v4847_v0  ;;  %v4849_v20 = vpop.f32.mrb[83].mxu0 }
 0x42d   : > { %v6915_v40 = vrot.slane %v5137_v41, 7  ;;  %9109 = vmatmul.mubr.msk.bf16.gmra.mrb[200].mxu1 %vm12295_vm5, %v12731_v2  ;;  %10191 = vmatmul.mubr.bf16.gmra.mrb[188].mxu0 %v15211_v9  ;;  %v13477_v34 = vsel %vm3426_vm0, %v6911_v38, %v6913_v60 }
 0x42e   : > { %15252 = vst [vmem:[#allocation30_spill] sm:$0xff] %v13477_v34  ;;  %9112 = vmatprep.mubr.msk.bf16.mxu1 %vm12309_vm6, %v12783_v42  ;;  %9280 = vmatprep.mubr.msk.bf16.mxu0 %vm12295_vm5, %v15212_v19 }
 0x42f   : > { %v13486_v46 = vsel %vm3426_vm0, %v6913_v60, %v6915_v40 }
 0x430   : > { %15253 = vst [vmem:[#allocation51_spill] sm:$0xff] %v13486_v46  ;;  %v10096_v53 = vpop.f32.mrb[108].mxu1  ;;  %v4852_v1 = vpop.f32.mrb[84].mxu0 }
 0x431   : > { %v5142_v44 = vadd.f32 %v10092_v13, %v4852_v1  ;;  %v5149_v15 = vpop.f32.mrb[109].mxu1  ;;  %v4854_v6 = vpop.f32.mrb[85].mxu0 }
 0x432   : > { %v10097_v0 = vpop.f32.mrb[110].mxu1  ;;  %v4855_v41 = vpop.f32.mrb[86].mxu0 }
 0x433   : > { %v6917_v38 = vrot.slane %v5142_v44, 7  ;;  %v5145_v20 = vadd.f32 %v10093_v36, %v4855_v41  ;;  %v5152_v34 = vpop.f32.mrb[111].mxu1  ;;  %v4857_v52 = vpop.f32.mrb[87].mxu0 }
 0x435   : > { %v6919_v59 = vrot.slane %v5145_v20, 7  ;;  %9115 = vmatmul.mubr.msk.bf16.gmra.mrb[204].mxu1 %vm12309_vm6, %v12740_v39  ;;  %6225 = vmatmul.mubr.bf16.vlgmr.msra.gmra.mrb[192].mxu0 %v15211_v9  ;;  %v13493_v60 = vsel %vm3426_vm0, %v6915_v40, %v6917_v38 }
 0x436   : > { %15254 = vst [vmem:[#allocation3_spill] sm:$0xff] %v13493_v60  ;;  %9118 = vmatprep.mubr.msk.bf16.mxu1 %vm12295_vm5, %v12834_v26  ;;  %9283 = vmatprep.mubr.msk.bf16.mxu0 %vm12309_vm6, %v15213_v45 }
 0x437   : > { %v13502_v13 = vsel %vm3426_vm0, %v6917_v38, %v6919_v59 }
 0x438   : > { %15255 = vst [vmem:[#allocation5_spill] sm:$0xff] %v13502_v13  ;;  %v4860_v36 = vpop.f32.mrb[88].mxu0 }
 0x439   : > { %v5150_v52 = vadd.f32 %v5149_v15, %v4860_v36  ;;  %v4862_v1 = vpop.f32.mrb[89].mxu0 }
 0x43a   : > { %v4863_v44 = vpop.f32.mrb[90].mxu0 }
 0x43b   : > { %v6921_v6 = vrot.slane %v5150_v52, 7  ;;  %v5153_v41 = vadd.f32 %v5152_v34, %v4863_v44  ;;  %v4865_v20 = vpop.f32.mrb[91].mxu0 }
 0x43d   : > { %v6923_v40 = vrot.slane %v5153_v41, 7  ;;  %9121 = vmatmul.mubr.msk.bf16.gmra.mrb[208].mxu1 %vm12295_vm5, %v12779_v48  ;;  %6233 = vmatmul.mubr.bf16.gmra.mrb[196].mxu0 %v15211_v9  ;;  %v13509_v60 = vsel %vm3426_vm0, %v6919_v59, %v6921_v6 }
 0x43e   : > { %15256 = vst [vmem:[#allocation8_spill] sm:$0xff] %v13509_v60  ;;  %9124 = vmatprep.mubr.msk.bf16.mxu1 %vm12309_vm6, %v12838_v27  ;;  %9286 = vmatprep.mubr.msk.bf16.mxu0 %vm12295_vm5, %v15214_v30 }
 0x43f   : > { %v13518_v34 = vsel %vm3426_vm0, %v6921_v6, %v6923_v40 }
 0x440   : > { %15257 = vst [vmem:[#allocation25_spill] sm:$0xff] %v13518_v34  ;;  %v10100_v15 = vpop.f32.mrb[112].mxu1  ;;  %v4868_v38 = vpop.f32.mrb[92].mxu0 }
 0x441   : > { %v5158_v36 = vadd.f32 %v10096_v53, %v4868_v38  ;;  %v5165_v52 = vpop.f32.mrb[113].mxu1  ;;  %v4870_v1 = vpop.f32.mrb[93].mxu0 }
 0x442   : > { %v10101_v44 = vpop.f32.mrb[114].mxu1  ;;  %v4871_v41 = vpop.f32.mrb[94].mxu0 }
 0x443   : > { %v6925_v59 = vrot.slane %v5158_v36, 7  ;;  %v5161_v20 = vadd.f32 %v10097_v0, %v4871_v41  ;;  %v5168_v60 = vpop.f32.mrb[115].mxu1  ;;  %v4873_v13 = vpop.f32.mrb[95].mxu0 }
 0x445   : > { %v6927_v46 = vrot.slane %v5161_v20, 7  ;;  %9127 = vmatmul.mubr.msk.bf16.gmra.mrb[212].mxu1 %vm12309_vm6, %v12783_v42  ;;  %9289 = vmatmul.mubr.msk.bf16.gmra.mrb[200].mxu0 %vm12295_vm5, %v15212_v19  ;;  %v13527_v6 = vsel %vm3426_vm0, %v6923_v40, %v6925_v59 }
 0x446   : > { %15258 = vst [vmem:[#allocation6_spill] sm:$0xff] %v13527_v6  ;;  %9130 = vmatprep.mubr.msk.bf16.mxu1 %vm12295_vm5, %v12873_v32  ;;  %9292 = vmatprep.mubr.msk.bf16.mxu0 %vm12309_vm6, %v15215_v14 }
 0x447   : > { %v13536_v53 = vsel %vm3426_vm0, %v6925_v59, %v6927_v46 }
 0x448   : > { %15259 = vst [vmem:[#allocation4_spill] sm:$0xff] %v13536_v53  ;;  %v4876_v0 = vpop.f32.mrb[96].mxu0 }
 0x449   : > { %v5166_v13 = vadd.f32 %v5165_v52, %v4876_v0  ;;  %v4878_v38 = vpop.f32.mrb[97].mxu0 }
 0x44a   : > { %v4879_v36 = vpop.f32.mrb[98].mxu0 }
 0x44b   : > { %v6929_v1 = vrot.slane %v5166_v13, 7  ;;  %v5169_v19 = vadd.f32 %v5168_v60, %v4879_v36  ;;  %v4881_v41 = vpop.f32.mrb[99].mxu0 }
 0x44d   : > { %v6931_v40 = vrot.slane %v5169_v19, 7  ;;  %9133 = vmatmul.mubr.msk.bf16.gmra.mrb[216].mxu1 %vm12295_vm5, %v12834_v26  ;;  %9295 = vmatmul.mubr.msk.bf16.gmra.mrb[204].mxu0 %vm12309_vm6, %v15213_v45  ;;  %v13545_v20 = vsel %vm3426_vm0, %v6927_v46, %v6929_v1 }
 0x44e   : > { %15260 = vst [vmem:[#allocation7_spill] sm:$0xff] %v13545_v20  ;;  %9136 = vmatprep.mubr.msk.bf16.mxu1 %vm12309_vm6, %v12877_v31  ;;  %9298 = vmatprep.mubr.msk.bf16.mxu0 %vm12295_vm5, %v15217_v28 }
 0x44f   : > { %v13554_v60 = vsel %vm3426_vm0, %v6929_v1, %v6931_v40 }
 0x450   : > { %15261 = vst [vmem:[#allocation13_spill] sm:$0xff] %v13554_v60  ;;  %v10104_v52 = vpop.f32.mrb[116].mxu1  ;;  %v4884_v59 = vpop.f32.mrb[100].mxu0 }
 0x451   : > { %v5174_v0 = vadd.f32 %v10100_v15, %v4884_v59  ;;  %v5181_v13 = vpop.f32.mrb[117].mxu1  ;;  %v4886_v38 = vpop.f32.mrb[101].mxu0 }
 0x452   : > { %v10105_v45 = vpop.f32.mrb[118].mxu1  ;;  %v4887_v36 = vpop.f32.mrb[102].mxu0 }
 0x453   : > { %v6933_v46 = vrot.slane %v5174_v0, 7  ;;  %v5177_v19 = vadd.f32 %v10101_v44, %v4887_v36  ;;  %v5184_v41 = vpop.f32.mrb[119].mxu1  ;;  %v4889_v20 = vpop.f32.mrb[103].mxu0 }
 0x455   : > { %v6935_v53 = vrot.slane %v5177_v19, 7  ;;  %9139 = vmatmul.mubr.msk.bf16.gmra.mrb[220].mxu1 %vm12309_vm6, %v12838_v27  ;;  %9301 = vmatmul.mubr.msk.bf16.gmra.mrb[208].mxu0 %vm12295_vm5, %v15214_v30  ;;  %v13563_v1 = vsel %vm3426_vm0, %v6931_v40, %v6933_v46 }
 0x456   : > { %15262 = vst [vmem:[#allocation9_spill] sm:$0xff] %v13563_v1  ;;  %9142 = vmatprep.mubr.msk.bf16.mxu1 %vm12295_vm5, %v12912_v50  ;;  %9304 = vmatprep.mubr.msk.bf16.mxu0 %vm12309_vm6, %v15218_v25 }
 0x457   : > { %v13572_v15 = vsel %vm3426_vm0, %v6933_v46, %v6935_v53 }
 0x458   : > { %15263 = vst [vmem:[#allocation11_spill] sm:$0xff] %v13572_v15  ;;  %v4892_v44 = vpop.f32.mrb[104].mxu0 }
 0x459   : > { %v5182_v20 = vadd.f32 %v5181_v13, %v4892_v44  ;;  %v4894_v59 = vpop.f32.mrb[105].mxu0 }
 0x45a   : > { %v4895_v0 = vpop.f32.mrb[106].mxu0 }
 0x45b   : > { %v6937_v38 = vrot.slane %v5182_v20, 7  ;;  %v5185_v36 = vadd.f32 %v5184_v41, %v4895_v0  ;;  %v4897_v19 = vpop.f32.mrb[107].mxu0 }
 0x45d   : > { %v6939_v40 = vrot.slane %v5185_v36, 7  ;;  %9145 = vmatmul.mubr.msk.bf16.gmra.mrb[224].mxu1 %vm12295_vm5, %v12873_v32  ;;  %9307 = vmatmul.mubr.msk.bf16.gmra.mrb[212].mxu0 %vm12309_vm6, %v15215_v14  ;;  %v13581_v1 = vsel %vm3426_vm0, %v6935_v53, %v6937_v38 }
 0x45e   : > { %15264 = vst [vmem:[#allocation20_spill] sm:$0xff] %v13581_v1  ;;  %9148 = vmatprep.mubr.msk.bf16.mxu1 %vm12309_vm6, %v12916_v35  ;;  %9310 = vmatprep.mubr.msk.bf16.mxu0 %vm12295_vm5, %v15220_v37 }
 0x45f   : > { %v13590_v13 = vsel %vm3426_vm0, %v6937_v38, %v6939_v40 }
 0x460   : > { %15265 = vst [vmem:[#allocation16_spill] sm:$0xff] %v13590_v13  ;;  %v10108_v46 = vpop.f32.mrb[120].mxu1  ;;  %v4900_v41 = vpop.f32.mrb[108].mxu0 }
 0x461   : > { %v5190_v44 = vadd.f32 %v10104_v52, %v4900_v41  ;;  %v5197_v20 = vpop.f32.mrb[121].mxu1  ;;  %v4902_v59 = vpop.f32.mrb[109].mxu0 }
 0x462   : > { %v10109_v0 = vpop.f32.mrb[122].mxu1  ;;  %v4903_v36 = vpop.f32.mrb[110].mxu0 }
 0x463   : > { %v6941_v53 = vrot.slane %v5190_v44, 7  ;;  %v5193_v19 = vadd.f32 %v10105_v45, %v4903_v36  ;;  %v5200_v1 = vpop.f32.mrb[123].mxu1  ;;  %v4905_v15 = vpop.f32.mrb[111].mxu0 }
 0x465   : > { %v6943_v60 = vrot.slane %v5193_v19, 7  ;;  %9151 = vmatmul.mubr.msk.bf16.gmra.mrb[228].mxu1 %vm12309_vm6, %v12877_v31  ;;  %9313 = vmatmul.mubr.msk.bf16.gmra.mrb[216].mxu0 %vm12295_vm5, %v15217_v28  ;;  %v13599_v38 = vsel %vm3426_vm0, %v6939_v40, %v6941_v53 }
 0x466   : > { %15266 = vst [vmem:[#allocation45_spill] sm:$0xff] %v13599_v38  ;;  %9154 = vmatprep.mubr.msk.bf16.mxu1 %vm12295_vm5, %v12951_v18  ;;  %9316 = vmatprep.mubr.msk.bf16.mxu0 %vm12309_vm6, %v15222_v51 }
 0x467   : > { %v13608_v52 = vsel %vm3426_vm0, %v6941_v53, %v6943_v60 }
 0x468   : > { %15267 = vst [vmem:[#allocation48_spill] sm:$0xff] %v13608_v52  ;;  %v4908_v45 = vpop.f32.mrb[112].mxu0  ;;  %v10112_v15 = vpop.f32.mrb[124].mxu1 }
 0x469   : > { %v5198_v41 = vadd.f32 %v5197_v20, %v4908_v45  ;;  %v4910_v44 = vpop.f32.mrb[113].mxu0  ;;  %v5213_v59 = vpop.f32.mrb[125].mxu1 }
 0x46a   : > { %v4911_v36 = vpop.f32.mrb[114].mxu0  ;;  %v10113_v19 = vpop.f32.mrb[126].mxu1 }
 0x46b   : > { %v6945_v40 = vrot.slane %v5198_v41, 7  ;;  %v5201_v38 = vadd.f32 %v5200_v1, %v4911_v36  ;;  %v4913_v13 = vpop.f32.mrb[115].mxu0  ;;  %v5216_v6 = vpop.f32.mrb[127].mxu1 }
 0x46d   : > { %v6947_v34 = vrot.slane %v5201_v38, 7  ;;  %9157 = vmatmul.mubr.msk.bf16.gmra.mrb[232].mxu1 %vm12295_vm5, %v12912_v50  ;;  %9319 = vmatmul.mubr.msk.bf16.gmra.mrb[220].mxu0 %vm12309_vm6, %v15218_v25  ;;  %v13617_v53 = vsel %vm3426_vm0, %v6943_v60, %v6945_v40 }
 0x46e   : > { %15268 = vst [vmem:[#allocation18_spill] sm:$0xff] %v13617_v53  ;;  %9160 = vmatprep.mubr.msk.bf16.mxu1 %vm12309_vm6, %v12955_v49  ;;  %9322 = vmatprep.mubr.msk.bf16.mxu0 %vm12295_vm5, %v15224_v47 }
 0x46f   : > { %v13626_v1 = vsel %vm3426_vm0, %v6945_v40, %v6947_v34 }
 0x470   : > { %15269 = vst [vmem:[#allocation50_spill] sm:$0xff] %v13626_v1  ;;  %v4916_v13 = vpop.f32.mrb[116].mxu0  ;;  %v5455_v20 = vpop.f32.mrb[128].mxu1 }
 0x471   : > { %v5206_v38 = vadd.f32 %v10108_v46, %v4916_v13  ;;  %v4918_v45 = vpop.f32.mrb[117].mxu0  ;;  %v5457_v41 = vpop.f32.mrb[129].mxu1 }
 0x472   : > { %v4919_v44 = vpop.f32.mrb[118].mxu0  ;;  %v5458_v36 = vpop.f32.mrb[130].mxu1 }
 0x473   : > { %v6949_v60 = vrot.slane %v5206_v38, 7  ;;  %v5209_v53 = vadd.f32 %v10109_v0, %v4919_v44  ;;  %v4921_v52 = vpop.f32.mrb[119].mxu0  ;;  %v5460_v9 = vpop.f32.mrb[131].mxu1 }
 0x475   : > { %v6951_v50 = vrot.slane %v5209_v53, 7  ;;  %9163 = vmatmul.mubr.msk.bf16.gmra.mrb[236].mxu1 %vm12309_vm6, %v12916_v35  ;;  %9325 = vmatmul.mubr.msk.bf16.gmra.mrb[224].mxu0 %vm12295_vm5, %v15220_v37  ;;  %v13635_v40 = vsel %vm3426_vm0, %v6947_v34, %v6949_v60 }
 0x476   : > { %15270 = vst [vmem:[#allocation29_spill] sm:$0xff] %v13635_v40  ;;  %9166 = vmatprep.mubr.msk.bf16.mxu1 %vm12295_vm5, %v12990_v10  ;;  %9328 = vmatprep.mubr.msk.bf16.mxu0 %vm12309_vm6, %v15226_v29 }
 0x477   : > { %v13644_v9 = vsel %vm3426_vm0, %v6949_v60, %v6951_v50 }
 0x478   : > { %15271 = vst [vmem:[#allocation24_spill] sm:$0xff] %v13644_v9  ;;  %v4924_v46 = vpop.f32.mrb[120].mxu0  ;;  %v5463_v0 = vpop.f32.mrb[132].mxu1 }
 0x479   : > { %v5214_v52 = vadd.f32 %v5213_v59, %v4924_v46  ;;  %v4926_v53 = vpop.f32.mrb[121].mxu0  ;;  %v5465_v13 = vpop.f32.mrb[133].mxu1 }
 0x47a   : > { %v4927_v38 = vpop.f32.mrb[122].mxu0  ;;  %v5466_v45 = vpop.f32.mrb[134].mxu1 }
 0x47b   : > { %v6953_v34 = vrot.slane %v5214_v52, 7  ;;  %v5217_v41 = vadd.f32 %v5216_v6, %v4927_v38  ;;  %v4929_v44 = vpop.f32.mrb[123].mxu0  ;;  %v5468_v40 = vpop.f32.mrb[135].mxu1 }
 0x47d   : > { %v6955_v1 = vrot.slane %v5217_v41, 7  ;;  %9169 = vmatmul.mubr.msk.bf16.gmra.mrb[240].mxu1 %vm12295_vm5, %v12951_v18  ;;  %9331 = vmatmul.mubr.msk.bf16.gmra.mrb[228].mxu0 %vm12309_vm6, %v15222_v51  ;;  %v13653_v60 = vsel %vm3426_vm0, %v6951_v50, %v6953_v34 }
 0x47e   : > { %15272 = vst [vmem:[#allocation53_spill] sm:$0xff] %v13653_v60  ;;  %9172 = vmatprep.mubr.msk.bf16.mxu1 %vm12309_vm6, %v12994_v58  ;;  %9334 = vmatprep.mubr.msk.bf16.mxu0 %vm12295_vm5, %v15228_v4 }
 0x47f   : > { %v13662_v6 = vsel %vm3426_vm0, %v6953_v34, %v6955_v1 }
 0x480   : > { %15273 = vst [vmem:[#allocation54_spill] sm:$0xff] %v13662_v6  ;;  %v5471_v59 = vpop.f32.mrb[136].mxu1  ;;  %v4932_v40 = vpop.f32.mrb[124].mxu0 }
 0x481   : > { %v5222_v46 = vadd.f32 %v10112_v15, %v4932_v40  ;;  %v5473_v52 = vpop.f32.mrb[137].mxu1  ;;  %v4934_v53 = vpop.f32.mrb[125].mxu0 }
 0x482   : > { %v5474_v13 = vpop.f32.mrb[138].mxu1  ;;  %v4935_v38 = vpop.f32.mrb[126].mxu0 }
 0x483   : > { %v6957_v50 = vrot.slane %v5222_v46, 7  ;;  %v5225_v41 = vadd.f32 %v10113_v19, %v4935_v38  ;;  %v5476_v44 = vpop.f32.mrb[139].mxu1  ;;  %v4937_v60 = vpop.f32.mrb[127].mxu0 }
 0x484   : > { %v15276_v44 = vrot.slane %v13045_v5, 7 }
 0x485   : > { %v6959_v9 = vrot.slane %v5225_v41, 7  ;;  %9175 = vmatmul.mubr.msk.bf16.gmra.mrb[244].mxu1 %vm12309_vm6, %v12955_v49  ;;  %9337 = vmatmul.mubr.msk.bf16.gmra.mrb[232].mxu0 %vm12295_vm5, %v15224_v47  ;;  %v13671_v34 = vsel %vm3426_vm0, %v6955_v1, %v6957_v50 }
 0x486   : > { %15274 = vst [vmem:[#allocation55_spill] sm:$0xff] %v13671_v34  ;;  %9178 = vmatprep.mubr.msk.bf16.mxu1 %vm12295_vm5, %v13027_v33  ;;  %9340 = vmatprep.mubr.msk.bf16.mxu0 %vm12309_vm6, %v15230_v54  ;;  %v7025_v34 = vsel %vm3426_vm0, %v13045_v5, %v15276_v44 }
 0x487   : > { %v13680_v15 = vsel %vm3426_vm0, %v6957_v50, %v6959_v9 }
 0x488   : > { %15275 = vst [vmem:[#allocation56_spill] sm:$0xff] %v13680_v15  ;;  %v5479_v19 = vpop.f32.mrb[140].mxu1  ;;  %v10132_v60 = vpop.f32.mrb[128].mxu0 }
 0x489   : > { %v5481_v40 = vpop.f32.mrb[141].mxu1  ;;  %v5753_v46 = vadd.f32 %v10132_v60, %v5463_v0  ;;  %v5744_v52 = vpop.f32.mrb[129].mxu0 }
 0x48a   : > { %v5482_v53 = vpop.f32.mrb[142].mxu1  ;;  %v5745_v38 = vadd.f32 %v5744_v52, %v5455_v20  ;;  %v10133_v1 = vpop.f32.mrb[130].mxu0 }
 0x48b   : > { %v13683_v41 = vadd.f32 %v13062_v22, %v5753_v46  ;;  %v5484_v6 = vpop.f32.mrb[143].mxu1  ;;  %v5756_v33 = vadd.f32 %v10133_v1, %v5466_v45  ;;  %v5747_v9 = vpop.f32.mrb[131].mxu0 }
 0x48c   : > { %v13689_v50 = vadd.f32 %v7025_v34, %v5745_v38  ;;  %v5748_v15 = vadd.f32 %v5747_v9, %v5458_v36 }
 0x48d   : > { %v13692_v0 = vadd.f32 %v13059_v62, %v5756_v33  ;;  %9181 = vmatmul.mubr.msk.bf16.gmra.mrb[248].mxu1 %vm12295_vm5, %v12990_v10  ;;  %9343 = vmatmul.mubr.msk.bf16.gmra.mrb[236].mxu0 %vm12309_vm6, %v15226_v29 }
 0x48e   : > { %v13701_v22 = vadd.f32 %v13067_v8, %v5748_v15  ;;  %9184 = vmatprep.mubr.msk.bf16.mxu1 %vm12309_vm6, %v13030_v21  ;;  %9346 = vmatprep.mubr.msk.bf16.mxu0 %vm12295_vm5, %v12583_v16 }
 0x490   : > { %v5487_v33 = vpop.f32.mrb[144].mxu1  ;;  %v10136_v5 = vpop.f32.mrb[132].mxu0 }
 0x491   : > { %v5489_v62 = vpop.f32.mrb[145].mxu1  ;;  %v5769_v20 = vadd.f32 %v10136_v5, %v5479_v19  ;;  %v5760_v36 = vpop.f32.mrb[133].mxu0 }
 0x492   : > { %v5490_v45 = vpop.f32.mrb[146].mxu1  ;;  %v5761_v6 = vadd.f32 %v5760_v36, %v5471_v59  ;;  %v10137_v34 = vpop.f32.mrb[134].mxu0 }
 0x493   : > { %v13710_v60 = vadd.f32 %v13100_v55, %v5769_v20  ;;  %v5492_v8 = vpop.f32.mrb[147].mxu1  ;;  %v5772_v15 = vadd.f32 %v10137_v34, %v5482_v53  ;;  %v5763_v40 = vpop.f32.mrb[135].mxu0 }
 0x494   : > { %v13713_v46 = vadd.f32 %v13083_v57, %v5761_v6  ;;  %v5764_v52 = vadd.f32 %v5763_v40, %v5474_v13 }
 0x495   : > { %v13716_v38 = vadd.f32 %v13109_v3, %v5772_v15  ;;  %9187 = vmatmul.mubr.msk.bf16.gmra.mrb[252].mxu1 %vm12309_vm6, %v12994_v58  ;;  %9349 = vmatmul.mubr.msk.bf16.gmra.mrb[240].mxu0 %vm12295_vm5, %v15228_v4 }
 0x496   : > { %v13725_v55 = vadd.f32 %v13090_v63, %v5764_v52  ;;  %10210 = vmatprep.mubr.msk.bf16.mxu1 %vm12295_vm5, %v15214_v30  ;;  %9352 = vmatprep.mubr.msk.bf16.mxu0 %vm12309_vm6, %v12591_v61  ;;  %v15278_v52 = vld [vmem:[#allocation38_spill] sm:$0xff] }
 0x498   : > { %v5495_v57 = vpop.f32.mrb[148].mxu1  ;;  %v10140_v3 = vpop.f32.mrb[136].mxu0 }
 0x499   : > { %v5497_v59 = vpop.f32.mrb[149].mxu1  ;;  %v5785_v13 = vadd.f32 %v10140_v3, %v5495_v57  ;;  %v5776_v19 = vpop.f32.mrb[137].mxu0 }
 0x49a   : > { %v5498_v53 = vpop.f32.mrb[150].mxu1  ;;  %v5777_v1 = vadd.f32 %v5776_v19, %v5487_v33  ;;  %v10141_v44 = vpop.f32.mrb[138].mxu0 }
 0x49b   : > { %v13734_v9 = vadd.f32 %v13142_v12, %v5785_v13  ;;  %v5500_v63 = vpop.f32.mrb[151].mxu1  ;;  %v5788_v5 = vadd.f32 %v10141_v44, %v5498_v53  ;;  %v5779_v62 = vpop.f32.mrb[139].mxu0  ;;  %v15277_v12 = vld [vmem:[#allocation33_spill] sm:$0xff] }
 0x49c   : > { %v13737_v30 = vadd.f32 %v13118_v56, %v5777_v1  ;;  %v5780_v20 = vadd.f32 %v5779_v62, %v5490_v45 }
 0x49d   : > { %v13740_v36 = vadd.f32 %v13154_v43, %v5788_v5  ;;  %10211 = vmatmul.mubr.msk.bf16.vlgmr.msra.gmra.mrb[0].mxu1 %vm12309_vm6, %v15215_v14  ;;  %9355 = vmatmul.mubr.msk.bf16.gmra.mrb[244].mxu0 %vm12309_vm6, %v15230_v54  ;;  %v15280_v5 = vld [vmem:[#allocation37_spill] sm:$0xff] }
 0x49e   : > { %v13749_v33 = vadd.f32 %v15277_v12, %v5780_v20  ;;  %10214 = vmatprep.mubr.msk.bf16.mxu1 %vm12295_vm5, %v15217_v28  ;;  %9358 = vmatprep.mubr.msk.bf16.mxu0 %vm12295_vm5, %v12657_v23  ;;  %v15279_v28 = vld [vmem:[#allocation36_spill] sm:$0xff] }
 0x4a0   : > { %v5503_v56 = vpop.f32.mrb[152].mxu1  ;;  %v10144_v43 = vpop.f32.mrb[140].mxu0 }
 0x4a1   : > { %v5505_v45 = vpop.f32.mrb[153].mxu1  ;;  %v5792_v6 = vpop.f32.mrb[141].mxu0 }
 0x4a2   : > { %v5506_v14 = vpop.f32.mrb[154].mxu1  ;;  %v5793_v34 = vadd.f32 %v5792_v6, %v5503_v56  ;;  %v10145_v8 = vpop.f32.mrb[142].mxu0  ;;  %v15281_v45 = vld [vmem:[#allocation41_spill] sm:$0xff] }
 0x4a3   : > { %v5508_v15 = vpop.f32.mrb[155].mxu1  ;;  %v5795_v40 = vpop.f32.mrb[143].mxu0 }
 0x4a4   : > { %v13758_v57 = vadd.f32 %v15278_v52, %v5793_v34  ;;  %v5796_v3 = vadd.f32 %v5795_v40, %v5506_v14 }
 0x4a5   : > { %10215 = vmatmul.mubr.msk.bf16.gmra.mrb[4].mxu1 %vm12309_vm6, %v15218_v25  ;;  %9361 = vmatmul.mubr.msk.bf16.gmra.mrb[248].mxu0 %vm12295_vm5, %v12583_v16 }
 0x4a6   : > { %v13767_v59 = vadd.f32 %v15279_v28, %v5796_v3  ;;  %10218 = vmatprep.mubr.msk.bf16.mxu1 %vm12295_vm5, %v15220_v37  ;;  %9364 = vmatprep.mubr.msk.bf16.mxu0 %vm12309_vm6, %v12665_v24 }
 0x4a8   : > { %v5511_v13 = vpop.f32.mrb[156].mxu1  ;;  %v10148_v19 = vpop.f32.mrb[144].mxu0 }
 0x4a9   : > { %v5801_v53 = vadd.f32 %v10144_v43, %v5511_v13  ;;  %v5513_v1 = vpop.f32.mrb[157].mxu1  ;;  %v5808_v25 = vpop.f32.mrb[145].mxu0 }
 0x4aa   : > { %v5514_v44 = vpop.f32.mrb[158].mxu1  ;;  %v10149_v63 = vpop.f32.mrb[146].mxu0 }
 0x4ab   : > { %v13776_v62 = vadd.f32 %v15280_v5, %v5801_v53  ;;  %v5804_v20 = vadd.f32 %v10145_v8, %v5514_v44  ;;  %v5516_v12 = vpop.f32.mrb[159].mxu1  ;;  %v5811_v56 = vpop.f32.mrb[147].mxu0  ;;  %v15285_v53 = vld [vmem:[#allocation40_spill] sm:$0xff] }
 0x4ad   : > { %v13779_v6 = vadd.f32 %v15281_v45, %v5804_v20  ;;  %10219 = vmatmul.mubr.msk.bf16.gmra.mrb[8].mxu1 %vm12309_vm6, %v15222_v51  ;;  %9367 = vmatmul.mubr.msk.bf16.gmra.mrb[252].mxu0 %vm12309_vm6, %v12591_v61  ;;  %v15283_v51 = vld [vmem:[#allocation39_spill] sm:$0xff] }
 0x4ae   : > { %10222 = vmatprep.mubr.msk.bf16.mxu1 %vm12295_vm5, %v15224_v47  ;;  %9370 = vmatprep.mubr.msk.bf16.mxu0 %vm12295_vm5, %v12731_v2 }
 0x4af   : > { %15282 = vst [vmem:[#allocation33_spill] sm:$0xff] %v13779_v6 }
 0x4b0   : > { %v5519_v37 = vpop.f32.mrb[160].mxu1  ;;  %v10152_v43 = vpop.f32.mrb[148].mxu0 }
 0x4b1   : > { %v5809_v14 = vadd.f32 %v5808_v25, %v5519_v37  ;;  %v5521_v34 = vpop.f32.mrb[161].mxu1  ;;  %v5824_v8 = vpop.f32.mrb[149].mxu0 }
 0x4b2   : > { %v5522_v15 = vpop.f32.mrb[162].mxu1  ;;  %v10153_v40 = vpop.f32.mrb[150].mxu0 }
 0x4b3   : > { %v13794_v52 = vadd.f32 %v15283_v51, %v5809_v14  ;;  %v5812_v3 = vadd.f32 %v5811_v56, %v5522_v15  ;;  %v5524_v28 = vpop.f32.mrb[163].mxu1  ;;  %v5827_v13 = vpop.f32.mrb[151].mxu0  ;;  %v15287_v56 = vld [vmem:[#allocation44_spill] sm:$0xff] }
 0x4b5   : > { %15284 = vst [vmem:[#allocation38_spill] sm:$0xff] %v13794_v52  ;;  %v13797_v1 = vadd.f32 %v15285_v53, %v5812_v3  ;;  %10223 = vmatmul.mubr.msk.bf16.gmra.mrb[12].mxu1 %vm12309_vm6, %v15226_v29  ;;  %9373 = vmatmul.mubr.msk.bf16.gmra.mrb[0].mxu0 %vm12295_vm5, %v12657_v23 }
 0x4b6   : > { %10226 = vmatprep.mubr.msk.bf16.mxu1 %vm12295_vm5, %v15228_v4  ;;  %9376 = vmatprep.mubr.msk.bf16.mxu0 %vm12309_vm6, %v12740_v39  ;;  %v15289_v4 = vld [vmem:[#allocation42_spill] sm:$0xff] }
 0x4b7   : > { %15286 = vst [vmem:[#allocation36_spill] sm:$0xff] %v13797_v1 }
 0x4b8   : > { %v5527_v47 = vpop.f32.mrb[164].mxu1  ;;  %v13811_v25 = vpop.f32.mrb[152].mxu0 }
 0x4b9   : > { %v5817_v44 = vadd.f32 %v10148_v19, %v5527_v47  ;;  %v5529_v5 = vpop.f32.mrb[165].mxu1  ;;  %v5840_v20 = vpop.f32.mrb[153].mxu0  ;;  %v15291_v47 = vld [vmem:[#allocation43_spill] sm:$0xff] }
 0x4ba   : > { %v5530_v12 = vpop.f32.mrb[166].mxu1  ;;  %v13813_v29 = vpop.f32.mrb[154].mxu0 }
 0x4bb   : > { %v13816_v45 = vadd.f32 %v15287_v56, %v5817_v44  ;;  %v5820_v37 = vadd.f32 %v10149_v63, %v5530_v12  ;;  %v5532_v14 = vpop.f32.mrb[167].mxu1  ;;  %v5843_v34 = vpop.f32.mrb[155].mxu0 }
 0x4bd   : > { %15288 = vst [vmem:[#allocation37_spill] sm:$0xff] %v13816_v45  ;;  %v13819_v15 = vadd.f32 %v15289_v4, %v5820_v37  ;;  %10227 = vmatmul.mubr.msk.bf16.gmra.mrb[16].mxu1 %vm12309_vm6, %v15230_v54  ;;  %9379 = vmatmul.mubr.msk.bf16.gmra.mrb[4].mxu0 %vm12309_vm6, %v12665_v24  ;;  %v15330_v45 = vld [vmem:[#allocation34_spill] sm:$0xff] }
 0x4be   : > { %10230 = vmatprep.mubr.msk.bf16.mxu1 %vm12295_vm5, %v12583_v16  ;;  %9382 = vmatprep.mubr.msk.bf16.mxu0 %vm12295_vm5, %v12779_v48  ;;  %v15293_v16 = vld [vmem:[#allocation49_spill] sm:$0xff] }
 0x4bf   : > { %15290 = vst [vmem:[#allocation41_spill] sm:$0xff] %v13819_v15 }
 0x4c0   : > { %v5535_v19 = vpop.f32.mrb[168].mxu1  ;;  %v13833_v63 = vpop.f32.mrb[156].mxu0 }
 0x4c1   : > { %v5825_v51 = vadd.f32 %v5824_v8, %v5535_v19  ;;  %v5537_v3 = vpop.f32.mrb[169].mxu1  ;;  %v5856_v28 = vpop.f32.mrb[157].mxu0 }
 0x4c2   : > { %v5538_v53 = vpop.f32.mrb[170].mxu1  ;;  %v13835_v54 = vpop.f32.mrb[158].mxu0  ;;  %v15295_v3 = vld [vmem:[#allocation46_spill] sm:$0xff] }
 0x4c3   : > { %v13838_v44 = vadd.f32 %v15291_v47, %v5825_v51  ;;  %v5828_v5 = vadd.f32 %v5827_v13, %v5538_v53  ;;  %v5540_v12 = vpop.f32.mrb[171].mxu1  ;;  %v5859_v56 = vpop.f32.mrb[159].mxu0 }
 0x4c4   : > { %v15297_v12 = vld [vmem:[#allocation47_spill] sm:$0xff] }
 0x4c5   : > { %15292 = vst [vmem:[#allocation39_spill] sm:$0xff] %v13838_v44  ;;  %v13841_v37 = vadd.f32 %v15293_v16, %v5828_v5  ;;  %10231 = vmatmul.mubr.msk.bf16.gmra.mrb[20].mxu1 %vm12309_vm6, %v12591_v61  ;;  %9385 = vmatmul.mubr.msk.bf16.gmra.mrb[8].mxu0 %vm12295_vm5, %v12731_v2 }
 0x4c6   : > { %10234 = vmatprep.mubr.msk.bf16.mxu1 %vm12295_vm5, %v12657_v23  ;;  %9388 = vmatprep.mubr.msk.bf16.mxu0 %vm12309_vm6, %v12783_v42 }
 0x4c7   : > { %15294 = vst [vmem:[#allocation40_spill] sm:$0xff] %v13841_v37 }
 0x4c8   : > { %v5543_v8 = vpop.f32.mrb[172].mxu1  ;;  %v13855_v13 = vpop.f32.mrb[160].mxu0 }
 0x4c9   : > { %v5833_v14 = vadd.f32 %v10152_v43, %v5543_v8  ;;  %v5545_v4 = vpop.f32.mrb[173].mxu1  ;;  %v13857_v19 = vpop.f32.mrb[161].mxu0 }
 0x4ca   : > { %v5546_v61 = vpop.f32.mrb[174].mxu1  ;;  %v13859_v51 = vpop.f32.mrb[162].mxu0 }
 0x4cb   : > { %v13862_v53 = vadd.f32 %v15295_v3, %v5833_v14  ;;  %v5836_v47 = vadd.f32 %v10153_v40, %v5546_v61  ;;  %v5548_v5 = vpop.f32.mrb[175].mxu1  ;;  %v13864_v23 = vpop.f32.mrb[163].mxu0  ;;  %v15299_v3 = vld [vmem:[#allocation52_spill] sm:$0xff] }
 0x4cd   : > { %15296 = vst [vmem:[#allocation44_spill] sm:$0xff] %v13862_v53  ;;  %v13867_v16 = vadd.f32 %v15297_v12, %v5836_v47  ;;  %10235 = vmatmul.mubr.msk.bf16.gmra.mrb[24].mxu1 %vm12309_vm6, %v12665_v24  ;;  %9391 = vmatmul.mubr.msk.bf16.gmra.mrb[12].mxu0 %vm12309_vm6, %v12740_v39  ;;  %v15317_v53 = vld [vmem:[#allocation23_spill] sm:$0xff] }
 0x4ce   : > { %10238 = vmatprep.mubr.msk.bf16.mxu1 %vm12295_vm5, %v12731_v2  ;;  %9394 = vmatprep.mubr.msk.bf16.mxu0 %vm12295_vm5, %v12834_v26 }
 0x4cf   : > { %15298 = vst [vmem:[#allocation42_spill] sm:$0xff] %v13867_v16 }
 0x4d0   : > { %v5551_v43 = vpop.f32.mrb[176].mxu1  ;;  %v13881_v40 = vpop.f32.mrb[164].mxu0 }
 0x4d1   : > { %v5841_v8 = vadd.f32 %v5840_v20, %v5551_v43  ;;  %v5553_v14 = vpop.f32.mrb[177].mxu1  ;;  %v13883_v4 = vpop.f32.mrb[165].mxu0 }
 0x4d2   : > { %v5554_v24 = vpop.f32.mrb[178].mxu1  ;;  %v13885_v61 = vpop.f32.mrb[166].mxu0 }
 0x4d3   : > { %v13888_v47 = vadd.f32 %v15299_v3, %v5841_v8  ;;  %v5844_v5 = vadd.f32 %v5843_v34, %v5554_v24  ;;  %v5556_v12 = vpop.f32.mrb[179].mxu1  ;;  %v13890_v2 = vpop.f32.mrb[167].mxu0  ;;  %v15302_v24 = vld [vmem:[#allocation10_spill] sm:$0xff] }
 0x4d5   : > { %15300 = vst [vmem:[#allocation43_spill] sm:$0xff] %v13888_v47  ;;  %v13893_v16 = vadd.f32 %v13339_v17, %v5844_v5  ;;  %10239 = vmatmul.mubr.msk.bf16.gmra.mrb[28].mxu1 %vm12309_vm6, %v12740_v39  ;;  %9397 = vmatmul.mubr.msk.bf16.gmra.mrb[16].mxu0 %vm12295_vm5, %v12779_v48 }
 0x4d6   : > { %10242 = vmatprep.mubr.msk.bf16.mxu1 %vm12295_vm5, %v12779_v48  ;;  %9400 = vmatprep.mubr.msk.bf16.mxu0 %vm12309_vm6, %v12838_v27 }
 0x4d7   : > { %15301 = vst [vmem:[#allocation49_spill] sm:$0xff] %v13893_v16  ;;  %v15304_v16 = vld [vmem:[#allocation12_spill] sm:$0xff] }
 0x4d8   : > { %v5559_v20 = vpop.f32.mrb[180].mxu1  ;;  %v13907_v34 = vpop.f32.mrb[168].mxu0 }
 0x4d9   : > { %v5849_v17 = vadd.f32 %v13811_v25, %v5559_v20  ;;  %v5561_v43 = vpop.f32.mrb[181].mxu1  ;;  %v13910_v8 = vpop.f32.mrb[169].mxu0 }
 0x4da   : > { %v5562_v39 = vpop.f32.mrb[182].mxu1  ;;  %v13912_v14 = vpop.f32.mrb[170].mxu0 }
 0x4db   : > { %v13915_v3 = vadd.f32 %v15302_v24, %v5849_v17  ;;  %v5852_v48 = vadd.f32 %v13813_v29, %v5562_v39  ;;  %v5564_v5 = vpop.f32.mrb[183].mxu1  ;;  %v13918_v12 = vpop.f32.mrb[171].mxu0  ;;  %v15306_v24 = vld [vmem:[#allocation14_spill] sm:$0xff] }
 0x4dd   : > { %15303 = vst [vmem:[#allocation46_spill] sm:$0xff] %v13915_v3  ;;  %v13921_v47 = vadd.f32 %v15304_v16, %v5852_v48  ;;  %10243 = vmatmul.mubr.msk.bf16.gmra.mrb[32].mxu1 %vm12309_vm6, %v12783_v42  ;;  %9403 = vmatmul.mubr.msk.bf16.gmra.mrb[20].mxu0 %vm12309_vm6, %v12783_v42  ;;  %v15308_v3 = vld [vmem:[#allocation15_spill] sm:$0xff] }
 0x4de   : > { %10246 = vmatprep.mubr.msk.bf16.mxu1 %vm12295_vm5, %v12834_v26  ;;  %9406 = vmatprep.mubr.msk.bf16.mxu0 %vm12295_vm5, %v12873_v32 }
 0x4df   : > { %15305 = vst [vmem:[#allocation47_spill] sm:$0xff] %v13921_v47 }
 0x4e0   : > { %v5567_v25 = vpop.f32.mrb[184].mxu1  ;;  %v13935_v29 = vpop.f32.mrb[172].mxu0 }
 0x4e1   : > { %v5857_v16 = vadd.f32 %v5856_v28, %v5567_v25  ;;  %v5569_v20 = vpop.f32.mrb[185].mxu1  ;;  %v13937_v17 = vpop.f32.mrb[173].mxu0 }
 0x4e2   : > { %v5570_v43 = vpop.f32.mrb[186].mxu1  ;;  %v13939_v39 = vpop.f32.mrb[174].mxu0 }
 0x4e3   : > { %v13942_v42 = vadd.f32 %v15306_v24, %v5857_v16  ;;  %v5860_v48 = vadd.f32 %v5859_v56, %v5570_v43  ;;  %v5572_v5 = vpop.f32.mrb[187].mxu1  ;;  %v13944_v47 = vpop.f32.mrb[175].mxu0 }
 0x4e5   : > { %15307 = vst [vmem:[#allocation52_spill] sm:$0xff] %v13942_v42  ;;  %v13947_v37 = vadd.f32 %v15308_v3, %v5860_v48  ;;  %10247 = vmatmul.mubr.msk.bf16.gmra.mrb[36].mxu1 %vm12309_vm6, %v12838_v27  ;;  %9409 = vmatmul.mubr.msk.bf16.gmra.mrb[24].mxu0 %vm12295_vm5, %v12834_v26  ;;  %v15310_v26 = vld [vmem:[#allocation17_spill] sm:$0xff]  ;;  %v15312_v42 = vld [vmem:[#allocation19_spill] sm:$0xff] }
 0x4e6   : > { %10250 = vmatprep.mubr.msk.bf16.mxu1 %vm12295_vm5, %v12873_v32  ;;  %9412 = vmatprep.mubr.msk.bf16.mxu0 %vm12309_vm6, %v12877_v31 }
 0x4e7   : > { %15309 = vst [vmem:[#allocation10_spill] sm:$0xff] %v13947_v37 }
 0x4e8   : > { %v5575_v28 = vpop.f32.mrb[188].mxu1  ;;  %v13961_v56 = vpop.f32.mrb[176].mxu0 }
 0x4e9   : > { %v5865_v3 = vadd.f32 %v13833_v63, %v5575_v28  ;;  %v5577_v25 = vpop.f32.mrb[189].mxu1  ;;  %v13964_v16 = vpop.f32.mrb[177].mxu0  ;;  %v15314_v63 = vld [vmem:[#allocation35_spill] sm:$0xff] }
 0x4ea   : > { %v5578_v20 = vpop.f32.mrb[190].mxu1  ;;  %v13966_v43 = vpop.f32.mrb[178].mxu0 }
 0x4eb   : > { %v13969_v24 = vadd.f32 %v15310_v26, %v5865_v3  ;;  %v5868_v48 = vadd.f32 %v13835_v54, %v5578_v20  ;;  %v5580_v5 = vpop.f32.mrb[191].mxu1  ;;  %v13972_v37 = vpop.f32.mrb[179].mxu0 }
 0x4ed   : > { %15311 = vst [vmem:[#allocation12_spill] sm:$0xff] %v13969_v24  ;;  %v13975_v44 = vadd.f32 %v15312_v42, %v5868_v48  ;;  %10251 = vmatmul.mubr.msk.bf16.gmra.mrb[40].mxu1 %vm12309_vm6, %v12877_v31  ;;  %9415 = vmatmul.mubr.msk.bf16.gmra.mrb[28].mxu0 %vm12309_vm6, %v12838_v27  ;;  %v15315_v27 = vld [vmem:[#allocation22_spill] sm:$0xff] }
 0x4ee   : > { %10254 = vmatprep.mubr.msk.bf16.mxu1 %vm12295_vm5, %v15314_v63  ;;  %9418 = vmatprep.mubr.msk.bf16.mxu0 %vm12295_vm5, %v15314_v63 }
 0x4ef   : > { %15313 = vst [vmem:[#allocation14_spill] sm:$0xff] %v13975_v44 }
 0x4f0   : > { %v5583_v54 = vpop.f32.mrb[192].mxu1  ;;  %v13989_v28 = vpop.f32.mrb[180].mxu0 }
 0x4f1   : > { %v5873_v42 = vadd.f32 %v13857_v19, %v5583_v54  ;;  %v5585_v3 = vpop.f32.mrb[193].mxu1  ;;  %v13992_v25 = vpop.f32.mrb[181].mxu0 }
 0x4f2   : > { %v5586_v20 = vpop.f32.mrb[194].mxu1  ;;  %v13994_v26 = vpop.f32.mrb[182].mxu0 }
 0x4f3   : > { %v13997_v48 = vadd.f32 %v15315_v27, %v5873_v42  ;;  %v5876_v5 = vadd.f32 %v13864_v23, %v5586_v20  ;;  %v5588_v44 = vpop.f32.mrb[195].mxu1  ;;  %v14000_v24 = vpop.f32.mrb[183].mxu0 }
 0x4f5   : > { %15316 = vst [vmem:[#allocation15_spill] sm:$0xff] %v13997_v48  ;;  %v14003_v15 = vadd.f32 %v15317_v53, %v5876_v5  ;;  %10255 = vmatmul.mubr.msk.bf16.gmra.mrb[44].mxu1 %vm12309_vm6, %v12916_v35  ;;  %9421 = vmatmul.mubr.msk.bf16.gmra.mrb[32].mxu0 %vm12295_vm5, %v12873_v32  ;;  %v15319_v32 = vld [vmem:[#allocation21_spill] sm:$0xff]  ;;  %v15321_v48 = vld [vmem:[#allocation26_spill] sm:$0xff] }
 0x4f6   : > { %10258 = vmatprep.mubr.msk.bf16.mxu1 %vm12295_vm5, %v12951_v18  ;;  %9424 = vmatprep.mubr.msk.bf16.mxu0 %vm12309_vm6, %v12916_v35 }
 0x4f7   : > { %15318 = vst [vmem:[#allocation17_spill] sm:$0xff] %v14003_v15 }
 0x4f8   : > { %v5591_v44 = vpop.f32.mrb[196].mxu1  ;;  %v14017_v19 = vpop.f32.mrb[184].mxu0 }
 0x4f9   : > { %v5881_v53 = vadd.f32 %v13855_v13, %v5591_v44  ;;  %v5593_v23 = vpop.f32.mrb[197].mxu1  ;;  %v14020_v54 = vpop.f32.mrb[185].mxu0 }
 0x4fa   : > { %v5594_v42 = vpop.f32.mrb[198].mxu1  ;;  %v14022_v3 = vpop.f32.mrb[186].mxu0 }
 0x4fb   : > { %v14025_v20 = vadd.f32 %v15319_v32, %v5881_v53  ;;  %v5884_v27 = vadd.f32 %v13859_v51, %v5594_v42  ;;  %v5596_v5 = vpop.f32.mrb[199].mxu1  ;;  %v14028_v15 = vpop.f32.mrb[187].mxu0 }
 0x4fd   : > { %15320 = vst [vmem:[#allocation19_spill] sm:$0xff] %v14025_v20  ;;  %v14031_v1 = vadd.f32 %v15321_v48, %v5884_v27  ;;  %10259 = vmatmul.mubr.msk.bf16.gmra.mrb[48].mxu1 %vm12309_vm6, %v12955_v49  ;;  %9427 = vmatmul.mubr.msk.bf16.gmra.mrb[36].mxu0 %vm12309_vm6, %v12877_v31  ;;  %v15323_v31 = vld [vmem:[#allocation27_spill] sm:$0xff]  ;;  %v15325_v20 = vld [vmem:[#allocation28_spill] sm:$0xff] }
 0x4fe   : > { %10262 = vmatprep.mubr.msk.bf16.mxu1 %vm12295_vm5, %v12990_v10  ;;  %9430 = vmatprep.mubr.msk.bf16.mxu0 %vm12295_vm5, %v12951_v18 }
 0x4ff   : > { %15322 = vst [vmem:[#allocation35_spill] sm:$0xff] %v14031_v1 }
 0x500   : > { %v5599_v13 = vpop.f32.mrb[200].mxu1  ;;  %v14045_v51 = vpop.f32.mrb[188].mxu0 }
 0x501   : > { %v5889_v48 = vadd.f32 %v13883_v4, %v5599_v13  ;;  %v5601_v44 = vpop.f32.mrb[201].mxu1  ;;  %v14048_v53 = vpop.f32.mrb[189].mxu0  ;;  %v15327_v4 = vld [vmem:[#allocation32_spill] sm:$0xff] }
 0x502   : > { %v5602_v23 = vpop.f32.mrb[202].mxu1  ;;  %v14050_v42 = vpop.f32.mrb[190].mxu0 }
 0x503   : > { %v14053_v32 = vadd.f32 %v15323_v31, %v5889_v48  ;;  %v5892_v27 = vadd.f32 %v13890_v2, %v5602_v23  ;;  %v5604_v5 = vpop.f32.mrb[203].mxu1  ;;  %v14056_v1 = vpop.f32.mrb[191].mxu0 }
 0x505   : > { %15324 = vst [vmem:[#allocation22_spill] sm:$0xff] %v14053_v32  ;;  %v14059_v52 = vadd.f32 %v15325_v20, %v5892_v27  ;;  %10263 = vmatmul.mubr.msk.bf16.gmra.mrb[52].mxu1 %vm12309_vm6, %v12994_v58  ;;  %9433 = vmatmul.mubr.msk.bf16.gmra.mrb[40].mxu0 %vm12295_vm5, %v15314_v63  ;;  %v15328_v27 = vld [vmem:[#allocation31_spill] sm:$0xff] }
 0x506   : > { %10266 = vmatprep.mubr.msk.bf16.mxu1 %vm12295_vm5, %v15327_v4  ;;  %9436 = vmatprep.mubr.msk.bf16.mxu0 %vm12309_vm6, %v12955_v49 }
 0x507   : > { %15326 = vst [vmem:[#allocation23_spill] sm:$0xff] %v14059_v52 }
 0x508   : > { %v5607_v2 = vpop.f32.mrb[204].mxu1  ;;  %v14073_v13 = vpop.f32.mrb[192].mxu0 }
 0x509   : > { %v5897_v20 = vadd.f32 %v13881_v40, %v5607_v2  ;;  %v5609_v48 = vpop.f32.mrb[205].mxu1  ;;  %v6228_v44 = vpop.f32.mrb[193].mxu0  ;;  %v15332_v40 = vmov 0  }
 0x50a   : > { %v5610_v23 = vpop.f32.mrb[206].mxu1  ;;  %v14076_v31 = vpop.f32.mrb[194].mxu0  ;;  %v15333_v44 = vld [vmem:[#allocation30_spill] sm:$0xff] }
 0x50b   : > { %v14079_v63 = vadd.f32 %v15328_v27, %v5897_v20  ;;  %v5900_v5 = vadd.f32 %v13885_v61, %v5610_v23  ;;  %v5612_v52 = vpop.f32.mrb[207].mxu1  ;;  %v6231_v32 = vpop.f32.mrb[195].mxu0 }
 0x50d   : > { %15329 = vst [vmem:[#allocation21_spill] sm:$0xff] %v14079_v63  ;;  %v14083_v6 = vadd.f32 %v15330_v45, %v5900_v5  ;;  %10267 = vmatmul.mubr.msk.bf16.gmra.mrb[56].mxu1 %vm12309_vm6, %v13030_v21  ;;  %9439 = vmatmul.mubr.msk.bf16.gmra.mrb[44].mxu0 %vm12309_vm6, %v12916_v35 }
 0x50e   : > { %9442 = vmatprep.mubr.msk.bf16.mxu0 %vm12295_vm5, %v12990_v10  ;;  %10270 = vmatprep.mubr.bf16.mxu1 %v15332_v40 }
 0x50f   : > { %15331 = vst [vmem:[#allocation26_spill] sm:$0xff] %v14083_v6  ;;  %v15335_v6 = vld [vmem:[#allocation51_spill] sm:$0xff] }
 0x510   : > { %v5615_v61 = vpop.f32.mrb[208].mxu1  ;;  %v14095_v52 = vpop.f32.mrb[196].mxu0 }
 0x511   : > { %v5905_v45 = vadd.f32 %v13910_v8, %v5615_v61  ;;  %v5617_v32 = vpop.f32.mrb[209].mxu1  ;;  %v6236_v2 = vpop.f32.mrb[197].mxu0 }
 0x512   : > { %v5618_v20 = vpop.f32.mrb[210].mxu1  ;;  %v14098_v48 = vpop.f32.mrb[198].mxu0 }
 0x513   : > { %v14101_v23 = vadd.f32 %v15333_v44, %v5905_v45  ;;  %v5908_v35 = vadd.f32 %v13918_v12, %v5618_v20  ;;  %v5620_v27 = vpop.f32.mrb[211].mxu1  ;;  %v6239_v5 = vpop.f32.mrb[199].mxu0  ;;  %v15337_v20 = vld [vmem:[#allocation3_spill] sm:$0xff] }
 0x514   : > { %v15339_v27 = vld [vmem:[#allocation5_spill] sm:$0xff] }
 0x515   : > { %15334 = vst [vmem:[#allocation27_spill] sm:$0xff] %v14101_v23  ;;  %v14105_v63 = vadd.f32 %v15335_v6, %v5908_v35  ;;  %9445 = vmatmul.mubr.msk.bf16.gmra.mrb[48].mxu0 %vm12295_vm5, %v12951_v18  ;;  %10271 = vmatmul.mubr.bf16.gmra.mrb[60].mxu1 %v15332_v40 }
 0x516   : > { %9448 = vmatprep.mubr.msk.bf16.mxu0 %vm12309_vm6, %v12994_v58 }
 0x517   : > { %15336 = vst [vmem:[#allocation28_spill] sm:$0xff] %v14105_v63 }
 0x518   : > { %v5623_v8 = vpop.f32.mrb[212].mxu1  ;;  %v14114_v61 = vpop.f32.mrb[200].mxu0 }
 0x519   : > { %v5913_v12 = vadd.f32 %v13907_v34, %v5623_v8  ;;  %v5625_v45 = vpop.f32.mrb[213].mxu1  ;;  %v6244_v32 = vpop.f32.mrb[201].mxu0 }
 0x51a   : > { %v5626_v2 = vpop.f32.mrb[214].mxu1  ;;  %v14117_v6 = vpop.f32.mrb[202].mxu0 }
 0x51b   : > { %v14120_v44 = vadd.f32 %v15337_v20, %v5913_v12  ;;  %v5916_v18 = vadd.f32 %v13912_v14, %v5626_v2  ;;  %v5628_v40 = vpop.f32.mrb[215].mxu1  ;;  %v6247_v35 = vpop.f32.mrb[203].mxu0  ;;  %v15341_v20 = vld [vmem:[#allocation8_spill] sm:$0xff] }
 0x51d   : > { %15338 = vst [vmem:[#allocation32_spill] sm:$0xff] %v14120_v44  ;;  %v14124_v5 = vadd.f32 %v15339_v27, %v5916_v18  ;;  %9451 = vmatmul.mubr.msk.bf16.gmra.mrb[52].mxu0 %vm12309_vm6, %v12955_v49  ;;  %v15343_v27 = vld [vmem:[#allocation25_spill] sm:$0xff] }
 0x51e   : > { %9454 = vmatprep.mubr.msk.bf16.mxu0 %vm12295_vm5, %v15327_v4 }
 0x51f   : > { %15340 = vst [vmem:[#allocation31_spill] sm:$0xff] %v14124_v5 }
 0x520   : > { %v5631_v34 = vpop.f32.mrb[216].mxu1  ;;  %v14132_v8 = vpop.f32.mrb[204].mxu0 }
 0x521   : > { %v5921_v12 = vadd.f32 %v13937_v17, %v5631_v34  ;;  %v5633_v45 = vpop.f32.mrb[217].mxu1  ;;  %v6252_v14 = vpop.f32.mrb[205].mxu0 }
 0x522   : > { %v5634_v32 = vpop.f32.mrb[218].mxu1  ;;  %v14135_v2 = vpop.f32.mrb[206].mxu0 }
 0x523   : > { %v14138_v18 = vadd.f32 %v15341_v20, %v5921_v12  ;;  %v5924_v40 = vadd.f32 %v13944_v47, %v5634_v32  ;;  %v5636_v49 = vpop.f32.mrb[219].mxu1  ;;  %v6255_v35 = vpop.f32.mrb[207].mxu0  ;;  %v15345_v32 = vld [vmem:[#allocation6_spill] sm:$0xff] }
 0x524   : > { %v15347_v49 = vld [vmem:[#allocation4_spill] sm:$0xff] }
 0x525   : > { %15342 = vst [vmem:[#allocation34_spill] sm:$0xff] %v14138_v18  ;;  %v14142_v5 = vadd.f32 %v15343_v27, %v5924_v40  ;;  %9457 = vmatmul.mubr.msk.bf16.gmra.mrb[56].mxu0 %vm12295_vm5, %v12990_v10  ;;  %v14311_v18 = vld [vmem:[%s10722_s26 + $0x68] sm:$0xff]  }
 0x526   : > { %9460 = vmatprep.mubr.msk.bf16.mxu0 %vm12309_vm6, %v13030_v21  ;;  %15386 = vst [vmem:[#allocation57_spill] sm:$0xff] %v14311_v18 }
 0x527   : > { %15344 = vst [vmem:[#allocation30_spill] sm:$0xff] %v14142_v5  ;;  %v15353_v5 = vld [vmem:[#allocation9_spill] sm:$0xff] }
 0x528   : > { %v5639_v17 = vpop.f32.mrb[220].mxu1  ;;  %v14150_v4 = vpop.f32.mrb[208].mxu0 }
 0x529   : > { %v5929_v34 = vadd.f32 %v13935_v29, %v5639_v17  ;;  %v5641_v12 = vpop.f32.mrb[221].mxu1  ;;  %v6260_v47 = vpop.f32.mrb[209].mxu0 }
 0x52a   : > { %v5642_v45 = vpop.f32.mrb[222].mxu1  ;;  %v14153_v14 = vpop.f32.mrb[210].mxu0 }
 0x52b   : > { %v14156_v20 = vadd.f32 %v15345_v32, %v5929_v34  ;;  %v5932_v11 = vadd.f32 %v13939_v39, %v5642_v45  ;;  %v5644_v10 = vpop.f32.mrb[223].mxu1  ;;  %v6263_v40 = vpop.f32.mrb[211].mxu0  ;;  %v15349_v39 = vld [vmem:[#allocation7_spill] sm:$0xff] }
 0x52c   : > { %v15351_v40 = vld [vmem:[#allocation13_spill] sm:$0xff] }
 0x52d   : > { %15346 = vst [vmem:[#allocation51_spill] sm:$0xff] %v14156_v20  ;;  %v14160_v35 = vadd.f32 %v15347_v49, %v5932_v11  ;;  %9463 = vmatmul.mubr.msk.bf16.gmra.mrb[60].mxu0 %vm12309_vm6, %v12994_v58 }
 0x52f   : > { %15348 = vst [vmem:[#allocation3_spill] sm:$0xff] %v14160_v35 }
 0x530   : > { %v5647_v21 = vpop.f32.mrb[224].mxu1  ;;  %v14165_v29 = vpop.f32.mrb[212].mxu0 }
 0x531   : > { %v5937_v27 = vadd.f32 %v13964_v16, %v5647_v21  ;;  %v5649_v17 = vpop.f32.mrb[225].mxu1  ;;  %v6268_v12 = vpop.f32.mrb[213].mxu0 }
 0x532   : > { %v5650_v34 = vpop.f32.mrb[226].mxu1  ;;  %v14168_v47 = vpop.f32.mrb[214].mxu0 }
 0x533   : > { %v14171_v45 = vadd.f32 %v15349_v39, %v5937_v27  ;;  %v5940_v32 = vadd.f32 %v13972_v37, %v5650_v34  ;;  %v5652_v11 = vpop.f32.mrb[227].mxu1  ;;  %v6271_v10 = vpop.f32.mrb[215].mxu0 }
 0x534   : > { %v15355_v11 = vld [vmem:[#allocation11_spill] sm:$0xff] }
 0x535   : > { %15350 = vst [vmem:[#allocation5_spill] sm:$0xff] %v14171_v45  ;;  %v14175_v7 = vadd.f32 %v15351_v40, %v5940_v32  ;;  %v15357_v45 = vld [vmem:[#allocation20_spill] sm:$0xff] }
 0x537   : > { %15352 = vst [vmem:[#allocation8_spill] sm:$0xff] %v14175_v7 }
 0x538   : > { %v5655_v58 = vpop.f32.mrb[228].mxu1  ;;  %v14177_v49 = vpop.f32.mrb[216].mxu0 }
 0x539   : > { %v5945_v16 = vadd.f32 %v13961_v56, %v5655_v58  ;;  %v5657_v21 = vpop.f32.mrb[229].mxu1  ;;  %v6276_v17 = vpop.f32.mrb[217].mxu0 }
 0x53a   : > { %v5658_v12 = vpop.f32.mrb[230].mxu1  ;;  %v14180_v35 = vpop.f32.mrb[218].mxu0 }
 0x53b   : > { %v14183_v27 = vadd.f32 %v15353_v5, %v5945_v16  ;;  %v5948_v37 = vadd.f32 %v13966_v43, %v5658_v12  ;;  %v5660_v34 = vpop.f32.mrb[231].mxu1  ;;  %v6279_v39 = vpop.f32.mrb[219].mxu0 }
 0x53c   : > { %v15359_v34 = vld [vmem:[#allocation16_spill] sm:$0xff] }
 0x53d   : > { %15354 = vst [vmem:[#allocation25_spill] sm:$0xff] %v14183_v27  ;;  %v14187_v32 = vadd.f32 %v15355_v11, %v5948_v37  ;;  %v15361_v27 = vld [vmem:[#allocation45_spill] sm:$0xff] }
 0x53f   : > { %15356 = vst [vmem:[#allocation6_spill] sm:$0xff] %v14187_v32 }
 0x540   : > { %v5663_v10 = vpop.f32.mrb[232].mxu1  ;;  %v14189_v40 = vpop.f32.mrb[220].mxu0 }
 0x541   : > { %v5953_v56 = vadd.f32 %v13992_v25, %v5663_v10  ;;  %v5665_v58 = vpop.f32.mrb[233].mxu1  ;;  %v6284_v21 = vpop.f32.mrb[221].mxu0 }
 0x542   : > { %v5666_v17 = vpop.f32.mrb[234].mxu1  ;;  %v14192_v7 = vpop.f32.mrb[222].mxu0 }
 0x543   : > { %v14195_v5 = vadd.f32 %v15357_v45, %v5953_v56  ;;  %v5956_v43 = vadd.f32 %v14000_v24, %v5666_v17  ;;  %v5668_v16 = vpop.f32.mrb[235].mxu1  ;;  %v6287_v12 = vpop.f32.mrb[223].mxu0 }
 0x544   : > { %v15363_v16 = vld [vmem:[#allocation48_spill] sm:$0xff] }
 0x545   : > { %15358 = vst [vmem:[#allocation4_spill] sm:$0xff] %v14195_v5  ;;  %v14199_v37 = vadd.f32 %v15359_v34, %v5956_v43  ;;  %v15365_v5 = vld [vmem:[#allocation18_spill] sm:$0xff] }
 0x547   : > { %15360 = vst [vmem:[#allocation7_spill] sm:$0xff] %v14199_v37 }
 0x548   : > { %v5671_v39 = vpop.f32.mrb[236].mxu1  ;;  %v14201_v11 = vpop.f32.mrb[224].mxu0 }
 0x549   : > { %v5961_v25 = vadd.f32 %v13989_v28, %v5671_v39  ;;  %v5673_v10 = vpop.f32.mrb[237].mxu1  ;;  %v6292_v58 = vpop.f32.mrb[225].mxu0 }
 0x54a   : > { %v5674_v21 = vpop.f32.mrb[238].mxu1  ;;  %v14204_v32 = vpop.f32.mrb[226].mxu0 }
 0x54b   : > { %v14207_v45 = vadd.f32 %v15361_v27, %v5961_v25  ;;  %v5964_v24 = vadd.f32 %v13994_v26, %v5674_v21  ;;  %v5676_v56 = vpop.f32.mrb[239].mxu1  ;;  %v6295_v17 = vpop.f32.mrb[227].mxu0 }
 0x54c   : > { %v15367_v56 = vld [vmem:[#allocation50_spill] sm:$0xff] }
 0x54d   : > { %15362 = vst [vmem:[#allocation13_spill] sm:$0xff] %v14207_v45  ;;  %v14211_v43 = vadd.f32 %v15363_v16, %v5964_v24  ;;  %v15369_v45 = vld [vmem:[#allocation29_spill] sm:$0xff] }
 0x54f   : > { %15364 = vst [vmem:[#allocation9_spill] sm:$0xff] %v14211_v43 }
 0x550   : > { %v5679_v12 = vpop.f32.mrb[240].mxu1  ;;  %v14213_v34 = vpop.f32.mrb[228].mxu0 }
 0x551   : > { %v5969_v28 = vadd.f32 %v14020_v54, %v5679_v12  ;;  %v5681_v39 = vpop.f32.mrb[241].mxu1  ;;  %v6300_v10 = vpop.f32.mrb[229].mxu0 }
 0x552   : > { %v5682_v58 = vpop.f32.mrb[242].mxu1  ;;  %v14216_v37 = vpop.f32.mrb[230].mxu0 }
 0x553   : > { %v14219_v27 = vadd.f32 %v15365_v5, %v5969_v28  ;;  %v5972_v26 = vadd.f32 %v14028_v15, %v5682_v58  ;;  %v5684_v25 = vpop.f32.mrb[243].mxu1  ;;  %v6303_v21 = vpop.f32.mrb[231].mxu0 }
 0x554   : > { %v15371_v25 = vld [vmem:[#allocation24_spill] sm:$0xff] }
 0x555   : > { %15366 = vst [vmem:[#allocation11_spill] sm:$0xff] %v14219_v27  ;;  %v14223_v24 = vadd.f32 %v15367_v56, %v5972_v26  ;;  %v15373_v27 = vld [vmem:[#allocation53_spill] sm:$0xff] }
 0x557   : > { %15368 = vst [vmem:[#allocation20_spill] sm:$0xff] %v14223_v24 }
 0x558   : > { %v5687_v17 = vpop.f32.mrb[244].mxu1  ;;  %v14225_v16 = vpop.f32.mrb[232].mxu0 }
 0x559   : > { %v5977_v54 = vadd.f32 %v14017_v19, %v5687_v17  ;;  %v5689_v12 = vpop.f32.mrb[245].mxu1  ;;  %v6308_v39 = vpop.f32.mrb[233].mxu0 }
 0x55a   : > { %v5690_v10 = vpop.f32.mrb[246].mxu1  ;;  %v14228_v43 = vpop.f32.mrb[234].mxu0 }
 0x55b   : > { %v14231_v5 = vadd.f32 %v15369_v45, %v5977_v54  ;;  %v5980_v15 = vadd.f32 %v14022_v3, %v5690_v10  ;;  %v5692_v28 = vpop.f32.mrb[247].mxu1  ;;  %v6311_v58 = vpop.f32.mrb[235].mxu0 }
 0x55d   : > { %15370 = vst [vmem:[#allocation16_spill] sm:$0xff] %v14231_v5  ;;  %v14235_v26 = vadd.f32 %v15371_v25, %v5980_v15  ;;  %v15375_v15 = vld [vmem:[#allocation54_spill] sm:$0xff] }
 0x55f   : > { %15372 = vst [vmem:[#allocation45_spill] sm:$0xff] %v14235_v26 }
 0x560   : > { %v5695_v21 = vpop.f32.mrb[248].mxu1  ;;  %v14237_v56 = vpop.f32.mrb[236].mxu0 }
 0x561   : > { %v5985_v19 = vadd.f32 %v14048_v53, %v5695_v21  ;;  %v5697_v17 = vpop.f32.mrb[249].mxu1  ;;  %v6316_v12 = vpop.f32.mrb[237].mxu0 }
 0x562   : > { %v5698_v39 = vpop.f32.mrb[250].mxu1  ;;  %v14240_v24 = vpop.f32.mrb[238].mxu0  ;;  %v15379_v17 = vld [vmem:[#allocation55_spill] sm:$0xff] }
 0x563   : > { %v14243_v45 = vadd.f32 %v15373_v27, %v5985_v19  ;;  %v5988_v3 = vadd.f32 %v14056_v1, %v5698_v39  ;;  %v5700_v54 = vpop.f32.mrb[251].mxu1  ;;  %v6319_v10 = vpop.f32.mrb[239].mxu0 }
 0x564   : > { %v14259_v10 = vld [vmem:[%s10722_s26 + $0x18] sm:$0xff]  }
 0x565   : > { %15374 = vst [vmem:[#allocation48_spill] sm:$0xff] %v14243_v45  ;;  %v14247_v28 = vadd.f32 %v15375_v15, %v5988_v3  ;;  %v14262_v15 = vld [vmem:[%s10722_s26 + $0x10] sm:$0xff]  }
 0x567   : > { %15376 = vst [vmem:[#allocation18_spill] sm:$0xff] %v14247_v28  ;;  %v15381_v28 = vld [vmem:[#allocation56_spill] sm:$0xff] }
 0x568   : > { %v5703_v53 = vpop.f32.mrb[252].mxu1  ;;  %v14249_v58 = vpop.f32.mrb[240].mxu0 }
 0x569   : > { %15377 = vst [vmem:[#allocation50_spill] sm:$0xff] %v14249_v58  ;;  %v5993_v25 = vadd.f32 %v14045_v51, %v5703_v53  ;;  %v5705_v27 = vpop.f32.mrb[253].mxu1  ;;  %v6324_v21 = vpop.f32.mrb[241].mxu0  ;;  %v14268_v53 = vld [vmem:[%s10722_s26 + $0x28] sm:$0xff]   ;;  %v14341_v58 = vld [vmem:[%s14985_s5] ss:$0 sm:$0xff] }
 0x56a   : > { %v5706_v19 = vpop.f32.mrb[254].mxu1  ;;  %v14252_v1 = vpop.f32.mrb[242].mxu0  ;;  %v14271_v27 = vld [vmem:[%s10722_s26 + $0x20] sm:$0xff]   ;;  %v14274_v21 = vld [vmem:[%s10722_s26 + $0x38] sm:$0xff]  }
 0x56b   : > { %15378 = vst [vmem:[#allocation29_spill] sm:$0xff] %v14252_v1  ;;  %v14255_v12 = vadd.f32 %v15379_v17, %v5993_v25  ;;  %v5996_v39 = vadd.f32 %v14050_v42, %v5706_v19  ;;  %v5708_v3 = vpop.f32.mrb[255].mxu1  ;;  %v6327_v54 = vpop.f32.mrb[243].mxu0  ;;  %v14277_v25 = vld [vmem:[%s10722_s26 + $0x30] sm:$0xff]   ;;  %v14292_v42 = vld [vmem:[%s10722_s26 + $0x40] sm:$0xff]  }
 0x56c   : > { %v14283_v3 = vld [vmem:[%s10722_s26 + $0x48] sm:$0xff]   ;;  %v14299_v54 = vld [vmem:[%s10722_s26 + $0x58] sm:$0xff]   ;;  %v14320_v1 = vld [vmem:[%s10722_s26 + $0x60] sm:$0xff]  }
 0x56d   : > { %15380 = vst [vmem:[#allocation24_spill] sm:$0xff] %v14255_v12  ;;  %v14265_v51 = vadd.f32 %v15381_v28, %v5996_v39  ;;  %15387 = vst [vmem:[#allocation58_spill] sm:$0xff] %v14320_v1 }
 0x56f   : > { %15382 = vst [vmem:[#allocation53_spill] sm:$0xff] %v14265_v51  ;;  %v14302_v51 = vld [vmem:[%s10722_s26 + $0x50] sm:$0xff]  }
 0x570   : > { %v10212_v28 = vpop.f32.mrb[0].mxu1  ;;  %v14285_v39 = vpop.f32.mrb[244].mxu0  ;;  %15384 = vst [vmem:[#allocation55_spill] sm:$0xff] %v14302_v51 }
 0x571   : > { %15383 = vst [vmem:[#allocation54_spill] sm:$0xff] %v14285_v39  ;;  %v6524_v19 = vadd.f32 %v10212_v28, %v14095_v52  ;;  %v6515_v17 = vpop.f32.mrb[1].mxu1  ;;  %v6332_v26 = vpop.f32.mrb[245].mxu0 }
 0x572   : > { %v6516_v45 = vadd.f32 %v6515_v17, %v14073_v13  ;;  %v10213_v12 = vpop.f32.mrb[2].mxu1  ;;  %v14305_v63 = vpop.f32.mrb[246].mxu0  ;;  %v14347_v13 = vld [vmem:[%s10722_s26 + $0x88] sm:$0xff]  }
 0x573   : > { %15385 = vst [vmem:[#allocation56_spill] sm:$0xff] %v14305_v63  ;;  %v14314_v20 = vadd.f32 %v10213_v12, %v14098_v48  ;;  %v6518_v5 = vpop.f32.mrb[3].mxu1  ;;  %v6335_v23 = vpop.f32.mrb[247].mxu0  ;;  %v14327_v48 = vld [vmem:[%s10722_s26 + $0x78] sm:$0xff]   ;;  %v7093_v12 = vrot.slane %v6524_v19, 1 }
 0x574   : > { %v6519_v52 = vadd.f32 %v6518_v5, %v14076_v31  ;;  %v14330_v23 = vld [vmem:[%s10722_s26 + $0x70] sm:$0xff]   ;;  %v7090_v31 = vrot.slane %v6516_v45, 1  ;;  %v14350_v45 = vld [vmem:[%s10722_s26 + $0x80] sm:$0xff]  }
 0x575   : > { %15388 = vst [vmem:[#allocation59_spill] sm:$0xff] %v14330_v23  ;;  %v7095_v17 = vrot.slane %v14314_v20, 1  ;;  %15389 = vst [vmem:[#allocation60_spill] sm:$0xff] %v14350_v45  ;;  %v14361_v20 = vld [vmem:[%s14986_s6] ss:$0 sm:$0xff] }
 0x576   : > { %v7091_v5 = vrot.slane %v6519_v52, 1 }
 0x577   : > { %v7096_v63 = vsel %vm3683_vm1, %v7093_v12, %v7095_v17 }
 0x578   : > { %v7348_v52 = vadd.f32 %v13683_v41, %v7096_v63  ;;  %v7092_v28 = vsel %vm3683_vm1, %v7090_v31, %v7091_v5  ;;  %v7094_v26 = vsel %vm3683_vm1, %v7091_v5, %v7093_v12  ;;  %v10216_v1 = vpop.f32.mrb[4].mxu1  ;;  %v14355_v39 = vpop.f32.mrb[248].mxu0 }
 0x579   : > { %15390 = vst [vmem:[#allocation61_spill] sm:$0xff] %v14355_v39  ;;  %v7346_v44 = vadd.f32 %v13689_v50, %v7092_v28  ;;  %v7347_v19 = vadd.f32 %v13701_v22, %v7094_v26  ;;  %v6540_v41 = vadd.f32 %v10216_v1, %v14132_v8  ;;  %v6531_v63 = vpop.f32.mrb[5].mxu1  ;;  %v6340_v12 = vpop.f32.mrb[249].mxu0  ;;  %v8629_v50 = vunpack.c.h.bf16 %v14347_v13 }
 0x57a   : > { %v7419_v5 = vmul.f32 %v14341_v58, %v7348_v52  ;;  %v6532_v51 = vadd.f32 %v6531_v63, %v14114_v61  ;;  %v10217_v23 = vpop.f32.mrb[6].mxu1  ;;  %v14369_v39 = vpop.f32.mrb[250].mxu0  ;;  %v14380_v12 = vld [vmem:[%s10722_s26 + $0x98] sm:$0xff]  }
 0x57b   : > { %v7417_v22 = vmul.f32 %v14341_v58, %v7346_v44  ;;  %v7418_v8 = vmul.f32 %v14341_v58, %v7347_v19  ;;  %v14376_v1 = vadd.f32 %v10217_v23, %v14135_v2  ;;  %v6534_v26 = vpop.f32.mrb[7].mxu1  ;;  %v6343_v28 = vpop.f32.mrb[251].mxu0  ;;  %v7101_v2 = vrot.slane %v6540_v41, 1 }
 0x57c   : > { %v7490_v61 = vadd.f32 %v14361_v20, %v7419_v5  ;;  %v7097_v63 = vrot.slane %v6532_v51, 1  ;;  %v6535_v18 = vadd.f32 %v6534_v26, %v14117_v6  ;;  %v15391_v28 = vunpack.c.l.bf16 %v14259_v10 }
 0x57d   : > { %v7488_v44 = vadd.f32 %v14361_v20, %v7417_v22  ;;  %v7489_v19 = vadd.f32 %v14361_v20, %v7418_v8  ;;  %v7103_v23 = vrot.slane %v14376_v1, 1  ;;  %v15392_v6 = vunpack.c.l.bf16 %v14262_v15 }
 0x57e   : > { %v7682_v52 = vadd.f32 %v15391_v28, %v7490_v61  ;;  %v7098_v31 = vsel %vm3683_vm1, %v7095_v17, %v7097_v63  ;;  %v7099_v45 = vrot.slane %v6535_v18, 1  ;;  %v15393_v41 = vunpack.c.h.bf16 %v14262_v15 }
 0x57f   : > { %v7680_v5 = vadd.f32 %v15392_v6, %v7488_v44  ;;  %v7349_v8 = vadd.f32 %v13692_v0, %v7098_v31  ;;  %v7104_v1 = vsel %vm3683_vm1, %v7101_v2, %v7103_v23  ;;  %v14410_v44 = vld [vmem:[%s10722_s26 + $0x90] sm:$0xff]  }
 0x580   : > { %v7681_v22 = vadd.f32 %v15393_v41, %v7489_v19  ;;  %v7746_v17 = vmax.f32 %v7682_v52, 0.0  ;;  %v7352_v18 = vadd.f32 %v13710_v60, %v7104_v1  ;;  %v7100_v26 = vsel %vm3683_vm1, %v7097_v63, %v7099_v45  ;;  %v10220_v28 = vpop.f32.mrb[8].mxu1  ;;  %v14407_v51 = vpop.f32.mrb[252].mxu0 }
 0x581   : > { %v7102_v61 = vsel %vm3683_vm1, %v7099_v45, %v7101_v2  ;;  %v7744_v15 = vmax.f32 %v7680_v5, 0.0  ;;  %v7420_v0 = vmul.f32 %v14341_v58, %v7349_v8  ;;  %v7350_v31 = vadd.f32 %v13713_v46, %v7100_v26  ;;  %v6547_v52 = vpop.f32.mrb[9].mxu1  ;;  %v6348_v6 = vpop.f32.mrb[253].mxu0 }
 0x582   : > { %v7745_v19 = vmax.f32 %v7681_v22, 0.0  ;;  %7810 = vst [vmem:[%s14396_s8 + $0x10] sm:$0xff] %v7746_v17  ;;  %v7423_v60 = vmul.f32 %v14341_v58, %v7352_v18  ;;  %v7351_v45 = vadd.f32 %v13725_v55, %v7102_v61  ;;  %v6556_v63 = vadd.f32 %v10220_v28, %v14165_v29  ;;  %v10221_v41 = vpop.f32.mrb[10].mxu1  ;;  %v14419_v1 = vpop.f32.mrb[254].mxu0 }
 0x583   : > { %v6548_v2 = vadd.f32 %v6547_v52, %v14150_v4  ;;  %7808 = vst [vmem:[%s14396_s8] sm:$0xff] %v7744_v15  ;;  %v7491_v5 = vadd.f32 %v14361_v20, %v7420_v0  ;;  %v7421_v46 = vmul.f32 %v14341_v58, %v7350_v31  ;;  %v14426_v22 = vadd.f32 %v10221_v41, %v14168_v47  ;;  %v6550_v8 = vpop.f32.mrb[11].mxu1  ;;  %v6351_v17 = vpop.f32.mrb[255].mxu0 }
 0x584   : > { %7809 = vst [vmem:[%s14396_s8 + $0x8] sm:$0xff] %v7745_v19  ;;  %v8632_v55 = vunpack.c.l.bf16 %v14410_v44  ;;  %v7494_v29 = vadd.f32 %v14361_v20, %v7423_v60  ;;  %v7422_v4 = vmul.f32 %v14341_v58, %v7351_v45  ;;  %v7109_v18 = vrot.slane %v6556_v63, 1 }
 0x585   : > { %v7105_v26 = vrot.slane %v6548_v2, 1  ;;  %v15394_v61 = vunpack.c.h.bf16 %v14259_v10  ;;  %v7492_v15 = vadd.f32 %v14361_v20, %v7421_v46  ;;  %v7111_v19 = vrot.slane %v14426_v22, 1 }
 0x586   : > { %v6551_v47 = vadd.f32 %v6550_v8, %v14153_v14  ;;  %v15395_v0 = vunpack.c.l.bf16 %v14268_v53  ;;  %v7493_v52 = vadd.f32 %v14361_v20, %v7422_v4  ;;  %v8633_v60 = vunpack.c.h.bf16 %v14410_v44 }
 0x587   : > { %v7683_v28 = vadd.f32 %v15394_v61, %v7491_v5  ;;  %v7106_v6 = vsel %vm3683_vm1, %v7103_v23, %v7105_v26  ;;  %v15396_v10 = vunpack.c.l.bf16 %v14271_v27  ;;  %v7112_v41 = vsel %vm3683_vm1, %v7109_v18, %v7111_v19 }
 0x588   : > { %v7686_v31 = vadd.f32 %v15395_v0, %v7494_v29  ;;  %v7353_v2 = vadd.f32 %v13716_v38, %v7106_v6  ;;  %v15397_v5 = vunpack.c.h.bf16 %v14271_v27  ;;  %v7356_v22 = vadd.f32 %v13734_v9, %v7112_v41  ;;  %v10224_v17 = vpop.f32.mrb[12].mxu1  ;;  %v14448_v23 = vpop.f32.mrb[0].mxu0  ;;  %v14451_v29 = vld [vmem:[%s10722_s26 + $0xa8] sm:$0xff]  }
 0x589   : > { %v7747_v45 = vmax.f32 %v7683_v28, 0.0  ;;  %v7684_v63 = vadd.f32 %v15396_v10, %v7492_v15  ;;  %v7107_v8 = vrot.slane %v6551_v47, 1  ;;  %v6572_v61 = vadd.f32 %v10224_v17, %v14189_v40  ;;  %v6563_v28 = vpop.f32.mrb[13].mxu1  ;;  %v6356_v15 = vpop.f32.mrb[1].mxu0 }
 0x58a   : > { %v7750_v14 = vmax.f32 %v7686_v31, 0.0  ;;  %v7685_v46 = vadd.f32 %v15397_v5, %v7493_v52  ;;  %v7424_v38 = vmul.f32 %v14341_v58, %v7353_v2  ;;  %v8637_v27 = vunpack.c.h.bf16 %v14380_v12  ;;  %v10225_v52 = vpop.f32.mrb[14].mxu1  ;;  %v14461_v6 = vpop.f32.mrb[2].mxu0 }
 0x58b   : > { %7811 = vst [vmem:[%s14396_s8 + $0x18] sm:$0xff] %v7747_v45  ;;  %v7748_v4 = vmax.f32 %v7684_v63, 0.0  ;;  %v7427_v47 = vmul.f32 %v14341_v58, %v7356_v22  ;;  %v7108_v0 = vsel %vm3683_vm1, %v7105_v26, %v7107_v8  ;;  %v7110_v31 = vsel %vm3683_vm1, %v7107_v8, %v7109_v18  ;;  %v6566_v63 = vpop.f32.mrb[15].mxu1  ;;  %v6359_v2 = vpop.f32.mrb[3].mxu0 }
 0x58c   : > { %7814 = vst [vmem:[%s14396_s8 + $0x30] sm:$0xff] %v7750_v14  ;;  %v7749_v9 = vmax.f32 %v7685_v46, 0.0  ;;  %v7495_v40 = vadd.f32 %v14361_v20, %v7424_v38  ;;  %v7354_v45 = vadd.f32 %v13737_v30, %v7108_v0  ;;  %v7355_v10 = vadd.f32 %v13749_v33, %v7110_v31  ;;  %v14474_v46 = vld [vmem:[%s10722_s26 + $0xa0] sm:$0xff]  }
 0x58d   : > { %7812 = vst [vmem:[%s14396_s8 + $0x20] sm:$0xff] %v7748_v4  ;;  %v8644_v41 = vunpack.c.l.bf16 %v14451_v29  ;;  %v7498_v26 = vadd.f32 %v14361_v20, %v7427_v47  ;;  %v6564_v14 = vadd.f32 %v6563_v28, %v14177_v49  ;;  %v6575_v18 = vadd.f32 %v10225_v52, %v14192_v7 }
 0x58e   : > { %7813 = vst [vmem:[%s14396_s8 + $0x28] sm:$0xff] %v7749_v9  ;;  %v6567_v5 = vadd.f32 %v6566_v63, %v14180_v35  ;;  %v15398_v22 = vunpack.c.h.bf16 %v14268_v53  ;;  %v7425_v33 = vmul.f32 %v14341_v58, %v7354_v45  ;;  %v7426_v8 = vmul.f32 %v14341_v58, %v7355_v10 }
 0x58f   : > { %v7117_v17 = vrot.slane %v6572_v61, 1  ;;  %v15399_v4 = vunpack.c.l.bf16 %v14274_v21  ;;  %v7113_v15 = vrot.slane %v6564_v14, 1  ;;  %v7119_v49 = vrot.slane %v6575_v18, 1 }
 0x590   : > { %v7687_v30 = vadd.f32 %v15398_v22, %v7495_v40  ;;  %v7115_v28 = vrot.slane %v6567_v5, 1  ;;  %v7496_v35 = vadd.f32 %v14361_v20, %v7425_v33  ;;  %v7497_v9 = vadd.f32 %v14361_v20, %v7426_v8  ;;  %v10228_v52 = vpop.f32.mrb[16].mxu1  ;;  %v14488_v40 = vpop.f32.mrb[4].mxu0 }
 0x591   : > { %v7690_v38 = vadd.f32 %v15399_v4, %v7498_v26  ;;  %v8640_v53 = vunpack.c.l.bf16 %v14474_v46  ;;  %v7114_v0 = vsel %vm3683_vm1, %v7111_v19, %v7113_v15  ;;  %v7120_v31 = vsel %vm3683_vm1, %v7117_v17, %v7119_v49  ;;  %v6579_v18 = vpop.f32.mrb[17].mxu1  ;;  %v6364_v19 = vpop.f32.mrb[5].mxu0 }
 0x592   : > { %v7751_v7 = vmax.f32 %v7687_v30, 0.0  ;;  %v7116_v61 = vsel %vm3683_vm1, %v7113_v15, %v7115_v28  ;;  %v15400_v45 = vunpack.c.l.bf16 %v14277_v25  ;;  %v15401_v63 = vunpack.c.h.bf16 %v14277_v25  ;;  %v10229_v8 = vpop.f32.mrb[18].mxu1  ;;  %v14502_v25 = vpop.f32.mrb[6].mxu0 }
 0x593   : > { %v7754_v47 = vmax.f32 %v7690_v38, 0.0  ;;  %v7357_v26 = vadd.f32 %v13740_v36, %v7114_v0  ;;  %v7360_v14 = vadd.f32 %v13776_v62, %v7120_v31  ;;  %v7118_v5 = vsel %vm3683_vm1, %v7115_v28, %v7117_v17  ;;  %v6582_v15 = vpop.f32.mrb[19].mxu1 }
 0x594   : > { %7815 = vst [vmem:[%s14396_s8 + $0x38] sm:$0xff] %v7751_v7  ;;  %v7688_v10 = vadd.f32 %v15400_v45, %v7496_v35  ;;  %v7689_v2 = vadd.f32 %v15401_v63, %v7497_v9  ;;  %v7358_v22 = vadd.f32 %v13758_v57, %v7116_v61  ;;  %v6588_v30 = vadd.f32 %v10228_v52, %v14213_v34  ;;  %v6367_v7 = vpop.f32.mrb[7].mxu0 }
 0x595   : > { %7818 = vst [vmem:[%s14396_s8 + $0x50] sm:$0xff] %v7754_v47  ;;  %v6580_v33 = vadd.f32 %v6579_v18, %v14201_v11  ;;  %v7428_v62 = vmul.f32 %v14341_v58, %v7357_v26  ;;  %v7431_v38 = vmul.f32 %v14341_v58, %v7360_v14  ;;  %v7359_v17 = vadd.f32 %v13767_v59, %v7118_v5  ;;  %v15407_v7 = vld [vmem:[#allocation37_spill] sm:$0xff] }
 0x596   : > { %v7752_v4 = vmax.f32 %v7688_v10, 0.0  ;;  %v7753_v36 = vmax.f32 %v7689_v2, 0.0  ;;  %v7429_v57 = vmul.f32 %v14341_v58, %v7358_v22  ;;  %v8641_v34 = vunpack.c.h.bf16 %v14474_v46  ;;  %v15404_v2 = vld [vmem:[#allocation33_spill] sm:$0xff] }
 0x597   : > { %v7121_v28 = vrot.slane %v6580_v33, 1  ;;  %v7499_v11 = vadd.f32 %v14361_v20, %v7428_v62  ;;  %v7502_v35 = vadd.f32 %v14361_v20, %v7431_v38  ;;  %v6591_v9 = vadd.f32 %v10229_v8, %v14216_v37 }
 0x598   : > { %7816 = vst [vmem:[%s14396_s8 + $0x40] sm:$0xff] %v7752_v4  ;;  %7817 = vst [vmem:[%s14396_s8 + $0x48] sm:$0xff] %v7753_v36  ;;  %v6583_v47 = vadd.f32 %v6582_v15, %v14204_v32  ;;  %v7430_v0 = vmul.f32 %v14341_v58, %v7359_v17  ;;  %v7500_v31 = vadd.f32 %v14361_v20, %v7429_v57  ;;  %v7125_v59 = vrot.slane %v6588_v30, 1  ;;  %v10232_v5 = vpop.f32.mrb[20].mxu1  ;;  %v14526_v22 = vpop.f32.mrb[8].mxu0 }
 0x599   : > { %v7122_v61 = vsel %vm3683_vm1, %v7119_v49, %v7121_v28  ;;  %v15402_v52 = vunpack.c.h.bf16 %v14274_v21  ;;  %v15403_v10 = vunpack.c.l.bf16 %v14283_v3  ;;  %v7127_v14 = vrot.slane %v6591_v9, 1  ;;  %v6595_v4 = vpop.f32.mrb[21].mxu1  ;;  %v6372_v36 = vpop.f32.mrb[9].mxu0  ;;  %v14538_v9 = vld [vmem:[%s10722_s26 + $0xb8] sm:$0xff]  }
 0x59a   : > { %v7361_v26 = vadd.f32 %v15404_v2, %v7122_v61  ;;  %v7501_v37 = vadd.f32 %v14361_v20, %v7430_v0  ;;  %v15405_v32 = vunpack.c.l.bf16 %v14292_v42  ;;  %v7123_v19 = vrot.slane %v6583_v47, 1 }
 0x59b   : > { %v7691_v45 = vadd.f32 %v15402_v52, %v7499_v11  ;;  %v7694_v63 = vadd.f32 %v15403_v10, %v7502_v35  ;;  %v8645_v21 = vunpack.c.h.bf16 %v14451_v29  ;;  %v7128_v8 = vsel %vm3683_vm1, %v7125_v59, %v7127_v14  ;;  %v10233_v11 = vpop.f32.mrb[22].mxu1  ;;  %v14535_v35 = vpop.f32.mrb[10].mxu0 }
 0x59c   : > { %v7692_v18 = vadd.f32 %v15405_v32, %v7500_v31  ;;  %v7432_v33 = vmul.f32 %v14341_v58, %v7361_v26  ;;  %v15406_v62 = vunpack.c.h.bf16 %v14292_v42  ;;  %v7364_v17 = vadd.f32 %v15407_v7, %v7128_v8  ;;  %v15408_v42 = vld [vmem:[#allocation38_spill] sm:$0xff]  ;;  %v6598_v52 = vpop.f32.mrb[23].mxu1 }
 0x59d   : > { %v7755_v49 = vmax.f32 %v7691_v45, 0.0  ;;  %v7758_v30 = vmax.f32 %v7694_v63, 0.0  ;;  %v7124_v57 = vsel %vm3683_vm1, %v7121_v28, %v7123_v19  ;;  %v7126_v0 = vsel %vm3683_vm1, %v7123_v19, %v7125_v59  ;;  %v6375_v45 = vpop.f32.mrb[11].mxu0  ;;  %v15409_v63 = vld [vmem:[#allocation36_spill] sm:$0xff] }
 0x59e   : > { %v7693_v38 = vadd.f32 %v15406_v62, %v7501_v37  ;;  %v7756_v15 = vmax.f32 %v7692_v18, 0.0  ;;  %v7503_v47 = vadd.f32 %v14361_v20, %v7432_v33  ;;  %v7362_v31 = vadd.f32 %v15408_v42, %v7124_v57  ;;  %v15415_v42 = vld [vmem:[#allocation54_spill] sm:$0xff]  ;;  %v14576_v45 = vld [vmem:[%s10722_s26 + $0xb0] sm:$0xff]  }
 0x59f   : > { %7819 = vst [vmem:[%s14396_s8 + $0x58] sm:$0xff] %v7755_v49  ;;  %7822 = vst [vmem:[%s14396_s8 + $0x70] sm:$0xff] %v7758_v30  ;;  %v6604_v61 = vadd.f32 %v10232_v5, %v14237_v56  ;;  %v7435_v28 = vmul.f32 %v14341_v58, %v7364_v17  ;;  %v7363_v2 = vadd.f32 %v15409_v63, %v7126_v0  ;;  %v15410_v37 = vunpack.c.h.bf16 %v14283_v3  ;;  %v15417_v63 = vld [vmem:[#allocation44_spill] sm:$0xff] }
 0x5a0   : > { %v7757_v10 = vmax.f32 %v7693_v38, 0.0  ;;  %7820 = vst [vmem:[%s14396_s8 + $0x60] sm:$0xff] %v7756_v15  ;;  %v6596_v26 = vadd.f32 %v6595_v4, %v14225_v16  ;;  %v7433_v18 = vmul.f32 %v14341_v58, %v7362_v31  ;;  %v14554_v59 = vadd.f32 %v10233_v11, %v14240_v24  ;;  %v10236_v15 = vpop.f32.mrb[24].mxu1  ;;  %v14567_v7 = vpop.f32.mrb[12].mxu0  ;;  %v15414_v11 = vld [vmem:[#allocation41_spill] sm:$0xff] }
 0x5a1   : > { %v7695_v32 = vadd.f32 %v15410_v37, %v7503_v47  ;;  %v8652_v56 = vunpack.c.l.bf16 %v14538_v9  ;;  %v7506_v19 = vadd.f32 %v14361_v20, %v7435_v28  ;;  %v7434_v5 = vmul.f32 %v14341_v58, %v7363_v2 }
 0x5a2   : > { %7821 = vst [vmem:[%s14396_s8 + $0x68] sm:$0xff] %v7757_v10  ;;  %v7129_v49 = vrot.slane %v6596_v26, 1  ;;  %v6599_v30 = vadd.f32 %v6598_v52, %v14228_v43  ;;  %v7504_v3 = vadd.f32 %v14361_v20, %v7433_v18  ;;  %v7133_v33 = vrot.slane %v6604_v61, 1  ;;  %v15412_v43 = vld [vmem:[#allocation55_spill] sm:$0xff]  ;;  %v6611_v61 = vpop.f32.mrb[25].mxu1  ;;  %v6380_v52 = vpop.f32.mrb[13].mxu0 }
 0x5a3   : > { %v7759_v16 = vmax.f32 %v7695_v32, 0.0  ;;  %v7135_v8 = vrot.slane %v14554_v59, 1  ;;  %v15411_v24 = vunpack.c.l.bf16 %v14299_v54  ;;  %v7505_v36 = vadd.f32 %v14361_v20, %v7434_v5  ;;  %v10237_v37 = vpop.f32.mrb[26].mxu1  ;;  %v14582_v32 = vpop.f32.mrb[14].mxu0  ;;  %v15418_v5 = vld [vmem:[#allocation39_spill] sm:$0xff] }
 0x5a4   : > { %v7130_v62 = vsel %vm3683_vm1, %v7127_v14, %v7129_v49  ;;  %v7131_v38 = vrot.slane %v6599_v30, 1  ;;  %v15413_v17 = vunpack.c.l.bf16 %v15412_v43  ;;  %v6620_v31 = vadd.f32 %v10236_v15, %v15415_v42  ;;  %v15422_v42 = vld [vmem:[#allocation29_spill] sm:$0xff] }
 0x5a5   : > { %v7698_v4 = vadd.f32 %v15411_v24, %v7506_v19  ;;  %7823 = vst [vmem:[%s14396_s8 + $0x78] sm:$0xff] %v7759_v16  ;;  %v7365_v47 = vadd.f32 %v15414_v11, %v7130_v62  ;;  %v7136_v0 = vsel %vm3683_vm1, %v7133_v33, %v7135_v8  ;;  %v15416_v10 = vunpack.c.h.bf16 %v15412_v43  ;;  %v6614_v16 = vpop.f32.mrb[27].mxu1 }
 0x5a6   : > { %v7696_v57 = vadd.f32 %v15413_v17, %v7504_v3  ;;  %v7368_v2 = vadd.f32 %v15417_v63, %v7136_v0  ;;  %v7132_v26 = vsel %vm3683_vm1, %v7129_v49, %v7131_v38  ;;  %v7134_v19 = vsel %vm3683_vm1, %v7131_v38, %v7133_v33  ;;  %v6383_v3 = vpop.f32.mrb[15].mxu0  ;;  %v15420_v17 = vld [vmem:[#allocation50_spill] sm:$0xff]  ;;  %v15421_v33 = vld [vmem:[#allocation56_spill] sm:$0xff] }
 0x5a7   : > { %v7762_v14 = vmax.f32 %v7698_v4, 0.0  ;;  %v7697_v28 = vadd.f32 %v15416_v10, %v7505_v36  ;;  %v7436_v59 = vmul.f32 %v14341_v58, %v7365_v47  ;;  %v7366_v30 = vadd.f32 %v15418_v5, %v7132_v26  ;;  %v15419_v36 = vld [vmem:[#allocation40_spill] sm:$0xff] }
 0x5a8   : > { %v7760_v18 = vmax.f32 %v7696_v57, 0.0  ;;  %v7439_v4 = vmul.f32 %v14341_v58, %v7368_v2  ;;  %v7367_v62 = vadd.f32 %v15419_v36, %v7134_v19  ;;  %v8648_v49 = vunpack.c.l.bf16 %v14576_v45  ;;  %v10240_v19 = vpop.f32.mrb[28].mxu1  ;;  %v14609_v5 = vpop.f32.mrb[16].mxu0 }
 0x5a9   : > { %7826 = vst [vmem:[%s14396_s8 + $0x90] sm:$0xff] %v7762_v14  ;;  %v7761_v24 = vmax.f32 %v7697_v28, 0.0  ;;  %v7507_v15 = vadd.f32 %v14361_v20, %v7436_v59  ;;  %v7437_v43 = vmul.f32 %v14341_v58, %v7366_v30  ;;  %v6612_v57 = vadd.f32 %v6611_v61, %v15420_v17  ;;  %v15424_v61 = vld [vmem:[#allocation57_spill] sm:$0xff]  ;;  %v6627_v36 = vpop.f32.mrb[29].mxu1 }
 0x5aa   : > { %7824 = vst [vmem:[%s14396_s8 + $0x80] sm:$0xff] %v7760_v18  ;;  %v14596_v38 = vadd.f32 %v10237_v37, %v15421_v33  ;;  %v7510_v11 = vadd.f32 %v14361_v20, %v7439_v4  ;;  %v7438_v47 = vmul.f32 %v14341_v58, %v7367_v62  ;;  %v7141_v0 = vrot.slane %v6620_v31, 1  ;;  %v6388_v62 = vpop.f32.mrb[17].mxu0 }
 0x5ab   : > { %7825 = vst [vmem:[%s14396_s8 + $0x88] sm:$0xff] %v7761_v24  ;;  %v6615_v52 = vadd.f32 %v6614_v16, %v15422_v42  ;;  %v15423_v14 = vunpack.c.h.bf16 %v14299_v54  ;;  %v7508_v28 = vadd.f32 %v14361_v20, %v7437_v43  ;;  %v7137_v63 = vrot.slane %v6612_v57, 1  ;;  %v15426_v54 = vld [vmem:[#allocation58_spill] sm:$0xff]  ;;  %v14620_v42 = vpop.f32.mrb[18].mxu0 }
 0x5ac   : > { %v7143_v2 = vrot.slane %v14596_v38, 1  ;;  %v15425_v26 = vunpack.c.l.bf16 %v15424_v61  ;;  %v7509_v18 = vadd.f32 %v14361_v20, %v7438_v47  ;;  %v8649_v31 = vunpack.c.h.bf16 %v14576_v45  ;;  %v15429_v57 = vld [vmem:[#allocation42_spill] sm:$0xff]  ;;  %v10241_v47 = vpop.f32.mrb[30].mxu1 }
 0x5ad   : > { %v7699_v10 = vadd.f32 %v15423_v14, %v7507_v15  ;;  %v7139_v59 = vrot.slane %v6615_v52, 1  ;;  %v15427_v16 = vunpack.c.l.bf16 %v15426_v54  ;;  %v7138_v24 = vsel %vm3683_vm1, %v7135_v8, %v7137_v63  ;;  %v15430_v38 = vld [vmem:[#allocation46_spill] sm:$0xff] }
 0x5ae   : > { %v7702_v37 = vadd.f32 %v15425_v26, %v7510_v11  ;;  %v7144_v4 = vsel %vm3683_vm1, %v7141_v0, %v7143_v2  ;;  %v15428_v43 = vunpack.c.h.bf16 %v15426_v54  ;;  %v7369_v33 = vadd.f32 %v15429_v57, %v7138_v24  ;;  %v6391_v26 = vpop.f32.mrb[19].mxu0 }
 0x5af   : > { %v7763_v30 = vmax.f32 %v7699_v10, 0.0  ;;  %v7700_v3 = vadd.f32 %v15427_v16, %v7508_v28  ;;  %v7372_v11 = vadd.f32 %v15430_v38, %v7144_v4  ;;  %v7140_v8 = vsel %vm3683_vm1, %v7137_v63, %v7139_v59  ;;  %v6630_v28 = vpop.f32.mrb[31].mxu1  ;;  %v15431_v16 = vld [vmem:[#allocation43_spill] sm:$0xff]  ;;  %v15433_v4 = vld [vmem:[#allocation61_spill] sm:$0xff] }
 0x5b0   : > { %v7766_v15 = vmax.f32 %v7702_v37, 0.0  ;;  %v7701_v17 = vadd.f32 %v15428_v43, %v7509_v18  ;;  %v7142_v14 = vsel %vm3683_vm1, %v7139_v59, %v7141_v0  ;;  %v6636_v10 = vadd.f32 %v10240_v19, %v14407_v51 }
 0x5b1   : > { %7827 = vst [vmem:[%s14396_s8 + $0x98] sm:$0xff] %v7763_v30  ;;  %v7764_v52 = vmax.f32 %v7700_v3, 0.0  ;;  %v7440_v18 = vmul.f32 %v14341_v58, %v7369_v33  ;;  %v7443_v54 = vmul.f32 %v14341_v58, %v7372_v11  ;;  %v7370_v24 = vadd.f32 %v15431_v16, %v7140_v8  ;;  %v15432_v30 = vld [vmem:[#allocation49_spill] sm:$0xff]  ;;  %v10244_v8 = vpop.f32.mrb[32].mxu1  ;;  %v15436_v16 = vld [vmem:[#allocation59_spill] sm:$0xff] }
 0x5b2   : > { %7830 = vst [vmem:[%s14396_s8 + $0xb0] sm:$0xff] %v7766_v15  ;;  %v7765_v37 = vmax.f32 %v7701_v17, 0.0  ;;  %v7371_v3 = vadd.f32 %v15432_v30, %v7142_v14  ;;  %v6628_v62 = vadd.f32 %v6627_v36, %v15433_v4  ;;  %v14634_v63 = vadd.f32 %v10241_v47, %v14419_v1  ;;  %v14649_v14 = vpop.f32.mrb[20].mxu0 }
 0x5b3   : > { %7828 = vst [vmem:[%s14396_s8 + $0xa0] sm:$0xff] %v7764_v52  ;;  %v8653_v51 = vunpack.c.h.bf16 %v14538_v9  ;;  %v7511_v0 = vadd.f32 %v14361_v20, %v7440_v18  ;;  %v7514_v59 = vadd.f32 %v14361_v20, %v7443_v54  ;;  %v7441_v19 = vmul.f32 %v14341_v58, %v7370_v24 }
 0x5b4   : > { %7829 = vst [vmem:[%s14396_s8 + $0xa8] sm:$0xff] %v7765_v37  ;;  %v6631_v15 = vadd.f32 %v6630_v28, %v14369_v39  ;;  %v7442_v43 = vmul.f32 %v14341_v58, %v7371_v3  ;;  %v7149_v17 = vrot.slane %v6636_v10, 1  ;;  %v7145_v57 = vrot.slane %v6628_v62, 1  ;;  %v6396_v37 = vpop.f32.mrb[21].mxu0  ;;  %v15438_v3 = vld [vmem:[#allocation47_spill] sm:$0xff] }
 0x5b5   : > { %v7151_v36 = vrot.slane %v14634_v63, 1  ;;  %v15434_v1 = vunpack.c.h.bf16 %v15424_v61  ;;  %v15435_v38 = vunpack.c.l.bf16 %v14327_v48  ;;  %v7512_v47 = vadd.f32 %v14361_v20, %v7441_v19  ;;  %v6643_v61 = vpop.f32.mrb[33].mxu1  ;;  %v14658_v63 = vpop.f32.mrb[22].mxu0 }
 0x5b6   : > { %v7147_v52 = vrot.slane %v6631_v15, 1  ;;  %v7513_v39 = vadd.f32 %v14361_v20, %v7442_v43  ;;  %v7146_v10 = vsel %vm3683_vm1, %v7143_v2, %v7145_v57  ;;  %v6652_v26 = vadd.f32 %v10244_v8, %v14488_v40  ;;  %v10245_v62 = vpop.f32.mrb[34].mxu1  ;;  %v15440_v40 = vld [vmem:[#allocation12_spill] sm:$0xff] }
 0x5b7   : > { %v7703_v33 = vadd.f32 %v15434_v1, %v7511_v0  ;;  %v7706_v11 = vadd.f32 %v15435_v38, %v7514_v59  ;;  %v7152_v28 = vsel %vm3683_vm1, %v7149_v17, %v7151_v36  ;;  %v15437_v24 = vunpack.c.l.bf16 %v15436_v16  ;;  %v14661_v0 = vld [vmem:[%s10722_s26 + $0xc8] sm:$0xff]   ;;  %v6646_v1 = vpop.f32.mrb[35].mxu1 }
 0x5b8   : > { %v7373_v4 = vadd.f32 %v15438_v3, %v7146_v10  ;;  %v15439_v2 = vunpack.c.h.bf16 %v15436_v16  ;;  %v7376_v19 = vadd.f32 %v15440_v40, %v7152_v28  ;;  %v7148_v15 = vsel %vm3683_vm1, %v7145_v57, %v7147_v52  ;;  %v15442_v10 = vld [vmem:[#allocation10_spill] sm:$0xff] }
 0x5b9   : > { %v7767_v18 = vmax.f32 %v7703_v33, 0.0  ;;  %v7770_v54 = vmax.f32 %v7706_v11, 0.0  ;;  %v7704_v30 = vadd.f32 %v15437_v24, %v7512_v47  ;;  %v7150_v43 = vsel %vm3683_vm1, %v7147_v52, %v7149_v17  ;;  %v6399_v33 = vpop.f32.mrb[23].mxu0  ;;  %v15441_v47 = vld [vmem:[#allocation52_spill] sm:$0xff] }
 0x5ba   : > { %v7705_v59 = vadd.f32 %v15439_v2, %v7513_v39  ;;  %v7444_v11 = vmul.f32 %v14341_v58, %v7373_v4  ;;  %v7374_v8 = vadd.f32 %v15441_v47, %v7148_v15  ;;  %v7375_v37 = vadd.f32 %v15442_v10, %v7150_v43  ;;  %v14688_v15 = vpop.f32.mrb[24].mxu0 }
 0x5bb   : > { %7831 = vst [vmem:[%s14396_s8 + $0xb8] sm:$0xff] %v7767_v18  ;;  %7834 = vst [vmem:[%s14396_s8 + $0xd0] sm:$0xff] %v7770_v54  ;;  %v7768_v38 = vmax.f32 %v7704_v30, 0.0  ;;  %v7447_v16 = vmul.f32 %v14341_v58, %v7376_v19  ;;  %v6644_v28 = vadd.f32 %v6643_v61, %v14448_v23  ;;  %v8660_v57 = vunpack.c.l.bf16 %v14661_v0  ;;  %v10248_v19 = vpop.f32.mrb[36].mxu1 }
 0x5bc   : > { %v7769_v39 = vmax.f32 %v7705_v59, 0.0  ;;  %v7515_v17 = vadd.f32 %v14361_v20, %v7444_v11  ;;  %v7445_v52 = vmul.f32 %v14341_v58, %v7374_v8  ;;  %v7446_v18 = vmul.f32 %v14341_v58, %v7375_v37  ;;  %v15448_v37 = vld [vmem:[#allocation14_spill] sm:$0xff] }
 0x5bd   : > { %7832 = vst [vmem:[%s14396_s8 + $0xc0] sm:$0xff] %v7768_v38  ;;  %v6655_v54 = vadd.f32 %v10245_v62, %v14502_v25  ;;  %v7518_v24 = vadd.f32 %v14361_v20, %v7447_v16  ;;  %v7157_v30 = vrot.slane %v6652_v26, 1  ;;  %v7153_v3 = vrot.slane %v6644_v28, 1  ;;  %v15445_v38 = vld [vmem:[#allocation60_spill] sm:$0xff] }
 0x5be   : > { %7833 = vst [vmem:[%s14396_s8 + $0xc8] sm:$0xff] %v7769_v39  ;;  %v6647_v4 = vadd.f32 %v6646_v1, %v14461_v6  ;;  %v15443_v23 = vunpack.c.h.bf16 %v14327_v48  ;;  %v7516_v2 = vadd.f32 %v14361_v20, %v7445_v52  ;;  %v7517_v59 = vadd.f32 %v14361_v20, %v7446_v18  ;;  %v6659_v48 = vpop.f32.mrb[37].mxu1  ;;  %v6404_v1 = vpop.f32.mrb[25].mxu0 }
 0x5bf   : > { %v7159_v40 = vrot.slane %v6655_v54, 1  ;;  %v15444_v25 = vunpack.c.l.bf16 %v14347_v13  ;;  %v7154_v26 = vsel %vm3683_vm1, %v7151_v36, %v7153_v3  ;;  %v14694_v6 = vadd.f32 %v10248_v19, %v14567_v7  ;;  %v10249_v16 = vpop.f32.mrb[38].mxu1  ;;  %v14701_v28 = vpop.f32.mrb[26].mxu0  ;;  %v14704_v36 = vld [vmem:[%s10722_s26 + $0xc0] sm:$0xff]  }
 0x5c0   : > { %v7707_v61 = vadd.f32 %v15443_v23, %v7515_v17  ;;  %v7155_v43 = vrot.slane %v6647_v4, 1  ;;  %v15446_v11 = vunpack.c.l.bf16 %v15445_v38  ;;  %v15447_v8 = vunpack.c.h.bf16 %v15445_v38  ;;  %v6662_v54 = vpop.f32.mrb[39].mxu1  ;;  %v15450_v19 = vld [vmem:[#allocation15_spill] sm:$0xff] }
 0x5c1   : > { %v7710_v62 = vadd.f32 %v15444_v25, %v7518_v24  ;;  %v7377_v39 = vadd.f32 %v15448_v37, %v7154_v26  ;;  %v7160_v17 = vsel %vm3683_vm1, %v7157_v30, %v7159_v40  ;;  %v6407_v24 = vpop.f32.mrb[27].mxu0  ;;  %v6660_v1 = vadd.f32 %v6659_v48, %v14526_v22 }
 0x5c2   : > { %v7771_v33 = vmax.f32 %v7707_v61, 0.0  ;;  %v7708_v47 = vadd.f32 %v15446_v11, %v7516_v2  ;;  %v7709_v10 = vadd.f32 %v15447_v8, %v7517_v59  ;;  %v7156_v52 = vsel %vm3683_vm1, %v7153_v3, %v7155_v43  ;;  %v15449_v2 = vld [vmem:[#allocation19_spill] sm:$0xff] }
 0x5c3   : > { %v7774_v7 = vmax.f32 %v7710_v62, 0.0  ;;  %v7158_v18 = vsel %vm3683_vm1, %v7155_v43, %v7157_v30  ;;  %v7448_v61 = vmul.f32 %v14341_v58, %v7377_v39  ;;  %v7380_v59 = vadd.f32 %v15449_v2, %v7160_v17  ;;  %v15451_v62 = vld [vmem:[#allocation17_spill] sm:$0xff]  ;;  %v15453_v24 = vld [vmem:[#allocation35_spill] sm:$0xff] }
 0x5c4   : > { %7835 = vst [vmem:[%s14396_s8 + $0xd8] sm:$0xff] %v7771_v33  ;;  %v7772_v4 = vmax.f32 %v7708_v47, 0.0  ;;  %v7773_v23 = vmax.f32 %v7709_v10, 0.0  ;;  %v7378_v25 = vadd.f32 %v15450_v19, %v7156_v52  ;;  %v7379_v26 = vadd.f32 %v15451_v62, %v7158_v18 }
 0x5c5   : > { %7838 = vst [vmem:[%s14396_s8 + $0xf0] sm:$0xff] %v7774_v7  ;;  %v8656_v3 = vunpack.c.l.bf16 %v14704_v36  ;;  %v7519_v30 = vadd.f32 %v14361_v20, %v7448_v61  ;;  %v7451_v43 = vmul.f32 %v14341_v58, %v7380_v59  ;;  %v14722_v33 = vadd.f32 %v10249_v16, %v14582_v32  ;;  %v10252_v7 = vpop.f32.mrb[40].mxu1  ;;  %v6410_v32 = vpop.f32.mrb[28].mxu0  ;;  %v15454_v59 = vld [vmem:[#allocation21_spill] sm:$0xff] }
 0x5c6   : > { %7836 = vst [vmem:[%s14396_s8 + $0xe0] sm:$0xff] %v7772_v4  ;;  %7837 = vst [vmem:[%s14396_s8 + $0xe8] sm:$0xff] %v7773_v23  ;;  %v6663_v38 = vadd.f32 %v6662_v54, %v14535_v35  ;;  %v7449_v11 = vmul.f32 %v14341_v58, %v7378_v25  ;;  %v7450_v47 = vmul.f32 %v14341_v58, %v7379_v26  ;;  %v7165_v8 = vrot.slane %v14694_v6, 1  ;;  %v6675_v52 = vpop.f32.mrb[41].mxu1  ;;  %v6412_v13 = vpop.f32.mrb[29].mxu0 }
 0x5c7   : > { %v7161_v22 = vrot.slane %v6660_v1, 1  ;;  %v7711_v48 = vadd.f32 %v8629_v50, %v7519_v30  ;;  %v7522_v10 = vadd.f32 %v14361_v20, %v7451_v43  ;;  %v7167_v37 = vrot.slane %v14722_v33, 1  ;;  %v10253_v61 = vpop.f32.mrb[42].mxu1  ;;  %v14742_v2 = vpop.f32.mrb[30].mxu0  ;;  %v15455_v33 = vld [vmem:[#allocation22_spill] sm:$0xff] }
 0x5c8   : > { %v7163_v39 = vrot.slane %v6663_v38, 1  ;;  %v7520_v16 = vadd.f32 %v14361_v20, %v7449_v11  ;;  %v7521_v35 = vadd.f32 %v14361_v20, %v7450_v47  ;;  %v14736_v6 = vadd.f32 %v10252_v7, %v14649_v14  ;;  %v6678_v62 = vpop.f32.mrb[43].mxu1  ;;  %v6415_v26 = vpop.f32.mrb[31].mxu0 }
 0x5c9   : > { %v7162_v17 = vsel %vm3683_vm1, %v7159_v40, %v7161_v22  ;;  %v7775_v50 = vmax.f32 %v7711_v48, 0.0  ;;  %v15452_v18 = vunpack.c.l.bf16 %v14380_v12  ;;  %v7168_v23 = vsel %vm3683_vm1, %v7165_v8, %v7167_v37 }
 0x5ca   : > { %v7381_v4 = vadd.f32 %v15453_v24, %v7162_v17  ;;  %v7712_v40 = vadd.f32 %v8632_v55, %v7520_v16  ;;  %v7713_v14 = vadd.f32 %v8633_v60, %v7521_v35  ;;  %v7384_v19 = vadd.f32 %v15454_v59, %v7168_v23  ;;  %v15456_v60 = vld [vmem:[#allocation23_spill] sm:$0xff] }
 0x5cb   : > { %v7714_v54 = vadd.f32 %v15452_v18, %v7522_v10  ;;  %v7164_v25 = vsel %vm3683_vm1, %v7161_v22, %v7163_v39  ;;  %7839 = vst [vmem:[%s14396_s8 + $0xf8] sm:$0xff] %v7775_v50  ;;  %v7166_v43 = vsel %vm3683_vm1, %v7163_v39, %v7165_v8  ;;  %v6676_v10 = vadd.f32 %v6675_v52, %v14609_v5  ;;  %v10256_v52 = vpop.f32.mrb[44].mxu1  ;;  %v14771_v18 = vpop.f32.mrb[32].mxu0 }
 0x5cc   : > { %v7452_v30 = vmul.f32 %v14341_v58, %v7381_v4  ;;  %v7382_v38 = vadd.f32 %v15455_v33, %v7164_v25  ;;  %v7776_v55 = vmax.f32 %v7712_v40, 0.0  ;;  %v7777_v11 = vmax.f32 %v7713_v14, 0.0  ;;  %v6420_v23 = vpop.f32.mrb[33].mxu0 }
 0x5cd   : > { %v7778_v1 = vmax.f32 %v7714_v54, 0.0  ;;  %v7455_v44 = vmul.f32 %v14341_v58, %v7384_v19  ;;  %v7383_v47 = vadd.f32 %v15456_v60, %v7166_v43  ;;  %v8657_v7 = vunpack.c.h.bf16 %v14704_v36  ;;  %v14779_v14 = vpop.f32.mrb[34].mxu0  ;;  %v15457_v19 = vld [vmem:[#allocation26_spill] sm:$0xff]  ;;  %v15468_v36 = vld [vmem:[#allocation8_spill] sm:$0xff] }
 0x5ce   : > { %v7523_v22 = vadd.f32 %v14361_v20, %v7452_v30  ;;  %v7453_v48 = vmul.f32 %v14341_v58, %v7382_v38  ;;  %7840 = vst [vmem:[%s14396_s8 + $0x100] sm:$0xff] %v7776_v55  ;;  %7841 = vst [vmem:[%s14396_s8 + $0x108] sm:$0xff] %v7777_v11  ;;  %v6687_v16 = vadd.f32 %v10253_v61, %v14658_v63  ;;  %v7173_v50 = vrot.slane %v14736_v6, 1  ;;  %v15458_v30 = vld [vmem:[#allocation32_spill] sm:$0xff] }
 0x5cf   : > { %7842 = vst [vmem:[%s14396_s8 + $0x110] sm:$0xff] %v7778_v1  ;;  %v7526_v8 = vadd.f32 %v14361_v20, %v7455_v44  ;;  %v7454_v39 = vmul.f32 %v14341_v58, %v7383_v47  ;;  %v6679_v35 = vadd.f32 %v6678_v62, %v14620_v42  ;;  %v7169_v5 = vrot.slane %v6676_v10, 1  ;;  %v6691_v42 = vpop.f32.mrb[45].mxu1  ;;  %v6423_v1 = vpop.f32.mrb[35].mxu0  ;;  %v15460_v55 = vld [vmem:[#allocation28_spill] sm:$0xff] }
 0x5d0   : > { %v7715_v17 = vadd.f32 %v8637_v27, %v7523_v22  ;;  %v7524_v13 = vadd.f32 %v14361_v20, %v7453_v48  ;;  %v7175_v4 = vrot.slane %v6687_v16, 1  ;;  %v6700_v61 = vadd.f32 %v10256_v52, %v6410_v32  ;;  %v10257_v40 = vpop.f32.mrb[46].mxu1  ;;  %v15463_v1 = vld [vmem:[#allocation34_spill] sm:$0xff] }
 0x5d1   : > { %v7718_v54 = vadd.f32 %v8644_v41, %v7526_v8  ;;  %v7525_v24 = vadd.f32 %v14361_v20, %v7454_v39  ;;  %v7171_v63 = vrot.slane %v6679_v35, 1  ;;  %v7170_v6 = vsel %vm3683_vm1, %v7167_v37, %v7169_v5  ;;  %v6694_v26 = vpop.f32.mrb[47].mxu1 }
 0x5d2   : > { %v7779_v12 = vmax.f32 %v7715_v17, 0.0  ;;  %v7716_v27 = vadd.f32 %v8640_v53, %v7524_v13  ;;  %v7385_v25 = vadd.f32 %v15457_v19, %v7170_v6  ;;  %v7176_v62 = vsel %vm3683_vm1, %v7173_v50, %v7175_v4  ;;  %v10260_v13 = vpop.f32.mrb[48].mxu1  ;;  %v15461_v6 = vld [vmem:[#allocation31_spill] sm:$0xff] }
 0x5d3   : > { %v7782_v59 = vmax.f32 %v7718_v54, 0.0  ;;  %v7717_v41 = vadd.f32 %v8641_v34, %v7525_v24  ;;  %v7388_v37 = vadd.f32 %v15458_v30, %v7176_v62  ;;  %v7172_v32 = vsel %vm3683_vm1, %v7169_v5, %v7171_v63  ;;  %v15459_v34 = vld [vmem:[#allocation27_spill] sm:$0xff] }
 0x5d4   : > { %7843 = vst [vmem:[%s14396_s8 + $0x118] sm:$0xff] %v7779_v12  ;;  %v7780_v53 = vmax.f32 %v7716_v27, 0.0  ;;  %v7174_v43 = vsel %vm3683_vm1, %v7171_v63, %v7173_v50  ;;  %v7456_v46 = vmul.f32 %v14341_v58, %v7385_v25  ;;  %v7386_v38 = vadd.f32 %v15459_v34, %v7172_v32 }
 0x5d5   : > { %7846 = vst [vmem:[%s14396_s8 + $0x130] sm:$0xff] %v7782_v59  ;;  %v7781_v33 = vmax.f32 %v7717_v41, 0.0  ;;  %v7387_v11 = vadd.f32 %v15460_v55, %v7174_v43  ;;  %v7459_v44 = vmul.f32 %v14341_v58, %v7388_v37  ;;  %v6692_v60 = vadd.f32 %v6691_v42, %v14688_v15  ;;  %v15462_v41 = vld [vmem:[#allocation51_spill] sm:$0xff]  ;;  %v15464_v37 = vld [vmem:[#allocation30_spill] sm:$0xff] }
 0x5d6   : > { %7844 = vst [vmem:[%s14396_s8 + $0x120] sm:$0xff] %v7780_v53  ;;  %v14797_v47 = vadd.f32 %v10257_v40, %v14742_v2  ;;  %v8661_v22 = vunpack.c.h.bf16 %v14661_v0  ;;  %v7527_v48 = vadd.f32 %v14361_v20, %v7456_v46  ;;  %v7457_v10 = vmul.f32 %v14341_v58, %v7386_v38  ;;  %v6426_v2 = vpop.f32.mrb[36].mxu0  ;;  %v14846_v46 = vld [vmem:[%s14986_s6] ss:$0 sm:$0xff] }
 0x5d7   : > { %7845 = vst [vmem:[%s14396_s8 + $0x128] sm:$0xff] %v7781_v33  ;;  %v7458_v8 = vmul.f32 %v14341_v58, %v7387_v11  ;;  %v6695_v39 = vadd.f32 %v6694_v26, %v14701_v28  ;;  %v7530_v16 = vadd.f32 %v14361_v20, %v7459_v44  ;;  %v7181_v35 = vrot.slane %v6700_v61, 1  ;;  %v6707_v58 = vpop.f32.mrb[49].mxu1  ;;  %v6428_v24 = vpop.f32.mrb[37].mxu0 }
 0x5d8   : > { %v7177_v17 = vrot.slane %v6692_v60, 1  ;;  %v7183_v15 = vrot.slane %v14797_v47, 1  ;;  %v7719_v50 = vadd.f32 %v8645_v21, %v7527_v48  ;;  %v7528_v5 = vadd.f32 %v14361_v20, %v7457_v10  ;;  %v10261_v29 = vpop.f32.mrb[50].mxu1  ;;  %v6429_v21 = vpop.f32.mrb[38].mxu0 }
 0x5d9   : > { %v7529_v52 = vadd.f32 %v14361_v20, %v7458_v8  ;;  %v7179_v54 = vrot.slane %v6695_v39, 1  ;;  %v7722_v28 = vadd.f32 %v8652_v56, %v7530_v16  ;;  %v14815_v23 = vadd.f32 %v10260_v13, %v6426_v2  ;;  %v14823_v56 = vld [vmem:[%s10722_s26 + $0xd8] sm:$0xff]   ;;  %v6431_v40 = vpop.f32.mrb[39].mxu0 }
 0x5da   : > { %v7178_v63 = vsel %vm3683_vm1, %v7175_v4, %v7177_v17  ;;  %v7184_v42 = vsel %vm3683_vm1, %v7181_v35, %v7183_v15  ;;  %v7783_v12 = vmax.f32 %v7719_v50, 0.0  ;;  %v7720_v27 = vadd.f32 %v8648_v49, %v7528_v5  ;;  %v6710_v4 = vpop.f32.mrb[51].mxu1  ;;  %v6434_v10 = vpop.f32.mrb[40].mxu0 }
 0x5db   : > { %v7721_v20 = vadd.f32 %v8649_v31, %v7529_v52  ;;  %v7389_v61 = vadd.f32 %v15461_v6, %v7178_v63  ;;  %v7786_v59 = vmax.f32 %v7722_v28, 0.0  ;;  %v7392_v19 = vadd.f32 %v15462_v41, %v7184_v42  ;;  %v14832_v31 = vld [vmem:[%s14985_s5] ss:$0 sm:$0xff]  ;;  %v10264_v48 = vpop.f32.mrb[52].mxu1  ;;  %v6436_v13 = vpop.f32.mrb[41].mxu0  ;;  %v15467_v6 = vld [vmem:[#allocation5_spill] sm:$0xff] }
 0x5dc   : > { %v7180_v25 = vsel %vm3683_vm1, %v7177_v17, %v7179_v54  ;;  %v7182_v62 = vsel %vm3683_vm1, %v7179_v54, %v7181_v35  ;;  %7847 = vst [vmem:[%s14396_s8 + $0x138] sm:$0xff] %v7783_v12  ;;  %v7784_v49 = vmax.f32 %v7720_v27, 0.0  ;;  %v6708_v43 = vadd.f32 %v6707_v58, %v14771_v18  ;;  %v6723_v17 = vpop.f32.mrb[53].mxu1  ;;  %v6437_v54 = vpop.f32.mrb[42].mxu0  ;;  %v15465_v58 = vld [vmem:[#allocation3_spill] sm:$0xff]  ;;  %v8718_v12 = vld [vmem:[%s10722_s26 + $0xd0] sm:$0xff]  }
 0x5dd   : > { %v7785_v45 = vmax.f32 %v7721_v20, 0.0  ;;  %v7460_v26 = vmul.f32 %v14832_v31, %v7389_v61  ;;  %v7390_v53 = vadd.f32 %v15463_v1, %v7180_v25  ;;  %7850 = vst [vmem:[%s14396_s8 + $0x150] sm:$0xff] %v7786_v59  ;;  %v7463_v30 = vmul.f32 %v14832_v31, %v7392_v19  ;;  %v10265_v52 = vpop.f32.mrb[54].mxu1 }
 0x5de   : > { %v7391_v32 = vadd.f32 %v15464_v37, %v7182_v62  ;;  %v8668_v33 = vunpack.c.l.bf16 %v14823_v56  ;;  %7848 = vst [vmem:[%s14396_s8 + $0x140] sm:$0xff] %v7784_v49  ;;  %v6719_v55 = vadd.f32 %v10261_v29, %v6429_v21  ;;  %v6711_v11 = vadd.f32 %v6710_v4, %v14779_v14  ;;  %v6726_v63 = vpop.f32.mrb[55].mxu1 }
 0x5df   : > { %7849 = vst [vmem:[%s14396_s8 + $0x148] sm:$0xff] %v7785_v45  ;;  %v7531_v34 = vadd.f32 %v14846_v46, %v7460_v26  ;;  %v7461_v38 = vmul.f32 %v14832_v31, %v7390_v53  ;;  %v7534_v44 = vadd.f32 %v14846_v46, %v7463_v30  ;;  %v7189_v60 = vrot.slane %v14815_v23, 1 }
 0x5e0   : > { %v7462_v18 = vmul.f32 %v14832_v31, %v7391_v32  ;;  %v7185_v47 = vrot.slane %v6708_v43, 1  ;;  %v7191_v16 = vrot.slane %v6719_v55, 1  ;;  %v7187_v35 = vrot.slane %v6711_v11, 1  ;;  %v14884_v53 = vpop.f32.mrb[56].mxu1  ;;  %v15469_v43 = vld [vmem:[#allocation6_spill] sm:$0xff] }
 0x5e1   : > { %v7723_v8 = vadd.f32 %v8653_v51, %v7531_v34  ;;  %v7532_v39 = vadd.f32 %v14846_v46, %v7461_v38  ;;  %v7726_v14 = vadd.f32 %v8660_v57, %v7534_v44  ;;  %v6724_v5 = vadd.f32 %v6723_v17, %v6434_v10  ;;  %v6439_v57 = vpop.f32.mrb[43].mxu0  ;;  %v6739_v55 = vpop.f32.mrb[57].mxu1 }
 0x5e2   : > { %v7533_v2 = vadd.f32 %v14846_v46, %v7462_v18  ;;  %v7186_v50 = vsel %vm3683_vm1, %v7183_v15, %v7185_v47  ;;  %v7192_v28 = vsel %vm3683_vm1, %v7189_v60, %v7191_v16  ;;  %v15466_v15 = vld [vmem:[#allocation25_spill] sm:$0xff]  ;;  %v7188_v21 = vsel %vm3683_vm1, %v7185_v47, %v7187_v35  ;;  %v6442_v30 = vpop.f32.mrb[44].mxu0  ;;  %v14894_v10 = vpop.f32.mrb[58].mxu1 }
 0x5e3   : > { %v7787_v9 = vmax.f32 %v7723_v8, 0.0  ;;  %v7724_v51 = vadd.f32 %v8656_v3, %v7532_v39  ;;  %v7393_v24 = vadd.f32 %v15465_v58, %v7186_v50  ;;  %v7790_v42 = vmax.f32 %v7726_v14, 0.0  ;;  %v6444_v11 = vpop.f32.mrb[45].mxu0  ;;  %v6742_v17 = vpop.f32.mrb[59].mxu1 }
 0x5e4   : > { %v7725_v23 = vadd.f32 %v8657_v7, %v7533_v2  ;;  %v7396_v29 = vadd.f32 %v15466_v15, %v7192_v28  ;;  %v7190_v20 = vsel %vm3683_vm1, %v7187_v35, %v7189_v60  ;;  %v7394_v61 = vadd.f32 %v15467_v6, %v7188_v21  ;;  %v6445_v0 = vpop.f32.mrb[46].mxu0  ;;  %v8720_v35 = vld [vmem:[%s10722_s26 + $0xe0] sm:$0xff]   ;;  %v15470_v2 = vld [vmem:[#allocation4_spill] sm:$0xff] }
 0x5e5   : > { %7851 = vst [vmem:[%s14396_s8 + $0x158] sm:$0xff] %v7787_v9  ;;  %v7788_v27 = vmax.f32 %v7724_v51, 0.0  ;;  %v7464_v3 = vmul.f32 %v14832_v31, %v7393_v24  ;;  %7854 = vst [vmem:[%s14396_s8 + $0x170] sm:$0xff] %v7790_v42  ;;  %v7395_v7 = vadd.f32 %v15468_v36, %v7190_v20  ;;  %v7193_v59 = vrot.slane %v6724_v5, 1 }
 0x5e6   : > { %v7789_v4 = vmax.f32 %v7725_v23, 0.0  ;;  %v7467_v40 = vmul.f32 %v14832_v31, %v7396_v29  ;;  %v7465_v19 = vmul.f32 %v14832_v31, %v7394_v61  ;;  %v8664_v25 = vunpack.c.l.bf16 %v8718_v12 }
 0x5e7   : > { %7852 = vst [vmem:[%s14396_s8 + $0x160] sm:$0xff] %v7788_v27  ;;  %v7535_v41 = vadd.f32 %v14846_v46, %v7464_v3  ;;  %v6727_v62 = vadd.f32 %v6726_v63, %v6437_v54  ;;  %v7466_v45 = vmul.f32 %v14832_v31, %v7395_v7  ;;  %v8665_v26 = vunpack.c.h.bf16 %v8718_v12  ;;  %v15471_v63 = vld [vmem:[#allocation7_spill] sm:$0xff]  ;;  %v8721_v3 = vld [vmem:[%s10722_s26 + $0xe8] sm:$0xff]  }
 0x5e8   : > { %7853 = vst [vmem:[%s14396_s8 + $0x168] sm:$0xff] %v7789_v4  ;;  %v7538_v49 = vadd.f32 %v14846_v46, %v7467_v40  ;;  %v7194_v1 = vsel %vm3683_vm1, %v7191_v16, %v7193_v59  ;;  %v7536_v32 = vadd.f32 %v14846_v46, %v7465_v19  ;;  %v8669_v60 = vunpack.c.h.bf16 %v14823_v56  ;;  %v15472_v40 = vld [vmem:[#allocation13_spill] sm:$0xff] }
 0x5e9   : > { %v7727_v37 = vadd.f32 %v8661_v22, %v7535_v41  ;;  %v7397_v34 = vadd.f32 %v15469_v43, %v7194_v1  ;;  %v7195_v38 = vrot.slane %v6727_v62, 1  ;;  %v7537_v18 = vadd.f32 %v14846_v46, %v7466_v45 }
 0x5ea   : > { %v7730_v44 = vadd.f32 %v8668_v33, %v7538_v49  ;;  %v6732_v47 = vadd.f32 %v10264_v48, %v6442_v30  ;;  %v7728_v8 = vadd.f32 %v8664_v25, %v7536_v32  ;;  %v6447_v33 = vpop.f32.mrb[47].mxu0  ;;  %v6735_v54 = vadd.f32 %v10265_v52, %v6445_v0  ;;  %v14909_v52 = vpop.f32.mrb[60].mxu1  ;;  %v15474_v0 = vld [vmem:[#allocation11_spill] sm:$0xff] }
 0x5eb   : > { %v7791_v22 = vmax.f32 %v7727_v37, 0.0  ;;  %v7468_v39 = vmul.f32 %v14832_v31, %v7397_v34  ;;  %v7196_v16 = vsel %vm3683_vm1, %v7193_v59, %v7195_v38  ;;  %v7729_v14 = vadd.f32 %v8665_v26, %v7537_v18  ;;  %v6450_v29 = vpop.f32.mrb[48].mxu0  ;;  %v6755_v61 = vpop.f32.mrb[61].mxu1  ;;  %v15473_v34 = vld [vmem:[#allocation9_spill] sm:$0xff] }
 0x5ec   : > { %v7794_v13 = vmax.f32 %v7730_v44, 0.0  ;;  %v7398_v56 = vadd.f32 %v15470_v2, %v7196_v16  ;;  %v7197_v48 = vrot.slane %v6732_v47, 1  ;;  %v7792_v50 = vmax.f32 %v7728_v8, 0.0  ;;  %v6452_v6 = vpop.f32.mrb[49].mxu0  ;;  %v14915_v59 = vpop.f32.mrb[62].mxu1  ;;  %v8722_v44 = vld [vmem:[%s10722_s26 + $0xf0] sm:$0xff]  }
 0x5ed   : > { %7855 = vst [vmem:[%s14396_s8 + $0x178] sm:$0xff] %v7791_v22  ;;  %v7539_v5 = vadd.f32 %v14846_v46, %v7468_v39  ;;  %v7793_v9 = vmax.f32 %v7729_v14, 0.0  ;;  %v8672_v58 = vunpack.c.l.bf16 %v8720_v35  ;;  %v7199_v42 = vrot.slane %v6735_v54, 1  ;;  %v6453_v7 = vpop.f32.mrb[50].mxu0  ;;  %v6758_v49 = vpop.f32.mrb[63].mxu1 }
 0x5ee   : > { %7858 = vst [vmem:[%s14396_s8 + $0x190] sm:$0xff] %v7794_v13  ;;  %v7469_v51 = vmul.f32 %v14832_v31, %v7398_v56  ;;  %v7198_v24 = vsel %vm3683_vm1, %v7195_v38, %v7197_v48  ;;  %7856 = vst [vmem:[%s14396_s8 + $0x180] sm:$0xff] %v7792_v50  ;;  %v8673_v15 = vunpack.c.h.bf16 %v8720_v35  ;;  %v6740_v20 = vadd.f32 %v6739_v55, %v6450_v29  ;;  %v6455_v62 = vpop.f32.mrb[51].mxu0 }
 0x5ef   : > { %v7731_v28 = vadd.f32 %v8669_v60, %v7539_v5  ;;  %v7399_v57 = vadd.f32 %v15471_v63, %v7198_v24  ;;  %7857 = vst [vmem:[%s14396_s8 + $0x188] sm:$0xff] %v7793_v9  ;;  %v7200_v27 = vsel %vm3683_vm1, %v7197_v48, %v7199_v42  ;;  %v6743_v25 = vadd.f32 %v6742_v17, %v6453_v7  ;;  %v8723_v63 = vld [vmem:[%s10722_s26 + $0xf8] sm:$0xff]  }
 0x5f0   : > { %v7540_v23 = vadd.f32 %v14846_v46, %v7469_v51  ;;  %v7400_v36 = vadd.f32 %v15472_v40, %v7200_v27  ;;  %v7201_v19 = vrot.slane %v6740_v20, 1  ;;  %v8676_v1 = vunpack.c.l.bf16 %v8721_v3  ;;  %v6458_v8 = vpop.f32.mrb[52].mxu0 }
 0x5f1   : > { %v7795_v21 = vmax.f32 %v7731_v28, 0.0  ;;  %v7470_v12 = vmul.f32 %v14832_v31, %v7399_v57  ;;  %v7203_v32 = vrot.slane %v6743_v25, 1  ;;  %v8677_v47 = vunpack.c.h.bf16 %v8721_v3  ;;  %v6460_v16 = vpop.f32.mrb[53].mxu0 }
 0x5f2   : > { %v7732_v4 = vadd.f32 %v8672_v58, %v7540_v23  ;;  %v7471_v26 = vmul.f32 %v14832_v31, %v7400_v36  ;;  %v7202_v37 = vsel %vm3683_vm1, %v7199_v42, %v7201_v19  ;;  %v6748_v39 = vadd.f32 %v14884_v53, %v6458_v8  ;;  %v6461_v14 = vpop.f32.mrb[54].mxu0  ;;  %v15475_v58 = vld [vmem:[#allocation20_spill] sm:$0xff] }
 0x5f3   : > { %7859 = vst [vmem:[%s14396_s8 + $0x198] sm:$0xff] %v7795_v21  ;;  %v7541_v41 = vadd.f32 %v14846_v46, %v7470_v12  ;;  %v7401_v38 = vadd.f32 %v15473_v34, %v7202_v37  ;;  %v7204_v11 = vsel %vm3683_vm1, %v7201_v19, %v7203_v32  ;;  %v8680_v13 = vunpack.c.l.bf16 %v8722_v44  ;;  %v6463_v48 = vpop.f32.mrb[55].mxu0  ;;  %v15476_v23 = vld [vmem:[#allocation16_spill] sm:$0xff] }
 0x5f4   : > { %v7796_v45 = vmax.f32 %v7732_v4, 0.0  ;;  %v7542_v43 = vadd.f32 %v14846_v46, %v7471_v26  ;;  %v7402_v22 = vadd.f32 %v15474_v0, %v7204_v11  ;;  %v7205_v2 = vrot.slane %v6748_v39, 1 }
 0x5f5   : > { %v7733_v30 = vadd.f32 %v8673_v15, %v7541_v41  ;;  %v7472_v60 = vmul.f32 %v14832_v31, %v7401_v38  ;;  %v6751_v56 = vadd.f32 %v14894_v10, %v6461_v14  ;;  %v8681_v42 = vunpack.c.h.bf16 %v8722_v44 }
 0x5f6   : > { %7860 = vst [vmem:[%s14396_s8 + $0x1a0] sm:$0xff] %v7796_v45  ;;  %v7734_v18 = vadd.f32 %v8676_v1, %v7542_v43  ;;  %v7473_v33 = vmul.f32 %v14832_v31, %v7402_v22  ;;  %v7206_v53 = vsel %vm3683_vm1, %v7203_v32, %v7205_v2  ;;  %v8684_v20 = vunpack.c.l.bf16 %v8723_v63  ;;  %v15477_v45 = vld [vmem:[#allocation45_spill] sm:$0xff]  ;;  %v15478_v43 = vld [vmem:[#allocation48_spill] sm:$0xff] }
 0x5f7   : > { %v7797_v55 = vmax.f32 %v7733_v30, 0.0  ;;  %v7543_v17 = vadd.f32 %v14846_v46, %v7472_v60  ;;  %v7207_v54 = vrot.slane %v6751_v56, 1  ;;  %v7403_v24 = vadd.f32 %v15475_v58, %v7206_v53  ;;  %v8724_v30 = vld [vmem:[%s10722_s26 + $0x100] sm:$0xff]   ;;  %v15480_v53 = vld [vmem:[#allocation24_spill] sm:$0xff] }
 0x5f8   : > { %v7798_v35 = vmax.f32 %v7734_v18, 0.0  ;;  %v7544_v5 = vadd.f32 %v14846_v46, %v7473_v33  ;;  %v6466_v29 = vpop.f32.mrb[56].mxu0  ;;  %v8688_v60 = vunpack.c.l.bf16 %v8724_v30  ;;  %v8689_v56 = vunpack.c.h.bf16 %v8724_v30 }
 0x5f9   : > { %7861 = vst [vmem:[%s14396_s8 + $0x1a8] sm:$0xff] %v7797_v55  ;;  %v7735_v50 = vadd.f32 %v8677_v47, %v7543_v17  ;;  %v7208_v28 = vsel %vm3683_vm1, %v7205_v2, %v7207_v54  ;;  %v7474_v10 = vmul.f32 %v14832_v31, %v7403_v24  ;;  %v6756_v21 = vadd.f32 %v6755_v61, %v6466_v29  ;;  %v6468_v12 = vpop.f32.mrb[57].mxu0  ;;  %v8725_v2 = vld [vmem:[%s10722_s26 + $0x108] sm:$0xff]  }
 0x5fa   : > { %7862 = vst [vmem:[%s14396_s8 + $0x1b0] sm:$0xff] %v7798_v35  ;;  %v7736_v51 = vadd.f32 %v8680_v13, %v7544_v5  ;;  %v7404_v15 = vadd.f32 %v15476_v23, %v7208_v28  ;;  %v6469_v6 = vpop.f32.mrb[58].mxu0  ;;  %v15479_v13 = vld [vmem:[#allocation18_spill] sm:$0xff]  ;;  %v8692_v58 = vunpack.c.l.bf16 %v8725_v2 }
 0x5fb   : > { %v7799_v9 = vmax.f32 %v7735_v50, 0.0  ;;  %v7545_v27 = vadd.f32 %v14846_v46, %v7474_v10  ;;  %v7209_v4 = vrot.slane %v6756_v21, 1  ;;  %v6759_v40 = vadd.f32 %v6758_v49, %v6469_v6  ;;  %v6471_v36 = vpop.f32.mrb[59].mxu0 }
 0x5fc   : > { %v7800_v57 = vmax.f32 %v7736_v51, 0.0  ;;  %v7475_v3 = vmul.f32 %v14832_v31, %v7404_v15  ;;  %v8685_v49 = vunpack.c.h.bf16 %v8723_v63 }
 0x5fd   : > { %7863 = vst [vmem:[%s14396_s8 + $0x1b8] sm:$0xff] %v7799_v9  ;;  %v7737_v7 = vadd.f32 %v8681_v42, %v7545_v27  ;;  %v7210_v19 = vsel %vm3683_vm1, %v7207_v54, %v7209_v4  ;;  %v7211_v61 = vrot.slane %v6759_v40, 1  ;;  %v15481_v9 = vld [vmem:[#allocation53_spill] sm:$0xff] }
 0x5fe   : > { %7864 = vst [vmem:[%s14396_s8 + $0x1c0] sm:$0xff] %v7800_v57  ;;  %v7546_v41 = vadd.f32 %v14846_v46, %v7475_v3  ;;  %v7405_v26 = vadd.f32 %v15477_v45, %v7210_v19  ;;  %v8693_v57 = vunpack.c.h.bf16 %v8725_v2 }
 0x5ff   : > { %v7801_v25 = vmax.f32 %v7737_v7, 0.0  ;;  %v7212_v1 = vsel %vm3683_vm1, %v7209_v4, %v7211_v61 }
 0x600   : > { %v7738_v62 = vadd.f32 %v8684_v20, %v7546_v41  ;;  %v7476_v32 = vmul.f32 %v14832_v31, %v7405_v26  ;;  %v7406_v34 = vadd.f32 %v15478_v43, %v7212_v1  ;;  %v6474_v38 = vpop.f32.mrb[60].mxu0 }
 0x601   : > { %7865 = vst [vmem:[%s14396_s8 + $0x1c8] sm:$0xff] %v7801_v25  ;;  %v6764_v55 = vadd.f32 %v14909_v52, %v6474_v38  ;;  %v6476_v11 = vpop.f32.mrb[61].mxu0 }
 0x602   : > { %v7802_v37 = vmax.f32 %v7738_v62, 0.0  ;;  %v7547_v44 = vadd.f32 %v14846_v46, %v7476_v32  ;;  %v7477_v18 = vmul.f32 %v14832_v31, %v7406_v34  ;;  %v6477_v47 = vpop.f32.mrb[62].mxu0 }
 0x603   : > { %v7213_v0 = vrot.slane %v6764_v55, 1  ;;  %v6767_v22 = vadd.f32 %v14915_v59, %v6477_v47  ;;  %v6479_v8 = vpop.f32.mrb[63].mxu0 }
 0x604   : > { %7866 = vst [vmem:[%s14396_s8 + $0x1d0] sm:$0xff] %v7802_v37  ;;  %v7739_v39 = vadd.f32 %v8685_v49, %v7547_v44  ;;  %v7548_v16 = vadd.f32 %v14846_v46, %v7477_v18 }
 0x605   : > { %v7214_v52 = vsel %vm3683_vm1, %v7211_v61, %v7213_v0  ;;  %v7215_v35 = vrot.slane %v6767_v22, 1 }
 0x606   : > { %v7803_v17 = vmax.f32 %v7739_v39, 0.0  ;;  %v7740_v33 = vadd.f32 %v8688_v60, %v7548_v16  ;;  %v7407_v14 = vadd.f32 %v15479_v13, %v7214_v52 }
 0x607   : > { %v7216_v48 = vsel %vm3683_vm1, %v7213_v0, %v7215_v35  ;;  %v7281_v50 = vsel %vm3683_vm1, %v7215_v35, %v6767_v22 }
 0x608   : > { %7867 = vst [vmem:[%s14396_s8 + $0x1d8] sm:$0xff] %v7803_v17  ;;  %v7804_v59 = vmax.f32 %v7740_v33, 0.0  ;;  %v7478_v5 = vmul.f32 %v14832_v31, %v7407_v14  ;;  %v7408_v54 = vadd.f32 %v15480_v53, %v7216_v48  ;;  %v7409_v51 = vadd.f32 %v15481_v9, %v7281_v50 }
 0x60a   : > { %7868 = vst [vmem:[%s14396_s8 + $0x1e0] sm:$0xff] %v7804_v59  ;;  %v7549_v24 = vadd.f32 %v14846_v46, %v7478_v5  ;;  %v7479_v28 = vmul.f32 %v14832_v31, %v7408_v54  ;;  %v7480_v63 = vmul.f32 %v14832_v31, %v7409_v51 }
 0x60c   : > { %v7741_v10 = vadd.f32 %v8689_v56, %v7549_v24  ;;  %v7550_v42 = vadd.f32 %v14846_v46, %v7479_v28  ;;  %v7551_v23 = vadd.f32 %v14846_v46, %v7480_v63 }
 0x60e   : > { %v7805_v15 = vmax.f32 %v7741_v10, 0.0  ;;  %v7742_v29 = vadd.f32 %v8692_v58, %v7550_v42  ;;  %v7743_v21 = vadd.f32 %v8693_v57, %v7551_v23 }
 0x610   : > { %7869 = vst [vmem:[%s14396_s8 + $0x1e8] sm:$0xff] %v7805_v15  ;;  %v7806_v12 = vmax.f32 %v7742_v29, 0.0  ;;  %v7807_v27 = vmax.f32 %v7743_v21, 0.0 }
 0x612   : > { %7870 = vst [vmem:[%s14396_s8 + $0x1f0] sm:$0xff] %v7806_v12  ;;  %7871 = vst [vmem:[%s14396_s8 + $0x1f8] sm:$0xff] %v7807_v27 }
 0x613 PF: > { %s17_s24 = sadd.s32 1, %s10632_s24  }
 0x614   : > { %p14_p4 = scmp.ge.s32.totalorder %s17_s24, 4  }
 0x616   :  { %16 = sbr.rel (!%p14_p4) target bundleno = 1 (0x1), region = 87 }

</bundles_post_ra>
